<compile_context>
chip_gen: v6e
topology: v6e:2x2x1
jax: 0.10.0
libtpu: 0.0.40
codegen_flags: <defaults>
</compile_context>

<pallas_src>
import functools

import jax
import jax.numpy as jnp
from jax.experimental import pallas as pl
from jax.experimental.pallas import tpu as pltpu

C_IN = 512
HIDDEN = 512
C_OUT = 1


def _linear_model_kernel(x_ref, w1_ref, b1_ref, w2r_ref, b2_ref, o_ref, acc_ref,
                         *, total_hw, hw_tile, needs_mask):
    # x_ref  : (b_tile, 512, hw_tile)  channels on sublanes, spatial on lanes
    # w1_ref : (512, 512)   b1_ref : (1, 512)   w2r_ref : (1, 512)
    # b2_ref : (1, 1) in SMEM          o_ref : (b_tile, 1)
    # acc_ref: (b_tile, 512) f32 spatial-sum accumulator (persists over hw axis)
    hw = pl.program_id(1)
    n_hw = pl.num_programs(1)

    @pl.when(hw == 0)
    def _init():
        acc_ref[...] = jnp.zeros_like(acc_ref)

    def _accumulate(mask_tail):
        # Widen (possibly bf16) tile to f32 after the load.
        x = x_ref[...].astype(jnp.float32)                    # (b_tile, 512, hw_tile)
        if mask_tail:
            # Lane iota broadcast in the compare (cheap); only on the last step.
            lane = jax.lax.broadcasted_iota(jnp.int32, (1, 1, hw_tile), 2)
            x = jnp.where(hw * hw_tile + lane < total_hw, x, 0.0)
        # Partial spatial sum: lane-axis (XLU) reduction, f32 accumulation.
        acc_ref[...] += jnp.sum(x, axis=-1)                    # (b_tile, 512)

    if needs_mask:
        @pl.when(hw < n_hw - 1)
        def _steady():
            _accumulate(False)

        @pl.when(hw == n_hw - 1)
        def _tail():
            _accumulate(True)
    else:
        _accumulate(False)

    @pl.when(hw == n_hw - 1)
    def _epilogue():
        # AdaptiveAvgPool2d((1,1)) == accumulated sum / (H*W).
        pooled = acc_ref[...] * (1.0 / total_hw)               # (b_tile, 512)

        # fc1 + ReLU (MXU matmul, f32 accumulation).
        h = jnp.dot(pooled, w1_ref[...],
                    preferred_element_type=jnp.float32) + b1_ref[...]
        h = jnp.maximum(h, 0.0)                                # (b_tile, 512)

        # fc2 (512 -> 1) as VPU multiply + lane reduction (skip N=1 MXU matmul).
        logits = jnp.sum(h * w2r_ref[...], axis=-1, keepdims=True) + b2_ref[0, 0]
        o_ref[...] = jax.nn.sigmoid(logits).astype(o_ref.dtype)


def _vmem_capacity_bytes():
    try:
        info = pltpu.get_tpu_info()
        cap = int(getattr(info, "vmem_capacity_bytes", 0) or 0)
        if cap > 0:
            return cap
    except Exception:
        pass
    return 64 * 1024 * 1024   # conservative fallback (v7x physical VMEM)


def _floor_multiple(x, m):
    return max(m, (x // m) * m)


def linear_model_forward(x_nchw, w1, b1, w2, b2, *, b_tile=8, hw_tile=None):
    """x_nchw: (B, 512, H, W) in f32 or bf16 (bf16 recommended: halves HBM bytes).
    w1: (512,512) in->out, b1: (512,), w2: (512,1), b2: (1,).
    Returns (B, 1) sigmoid outputs (float32)."""
    B, C, H, W = x_nchw.shape
    assert C == C_IN, f"model requires C={C_IN}, got {C}"
    HW = H * W

    # NCHW -> (B, C, H*W): collapses contiguous dims, no HBM transpose/copy.
    x = x_nchw.reshape(B, C, HW)
    itemsize = jnp.dtype(x.dtype).itemsize

    # --- batch tiling (v7x megacore: keep >=2 batch tiles whenever B allows) ---
    b_tile = max(1, min(b_tile, B))
    if B > 8 and pl.cdiv(B, b_tile) < 2:
        b_tile = _floor_multiple((B + 1) // 2, 8)

    # --- per-generation VMEM budget -> spatial tile ---
    vmem_cap = _vmem_capacity_bytes()                      # v5e/v6e 128MiB, v7x 64MiB
    vmem_limit = min((vmem_cap * 7) // 8, 96 * 1024 * 1024)
    # x is double-buffered; weights (~2 MiB), scratch and output need headroom,
    # so cap a single x buffer at ~1/3 of the scoped limit.
    x_buf_budget = max(2 * 1024 * 1024, vmem_limit // 3)
    max_hw_tile = _floor_multiple(x_buf_budget // (b_tile * C_IN * itemsize), 128)

    if hw_tile is not None:
        hw_tile = HW if hw_tile >= HW else _floor_multiple(hw_tile, 128)
    elif HW <= max_hw_tile:
        hw_tile = HW                          # full-HW block: one long contiguous DMA
    else:
        # Prefer a multiple-of-128 divisor of HW (no tail mask, no partial tile).
        hw_tile = 0
        for cand in range(max_hw_tile, 127, -128):
            if HW % cand == 0:
                hw_tile = cand
                break
        if hw_tile == 0:
            hw_tile = max_hw_tile
    needs_mask = (HW % hw_tile) != 0

    n_b = pl.cdiv(B, b_tile)
    n_hw = pl.cdiv(HW, hw_tile)

    # Weights: (in_features, out_features); fc2 weights as a (1, 512) row.
    w1_io = w1.astype(jnp.float32)                         # (512, 512)
    b1_r = b1.reshape(1, HIDDEN).astype(jnp.float32)       # (1, 512)
    w2_row = w2.reshape(1, HIDDEN).astype(jnp.float32)     # (512,1) -> (1,512)
    b2_s = b2.reshape(1, 1).astype(jnp.float32)            # (1, 1) scalar (SMEM)

    kernel = functools.partial(
        _linear_model_kernel,
        total_hw=HW, hw_tile=hw_tile, needs_mask=needs_mask)

    cost = pl.CostEstimate(
        flops=int(B * HW * C_IN                     # pooling adds
                  + 2 * B * C_IN * HIDDEN           # fc1
                  + 2 * B * HIDDEN * C_OUT),        # fc2
        transcendentals=int(B),                     # sigmoid
        bytes_accessed=int(B * C_IN * HW * itemsize # x dominates (mem-bound)
                           + (w1_io.size + b1_r.size + w2_row.size + b2_s.size
                              + B * C_OUT) * 4),
    )

    grid_spec = pltpu.PrefetchScalarGridSpec(
        num_scalar_prefetch=0,
        grid=(n_b, n_hw),
        in_specs=[
            # x: streamed / double-buffered over (batch, spatial) tiles.
            pl.BlockSpec((b_tile, C_IN, hw_tile), lambda b, k: (b, 0, k)),
            # Weights/biases: constant block index -> loaded once, VMEM-resident.
            pl.BlockSpec((C_IN, HIDDEN), lambda b, k: (0, 0)),   # w1
            pl.BlockSpec((1, HIDDEN), lambda b, k: (0, 0)),      # b1
            pl.BlockSpec((1, HIDDEN), lambda b, k: (0, 0)),      # w2 row
            # b2 scalar via SMEM (avoids a padded VMEM tile).
            pl.BlockSpec(memory_space=pltpu.MemorySpace.SMEM),   # b2
        ],
        out_specs=pl.BlockSpec((b_tile, C_OUT), lambda b, k: (b, 0)),
        scratch_shapes=[pltpu.VMEM((b_tile, C_IN), jnp.float32)],
    )

    out = pl.pallas_call(
        kernel,
        out_shape=jax.ShapeDtypeStruct((B, C_OUT), jnp.float32),
        grid_spec=grid_spec,
        compiler_params=pltpu.CompilerParams(
            # batch tiles independent (megacore on v7x); spatial axis is a
            # reduction revisiting the same output block -> "arbitrary".
            dimension_semantics=("parallel", "arbitrary"),
            vmem_limit_bytes=int(vmem_limit),
        ),
        cost_estimate=cost,
    )(x, w1_io, b1_r, w2_row, b2_s)
    return out


def init_params(key):
    """Deterministic init mimicking nn.Linear default (uniform +-1/sqrt(fan_in))."""
    k1, k2, k3, k4 = jax.random.split(key, 4)
    bound1 = 1.0 / jnp.sqrt(jnp.float32(C_IN))
    bound2 = 1.0 / jnp.sqrt(jnp.float32(HIDDEN))
    w1 = jax.random.uniform(k1, (C_IN, HIDDEN), jnp.float32, -bound1, bound1)
    b1 = jax.random.uniform(k2, (HIDDEN,), jnp.float32, -bound1, bound1)
    w2 = jax.random.uniform(k3, (HIDDEN, C_OUT), jnp.float32, -bound2, bound2)
    b2 = jax.random.uniform(k4, (C_OUT,), jnp.float32, -bound2, bound2)
    return w1, b1, w2, b2


if __name__ == "__main__":
    key = jax.random.PRNGKey(0)
    kx, kp = jax.random.split(key)

    # Small shapes that still exercise the grid: channel dim fixed at 512 by fc1.
    # bf16 input (halves HBM traffic); weights/accumulation stay f32 in-kernel.
    B, H, W = 16, 12, 12
    x = jax.random.normal(kx, (B, C_IN, H, W), jnp.float32).astype(jnp.bfloat16)
    w1, b1, w2, b2 = init_params(kp)

    # Pure-JAX reference on the exact bf16 values the kernel sees (widened to f32).
    xf = x.astype(jnp.float32)
    pooled_ref = jnp.mean(xf, axis=(2, 3))                       # (B, 512)
    h_ref = jnp.maximum(pooled_ref @ w1 + b1, 0.0)
    ref = jax.nn.sigmoid(h_ref @ w2 + b2)                        # (B, 1)

    # 1) Auto config: HW=144 fits VMEM -> single full-HW block per batch tile,
    #    2 batch tiles (exercises the "parallel" batch axis).
    out = linear_model_forward(x, w1, b1, w2, b2)
    out = jax.block_until_ready(out)
    assert out.shape == (B, 1)
    assert jnp.allclose(out, ref, atol=2e-5, rtol=2e-5), "mismatch (full-HW path)"

    # 2) Forced small spatial tile: multi-step pooling accumulation, last-step
    #    tail mask (144 % 128 != 0), and a partial batch tile (10 % 8 != 0).
    out2 = linear_model_forward(x[:10], w1, b1, w2, b2, b_tile=8, hw_tile=128)
    out2 = jax.block_until_ready(out2)
    assert out2.shape == (10, 1)
    assert jnp.allclose(out2, ref[:10], atol=2e-5, rtol=2e-5), "mismatch (tiled path)"

    print("KERNEL_OK")
</pallas_src>

<mosaic_0001>
module attributes {stable_mosaic.version = 11 : i64} {
  func.func @_linear_model_kernel(%arg0: i32, %arg1: i32, %arg2: memref<8x512x144xbf16, #tpu.memory_space<vmem>>, %arg3: memref<512x512xf32, #tpu.memory_space<vmem>>, %arg4: memref<1x512xf32, #tpu.memory_space<vmem>>, %arg5: memref<1x512xf32, #tpu.memory_space<vmem>>, %arg6: memref<1x1xf32, #tpu.memory_space<smem>>, %arg7: memref<8x1xf32, #tpu.memory_space<vmem>>, %arg8: memref<8x512xf32, #tpu.memory_space<vmem>>) attributes {dimension_semantics = [#tpu.dimension_semantics<parallel>, #tpu.dimension_semantics<arbitrary>], iteration_bounds = array<i64: 2, 1>, scalar_prefetch = 0 : i64, scratch_operands = 1 : i64, tpu.core_type = #tpu.core_type<tc>, window_params = [{transform_indices = @transform_0, window_bounds = array<i64: 8, 512, 144>}, {pipeline_mode = #tpu.pipeline_mode<synchronous>, transform_indices = @transform_1, window_bounds = array<i64: 512, 512>}, {pipeline_mode = #tpu.pipeline_mode<synchronous>, transform_indices = @transform_2, window_bounds = array<i64: 1, 512>}, {pipeline_mode = #tpu.pipeline_mode<synchronous>, transform_indices = @transform_3, window_bounds = array<i64: 1, 512>}, {transform_indices = @transform_4, window_bounds = array<i64: 1, 1>}, {transform_indices = @transform_5, window_bounds = array<i64: 8, 1>}]} {
    %c0_i32 = arith.constant 0 : i32
    %0 = arith.cmpi eq, %arg1, %c0_i32 : i32
    %1 = arith.extui %0 : i1 to i32
    %c0_i32_0 = arith.constant 0 : i32
    %2 = arith.cmpi ne, %1, %c0_i32_0 : i32
    scf.if %2 {
      %cst_9 = arith.constant 0.000000e+00 : f32
      %12 = vector.broadcast %cst_9 : f32 to vector<8x512xf32>
      %c0_10 = arith.constant 0 : index
      %c0_11 = arith.constant 0 : index
      %13 = vector.load %arg8[%c0_10, %c0_11] : memref<8x512xf32, #tpu.memory_space<vmem>>, vector<8x512xf32>
      tpu.vector_store %arg8[%c0_10, %c0_11], %12 {strides = array<i32>} : memref<8x512xf32, #tpu.memory_space<vmem>>, vector<8x512xf32>,
    } else {
    }
    %c0 = arith.constant 0 : index
    %c0_1 = arith.constant 0 : index
    %c0_2 = arith.constant 0 : index
    %3 = vector.load %arg2[%c0, %c0_1, %c0_2] : memref<8x512x144xbf16, #tpu.memory_space<vmem>>, vector<8x512x144xbf16>
    %4 = arith.extf %3 : vector<8x512x144xbf16> to vector<8x512x144xf32>
    %c0_3 = arith.constant 0 : index
    %c0_4 = arith.constant 0 : index
    %5 = vector.load %arg8[%c0_3, %c0_4] : memref<8x512xf32, #tpu.memory_space<vmem>>, vector<8x512xf32>
    %cst = arith.constant dense<0.000000e+00> : vector<8x512xf32>
    %6 = vector.multi_reduction <add>, %4, %cst [2] : vector<8x512x144xf32> to vector<8x512xf32>
    %7 = arith.addf %5, %6 : vector<8x512xf32>
    %c0_5 = arith.constant 0 : index
    %c0_6 = arith.constant 0 : index
    %8 = vector.load %arg8[%c0_5, %c0_6] : memref<8x512xf32, #tpu.memory_space<vmem>>, vector<8x512xf32>
    tpu.vector_store %arg8[%c0_5, %c0_6], %7 {strides = array<i32>} : memref<8x512xf32, #tpu.memory_space<vmem>>, vector<8x512xf32>,
    %c0_i32_7 = arith.constant 0 : i32
    %9 = arith.cmpi eq, %arg1, %c0_i32_7 : i32
    %10 = arith.extui %9 : i1 to i32
    %c0_i32_8 = arith.constant 0 : i32
    %11 = arith.cmpi ne, %10, %c0_i32_8 : i32
    scf.if %11 {
      %c0_9 = arith.constant 0 : index
      %c0_10 = arith.constant 0 : index
      %12 = vector.load %arg8[%c0_9, %c0_10] : memref<8x512xf32, #tpu.memory_space<vmem>>, vector<8x512xf32>
      %cst_11 = arith.constant 0.0069444445 : f32
      %13 = vector.broadcast %cst_11 : f32 to vector<8x512xf32>
      %14 = arith.mulf %12, %13 : vector<8x512xf32>
      %c0_12 = arith.constant 0 : index
      %c0_13 = arith.constant 0 : index
      %15 = vector.load %arg3[%c0_12, %c0_13] : memref<512x512xf32, #tpu.memory_space<vmem>>, vector<512x512xf32>
      %cst_14 = arith.constant dense<0.000000e+00> : vector<8x512xf32>
      %16 = tpu.matmul %14, %15, %cst_14 {dimension_numbers = #tpu.dot_dimension_numbers<[1], [0], [0], [1], [0, 0, 1, 1], [], []>} : vector<8x512xf32>, vector<512x512xf32>, vector<8x512xf32> -> vector<8x512xf32>
      %c0_15 = arith.constant 0 : index
      %c0_16 = arith.constant 0 : index
      %17 = vector.load %arg4[%c0_15, %c0_16] : memref<1x512xf32, #tpu.memory_space<vmem>>, vector<1x512xf32>
      %18 = vector.broadcast %17 : vector<1x512xf32> to vector<8x512xf32>
      %19 = arith.addf %16, %18 : vector<8x512xf32>
      %cst_17 = arith.constant 0.000000e+00 : f32
      %20 = vector.broadcast %cst_17 : f32 to vector<8x512xf32>
      %21 = arith.maximumf %19, %20 : vector<8x512xf32>
      %c0_18 = arith.constant 0 : index
      %c0_19 = arith.constant 0 : index
      %22 = vector.load %arg5[%c0_18, %c0_19] : memref<1x512xf32, #tpu.memory_space<vmem>>, vector<1x512xf32>
      %23 = vector.broadcast %22 : vector<1x512xf32> to vector<8x512xf32>
      %24 = arith.mulf %21, %23 : vector<8x512xf32>
      %cst_20 = arith.constant dense<0.000000e+00> : vector<8xf32>
      %25 = vector.multi_reduction <add>, %24, %cst_20 [1] : vector<8x512xf32> to vector<8xf32>
      %26 = vector.shape_cast %25 : vector<8xf32> to vector<8x1xf32>
      %c0_21 = arith.constant 0 : index
      %c0_22 = arith.constant 0 : index
      %27 = memref.load %arg6[%c0_21, %c0_22] : memref<1x1xf32, #tpu.memory_space<smem>>
      %28 = vector.broadcast %27 : f32 to vector<8x1xf32>
      %29 = arith.addf %26, %28 : vector<8x1xf32>
      %30 = arith.negf %29 : vector<8x1xf32>
      %31 = math.exp %30 : vector<8x1xf32>
      %cst_23 = arith.constant 1.000000e+00 : f32
      %32 = vector.broadcast %cst_23 : f32 to vector<8x1xf32>
      %33 = arith.addf %32, %31 : vector<8x1xf32>
      %34 = arith.divf %32, %33 : vector<8x1xf32>
      %c0_24 = arith.constant 0 : index
      %c0_25 = arith.constant 0 : index
      %35 = vector.load %arg7[%c0_24, %c0_25] : memref<8x1xf32, #tpu.memory_space<vmem>>, vector<8x1xf32>
      tpu.vector_store %arg7[%c0_24, %c0_25], %34 {strides = array<i32>} : memref<8x1xf32, #tpu.memory_space<vmem>>, vector<8x1xf32>,
    } else {
    }
    return
  }
  func.func @transform_0(%arg0: i32, %arg1: i32) -> (i32, i32, i32) {
    %c0_i32 = arith.constant 0 : i32
    %c0_i32_0 = arith.constant 0 : i32
    return %arg0, %c0_i32, %arg1 : i32, i32, i32
  }
  func.func @transform_1(%arg0: i32, %arg1: i32) -> (i32, i32) {
    %c0_i32 = arith.constant 0 : i32
    %c0_i32_0 = arith.constant 0 : i32
    %c0_i32_1 = arith.constant 0 : i32
    return %c0_i32, %c0_i32_0 : i32, i32
  }
  func.func @transform_2(%arg0: i32, %arg1: i32) -> (i32, i32) {
    %c0_i32 = arith.constant 0 : i32
    %c0_i32_0 = arith.constant 0 : i32
    %c0_i32_1 = arith.constant 0 : i32
    return %c0_i32, %c0_i32_0 : i32, i32
  }
  func.func @transform_3(%arg0: i32, %arg1: i32) -> (i32, i32) {
    %c0_i32 = arith.constant 0 : i32
    %c0_i32_0 = arith.constant 0 : i32
    %c0_i32_1 = arith.constant 0 : i32
    return %c0_i32, %c0_i32_0 : i32, i32
  }
  func.func @transform_4(%arg0: i32, %arg1: i32) -> (i32, i32) {
    %c0_i32 = arith.constant 0 : i32
    %c0_i32_0 = arith.constant 0 : i32
    %c0_i32_1 = arith.constant 0 : i32
    return %c0_i32, %c0_i32_0 : i32, i32
  }
  func.func @transform_5(%arg0: i32, %arg1: i32) -> (i32, i32) {
    %c0_i32 = arith.constant 0 : i32
    %c0_i32_0 = arith.constant 0 : i32
    return %arg0, %c0_i32 : i32, i32
  }
}

</mosaic_0001>

<bundles_post_ra>
// kernel: tpu_custom_call.1
= control target key start
LH: loop header
LB: loop body
LE: loop exit
PB: predicated region body
PF: predicated region fallthrough
CT: control target
= control target key end

     0   :  { %s7757_s20 = smov 0   ;;  %s7759_s21 = smov 0   ;;  %s11342_s0 = inlined_call_operand.vmem [shape: bf16[16,512,144], index: 0, kind: input, shape index: {}]   ;;  %s11343_s1 = inlined_call_operand.vmem [shape: f32[512,512], index: 1, kind: input, shape index: {}]   ;;  %s11344_s2 = inlined_call_operand.vmem [shape: f32[1,512], index: 2, kind: input, shape index: {}]   ;;  %s11345_s3 = inlined_call_operand.vmem [shape: f32[1,512], index: 3, kind: input, shape index: {}]   ;;  %s11346_s4 = inlined_call_operand.<no memory space> [shape: f32[1,1], index: 4, kind: input, shape index: {}]   ;;  %s11347_s5 = inlined_call_operand.vmem [shape: f32[16,1], index: 5, kind: output, shape index: {}]  }
   0x1   :  { %10 = sst [smem:[#allocation3]] %s11346_s4  ;;  %s7761_s22 = smov 0  }
   0x2 LB: > { %s28_s4 = sadd.s32 1, %s7718_s21  ;;  %p7663_p0 = scmp.ge.s32.totalorder %s7722_s22, 1  ;;  %s7722_s22 = sphi %s7761_s22, %s16_s22   ;;  %s7718_s21 = sphi %s7759_s21, %s11397_s21   ;;  %s7714_s20 = sphi %s7757_s20, %s11396_s20  }
   0x3   : > { %p30_p1 = scmp.ge.s32.totalorder %s28_s4, 2  ;;  %p209_p2 = scmp.lt.s32.totalorder %s7722_s22, 3 }
   0x5   : > { %s11399_s4 = smov (%p30_p1, %s28_s4), 0  ;;  %p210_p3 = pnand %p7663_p0, %p209_p2 }
   0x6   : > { %s7664_s23 = sshll.u32 (!%p210_p3), %s7714_s20, 3  ;;  %s7581_s18 = sld [smem:[#allocation3]] (!%p210_p3) }
   0x7   : > { %213 = sbr.rel (%p210_p3) target bundleno = 1627 (0x65b), region = 40  ;;  %p243_p4 = scmp.lt.s32.totalorder (!%p210_p3), %s7664_s23, 15 }
   0x8   : > { %p253_p5 = scmp.lt.s32.totalorder (!%p210_p3), %s7714_s20, 1 }
   0xc   : > { %s11401_s23 = smov (!%p243_p4, %s7664_s23), 15  ;;  %vm1805_vm0 = vcmask 130048   ;;  %vm4377_vm1 = vcmask 130112   ;;  %vm4384_vm2 = vcmask 195712   ;;  %vm4391_vm3 = vcmask 261312   ;;  %s11403_s20 = smov (!%p253_p5, %s7714_s20), 1 }
   0xd   : > { %s7671_s24 = sshll.u32 %s11401_s23, 9  ;;  %vm4398_vm4 = vcmask 326912   ;;  %vm4405_vm5 = vcmask 392512   ;;  %vm4412_vm6 = vcmask 458112   ;;  %vm4419_vm7 = vcmask 523712   ;;  %s7667_s19 = sshll.u32 %s11403_s20, 3 }
   0xe   : > { %s7781_s27 = scalar_lea.vmem %s11342_s0, %s7671_s24  ;;  %vm4426_vm8 = vcmask 589312   ;;  %vm11349_vm9 = vcmask 654912   ;;  %vm4440_vm10 = vcmask 720512   ;;  %vm11348_vm11 = vcmask 786112   ;;  %s256_s25 = scalar_lea.vmem %s11347_s5, %s7667_s19 }
   0xf   : > { %v267_v0 = vld [vmem:[%s7781_s27 + $0x10] sm:$0xff]  ;;  %v265_v1 = vld [vmem:[%s7781_s27] sm:$0xff]  ;;  %v268_v2 = vld [vmem:[%s7781_s27 + $0x18] sm:$0xff]  ;;  %vm4454_vm12 = vcmask 851712   ;;  %vm4461_vm13 = vcmask 917312   ;;  %vm4468_vm14 = vcmask 982912  }
  0x10   : > { %v781_v3 = vunpack.c.l.bf16 %v267_v0  ;;  %v782_v4 = vunpack.c.h.bf16 %v267_v0  ;;  %v777_v5 = vunpack.c.l.bf16 %v265_v1  ;;  %v778_v6 = vunpack.c.h.bf16 %v265_v1  ;;  %v266_v7 = vld [vmem:[%s7781_s27 + $0x8] sm:$0xff]  ;;  %v269_v16 = vld [vmem:[%s7781_s27 + $0x20] sm:$0xff]  ;;  %v272_v21 = vld [vmem:[%s7781_s27 + $0x38] sm:$0xff] }
  0x11   : > { %v270_v8 = vld [vmem:[%s7781_s27 + $0x28] sm:$0xff]  ;;  %v783_v9 = vunpack.c.l.bf16 %v268_v2  ;;  %v784_v10 = vunpack.c.h.bf16 %v268_v2  ;;  %v779_v11 = vunpack.c.l.bf16 %v266_v7  ;;  %v780_v12 = vunpack.c.h.bf16 %v266_v7  ;;  %v271_v22 = vld [vmem:[%s7781_s27 + $0x30] sm:$0xff]  ;;  %v273_v33 = vld [vmem:[%s7781_s27 + $0x40] sm:$0xff] }
  0x12   : > { %v1814_v13 = vsel %vm1805_vm0, %v782_v4, 0.0  ;;  %v1806_v14 = vsel %vm1805_vm0, %v778_v6, 0.0  ;;  %v788_v15 = vunpack.c.h.bf16 %v270_v8  ;;  %v787_v23 = vunpack.c.l.bf16 %v270_v8  ;;  %v274_v32 = vld [vmem:[%s7781_s27 + $0x48] sm:$0xff]  ;;  %v276_v42 = vld [vmem:[%s7781_s27 + $0x58] sm:$0xff]  ;;  %v275_v43 = vld [vmem:[%s7781_s27 + $0x50] sm:$0xff] }
  0x13   : > { %v1815_v17 = vadd.f32 %v1814_v13, %v781_v3  ;;  %v1807_v18 = vadd.f32 %v1806_v14, %v777_v5  ;;  %v1818_v19 = vsel %vm1805_vm0, %v784_v10, 0.0  ;;  %v1810_v20 = vsel %vm1805_vm0, %v780_v12, 0.0  ;;  %v278_v52 = vld [vmem:[%s7781_s27 + $0x68] sm:$0xff]  ;;  %v277_v53 = vld [vmem:[%s7781_s27 + $0x60] sm:$0xff]  ;;  %v280_v62 = vld [vmem:[%s7781_s27 + $0x78] sm:$0xff] }
  0x14   : > { %v1819_v24 = vadd.f32 %v1818_v19, %v783_v9  ;;  %v1811_v25 = vadd.f32 %v1810_v20, %v779_v11  ;;  %v785_v26 = vunpack.c.l.bf16 %v269_v16  ;;  %v786_v27 = vunpack.c.h.bf16 %v269_v16  ;;  %v279_v63 = vld [vmem:[%s7781_s27 + $0x70] sm:$0xff]  ;;  %v282_v8 = vld [vmem:[%s7781_s27 + $0x88] sm:$0xff]  ;;  %v281_v9 = vld [vmem:[%s7781_s27 + $0x80] sm:$0xff] }
  0x15   : > { %1816 = vadd.xlane.f32.xlu1 %v1815_v17  ;;  %1808 = vadd.xlane.f32.xlu0 %v1807_v18  ;;  %v1826_v28 = vsel %vm1805_vm0, %v788_v15, 0.0  ;;  %v792_v29 = vunpack.c.h.bf16 %v272_v21  ;;  %v790_v30 = vunpack.c.h.bf16 %v271_v22  ;;  %v791_v36 = vunpack.c.l.bf16 %v272_v21  ;;  %v284_v18 = vld [vmem:[%s7781_s27 + $0x98] sm:$0xff]  ;;  %v283_v19 = vld [vmem:[%s7781_s27 + $0x90] sm:$0xff] }
  0x16   : > { %v1822_v31 = vsel %vm1805_vm0, %v786_v27, 0.0  ;;  %v1827_v34 = vadd.f32 %v1826_v28, %v787_v23  ;;  %v789_v37 = vunpack.c.l.bf16 %v271_v22  ;;  %v796_v40 = vunpack.c.h.bf16 %v274_v32  ;;  %v286_v28 = vld [vmem:[%s7781_s27 + $0xa8] sm:$0xff] }
  0x17   : > { %v1823_v35 = vadd.f32 %v1822_v31, %v785_v26  ;;  %v1834_v38 = vsel %vm1805_vm0, %v792_v29, 0.0  ;;  %v1830_v39 = vsel %vm1805_vm0, %v790_v30, 0.0  ;;  %v794_v41 = vunpack.c.h.bf16 %v273_v33  ;;  %v285_v29 = vld [vmem:[%s7781_s27 + $0xa0] sm:$0xff] }
  0x18   : > { %v1835_v44 = vadd.f32 %v1834_v38, %v791_v36  ;;  %v1831_v45 = vadd.f32 %v1830_v39, %v789_v37  ;;  %v795_v46 = vunpack.c.l.bf16 %v274_v32  ;;  %v793_v47 = vunpack.c.l.bf16 %v273_v33  ;;  %v288_v38 = vld [vmem:[%s7781_s27 + $0xb8] sm:$0xff]  ;;  %v287_v39 = vld [vmem:[%s7781_s27 + $0xb0] sm:$0xff] }
  0x19   : > { %1820 = vadd.xlane.f32.xlu1 %v1819_v24  ;;  %1812 = vadd.xlane.f32.xlu0 %v1811_v25  ;;  %v1842_v48 = vsel %vm1805_vm0, %v796_v40, 0.0  ;;  %v1838_v49 = vsel %vm1805_vm0, %v794_v41, 0.0  ;;  %v800_v50 = vunpack.c.h.bf16 %v276_v42  ;;  %v798_v51 = vunpack.c.h.bf16 %v275_v43 }
  0x1a   : > { %v1843_v54 = vadd.f32 %v1842_v48, %v795_v46  ;;  %v1839_v55 = vadd.f32 %v1838_v49, %v793_v47  ;;  %v799_v56 = vunpack.c.l.bf16 %v276_v42  ;;  %v797_v57 = vunpack.c.l.bf16 %v275_v43  ;;  %v290_v48 = vld [vmem:[%s7781_s27 + $0xc8] sm:$0xff]  ;;  %v289_v49 = vld [vmem:[%s7781_s27 + $0xc0] sm:$0xff] }
  0x1b   : > { %v1850_v58 = vsel %vm1805_vm0, %v800_v50, 0.0  ;;  %v1846_v59 = vsel %vm1805_vm0, %v798_v51, 0.0  ;;  %v804_v60 = vunpack.c.h.bf16 %v278_v52  ;;  %v802_v61 = vunpack.c.h.bf16 %v277_v53 }
  0x1c   : > { %v1851_v0 = vadd.f32 %v1850_v58, %v799_v56  ;;  %v1847_v1 = vadd.f32 %v1846_v59, %v797_v57  ;;  %v803_v2 = vunpack.c.l.bf16 %v278_v52  ;;  %v801_v3 = vunpack.c.l.bf16 %v277_v53  ;;  %v292_v58 = vld [vmem:[%s7781_s27 + $0xd8] sm:$0xff]  ;;  %v291_v59 = vld [vmem:[%s7781_s27 + $0xd0] sm:$0xff] }
  0x1d   : > { %1828 = vadd.xlane.f32.xlu1 %v1827_v34  ;;  %1824 = vadd.xlane.f32.xlu0 %v1823_v35  ;;  %v1858_v4 = vsel %vm1805_vm0, %v804_v60, 0.0  ;;  %v1854_v5 = vsel %vm1805_vm0, %v802_v61, 0.0  ;;  %v808_v6 = vunpack.c.h.bf16 %v280_v62  ;;  %v806_v7 = vunpack.c.h.bf16 %v279_v63 }
  0x1e   : > { %v1859_v10 = vadd.f32 %v1858_v4, %v803_v2  ;;  %v1855_v11 = vadd.f32 %v1854_v5, %v801_v3  ;;  %v807_v12 = vunpack.c.l.bf16 %v280_v62  ;;  %v805_v13 = vunpack.c.l.bf16 %v279_v63  ;;  %v294_v4 = vld [vmem:[%s7781_s27 + $0xe8] sm:$0xff]  ;;  %v293_v5 = vld [vmem:[%s7781_s27 + $0xe0] sm:$0xff] }
  0x1f   : > { %v1866_v14 = vsel %vm1805_vm0, %v808_v6, 0.0  ;;  %v1862_v15 = vsel %vm1805_vm0, %v806_v7, 0.0  ;;  %v812_v16 = vunpack.c.h.bf16 %v282_v8  ;;  %v810_v17 = vunpack.c.h.bf16 %v281_v9 }
  0x20   : > { %v1867_v20 = vadd.f32 %v1866_v14, %v807_v12  ;;  %v1863_v21 = vadd.f32 %v1862_v15, %v805_v13  ;;  %v811_v22 = vunpack.c.l.bf16 %v282_v8  ;;  %v809_v23 = vunpack.c.l.bf16 %v281_v9  ;;  %v296_v14 = vld [vmem:[%s7781_s27 + $0xf8] sm:$0xff]  ;;  %v295_v15 = vld [vmem:[%s7781_s27 + $0xf0] sm:$0xff] }
  0x21   : > { %1836 = vadd.xlane.f32.xlu1 %v1835_v44  ;;  %1832 = vadd.xlane.f32.xlu0 %v1831_v45  ;;  %v1874_v24 = vsel %vm1805_vm0, %v812_v16, 0.0  ;;  %v1870_v25 = vsel %vm1805_vm0, %v810_v17, 0.0  ;;  %v816_v26 = vunpack.c.h.bf16 %v284_v18  ;;  %v814_v27 = vunpack.c.h.bf16 %v283_v19 }
  0x22   : > { %v1875_v30 = vadd.f32 %v1874_v24, %v811_v22  ;;  %v1871_v31 = vadd.f32 %v1870_v25, %v809_v23  ;;  %v815_v32 = vunpack.c.l.bf16 %v284_v18  ;;  %v813_v33 = vunpack.c.l.bf16 %v283_v19  ;;  %v298_v24 = vld [vmem:[%s7781_s27 + $0x108] sm:$0xff]  ;;  %v297_v25 = vld [vmem:[%s7781_s27 + $0x100] sm:$0xff] }
  0x23   : > { %v1882_v34 = vsel %vm1805_vm0, %v816_v26, 0.0  ;;  %v1878_v35 = vsel %vm1805_vm0, %v814_v27, 0.0  ;;  %v820_v36 = vunpack.c.h.bf16 %v286_v28  ;;  %v818_v37 = vunpack.c.h.bf16 %v285_v29 }
  0x24   : > { %v1883_v40 = vadd.f32 %v1882_v34, %v815_v32  ;;  %v1879_v41 = vadd.f32 %v1878_v35, %v813_v33  ;;  %v819_v42 = vunpack.c.l.bf16 %v286_v28  ;;  %v817_v43 = vunpack.c.l.bf16 %v285_v29  ;;  %v300_v34 = vld [vmem:[%s7781_s27 + $0x118] sm:$0xff]  ;;  %v299_v35 = vld [vmem:[%s7781_s27 + $0x110] sm:$0xff] }
  0x25   : > { %1844 = vadd.xlane.f32.xlu1 %v1843_v54  ;;  %1840 = vadd.xlane.f32.xlu0 %v1839_v55  ;;  %v1890_v44 = vsel %vm1805_vm0, %v820_v36, 0.0  ;;  %v1886_v45 = vsel %vm1805_vm0, %v818_v37, 0.0  ;;  %v824_v46 = vunpack.c.h.bf16 %v288_v38  ;;  %v822_v47 = vunpack.c.h.bf16 %v287_v39 }
  0x26   : > { %v1891_v50 = vadd.f32 %v1890_v44, %v819_v42  ;;  %v1887_v51 = vadd.f32 %v1886_v45, %v817_v43  ;;  %v823_v52 = vunpack.c.l.bf16 %v288_v38  ;;  %v821_v53 = vunpack.c.l.bf16 %v287_v39  ;;  %v302_v44 = vld [vmem:[%s7781_s27 + $0x128] sm:$0xff]  ;;  %v301_v45 = vld [vmem:[%s7781_s27 + $0x120] sm:$0xff] }
  0x27   : > { %v1898_v54 = vsel %vm1805_vm0, %v824_v46, 0.0  ;;  %v1894_v55 = vsel %vm1805_vm0, %v822_v47, 0.0  ;;  %v828_v56 = vunpack.c.h.bf16 %v290_v48  ;;  %v826_v57 = vunpack.c.h.bf16 %v289_v49 }
  0x28   : > { %v1899_v60 = vadd.f32 %v1898_v54, %v823_v52  ;;  %v1895_v61 = vadd.f32 %v1894_v55, %v821_v53  ;;  %v827_v62 = vunpack.c.l.bf16 %v290_v48  ;;  %v825_v63 = vunpack.c.l.bf16 %v289_v49  ;;  %v304_v54 = vld [vmem:[%s7781_s27 + $0x138] sm:$0xff]  ;;  %v303_v55 = vld [vmem:[%s7781_s27 + $0x130] sm:$0xff] }
  0x29   : > { %1852 = vadd.xlane.f32.xlu1 %v1851_v0  ;;  %1848 = vadd.xlane.f32.xlu0 %v1847_v1  ;;  %v1906_v0 = vsel %vm1805_vm0, %v828_v56, 0.0  ;;  %v1902_v1 = vsel %vm1805_vm0, %v826_v57, 0.0  ;;  %v832_v2 = vunpack.c.h.bf16 %v292_v58  ;;  %v830_v3 = vunpack.c.h.bf16 %v291_v59 }
  0x2a   : > { %v1907_v6 = vadd.f32 %v1906_v0, %v827_v62  ;;  %v1903_v7 = vadd.f32 %v1902_v1, %v825_v63  ;;  %v831_v8 = vunpack.c.l.bf16 %v292_v58  ;;  %v829_v9 = vunpack.c.l.bf16 %v291_v59  ;;  %v306_v0 = vld [vmem:[%s7781_s27 + $0x148] sm:$0xff]  ;;  %v305_v1 = vld [vmem:[%s7781_s27 + $0x140] sm:$0xff] }
  0x2b   : > { %v836_v12 = vunpack.c.h.bf16 %v294_v4  ;;  %v834_v13 = vunpack.c.h.bf16 %v293_v5  ;;  %v835_v18 = vunpack.c.l.bf16 %v294_v4  ;;  %v833_v19 = vunpack.c.l.bf16 %v293_v5 }
  0x2c   : > { %v840_v22 = vunpack.c.h.bf16 %v296_v14  ;;  %v838_v23 = vunpack.c.h.bf16 %v295_v15  ;;  %v839_v28 = vunpack.c.l.bf16 %v296_v14  ;;  %v837_v29 = vunpack.c.l.bf16 %v295_v15 }
  0x2d   : > { %1860 = vadd.xlane.f32.xlu1 %v1859_v10  ;;  %1856 = vadd.xlane.f32.xlu0 %v1855_v11  ;;  %v1914_v10 = vsel %vm1805_vm0, %v832_v2, 0.0  ;;  %v1910_v11 = vsel %vm1805_vm0, %v830_v3, 0.0  ;;  %v844_v32 = vunpack.c.h.bf16 %v298_v24  ;;  %v842_v33 = vunpack.c.h.bf16 %v297_v25 }
  0x2e   : > { %v1915_v16 = vadd.f32 %v1914_v10, %v831_v8  ;;  %v1911_v17 = vadd.f32 %v1910_v11, %v829_v9  ;;  %v843_v38 = vunpack.c.l.bf16 %v298_v24  ;;  %v841_v39 = vunpack.c.l.bf16 %v297_v25  ;;  %v308_v10 = vld [vmem:[%s7781_s27 + $0x158] sm:$0xff]  ;;  %v307_v11 = vld [vmem:[%s7781_s27 + $0x150] sm:$0xff] }
  0x2f   : > { %v848_v42 = vunpack.c.h.bf16 %v300_v34  ;;  %v846_v43 = vunpack.c.h.bf16 %v299_v35  ;;  %v847_v48 = vunpack.c.l.bf16 %v300_v34  ;;  %v845_v49 = vunpack.c.l.bf16 %v299_v35 }
  0x30   : > { %v852_v52 = vunpack.c.h.bf16 %v302_v44  ;;  %v850_v53 = vunpack.c.h.bf16 %v301_v45  ;;  %v851_v58 = vunpack.c.l.bf16 %v302_v44  ;;  %v849_v59 = vunpack.c.l.bf16 %v301_v45 }
  0x31   : > { %1868 = vadd.xlane.f32.xlu1 %v1867_v20  ;;  %1864 = vadd.xlane.f32.xlu0 %v1863_v21  ;;  %v1922_v20 = vsel %vm1805_vm0, %v836_v12, 0.0  ;;  %v1918_v21 = vsel %vm1805_vm0, %v834_v13, 0.0  ;;  %v856_v62 = vunpack.c.h.bf16 %v304_v54  ;;  %v854_v63 = vunpack.c.h.bf16 %v303_v55 }
  0x32   : > { %v1923_v26 = vadd.f32 %v1922_v20, %v835_v18  ;;  %v1919_v27 = vadd.f32 %v1918_v21, %v833_v19  ;;  %v855_v4 = vunpack.c.l.bf16 %v304_v54  ;;  %v853_v5 = vunpack.c.l.bf16 %v303_v55  ;;  %v310_v20 = vld [vmem:[%s7781_s27 + $0x168] sm:$0xff]  ;;  %v309_v21 = vld [vmem:[%s7781_s27 + $0x160] sm:$0xff] }
  0x33   : > { %v860_v8 = vunpack.c.h.bf16 %v306_v0  ;;  %v858_v9 = vunpack.c.h.bf16 %v305_v1  ;;  %v859_v14 = vunpack.c.l.bf16 %v306_v0  ;;  %v857_v15 = vunpack.c.l.bf16 %v305_v1 }
  0x34   : > { %v864_v18 = vunpack.c.h.bf16 %v308_v10  ;;  %v862_v19 = vunpack.c.h.bf16 %v307_v11  ;;  %v863_v24 = vunpack.c.l.bf16 %v308_v10  ;;  %v861_v25 = vunpack.c.l.bf16 %v307_v11 }
  0x35   : > { %1876 = vadd.xlane.f32.xlu1 %v1875_v30  ;;  %1872 = vadd.xlane.f32.xlu0 %v1871_v31  ;;  %v1930_v30 = vsel %vm1805_vm0, %v840_v22, 0.0  ;;  %v1926_v31 = vsel %vm1805_vm0, %v838_v23, 0.0  ;;  %v867_v34 = vunpack.c.l.bf16 %v310_v20  ;;  %v865_v35 = vunpack.c.l.bf16 %v309_v21 }
  0x36   : > { %v1931_v36 = vadd.f32 %v1930_v30, %v839_v28  ;;  %v1927_v37 = vadd.f32 %v1926_v31, %v837_v29  ;;  %v868_v28 = vunpack.c.h.bf16 %v310_v20  ;;  %v866_v29 = vunpack.c.h.bf16 %v309_v21  ;;  %v312_v30 = vld [vmem:[%s7781_s27 + $0x178] sm:$0xff]  ;;  %v311_v31 = vld [vmem:[%s7781_s27 + $0x170] sm:$0xff] }
  0x37   : > { %v871_v44 = vunpack.c.l.bf16 %v312_v30  ;;  %v869_v45 = vunpack.c.l.bf16 %v311_v31  ;;  %vm4475_vm15 = vcmask 1048512  }
  0x39   : > { %1884 = vadd.xlane.f32.xlu1 %v1883_v40  ;;  %1880 = vadd.xlane.f32.xlu0 %v1879_v41  ;;  %v1938_v40 = vsel %vm1805_vm0, %v844_v32, 0.0  ;;  %v1934_v41 = vsel %vm1805_vm0, %v842_v33, 0.0 }
  0x3a   : > { %v1939_v46 = vadd.f32 %v1938_v40, %v843_v38  ;;  %v1935_v47 = vadd.f32 %v1934_v41, %v841_v39  ;;  %v872_v38 = vunpack.c.h.bf16 %v312_v30  ;;  %v870_v39 = vunpack.c.h.bf16 %v311_v31  ;;  %v314_v40 = vld [vmem:[%s7781_s27 + $0x188] sm:$0xff]  ;;  %v313_v41 = vld [vmem:[%s7781_s27 + $0x180] sm:$0xff] }
  0x3b   : > { %v875_v54 = vunpack.c.l.bf16 %v314_v40  ;;  %v873_v55 = vunpack.c.l.bf16 %v313_v41 }
  0x3d   : > { %1892 = vadd.xlane.f32.xlu1 %v1891_v50  ;;  %1888 = vadd.xlane.f32.xlu0 %v1887_v51  ;;  %v1946_v50 = vsel %vm1805_vm0, %v848_v42, 0.0  ;;  %v1942_v51 = vsel %vm1805_vm0, %v846_v43, 0.0 }
  0x3e   : > { %v1947_v56 = vadd.f32 %v1946_v50, %v847_v48  ;;  %v1943_v57 = vadd.f32 %v1942_v51, %v845_v49  ;;  %v876_v48 = vunpack.c.h.bf16 %v314_v40  ;;  %v874_v49 = vunpack.c.h.bf16 %v313_v41  ;;  %v316_v50 = vld [vmem:[%s7781_s27 + $0x198] sm:$0xff]  ;;  %v315_v51 = vld [vmem:[%s7781_s27 + $0x190] sm:$0xff] }
  0x3f   : > { %v879_v0 = vunpack.c.l.bf16 %v316_v50  ;;  %v877_v1 = vunpack.c.l.bf16 %v315_v51 }
  0x41   : > { %1900 = vadd.xlane.f32.xlu1 %v1899_v60  ;;  %1896 = vadd.xlane.f32.xlu0 %v1895_v61  ;;  %v1954_v60 = vsel %vm1805_vm0, %v852_v52, 0.0  ;;  %v1950_v61 = vsel %vm1805_vm0, %v850_v53, 0.0 }
  0x42   : > { %v1955_v2 = vadd.f32 %v1954_v60, %v851_v58  ;;  %v1951_v3 = vadd.f32 %v1950_v61, %v849_v59  ;;  %v880_v58 = vunpack.c.h.bf16 %v316_v50  ;;  %v878_v59 = vunpack.c.h.bf16 %v315_v51  ;;  %v318_v60 = vld [vmem:[%s7781_s27 + $0x1a8] sm:$0xff]  ;;  %v317_v61 = vld [vmem:[%s7781_s27 + $0x1a0] sm:$0xff] }
  0x43   : > { %v883_v10 = vunpack.c.l.bf16 %v318_v60  ;;  %v881_v11 = vunpack.c.l.bf16 %v317_v61 }
  0x45   : > { %1908 = vadd.xlane.f32.xlu1 %v1907_v6  ;;  %1904 = vadd.xlane.f32.xlu0 %v1903_v7  ;;  %v1962_v6 = vsel %vm1805_vm0, %v856_v62, 0.0  ;;  %v1958_v7 = vsel %vm1805_vm0, %v854_v63, 0.0 }
  0x46   : > { %v1963_v12 = vadd.f32 %v1962_v6, %v855_v4  ;;  %v1959_v13 = vadd.f32 %v1958_v7, %v853_v5  ;;  %v884_v4 = vunpack.c.h.bf16 %v318_v60  ;;  %v882_v5 = vunpack.c.h.bf16 %v317_v61  ;;  %v320_v6 = vld [vmem:[%s7781_s27 + $0x1b8] sm:$0xff]  ;;  %v319_v7 = vld [vmem:[%s7781_s27 + $0x1b0] sm:$0xff] }
  0x47   : > { %v887_v20 = vunpack.c.l.bf16 %v320_v6  ;;  %v885_v21 = vunpack.c.l.bf16 %v319_v7 }
  0x49   : > { %1916 = vadd.xlane.f32.xlu1 %v1915_v16  ;;  %1912 = vadd.xlane.f32.xlu0 %v1911_v17  ;;  %v1970_v16 = vsel %vm1805_vm0, %v860_v8, 0.0  ;;  %v1966_v17 = vsel %vm1805_vm0, %v858_v9, 0.0 }
  0x4a   : > { %v1971_v22 = vadd.f32 %v1970_v16, %v859_v14  ;;  %v1967_v23 = vadd.f32 %v1966_v17, %v857_v15  ;;  %v888_v14 = vunpack.c.h.bf16 %v320_v6  ;;  %v886_v15 = vunpack.c.h.bf16 %v319_v7  ;;  %v322_v16 = vld [vmem:[%s7781_s27 + $0x1c8] sm:$0xff]  ;;  %v321_v17 = vld [vmem:[%s7781_s27 + $0x1c0] sm:$0xff] }
  0x4b   : > { %v891_v30 = vunpack.c.l.bf16 %v322_v16  ;;  %v889_v31 = vunpack.c.l.bf16 %v321_v17 }
  0x4d   : > { %1924 = vadd.xlane.f32.xlu1 %v1923_v26  ;;  %1920 = vadd.xlane.f32.xlu0 %v1919_v27  ;;  %v1978_v26 = vsel %vm1805_vm0, %v864_v18, 0.0  ;;  %v1974_v27 = vsel %vm1805_vm0, %v862_v19, 0.0 }
  0x4e   : > { %v1979_v32 = vadd.f32 %v1978_v26, %v863_v24  ;;  %v1975_v33 = vadd.f32 %v1974_v27, %v861_v25  ;;  %v892_v24 = vunpack.c.h.bf16 %v322_v16  ;;  %v890_v25 = vunpack.c.h.bf16 %v321_v17  ;;  %v324_v26 = vld [vmem:[%s7781_s27 + $0x1d8] sm:$0xff]  ;;  %v323_v27 = vld [vmem:[%s7781_s27 + $0x1d0] sm:$0xff] }
  0x4f   : > { %v895_v40 = vunpack.c.l.bf16 %v324_v26  ;;  %v893_v41 = vunpack.c.l.bf16 %v323_v27 }
  0x51   : > { %1932 = vadd.xlane.f32.xlu1 %v1931_v36  ;;  %1928 = vadd.xlane.f32.xlu0 %v1927_v37  ;;  %v1986_v36 = vsel %vm1805_vm0, %v868_v28, 0.0  ;;  %v1982_v37 = vsel %vm1805_vm0, %v866_v29, 0.0 }
  0x52   : > { %v1987_v42 = vadd.f32 %v1986_v36, %v867_v34  ;;  %v1983_v43 = vadd.f32 %v1982_v37, %v865_v35  ;;  %v896_v34 = vunpack.c.h.bf16 %v324_v26  ;;  %v894_v35 = vunpack.c.h.bf16 %v323_v27  ;;  %v326_v36 = vld [vmem:[%s7781_s27 + $0x1e8] sm:$0xff]  ;;  %v325_v37 = vld [vmem:[%s7781_s27 + $0x1e0] sm:$0xff] }
  0x53   : > { %v899_v50 = vunpack.c.l.bf16 %v326_v36  ;;  %v897_v51 = vunpack.c.l.bf16 %v325_v37 }
  0x55   : > { %1940 = vadd.xlane.f32.xlu1 %v1939_v46  ;;  %1936 = vadd.xlane.f32.xlu0 %v1935_v47  ;;  %v1994_v46 = vsel %vm1805_vm0, %v872_v38, 0.0  ;;  %v1990_v47 = vsel %vm1805_vm0, %v870_v39, 0.0 }
  0x56   : > { %v1995_v52 = vadd.f32 %v1994_v46, %v871_v44  ;;  %v1991_v53 = vadd.f32 %v1990_v47, %v869_v45  ;;  %v900_v44 = vunpack.c.h.bf16 %v326_v36  ;;  %v898_v45 = vunpack.c.h.bf16 %v325_v37  ;;  %v328_v46 = vld [vmem:[%s7781_s27 + $0x1f8] sm:$0xff]  ;;  %v327_v47 = vld [vmem:[%s7781_s27 + $0x1f0] sm:$0xff]  ;;  %v337_v37 = vld [vmem:[%s7781_s27 + $0x240] sm:$0xff] }
  0x57   : > { %v903_v60 = vunpack.c.l.bf16 %v328_v46  ;;  %v901_v61 = vunpack.c.l.bf16 %v327_v47 }
  0x59   : > { %1948 = vadd.xlane.f32.xlu1 %v1947_v56  ;;  %1944 = vadd.xlane.f32.xlu0 %v1943_v57  ;;  %v2002_v56 = vsel %vm1805_vm0, %v876_v48, 0.0  ;;  %v1998_v57 = vsel %vm1805_vm0, %v874_v49, 0.0 }
  0x5a   : > { %v2003_v62 = vadd.f32 %v2002_v56, %v875_v54  ;;  %v1999_v63 = vadd.f32 %v1998_v57, %v873_v55  ;;  %v904_v54 = vunpack.c.h.bf16 %v328_v46  ;;  %v902_v55 = vunpack.c.h.bf16 %v327_v47  ;;  %v330_v56 = vld [vmem:[%s7781_s27 + $0x208] sm:$0xff]  ;;  %v329_v57 = vld [vmem:[%s7781_s27 + $0x200] sm:$0xff]  ;;  %v339_v46 = vld [vmem:[%s7781_s27 + $0x250] sm:$0xff] }
  0x5b   : > { %v907_v6 = vunpack.c.l.bf16 %v330_v56  ;;  %v905_v7 = vunpack.c.l.bf16 %v329_v57 }
  0x5d   : > { %1956 = vadd.xlane.f32.xlu1 %v1955_v2  ;;  %1952 = vadd.xlane.f32.xlu0 %v1951_v3  ;;  %v2010_v2 = vsel %vm1805_vm0, %v880_v58, 0.0  ;;  %v2006_v3 = vsel %vm1805_vm0, %v878_v59, 0.0 }
  0x5e   : > { %v2011_v8 = vadd.f32 %v2010_v2, %v879_v0  ;;  %v2007_v9 = vadd.f32 %v2006_v3, %v877_v1  ;;  %v908_v0 = vunpack.c.h.bf16 %v330_v56  ;;  %v906_v1 = vunpack.c.h.bf16 %v329_v57  ;;  %v332_v2 = vld [vmem:[%s7781_s27 + $0x218] sm:$0xff]  ;;  %v331_v3 = vld [vmem:[%s7781_s27 + $0x210] sm:$0xff] }
  0x5f   : > { %v926_v56 = vunpack.c.h.bf16 %v339_v46 }
  0x61   : > { %1964 = vadd.xlane.f32.xlu1 %v1963_v12  ;;  %1960 = vadd.xlane.f32.xlu0 %v1959_v13  ;;  %v2018_v12 = vsel %vm1805_vm0, %v884_v4, 0.0  ;;  %v2014_v13 = vsel %vm1805_vm0, %v882_v5, 0.0 }
  0x62   : > { %v2019_v18 = vadd.f32 %v2018_v12, %v883_v10  ;;  %v2015_v19 = vadd.f32 %v2014_v13, %v881_v11  ;;  %v2062_v10 = vsel %vm1805_vm0, %v906_v1, 0.0  ;;  %v912_v11 = vunpack.c.h.bf16 %v332_v2  ;;  %v333_v13 = vld [vmem:[%s7781_s27 + $0x220] sm:$0xff] }
  0x63   : > { %v910_v12 = vunpack.c.h.bf16 %v331_v3  ;;  %v2063_v17 = vadd.f32 %v2062_v10, %v905_v7  ;;  %v2102_v10 = vsel %vm1805_vm0, %v926_v56, 0.0 }
  0x65   : > { %1972 = vadd.xlane.f32.xlu1 %v1971_v22  ;;  %1968 = vadd.xlane.f32.xlu0 %v1967_v23  ;;  %v2026_v22 = vsel %vm1805_vm0, %v888_v14, 0.0  ;;  %v2022_v23 = vsel %vm1805_vm0, %v886_v15, 0.0  ;;  %v4366_v15 = vlaneseq }
  0x66   : > { %v2027_v28 = vadd.f32 %v2026_v22, %v887_v20  ;;  %v2023_v29 = vadd.f32 %v2022_v23, %v885_v21  ;;  %v336_v20 = vld [vmem:[%s7781_s27 + $0x238] sm:$0xff]  ;;  %v335_v21 = vld [vmem:[%s7781_s27 + $0x230] sm:$0xff]  ;;  %v2074_v22 = vsel %vm1805_vm0, %v912_v11, 0.0  ;;  %v2070_v23 = vsel %vm1805_vm0, %v910_v12, 0.0 }
  0x67   : > { %v7928_v36 = vshrl.u32 %v4366_v15, 7 }
  0x69   : > { %1980 = vadd.xlane.f32.xlu1 %v1979_v32  ;;  %1976 = vadd.xlane.f32.xlu0 %v1975_v33  ;;  %v2034_v32 = vsel %vm1805_vm0, %v892_v24, 0.0  ;;  %v2030_v33 = vsel %vm1805_vm0, %v890_v25, 0.0  ;;  %v914_v24 = vunpack.c.h.bf16 %v333_v13  ;;  %v338_v25 = vld [vmem:[%s7781_s27 + $0x248] sm:$0xff] }
  0x6a   : > { %v2035_v38 = vadd.f32 %v2034_v32, %v891_v30  ;;  %v2031_v39 = vadd.f32 %v2030_v33, %v889_v31  ;;  %v918_v30 = vunpack.c.h.bf16 %v335_v21  ;;  %v913_v33 = vunpack.c.l.bf16 %v333_v13 }
  0x6d   : > { %1988 = vadd.xlane.f32.xlu1 %v1987_v42  ;;  %1984 = vadd.xlane.f32.xlu0 %v1983_v43  ;;  %v2042_v42 = vsel %vm1805_vm0, %v896_v34, 0.0  ;;  %v2038_v43 = vsel %vm1805_vm0, %v894_v35, 0.0  ;;  %v924_v34 = vunpack.c.h.bf16 %v338_v25  ;;  %v2078_v35 = vsel %vm1805_vm0, %v914_v24, 0.0 }
  0x6e   : > { %v2043_v48 = vadd.f32 %v2042_v42, %v895_v40  ;;  %v2039_v49 = vadd.f32 %v2038_v43, %v893_v41  ;;  %v917_v40 = vunpack.c.l.bf16 %v335_v21  ;;  %v340_v41 = vld [vmem:[%s7781_s27 + $0x258] sm:$0xff]  ;;  %v2079_v47 = vadd.f32 %v2078_v35, %v913_v33 }
  0x6f   : > { %v927_v1 = vunpack.c.l.bf16 %v340_v41 }
  0x71   : > { %1996 = vadd.xlane.f32.xlu1 %v1995_v52  ;;  %1992 = vadd.xlane.f32.xlu0 %v1991_v53  ;;  %v2050_v52 = vsel %vm1805_vm0, %v900_v44, 0.0  ;;  %v2046_v53 = vsel %vm1805_vm0, %v898_v45, 0.0  ;;  %v2086_v44 = vsel %vm1805_vm0, %v918_v30, 0.0  ;;  %v923_v45 = vunpack.c.l.bf16 %v338_v25  ;;  %v343_v25 = vld [vmem:[%s7781_s27 + $0x270] sm:$0xff] }
  0x72   : > { %v2051_v58 = vadd.f32 %v2050_v52, %v899_v50  ;;  %v2047_v59 = vadd.f32 %v2046_v53, %v897_v51  ;;  %v922_v50 = vunpack.c.h.bf16 %v337_v37  ;;  %v928_v52 = vunpack.c.h.bf16 %v340_v41 }
  0x75   : > { %2004 = vadd.xlane.f32.xlu1 %v2003_v62  ;;  %2000 = vadd.xlane.f32.xlu0 %v1999_v63  ;;  %v2058_v62 = vsel %vm1805_vm0, %v904_v54, 0.0  ;;  %v2054_v63 = vsel %vm1805_vm0, %v902_v55, 0.0  ;;  %v2087_v54 = vadd.f32 %v2086_v44, %v917_v40 }
  0x76   : > { %v2059_v4 = vadd.f32 %v2058_v62, %v903_v60  ;;  %v2055_v5 = vadd.f32 %v2054_v63, %v901_v61  ;;  %v342_v61 = vld [vmem:[%s7781_s27 + $0x268] sm:$0xff]  ;;  %v2094_v63 = vsel %vm1805_vm0, %v922_v50, 0.0 }
  0x77   : > { %v932_v11 = vunpack.c.h.bf16 %v342_v61 }
  0x79   : > { %2012 = vadd.xlane.f32.xlu1 %v2011_v8  ;;  %2008 = vadd.xlane.f32.xlu0 %v2007_v9  ;;  %v334_v8 = vld [vmem:[%s7781_s27 + $0x228] sm:$0xff]  ;;  %v2066_v9 = vsel %vm1805_vm0, %v908_v0, 0.0  ;;  %v2114_v30 = vsel %vm1805_vm0, %v932_v11, 0.0 }
  0x7a   : > { %v916_v14 = vunpack.c.h.bf16 %v334_v8  ;;  %v2067_v16 = vadd.f32 %v2066_v9, %v907_v6  ;;  %v915_v26 = vunpack.c.l.bf16 %v334_v8  ;;  %v925_v6 = vunpack.c.l.bf16 %v339_v46 }
  0x7c   : > { %v2082_v27 = vsel %vm1805_vm0, %v916_v14, 0.0  ;;  %v2103_v21 = vadd.f32 %v2102_v10, %v925_v6 }
  0x7d   : > { %2020 = vadd.xlane.f32.xlu1 %v2019_v18  ;;  %2016 = vadd.xlane.f32.xlu0 %v2015_v19  ;;  %v911_v18 = vunpack.c.l.bf16 %v332_v2  ;;  %v909_v19 = vunpack.c.l.bf16 %v331_v3  ;;  %v341_v2 = vld [vmem:[%s7781_s27 + $0x260] sm:$0xff] }
  0x7e   : > { %v930_v14 = vunpack.c.h.bf16 %v341_v2  ;;  %v929_v24 = vunpack.c.l.bf16 %v341_v2  ;;  %v348_v2 = vld [vmem:[%s7781_s27 + $0x298] sm:$0xff] }
  0x7f   : > { %v2075_v31 = vadd.f32 %v2074_v22, %v911_v18  ;;  %v2071_v32 = vadd.f32 %v2070_v23, %v909_v19  ;;  %v344_v18 = vld [vmem:[%s7781_s27 + $0x278] sm:$0xff] }
  0x80   : > { %v935_v44 = vunpack.c.l.bf16 %v344_v18 }
  0x81   : > { %2028 = vadd.xlane.f32.xlu1 %v2027_v28  ;;  %2024 = vadd.xlane.f32.xlu0 %v2023_v29  ;;  %v7925_v28 = vand.u32 127, %v4366_v15  ;;  %v920_v29 = vunpack.c.h.bf16 %v336_v20 }
  0x83   : > { %v4379_v42 = vadd.s32 4294967280, %v7925_v28  ;;  %v2090_v43 = vsel %vm1805_vm0, %v920_v29, 0.0  ;;  %v7940_v51 = vsub.s32 %v7925_v28, %v7928_v36  ;;  %v4372_v55 = vadd.s32 4294967288, %v7925_v28 }
  0x84   : > { %v4400_v60 = vadd.s32 4294967256, %v7925_v28  ;;  %v4393_v0 = vadd.s32 4294967264, %v7925_v28  ;;  %v4414_v7 = vadd.s32 4294967240, %v7925_v28  ;;  %v4407_v8 = vadd.s32 4294967248, %v7925_v28 }
  0x85   : > { %2036 = vadd.xlane.f32.xlu1 %v2035_v38  ;;  %2032 = vadd.xlane.f32.xlu0 %v2031_v39  ;;  %v2083_v38 = vadd.f32 %v2082_v27, %v915_v26  ;;  %v919_v39 = vunpack.c.l.bf16 %v336_v20  ;;  %v7944_v57 = vsub.s32 %v4379_v42, %v7928_v36  ;;  %v7958_v9 = vsub.s32 %v4372_v55, %v7928_v36 }
  0x86   : > { %v7962_v13 = vsub.s32 %v4400_v60, %v7928_v36  ;;  %v7965_v15 = vsub.s32 %v4393_v0, %v7928_v36  ;;  %v7969_v22 = vsub.s32 %v4414_v7, %v7928_v36  ;;  %v7972_v23 = vsub.s32 %v4407_v8, %v7928_v36  ;;  %v347_v7 = vld [vmem:[%s7781_s27 + $0x290] sm:$0xff] }
  0x87   : > { %v2091_v53 = vadd.f32 %v2090_v43, %v919_v39  ;;  %v4428_v33 = vadd.s32 4294967224, %v7925_v28  ;;  %v346_v39 = vld [vmem:[%s7781_s27 + $0x288] sm:$0xff]  ;;  %v4442_v0 = vadd.s32 4294967208, %v7925_v28 }
  0x88   : > { %v939_v6 = vunpack.c.l.bf16 %v346_v39 }
  0x89   : > { %2044 = vadd.xlane.f32.xlu1 %v2043_v48  ;;  %2040 = vadd.xlane.f32.xlu0 %v2039_v49  ;;  %v4386_v48 = vadd.s32 4294967272, %v7925_v28  ;;  %v2098_v49 = vsel %vm1805_vm0, %v924_v34, 0.0  ;;  %v936_v34 = vunpack.c.h.bf16 %v344_v18  ;;  %v7991_v50 = vsub.s32 %v4428_v33, %v7928_v36 }
  0x8a   : > { %v944_v18 = vunpack.c.h.bf16 %v348_v2 }
  0x8b   : > { %v7949_v62 = vsub.s32 %v4386_v48, %v7928_v36 }
  0x8d   : > { %2052 = vadd.xlane.f32.xlu1 %v2051_v58  ;;  %2048 = vadd.xlane.f32.xlu0 %v2047_v59  ;;  %v2099_v58 = vadd.f32 %v2098_v49, %v923_v45  ;;  %v921_v59 = vunpack.c.l.bf16 %v337_v37  ;;  %v4421_v37 = vadd.s32 4294967232, %v7925_v28  ;;  %v345_v45 = vld [vmem:[%s7781_s27 + $0x280] sm:$0xff] }
  0x8e   : > { %v937_v11 = vunpack.c.l.bf16 %v345_v45 }
  0x8f   : > { %v2095_v12 = vadd.f32 %v2094_v63, %v921_v59  ;;  %v7996_v56 = vsub.s32 %v4421_v37, %v7928_v36  ;;  %v938_v59 = vunpack.c.h.bf16 %v345_v45 }
  0x91   : > { %2060 = vadd.xlane.f32.xlu1 %v2059_v4  ;;  %2056 = vadd.xlane.f32.xlu0 %v2055_v5  ;;  %v2106_v5 = vsel %vm1805_vm0, %v928_v52, 0.0  ;;  %v2122_v52 = vsel %vm1805_vm0, %v936_v34, 0.0 }
  0x95   : > { %2068 = vadd.xlane.f32.xlu1 %v2067_v16  ;;  %2064 = vadd.xlane.f32.xlu0 %v2063_v17  ;;  %v2107_v16 = vadd.f32 %v2106_v5, %v927_v1  ;;  %v931_v17 = vunpack.c.l.bf16 %v342_v61  ;;  %v4435_v1 = vadd.s32 4294967216, %v7925_v28  ;;  %v2123_v5 = vadd.f32 %v2122_v52, %v935_v44 }
  0x96   : > { %v4470_v52 = vadd.s32 4294967176, %v7925_v28 }
  0x97   : > { %v2115_v43 = vadd.f32 %v2114_v30, %v931_v17  ;;  %v4449_v17 = vadd.s32 4294967200, %v7925_v28  ;;  %v350_v30 = vld [vmem:[%s7781_s27 + $0x2a8] sm:$0xff] }
  0x98   : > { %v948_v45 = vunpack.c.h.bf16 %v350_v30 }
  0x99   : > { %2076 = vadd.xlane.f32.xlu1 %v2075_v31  ;;  %2072 = vadd.xlane.f32.xlu0 %v2071_v32  ;;  %v2110_v32 = vsel %vm1805_vm0, %v930_v14, 0.0 }
  0x9a   : > { %v2111_v49 = vadd.f32 %v2110_v32, %v929_v24  ;;  %v8013_v24 = vsub.s32 %v4442_v0, %v7928_v36 }
  0x9d   : > { %2084 = vadd.xlane.f32.xlu1 %v2083_v38  ;;  %2080 = vadd.xlane.f32.xlu0 %v2079_v47  ;;  %v934_v38 = vunpack.c.h.bf16 %v343_v25 }
  0x9e   : > { %v1817_v3 = vpop.xlane.xlu1 %1816  ;;  %v1809_v4 = vpop.xlane.xlu0 %1808 }
  0x9f   : > { %v4371_v26 = vrot.slane %v1809_v4, %v7940_v51  ;;  %v4383_v31 = vrot.slane %v1817_v3, %v7944_v57 }
  0xa1   : > { %2092 = vadd.xlane.f32.xlu1 %v2091_v53  ;;  %2088 = vadd.xlane.f32.xlu0 %v2087_v54  ;;  %v933_v53 = vunpack.c.l.bf16 %v343_v25  ;;  %v940_v54 = vunpack.c.h.bf16 %v346_v39  ;;  %v942_v25 = vunpack.c.h.bf16 %v347_v7  ;;  %v2138_v39 = vsel %vm1805_vm0, %v944_v18, 0.0 }
  0xa2   : > { %v1821_v19 = vpop.xlane.xlu1 %1820  ;;  %v1813_v20 = vpop.xlane.xlu0 %1812 }
  0xa3   : > { %v4390_v27 = vrot.slane %v1821_v19, %v7949_v62  ;;  %v4376_v29 = vrot.slane %v1813_v20, %v7958_v9  ;;  %v2130_v10 = vsel %vm1805_vm0, %v940_v54, 0.0  ;;  %v2134_v44 = vsel %vm1805_vm0, %v942_v25, 0.0  ;;  %v351_v54 = vld [vmem:[%s7781_s27 + $0x2b0] sm:$0xff] }
  0xa4   : > { %v2131_v32 = vadd.f32 %v2130_v10, %v939_v6 }
  0xa5   : > { %v4378_v35 = vsel %vm4377_vm1, %v4376_v29, %v4371_v26  ;;  %2100 = vadd.xlane.f32.xlu1 %v2099_v58  ;;  %2096 = vadd.xlane.f32.xlu0 %v2095_v12  ;;  %v2118_v58 = vsel %vm1805_vm0, %v934_v38, 0.0  ;;  %v4456_v12 = vadd.s32 4294967192, %v7925_v28  ;;  %v8018_v29 = vsub.s32 %v4435_v1, %v7928_v36 }
  0xa6   : > { %v4385_v40 = vsel %vm4384_vm2, %v4383_v31, %v4378_v35  ;;  %v1829_v41 = vpop.xlane.xlu1 %1828  ;;  %v1825_v42 = vpop.xlane.xlu0 %1824  ;;  %v2119_v8 = vadd.f32 %v2118_v58, %v933_v53  ;;  %v349_v31 = vld [vmem:[%s7781_s27 + $0x2a0] sm:$0xff]  ;;  %v943_v35 = vunpack.c.l.bf16 %v348_v2  ;;  %v8027_v38 = vsub.s32 %v4449_v17, %v7928_v36 }
  0xa7   : > { %v4404_v46 = vrot.slane %v1829_v41, %v7962_v13  ;;  %v4392_v47 = vsel %vm4391_vm3, %v4390_v27, %v4385_v40  ;;  %v4397_v48 = vrot.slane %v1825_v42, %v7965_v15  ;;  %v8023_v34 = vsub.s32 %v4456_v12, %v7928_v36 }
  0xa8   : > { %v941_v40 = vunpack.c.l.bf16 %v347_v7  ;;  %v4463_v53 = vadd.s32 4294967184, %v7925_v28  ;;  %v947_v58 = vunpack.c.l.bf16 %v350_v30  ;;  %v2146_v28 = vsel %vm1805_vm0, %v948_v45, 0.0 }
  0xa9   : > { %v4399_v55 = vsel %vm4398_vm4, %v4397_v48, %v4392_v47  ;;  %2108 = vadd.xlane.f32.xlu1 %v2107_v16  ;;  %2104 = vadd.xlane.f32.xlu0 %v2103_v21  ;;  %v2126_v16 = vsel %vm1805_vm0, %v938_v59, 0.0  ;;  %v352_v47 = vld [vmem:[%s7781_s27 + $0x2b8] sm:$0xff] }
  0xaa   : > { %v1837_v60 = vpop.xlane.xlu1 %1836  ;;  %v4406_v61 = vsel %vm4405_vm5, %v4404_v46, %v4399_v55  ;;  %v1833_v63 = vpop.xlane.xlu0 %1832  ;;  %v2127_v33 = vadd.f32 %v2126_v16, %v937_v11  ;;  %v946_v46 = vunpack.c.h.bf16 %v349_v31  ;;  %v2139_v55 = vadd.f32 %v2138_v39, %v943_v35  ;;  %v353_v11 = vld [vmem:[%s7781_s27 + $0x2c0] sm:$0xff]  ;;  %v355_v35 = vld [vmem:[%s7781_s27 + $0x2d0] sm:$0xff] }
  0xab   : > { %v4418_v3 = vrot.slane %v1837_v60, %v7969_v22  ;;  %v4411_v4 = vrot.slane %v1833_v63, %v7972_v23  ;;  %v2135_v60 = vadd.f32 %v2134_v44, %v941_v40  ;;  %v952_v63 = vunpack.c.h.bf16 %v352_v47 }
  0xac   : > { %v8049_v10 = vsub.s32 %v4463_v53, %v7928_v36  ;;  %v951_v12 = vunpack.c.l.bf16 %v352_v47  ;;  %v2147_v17 = vadd.f32 %v2146_v28, %v947_v58  ;;  %v954_v30 = vunpack.c.h.bf16 %v353_v11 }
  0xad   : > { %v4413_v14 = vsel %vm4412_vm6, %v4411_v4, %v4406_v61  ;;  %2116 = vadd.xlane.f32.xlu1 %v2115_v43  ;;  %2112 = vadd.xlane.f32.xlu0 %v2111_v49  ;;  %v945_v61 = vunpack.c.l.bf16 %v349_v31  ;;  %v950_v4 = vunpack.c.h.bf16 %v351_v54  ;;  %v953_v39 = vunpack.c.l.bf16 %v353_v11  ;;  %v359_v11 = vld [vmem:[%s7781_s27 + $0x2f0] sm:$0xff] }
  0xae   : > { %v1845_v19 = vpop.xlane.xlu1 %1844  ;;  %v4420_v20 = vsel %vm4419_vm7, %v4418_v3, %v4413_v14  ;;  %v1841_v21 = vpop.xlane.xlu0 %1840  ;;  %v2142_v3 = vsel %vm1805_vm0, %v946_v46, 0.0  ;;  %v949_v14 = vunpack.c.l.bf16 %v351_v54  ;;  %v2158_v47 = vsel %vm1805_vm0, %v954_v30, 0.0 }
  0xaf   : > { %v4432_v26 = vrot.slane %v1845_v19, %v7991_v50  ;;  %v4425_v27 = vrot.slane %v1841_v21, %v7996_v56  ;;  %v2143_v18 = vadd.f32 %v2142_v3, %v945_v61  ;;  %v2159_v61 = vadd.f32 %v2158_v47, %v953_v39 }
  0xb0   : > { %v966_v30 = vunpack.c.h.bf16 %v359_v11 }
  0xb1   : > { %v4427_v37 = vsel %vm4426_vm8, %v4425_v27, %v4420_v20  ;;  %2124 = vadd.xlane.f32.xlu1 %v2123_v5  ;;  %2120 = vadd.xlane.f32.xlu0 %v2119_v8  ;;  %v354_v5 = vld [vmem:[%s7781_s27 + $0x2c8] sm:$0xff]  ;;  %v8046_v8 = vsub.s32 %v4470_v52, %v7928_v36  ;;  %v2150_v27 = vsel %vm1805_vm0, %v950_v4, 0.0 }
  0xb2   : > { %v1853_v41 = vpop.xlane.xlu1 %1852  ;;  %v4434_v42 = vsel %vm11349_vm9, %v4432_v26, %v4427_v37  ;;  %v1849_v43 = vpop.xlane.xlu0 %1848  ;;  %v956_v19 = vunpack.c.h.bf16 %v354_v5  ;;  %v2154_v26 = vsel %vm1805_vm0, %v952_v63, 0.0  ;;  %v955_v37 = vunpack.c.l.bf16 %v354_v5  ;;  %v358_v52 = vld [vmem:[%s7781_s27 + $0x2e8] sm:$0xff] }
  0xb3   : > { %v4446_v48 = vrot.slane %v1853_v41, %v8013_v24  ;;  %v4439_v49 = vrot.slane %v1849_v43, %v8018_v29  ;;  %v2155_v41 = vadd.f32 %v2154_v26, %v951_v12  ;;  %v957_v63 = vunpack.c.l.bf16 %v355_v35 }
  0xb4   : > { %v2162_v43 = vsel %vm1805_vm0, %v956_v19, 0.0  ;;  %v963_v12 = vunpack.c.l.bf16 %v358_v52 }
  0xb5   : > { %v4441_v59 = vsel %vm4440_vm10, %v4439_v49, %v4434_v42  ;;  %2132 = vadd.xlane.f32.xlu1 %v2131_v32  ;;  %2128 = vadd.xlane.f32.xlu0 %v2127_v33  ;;  %v356_v33 = vld [vmem:[%s7781_s27 + $0x2d8] sm:$0xff]  ;;  %v2151_v42 = vadd.f32 %v2150_v27, %v949_v14  ;;  %v958_v49 = vunpack.c.h.bf16 %v355_v35  ;;  %v2163_v58 = vadd.f32 %v2162_v43, %v955_v37  ;;  %v361_v35 = vld [vmem:[%s7781_s27 + $0x300] sm:$0xff] }
  0xb6   : > { %v1861_v0 = vpop.xlane.xlu1 %1860  ;;  %v4448_v1 = vsel %vm11348_vm11, %v4446_v48, %v4441_v59  ;;  %v1857_v2 = vpop.xlane.xlu0 %1856  ;;  %v960_v48 = vunpack.c.h.bf16 %v356_v33  ;;  %v959_v59 = vunpack.c.l.bf16 %v356_v33 }
  0xb7   : > { %v4460_v6 = vrot.slane %v1861_v0, %v8023_v34  ;;  %v4453_v7 = vrot.slane %v1857_v2, %v8027_v38  ;;  %v964_v0 = vunpack.c.h.bf16 %v358_v52  ;;  %v2166_v3 = vsel %vm1805_vm0, %v958_v49, 0.0 }
  0xb8   : > { %v2170_v28 = vsel %vm1805_vm0, %v960_v48, 0.0  ;;  %v2182_v49 = vsel %vm1805_vm0, %v966_v30, 0.0  ;;  %v970_v52 = vunpack.c.h.bf16 %v361_v35 }
  0xb9   : > { %v4455_v16 = vsel %vm4454_vm12, %v4453_v7, %v4448_v1  ;;  %2140 = vadd.xlane.f32.xlu1 %v2139_v55  ;;  %2136 = vadd.xlane.f32.xlu0 %v2135_v60  ;;  %v357_v55 = vld [vmem:[%s7781_s27 + $0x2e0] sm:$0xff]  ;;  %v360_v7 = vld [vmem:[%s7781_s27 + $0x2f8] sm:$0xff]  ;;  %v2178_v19 = vsel %vm1805_vm0, %v964_v0, 0.0 }
  0xba   : > { %v1869_v20 = vpop.xlane.xlu1 %1868  ;;  %v4462_v21 = vsel %vm4461_vm13, %v4460_v6, %v4455_v16  ;;  %v1865_v25 = vpop.xlane.xlu0 %1864  ;;  %v962_v4 = vunpack.c.h.bf16 %v357_v55  ;;  %v961_v14 = vunpack.c.l.bf16 %v357_v55  ;;  %v968_v27 = vunpack.c.h.bf16 %v360_v7 }
  0xbb   : > { %v4474_v31 = vrot.slane %v1869_v20, %v8046_v8  ;;  %v4467_v32 = vrot.slane %v1865_v25, %v8049_v10  ;;  %v2179_v37 = vadd.f32 %v2178_v19, %v963_v12  ;;  %v967_v39 = vunpack.c.l.bf16 %v360_v7  ;;  %v366_v12 = vld [vmem:[%s7781_s27 + $0x328] sm:$0xff] }
  0xbc   : > { %v2174_v26 = vsel %vm1805_vm0, %v962_v4, 0.0  ;;  %v2186_v48 = vsel %vm1805_vm0, %v968_v27, 0.0 }
  0xbd   : > { %v4469_v40 = vsel %vm4468_vm14, %v4467_v32, %v4462_v21  ;;  %2148 = vadd.xlane.f32.xlu1 %v2147_v17  ;;  %2144 = vadd.xlane.f32.xlu0 %v2143_v18  ;;  %v2171_v17 = vadd.f32 %v2170_v28, %v959_v59  ;;  %v2167_v18 = vadd.f32 %v2166_v3, %v957_v63 }
  0xbe   : > { %v8063_v44 = vsel %vm4475_vm15, %v4474_v31, %v4469_v40  ;;  %v1877_v45 = vpop.xlane.xlu1 %1876  ;;  %v1873_v46 = vpop.xlane.xlu0 %1872  ;;  %v362_v31 = vld [vmem:[%s7781_s27 + $0x308] sm:$0xff]  ;;  %v2187_v63 = vadd.f32 %v2186_v48, %v967_v39  ;;  %v367_v39 = vld [vmem:[%s7781_s27 + $0x330] sm:$0xff] }
  0xbf   : > { %v4484_v53 = vrot.slane %v1877_v45, %v7958_v9  ;;  %v4480_v54 = vrot.slane %v1873_v46, %v7940_v51  ;;  %v972_v43 = vunpack.c.h.bf16 %v362_v31  ;;  %v971_v59 = vunpack.c.l.bf16 %v362_v31 }
  0xc0   : > { %v980_v31 = vunpack.c.h.bf16 %v366_v12 }
  0xc1   : > { %v4485_v60 = vsel %vm4377_vm1, %v4484_v53, %v4480_v54  ;;  %2156 = vadd.xlane.f32.xlu1 %v2155_v41  ;;  %2152 = vadd.xlane.f32.xlu0 %v2151_v42  ;;  %v2175_v41 = vadd.f32 %v2174_v26, %v961_v14  ;;  %v965_v42 = vunpack.c.l.bf16 %v359_v11  ;;  %v364_v53 = vld [vmem:[%s7781_s27 + $0x318] sm:$0xff]  ;;  %v2194_v4 = vsel %vm1805_vm0, %v972_v43, 0.0  ;;  %v365_v14 = vld [vmem:[%s7781_s27 + $0x320] sm:$0xff] }
  0xc2   : > { %v1885_v1 = vpop.xlane.xlu1 %1884  ;;  %v1881_v2 = vpop.xlane.xlu0 %1880  ;;  %v2195_v19 = vadd.f32 %v2194_v4, %v971_v59  ;;  %v370_v59 = vld [vmem:[%s7781_s27 + $0x348] sm:$0xff] }
  0xc3   : > { %v4494_v5 = vrot.slane %v1885_v1, %v7949_v62  ;;  %v4489_v6 = vrot.slane %v1881_v2, %v7944_v57  ;;  %v2183_v0 = vadd.f32 %v2182_v49, %v965_v42  ;;  %v976_v1 = vunpack.c.h.bf16 %v364_v53 }
  0xc5   : > { %v4490_v16 = vsel %vm4384_vm2, %v4489_v6, %v4485_v60  ;;  %2164 = vadd.xlane.f32.xlu1 %v2163_v58  ;;  %2160 = vadd.xlane.f32.xlu0 %v2159_v61  ;;  %v363_v58 = vld [vmem:[%s7781_s27 + $0x310] sm:$0xff]  ;;  %v969_v60 = vunpack.c.l.bf16 %v361_v35 }
  0xc6   : > { %v1893_v20 = vpop.xlane.xlu1 %1892  ;;  %v4495_v21 = vsel %vm4391_vm3, %v4494_v5, %v4490_v16  ;;  %v1889_v25 = vpop.xlane.xlu0 %1888  ;;  %v2190_v5 = vsel %vm1805_vm0, %v970_v52, 0.0  ;;  %v974_v6 = vunpack.c.h.bf16 %v363_v58  ;;  %v975_v16 = vunpack.c.l.bf16 %v364_v53 }
  0xc7   : > { %v4504_v32 = vrot.slane %v1893_v20, %v7962_v13  ;;  %v4499_v33 = vrot.slane %v1889_v25, %v7965_v15  ;;  %v2191_v20 = vadd.f32 %v2190_v5, %v969_v60  ;;  %v2210_v52 = vsel %vm1805_vm0, %v980_v31, 0.0  ;;  %v369_v60 = vld [vmem:[%s7781_s27 + $0x340] sm:$0xff] }
  0xc8   : > { %v2198_v30 = vsel %vm1805_vm0, %v974_v6, 0.0 }
  0xc9   : > { %v4500_v40 = vsel %vm4398_vm4, %v4499_v33, %v4495_v21  ;;  %2172 = vadd.xlane.f32.xlu1 %v2171_v17  ;;  %2168 = vadd.xlane.f32.xlu0 %v2167_v18  ;;  %v973_v17 = vunpack.c.l.bf16 %v363_v58  ;;  %v2202_v21 = vsel %vm1805_vm0, %v976_v1, 0.0  ;;  %v368_v33 = vld [vmem:[%s7781_s27 + $0x338] sm:$0xff] }
  0xca   : > { %v1901_v45 = vpop.xlane.xlu1 %1900  ;;  %v4505_v46 = vsel %vm4405_vm5, %v4504_v32, %v4500_v40  ;;  %v1897_v47 = vpop.xlane.xlu0 %1896  ;;  %v978_v32 = vunpack.c.h.bf16 %v365_v14  ;;  %v2203_v40 = vadd.f32 %v2202_v21, %v975_v16 }
  0xcb   : > { %v4514_v54 = vrot.slane %v1901_v45, %v7969_v22  ;;  %v4509_v55 = vrot.slane %v1897_v47, %v7972_v23  ;;  %v2199_v43 = vadd.f32 %v2198_v30, %v973_v17  ;;  %v977_v45 = vunpack.c.l.bf16 %v365_v14  ;;  %v371_v17 = vld [vmem:[%s7781_s27 + $0x350] sm:$0xff] }
  0xcc   : > { %v2206_v53 = vsel %vm1805_vm0, %v978_v32, 0.0 }
  0xcd   : > { %v4510_v61 = vsel %vm4412_vm6, %v4509_v55, %v4505_v46  ;;  %2180 = vadd.xlane.f32.xlu1 %v2179_v37  ;;  %2176 = vadd.xlane.f32.xlu0 %v2175_v41  ;;  %v979_v41 = vunpack.c.l.bf16 %v366_v12  ;;  %v984_v46 = vunpack.c.h.bf16 %v368_v33  ;;  %v372_v12 = vld [vmem:[%s7781_s27 + $0x358] sm:$0xff] }
  0xce   : > { %v1909_v2 = vpop.xlane.xlu1 %1908  ;;  %v4515_v28 = vsel %vm4419_vm7, %v4514_v54, %v4510_v61  ;;  %v1905_v3 = vpop.xlane.xlu0 %1904  ;;  %v982_v54 = vunpack.c.h.bf16 %v367_v39  ;;  %v983_v61 = vunpack.c.l.bf16 %v368_v33 }
  0xcf   : > { %v4524_v7 = vrot.slane %v1909_v2, %v7991_v50  ;;  %v4519_v11 = vrot.slane %v1905_v3, %v7996_v56  ;;  %v2211_v1 = vadd.f32 %v2210_v52, %v979_v41  ;;  %v2207_v2 = vadd.f32 %v2206_v53, %v977_v45  ;;  %v373_v41 = vld [vmem:[%s7781_s27 + $0x360] sm:$0xff] }
  0xd0   : > { %v2214_v6 = vsel %vm1805_vm0, %v982_v54, 0.0 }
  0xd1   : > { %v4520_v18 = vsel %vm4426_vm8, %v4519_v11, %v4515_v28  ;;  %2188 = vadd.xlane.f32.xlu1 %v2187_v63  ;;  %2184 = vadd.xlane.f32.xlu0 %v2183_v0  ;;  %v981_v63 = vunpack.c.l.bf16 %v367_v39  ;;  %v2218_v28 = vsel %vm1805_vm0, %v984_v46, 0.0  ;;  %v986_v11 = vunpack.c.h.bf16 %v369_v60 }
  0xd2   : > { %v1917_v25 = vpop.xlane.xlu1 %1916  ;;  %v4525_v26 = vsel %vm11349_vm9, %v4524_v7, %v4520_v18  ;;  %v1913_v27 = vpop.xlane.xlu0 %1912  ;;  %v988_v7 = vunpack.c.h.bf16 %v370_v59  ;;  %v2219_v18 = vadd.f32 %v2218_v28, %v983_v61  ;;  %v375_v61 = vld [vmem:[%s7781_s27 + $0x370] sm:$0xff] }
  0xd3   : > { %v4534_v35 = vrot.slane %v1917_v25, %v8013_v24  ;;  %v4529_v37 = vrot.slane %v1913_v27, %v8018_v29  ;;  %v2215_v21 = vadd.f32 %v2214_v6, %v981_v63  ;;  %v985_v25 = vunpack.c.l.bf16 %v369_v60  ;;  %v376_v60 = vld [vmem:[%s7781_s27 + $0x378] sm:$0xff] }
  0xd4   : > { %v2226_v32 = vsel %vm1805_vm0, %v988_v7, 0.0  ;;  %v2222_v33 = vsel %vm1805_vm0, %v986_v11, 0.0  ;;  %v1000_v11 = vunpack.c.h.bf16 %v376_v60 }
  0xd5   : > { %v4530_v42 = vsel %vm4440_vm10, %v4529_v37, %v4525_v26  ;;  %2196 = vadd.xlane.f32.xlu1 %v2195_v19  ;;  %2192 = vadd.xlane.f32.xlu0 %v2191_v20  ;;  %v987_v19 = vunpack.c.l.bf16 %v370_v59  ;;  %v992_v26 = vunpack.c.h.bf16 %v372_v12  ;;  %v374_v37 = vld [vmem:[%s7781_s27 + $0x368] sm:$0xff] }
  0xd6   : > { %v1925_v47 = vpop.xlane.xlu1 %1924  ;;  %v4535_v48 = vsel %vm11348_vm11, %v4534_v35, %v4530_v42  ;;  %v1921_v49 = vpop.xlane.xlu0 %1920  ;;  %v990_v35 = vunpack.c.h.bf16 %v371_v17  ;;  %v991_v42 = vunpack.c.l.bf16 %v372_v12  ;;  %v995_v63 = vunpack.c.l.bf16 %v374_v37 }
  0xd7   : > { %v4544_v55 = vrot.slane %v1925_v47, %v8023_v34  ;;  %v4539_v58 = vrot.slane %v1921_v49, %v8027_v38  ;;  %v2227_v46 = vadd.f32 %v2226_v32, %v987_v19  ;;  %v2223_v47 = vadd.f32 %v2222_v33, %v985_v25 }
  0xd8   : > { %v2234_v53 = vsel %vm1805_vm0, %v992_v26, 0.0  ;;  %v2230_v54 = vsel %vm1805_vm0, %v990_v35, 0.0  ;;  %v998_v12 = vunpack.c.h.bf16 %v375_v61  ;;  %v997_v26 = vunpack.c.l.bf16 %v375_v61  ;;  %v382_v61 = vld [vmem:[%s7781_s27 + $0x3a8] sm:$0xff] }
  0xd9   : > { %v4540_v0 = vsel %vm4454_vm12, %v4539_v58, %v4535_v48  ;;  %2204 = vadd.xlane.f32.xlu1 %v2203_v40  ;;  %2200 = vadd.xlane.f32.xlu0 %v2199_v43  ;;  %v989_v43 = vunpack.c.l.bf16 %v371_v17  ;;  %v996_v48 = vunpack.c.h.bf16 %v374_v37  ;;  %v2250_v35 = vsel %vm1805_vm0, %v1000_v11, 0.0 }
  0xda   : > { %v1933_v3 = vpop.xlane.xlu1 %1932  ;;  %v4545_v4 = vsel %vm4461_vm13, %v4544_v55, %v4540_v0  ;;  %v1929_v5 = vpop.xlane.xlu0 %1928  ;;  %v994_v55 = vunpack.c.h.bf16 %v373_v41  ;;  %v993_v0 = vunpack.c.l.bf16 %v373_v41  ;;  %v2246_v37 = vsel %vm1805_vm0, %v998_v12, 0.0 }
  0xdb   : > { %v4554_v14 = vrot.slane %v1933_v3, %v8046_v8  ;;  %v4549_v16 = vrot.slane %v1929_v5, %v8049_v10  ;;  %v2231_v28 = vadd.f32 %v2230_v54, %v989_v43  ;;  %v2242_v3 = vsel %vm1805_vm0, %v996_v48, 0.0  ;;  %v379_v43 = vld [vmem:[%s7781_s27 + $0x390] sm:$0xff] }
  0xdc   : > { %v2238_v7 = vsel %vm1805_vm0, %v994_v55, 0.0  ;;  %v2243_v19 = vadd.f32 %v2242_v3, %v995_v63 }
  0xdd   : > { %v4550_v20 = vsel %vm4468_vm14, %v4549_v16, %v4545_v4  ;;  %2212 = vadd.xlane.f32.xlu1 %v2211_v1  ;;  %2208 = vadd.xlane.f32.xlu0 %v2207_v2  ;;  %v2235_v2 = vadd.f32 %v2234_v53, %v991_v42  ;;  %v2239_v25 = vadd.f32 %v2238_v7, %v993_v0  ;;  %v380_v42 = vld [vmem:[%s7781_s27 + $0x398] sm:$0xff] }
  0xde   : > { %v8127_v27 = vsel %vm4475_vm15, %v4554_v14, %v4550_v20  ;;  %v1941_v30 = vpop.xlane.xlu1 %1940  ;;  %v1937_v31 = vpop.xlane.xlu0 %1936  ;;  %v378_v14 = vld [vmem:[%s7781_s27 + $0x388] sm:$0xff]  ;;  %v999_v20 = vunpack.c.l.bf16 %v376_v60  ;;  %v1006_v60 = vunpack.c.h.bf16 %v379_v43 }
  0xdf   : > { %v4563_v39 = vrot.slane %v1941_v30, %v7958_v9  ;;  %v4559_v40 = vrot.slane %v1937_v31, %v7940_v51  ;;  %v1004_v30 = vunpack.c.h.bf16 %v378_v14 }
  0xe0   : > { %v2251_v48 = vadd.f32 %v2250_v35, %v999_v20 }
  0xe1   : > { %v4564_v45 = vsel %vm4377_vm1, %v4563_v39, %v4559_v40  ;;  %2220 = vadd.xlane.f32.xlu1 %v2219_v18  ;;  %2216 = vadd.xlane.f32.xlu0 %v2215_v21  ;;  %v377_v18 = vld [vmem:[%s7781_s27 + $0x380] sm:$0xff] }
  0xe2   : > { %v1949_v49 = vpop.xlane.xlu1 %1948  ;;  %v1945_v52 = vpop.xlane.xlu0 %1944  ;;  %v1002_v39 = vunpack.c.h.bf16 %v377_v18 }
  0xe3   : > { %v4573_v58 = vrot.slane %v1949_v49, %v7949_v62  ;;  %v4568_v59 = vrot.slane %v1945_v52, %v7944_v57  ;;  %v2247_v49 = vadd.f32 %v2246_v37, %v997_v26  ;;  %v2258_v52 = vsel %vm1805_vm0, %v1004_v30, 0.0 }
  0xe5   : > { %v4569_v1 = vsel %vm4384_vm2, %v4568_v59, %v4564_v45  ;;  %2228 = vadd.xlane.f32.xlu1 %v2227_v46  ;;  %2224 = vadd.xlane.f32.xlu0 %v2223_v47  ;;  %v1003_v45 = vunpack.c.l.bf16 %v378_v14  ;;  %v1001_v46 = vunpack.c.l.bf16 %v377_v18  ;;  %v1008_v59 = vunpack.c.h.bf16 %v380_v42  ;;  %v384_v18 = vld [vmem:[%s7781_s27 + $0x3b8] sm:$0xff] }
  0xe6   : > { %v1957_v4 = vpop.xlane.xlu1 %1956  ;;  %v4574_v5 = vsel %vm4391_vm3, %v4573_v58, %v4569_v1  ;;  %v1953_v6 = vpop.xlane.xlu0 %1952  ;;  %v2254_v58 = vsel %vm1805_vm0, %v1002_v39, 0.0  ;;  %v381_v1 = vld [vmem:[%s7781_s27 + $0x3a0] sm:$0xff] }
  0xe7   : > { %v4583_v16 = vrot.slane %v1957_v4, %v7962_v13  ;;  %v4578_v17 = vrot.slane %v1953_v6, %v7965_v15  ;;  %v2255_v4 = vadd.f32 %v2254_v58, %v1001_v46  ;;  %v1012_v6 = vunpack.c.h.bf16 %v382_v61  ;;  %v386_v46 = vld [vmem:[%s7781_s27 + $0x3c8] sm:$0xff] }
  0xe8   : > { %v2266_v14 = vsel %vm1805_vm0, %v1008_v59, 0.0  ;;  %v1009_v26 = vunpack.c.l.bf16 %v381_v1 }
  0xe9   : > { %v4579_v21 = vsel %vm4398_vm4, %v4578_v17, %v4574_v5  ;;  %2236 = vadd.xlane.f32.xlu1 %v2235_v2  ;;  %2232 = vadd.xlane.f32.xlu0 %v2231_v28  ;;  %v2259_v2 = vadd.f32 %v2258_v52, %v1003_v45  ;;  %v1007_v28 = vunpack.c.l.bf16 %v380_v42  ;;  %v1005_v5 = vunpack.c.l.bf16 %v379_v43 }
  0xea   : > { %v1965_v31 = vpop.xlane.xlu1 %1964  ;;  %v4584_v32 = vsel %vm4405_vm5, %v4583_v16, %v4579_v21  ;;  %v1961_v33 = vpop.xlane.xlu0 %1960  ;;  %v2262_v16 = vsel %vm1805_vm0, %v1006_v60, 0.0  ;;  %v1010_v17 = vunpack.c.h.bf16 %v381_v1  ;;  %v383_v21 = vld [vmem:[%s7781_s27 + $0x3b0] sm:$0xff]  ;;  %v388_v1 = vld [vmem:[%s7781_s27 + $0x3d8] sm:$0xff] }
  0xeb   : > { %v4593_v40 = vrot.slane %v1965_v31, %v7969_v22  ;;  %v4588_v41 = vrot.slane %v1961_v33, %v7972_v23  ;;  %v2267_v31 = vadd.f32 %v2266_v14, %v1007_v28  ;;  %v1016_v33 = vunpack.c.h.bf16 %v384_v18 }
  0xec   : > { %v1014_v42 = vunpack.c.h.bf16 %v383_v21 }
  0xed   : > { %v4589_v47 = vsel %vm4412_vm6, %v4588_v41, %v4584_v32  ;;  %2244 = vadd.xlane.f32.xlu1 %v2243_v19  ;;  %2240 = vadd.xlane.f32.xlu0 %v2239_v25  ;;  %v1011_v25 = vunpack.c.l.bf16 %v382_v61  ;;  %v2263_v32 = vadd.f32 %v2262_v16, %v1005_v5  ;;  %v2270_v41 = vsel %vm1805_vm0, %v1010_v17, 0.0 }
  0xee   : > { %v1973_v53 = vpop.xlane.xlu1 %1972  ;;  %v4594_v54 = vsel %vm4419_vm7, %v4593_v40, %v4589_v47  ;;  %v1969_v55 = vpop.xlane.xlu0 %1968  ;;  %v2274_v40 = vsel %vm1805_vm0, %v1012_v6, 0.0  ;;  %v385_v47 = vld [vmem:[%s7781_s27 + $0x3c0] sm:$0xff]  ;;  %v2278_v61 = vsel %vm1805_vm0, %v1014_v42, 0.0  ;;  %v1019_v5 = vunpack.c.l.bf16 %v386_v46 }
  0xef   : > { %v4603_v63 = vrot.slane %v1973_v53, %v7991_v50  ;;  %v4598_v0 = vrot.slane %v1969_v55, %v7996_v56  ;;  %v2275_v53 = vadd.f32 %v2274_v40, %v1011_v25  ;;  %v2282_v55 = vsel %vm1805_vm0, %v1016_v33, 0.0 }
  0xf1   : > { %v4599_v3 = vsel %vm4426_vm8, %v4598_v0, %v4594_v54  ;;  %2252 = vadd.xlane.f32.xlu1 %v2251_v48  ;;  %2248 = vadd.xlane.f32.xlu0 %v2247_v49  ;;  %v1015_v48 = vunpack.c.l.bf16 %v384_v18  ;;  %v1013_v49 = vunpack.c.l.bf16 %v383_v21  ;;  %v2271_v54 = vadd.f32 %v2270_v41, %v1009_v26  ;;  %v390_v26 = vld [vmem:[%s7781_s27 + $0x3e8] sm:$0xff] }
  0xf2   : > { %v1981_v7 = vpop.xlane.xlu1 %1980  ;;  %v4604_v11 = vsel %vm11349_vm9, %v4603_v63, %v4599_v3  ;;  %v1977_v12 = vpop.xlane.xlu0 %1976  ;;  %v1020_v63 = vunpack.c.h.bf16 %v386_v46  ;;  %v1018_v0 = vunpack.c.h.bf16 %v385_v47  ;;  %v387_v3 = vld [vmem:[%s7781_s27 + $0x3d0] sm:$0xff]  ;;  %v392_v46 = vld [vmem:[%s7781_s27 + $0x3f8] sm:$0xff] }
  0xf3   : > { %v4613_v19 = vrot.slane %v1981_v7, %v8013_v24  ;;  %v4608_v20 = vrot.slane %v1977_v12, %v8018_v29  ;;  %v2279_v7 = vadd.f32 %v2278_v61, %v1013_v49  ;;  %v1024_v12 = vunpack.c.h.bf16 %v388_v1  ;;  %v391_v49 = vld [vmem:[%s7781_s27 + $0x3f0] sm:$0xff] }
  0xf4   : > { %v2290_v18 = vsel %vm1805_vm0, %v1020_v63, 0.0 }
  0xf5   : > { %v4609_v30 = vsel %vm4440_vm10, %v4608_v20, %v4604_v11  ;;  %2260 = vadd.xlane.f32.xlu1 %v2259_v2  ;;  %2256 = vadd.xlane.f32.xlu0 %v2255_v4  ;;  %v2283_v4 = vadd.f32 %v2282_v55, %v1015_v48  ;;  %v1017_v11 = vunpack.c.l.bf16 %v385_v47  ;;  %v1022_v20 = vunpack.c.h.bf16 %v387_v3 }
  0xf6   : > { %v1989_v35 = vpop.xlane.xlu1 %1988  ;;  %v4614_v37 = vsel %vm11348_vm11, %v4613_v19, %v4609_v30  ;;  %v1985_v39 = vpop.xlane.xlu0 %1984  ;;  %v2286_v19 = vsel %vm1805_vm0, %v1018_v0, 0.0  ;;  %v389_v30 = vld [vmem:[%s7781_s27 + $0x3e0] sm:$0xff] }
  0xf7   : > { %v4623_v43 = vrot.slane %v1989_v35, %v8023_v34  ;;  %v4618_v45 = vrot.slane %v1985_v39, %v8027_v38  ;;  %v2291_v35 = vadd.f32 %v2290_v18, %v1019_v5  ;;  %v2298_v39 = vsel %vm1805_vm0, %v1024_v12, 0.0  ;;  %v393_v5 = vld [vmem:[%s7781_s27 + $0x400] sm:$0xff] }
  0xf8   : > { %v2294_v42 = vsel %vm1805_vm0, %v1022_v20, 0.0 }
  0xf9   : > { %v4619_v52 = vsel %vm4454_vm12, %v4618_v45, %v4614_v37  ;;  %2268 = vadd.xlane.f32.xlu1 %v2267_v31  ;;  %2264 = vadd.xlane.f32.xlu0 %v2263_v32  ;;  %v1023_v31 = vunpack.c.l.bf16 %v388_v1  ;;  %v1021_v32 = vunpack.c.l.bf16 %v387_v3  ;;  %v2287_v37 = vadd.f32 %v2286_v19, %v1017_v11 }
  0xfa   : > { %v1997_v58 = vpop.xlane.xlu1 %1996  ;;  %v4624_v59 = vsel %vm4461_vm13, %v4623_v43, %v4619_v52  ;;  %v1993_v60 = vpop.xlane.xlu0 %1992  ;;  %v1028_v43 = vunpack.c.h.bf16 %v390_v26  ;;  %v1026_v45 = vunpack.c.h.bf16 %v389_v30 }
  0xfb   : > { %v4633_v2 = vrot.slane %v1997_v58, %v8046_v8  ;;  %v4628_v28 = vrot.slane %v1993_v60, %v8049_v10  ;;  %v2299_v52 = vadd.f32 %v2298_v39, %v1023_v31  ;;  %v2295_v55 = vadd.f32 %v2294_v42, %v1021_v32  ;;  %v394_v60 = vld [vmem:[%s7781_s27 + $0x408] sm:$0xff] }
  0xfc   : > { %v1025_v58 = vunpack.c.l.bf16 %v389_v30  ;;  %v2306_v1 = vsel %vm1805_vm0, %v1028_v43, 0.0  ;;  %v1036_v11 = vunpack.c.h.bf16 %v394_v60  ;;  %v396_v30 = vld [vmem:[%s7781_s27 + $0x418] sm:$0xff]  ;;  %v1033_v39 = vunpack.c.l.bf16 %v393_v5 }
  0xfd   : > { %v4629_v6 = vsel %vm4468_vm14, %v4628_v28, %v4624_v59  ;;  %2276 = vadd.xlane.f32.xlu1 %v2275_v53  ;;  %2272 = vadd.xlane.f32.xlu0 %v2271_v54  ;;  %v1027_v53 = vunpack.c.l.bf16 %v390_v26  ;;  %v1032_v59 = vunpack.c.h.bf16 %v392_v46  ;;  %v1030_v28 = vunpack.c.h.bf16 %v391_v49 }
  0xfe   : > { %v8192_v14 = vsel %vm4475_vm15, %v4633_v2, %v4629_v6  ;;  %v2005_v16 = vpop.xlane.xlu1 %2004  ;;  %v2001_v17 = vpop.xlane.xlu0 %2000  ;;  %v2302_v2 = vsel %vm1805_vm0, %v1026_v45, 0.0  ;;  %v1031_v6 = vunpack.c.l.bf16 %v392_v46  ;;  %v1034_v26 = vunpack.c.h.bf16 %v393_v5 }
  0xff   : > { %v4642_v21 = vrot.slane %v2005_v16, %v7958_v9  ;;  %v4638_v25 = vrot.slane %v2001_v17, %v7940_v51  ;;  %v2307_v16 = vadd.f32 %v2306_v1, %v1027_v53  ;;  %v2303_v17 = vadd.f32 %v2302_v2, %v1025_v58 }
 0x100   : > { %v2314_v18 = vsel %vm1805_vm0, %v1032_v59, 0.0  ;;  %v2322_v42 = vsel %vm1805_vm0, %v1036_v11, 0.0  ;;  %v1040_v43 = vunpack.c.h.bf16 %v396_v30  ;;  %v1039_v59 = vunpack.c.l.bf16 %v396_v30 }
 0x101   : > { %v4643_v33 = vsel %vm4377_vm1, %v4642_v21, %v4638_v25  ;;  %2284 = vadd.xlane.f32.xlu1 %v2283_v4  ;;  %2280 = vadd.xlane.f32.xlu0 %v2279_v7  ;;  %v1029_v7 = vunpack.c.l.bf16 %v391_v49  ;;  %v2310_v25 = vsel %vm1805_vm0, %v1030_v28, 0.0 }
 0x102   : > { %v2013_v40 = vpop.xlane.xlu1 %2012  ;;  %v2009_v41 = vpop.xlane.xlu0 %2008 }
 0x103   : > { %v4652_v47 = vrot.slane %v2013_v40, %v7949_v62  ;;  %v4647_v48 = vrot.slane %v2009_v41, %v7944_v57  ;;  %v2311_v41 = vadd.f32 %v2310_v25, %v1029_v7 }
 0x105   : > { %v4648_v54 = vsel %vm4384_vm2, %v4647_v48, %v4643_v33  ;;  %2292 = vadd.xlane.f32.xlu1 %v2291_v35  ;;  %2288 = vadd.xlane.f32.xlu0 %v2287_v37  ;;  %v395_v33 = vld [vmem:[%s7781_s27 + $0x410] sm:$0xff]  ;;  %v2315_v35 = vadd.f32 %v2314_v18, %v1031_v6  ;;  %v1035_v37 = vunpack.c.l.bf16 %v394_v60  ;;  %v2318_v48 = vsel %vm1805_vm0, %v1034_v26, 0.0  ;;  %v400_v6 = vld [vmem:[%s7781_s27 + $0x438] sm:$0xff] }
 0x106   : > { %v2021_v61 = vpop.xlane.xlu1 %2020  ;;  %v4653_v63 = vsel %vm4391_vm3, %v4652_v47, %v4648_v54  ;;  %v2017_v0 = vpop.xlane.xlu0 %2016  ;;  %v1038_v49 = vunpack.c.h.bf16 %v395_v33  ;;  %v1037_v60 = vunpack.c.l.bf16 %v395_v33  ;;  %v1048_v25 = vunpack.c.h.bf16 %v400_v6 }
 0x107   : > { %v4662_v3 = vrot.slane %v2021_v61, %v7962_v13  ;;  %v4657_v4 = vrot.slane %v2017_v0, %v7965_v15  ;;  %v2323_v58 = vadd.f32 %v2322_v42, %v1035_v37  ;;  %v2330_v0 = vsel %vm1805_vm0, %v1040_v43, 0.0 }
 0x108   : > { %v1047_v42 = vunpack.c.l.bf16 %v400_v6 }
 0x109   : > { %v4658_v12 = vsel %vm4398_vm4, %v4657_v4, %v4653_v63  ;;  %2300 = vadd.xlane.f32.xlu1 %v2299_v52  ;;  %2296 = vadd.xlane.f32.xlu0 %v2295_v55  ;;  %v398_v52 = vld [vmem:[%s7781_s27 + $0x428] sm:$0xff]  ;;  %v397_v55 = vld [vmem:[%s7781_s27 + $0x420] sm:$0xff]  ;;  %v2319_v63 = vadd.f32 %v2318_v48, %v1033_v39  ;;  %v2326_v4 = vsel %vm1805_vm0, %v1038_v49, 0.0 }
 0x10a   : > { %v2029_v19 = vpop.xlane.xlu1 %2028  ;;  %v4663_v20 = vsel %vm4405_vm5, %v4662_v3, %v4658_v12  ;;  %v2025_v21 = vpop.xlane.xlu0 %2024  ;;  %v1044_v1 = vunpack.c.h.bf16 %v398_v52  ;;  %v1042_v5 = vunpack.c.h.bf16 %v397_v55  ;;  %v399_v12 = vld [vmem:[%s7781_s27 + $0x430] sm:$0xff]  ;;  %v1041_v18 = vunpack.c.l.bf16 %v397_v55 }
 0x10b   : > { %v4672_v31 = vrot.slane %v2029_v19, %v7969_v22  ;;  %v4667_v32 = vrot.slane %v2025_v21, %v7972_v23  ;;  %v1046_v33 = vunpack.c.h.bf16 %v399_v12  ;;  %v1045_v43 = vunpack.c.l.bf16 %v399_v12 }
 0x10c   : > { %v2338_v21 = vsel %vm1805_vm0, %v1044_v1, 0.0 }
 0x10d   : > { %v4668_v40 = vsel %vm4412_vm6, %v4667_v32, %v4663_v20  ;;  %2308 = vadd.xlane.f32.xlu1 %v2307_v16  ;;  %2304 = vadd.xlane.f32.xlu0 %v2303_v17  ;;  %v2331_v16 = vadd.f32 %v2330_v0, %v1039_v59  ;;  %v1043_v17 = vunpack.c.l.bf16 %v398_v52  ;;  %v2327_v20 = vadd.f32 %v2326_v4, %v1037_v60 }
 0x10e   : > { %v2037_v45 = vpop.xlane.xlu1 %2036  ;;  %v4673_v46 = vsel %vm4419_vm7, %v4672_v31, %v4668_v40  ;;  %v2033_v47 = vpop.xlane.xlu0 %2032  ;;  %v2334_v32 = vsel %vm1805_vm0, %v1042_v5, 0.0  ;;  %v401_v40 = vld [vmem:[%s7781_s27 + $0x440] sm:$0xff] }
 0x10f   : > { %v4682_v53 = vrot.slane %v2037_v45, %v7991_v50  ;;  %v4677_v54 = vrot.slane %v2033_v47, %v7996_v56  ;;  %v2346_v47 = vsel %vm1805_vm0, %v1048_v25, 0.0  ;;  %v1050_v55 = vunpack.c.h.bf16 %v401_v40 }
 0x110   : > { %v1049_v1 = vunpack.c.l.bf16 %v401_v40 }
 0x111   : > { %v4678_v61 = vsel %vm4426_vm8, %v4677_v54, %v4673_v46  ;;  %2316 = vadd.xlane.f32.xlu1 %v2315_v35  ;;  %2312 = vadd.xlane.f32.xlu0 %v2311_v41  ;;  %v402_v35 = vld [vmem:[%s7781_s27 + $0x448] sm:$0xff]  ;;  %v2339_v41 = vadd.f32 %v2338_v21, %v1043_v17  ;;  %v2335_v46 = vadd.f32 %v2334_v32, %v1041_v18  ;;  %v2342_v54 = vsel %vm1805_vm0, %v1046_v33, 0.0  ;;  %v408_v33 = vld [vmem:[%s7781_s27 + $0x478] sm:$0xff] }
 0x112   : > { %v2045_v2 = vpop.xlane.xlu1 %2044  ;;  %v4683_v28 = vsel %vm11349_vm9, %v4682_v53, %v4678_v61  ;;  %v2041_v3 = vpop.xlane.xlu0 %2040  ;;  %v1052_v48 = vunpack.c.h.bf16 %v402_v35  ;;  %v403_v61 = vld [vmem:[%s7781_s27 + $0x450] sm:$0xff]  ;;  %v1051_v0 = vunpack.c.l.bf16 %v402_v35 }
 0x113   : > { %v4692_v7 = vrot.slane %v2045_v2, %v8013_v24  ;;  %v4687_v11 = vrot.slane %v2041_v3, %v8018_v29  ;;  %v1054_v12 = vunpack.c.h.bf16 %v403_v61  ;;  %v1053_v25 = vunpack.c.l.bf16 %v403_v61 }
 0x114   : > { %v2354_v3 = vsel %vm1805_vm0, %v1052_v48, 0.0  ;;  %v1064_v48 = vunpack.c.h.bf16 %v408_v33 }
 0x115   : > { %v4688_v19 = vsel %vm4440_vm10, %v4687_v11, %v4683_v28  ;;  %2324 = vadd.xlane.f32.xlu1 %v2323_v58  ;;  %2320 = vadd.xlane.f32.xlu0 %v2319_v63  ;;  %v404_v58 = vld [vmem:[%s7781_s27 + $0x458] sm:$0xff]  ;;  %v2347_v63 = vadd.f32 %v2346_v47, %v1047_v42  ;;  %v2343_v28 = vadd.f32 %v2342_v54, %v1045_v43  ;;  %v2350_v11 = vsel %vm1805_vm0, %v1050_v55, 0.0  ;;  %v410_v55 = vld [vmem:[%s7781_s27 + $0x488] sm:$0xff] }
 0x116   : > { %v2053_v26 = vpop.xlane.xlu1 %2052  ;;  %v4693_v30 = vsel %vm11348_vm11, %v4692_v7, %v4688_v19  ;;  %v2049_v31 = vpop.xlane.xlu0 %2048  ;;  %v1056_v4 = vunpack.c.h.bf16 %v404_v58  ;;  %v405_v19 = vld [vmem:[%s7781_s27 + $0x460] sm:$0xff]  ;;  %v1055_v21 = vunpack.c.l.bf16 %v404_v58 }
 0x117   : > { %v4702_v37 = vrot.slane %v2053_v26, %v8023_v34  ;;  %v4697_v39 = vrot.slane %v2049_v31, %v8027_v38  ;;  %v1058_v40 = vunpack.c.h.bf16 %v405_v19  ;;  %v1057_v47 = vunpack.c.l.bf16 %v405_v19 }
 0x118   : > { %v2362_v31 = vsel %vm1805_vm0, %v1056_v4, 0.0 }
 0x119   : > { %v4698_v45 = vsel %vm4454_vm12, %v4697_v39, %v4693_v30  ;;  %2332 = vadd.xlane.f32.xlu1 %v2331_v16  ;;  %2328 = vadd.xlane.f32.xlu0 %v2327_v20  ;;  %v406_v16 = vld [vmem:[%s7781_s27 + $0x468] sm:$0xff]  ;;  %v2355_v20 = vadd.f32 %v2354_v3, %v1051_v0  ;;  %v2351_v30 = vadd.f32 %v2350_v11, %v1049_v1  ;;  %v2358_v39 = vsel %vm1805_vm0, %v1054_v12, 0.0 }
 0x11a   : > { %v2061_v49 = vpop.xlane.xlu1 %2060  ;;  %v4703_v52 = vsel %vm4461_vm13, %v4702_v37, %v4698_v45  ;;  %v2057_v53 = vpop.xlane.xlu0 %2056  ;;  %v1060_v32 = vunpack.c.h.bf16 %v406_v16  ;;  %v2363_v45 = vadd.f32 %v2362_v31, %v1055_v21  ;;  %v2366_v61 = vsel %vm1805_vm0, %v1058_v40, 0.0  ;;  %v411_v21 = vld [vmem:[%s7781_s27 + $0x490] sm:$0xff] }
 0x11b   : > { %v4712_v59 = vrot.slane %v2061_v49, %v8046_v8  ;;  %v4707_v60 = vrot.slane %v2057_v53, %v8049_v10  ;;  %v2378_v3 = vsel %vm1805_vm0, %v1064_v48, 0.0  ;;  %v2367_v11 = vadd.f32 %v2366_v61, %v1057_v47 }
 0x11c   : > { %v2370_v53 = vsel %vm1805_vm0, %v1060_v32, 0.0  ;;  %v1067_v32 = vunpack.c.l.bf16 %v410_v55 }
 0x11d   : > { %v4708_v2 = vsel %vm4468_vm14, %v4707_v60, %v4703_v52  ;;  %2340 = vadd.xlane.f32.xlu1 %v2339_v41  ;;  %2336 = vadd.xlane.f32.xlu0 %v2335_v46  ;;  %v407_v41 = vld [vmem:[%s7781_s27 + $0x470] sm:$0xff]  ;;  %v1059_v46 = vunpack.c.l.bf16 %v406_v16  ;;  %v2359_v52 = vadd.f32 %v2358_v39, %v1053_v25 }
 0x11e   : > { %v8258_v5 = vsel %vm4475_vm15, %v4712_v59, %v4708_v2  ;;  %v2069_v6 = vpop.xlane.xlu1 %2068  ;;  %v2065_v7 = vpop.xlane.xlu0 %2064  ;;  %v1062_v54 = vunpack.c.h.bf16 %v407_v41  ;;  %v1063_v2 = vunpack.c.l.bf16 %v408_v33  ;;  %v1061_v4 = vunpack.c.l.bf16 %v407_v41 }
 0x11f   : > { %v4721_v17 = vrot.slane %v2069_v6, %v7958_v9  ;;  %v4717_v18 = vrot.slane %v2065_v7, %v7940_v51  ;;  %v1068_v6 = vunpack.c.h.bf16 %v410_v55  ;;  %v1070_v41 = vunpack.c.h.bf16 %v411_v21 }
 0x120   : > { %v2374_v12 = vsel %vm1805_vm0, %v1062_v54, 0.0  ;;  %v1069_v55 = vunpack.c.l.bf16 %v411_v21  ;;  %v418_v21 = vld [vmem:[%s7781_s27 + $0x4c8] sm:$0xff] }
 0x121   : > { %v4722_v26 = vsel %vm4377_vm1, %v4721_v17, %v4717_v18  ;;  %2348 = vadd.xlane.f32.xlu1 %v2347_v63  ;;  %2344 = vadd.xlane.f32.xlu0 %v2343_v28  ;;  %v409_v63 = vld [vmem:[%s7781_s27 + $0x480] sm:$0xff]  ;;  %v2371_v28 = vadd.f32 %v2370_v53, %v1059_v46  ;;  %v2375_v31 = vadd.f32 %v2374_v12, %v1061_v4  ;;  %v2386_v33 = vsel %vm1805_vm0, %v1068_v6, 0.0  ;;  %v414_v46 = vld [vmem:[%s7781_s27 + $0x4a8] sm:$0xff] }
 0x122   : > { %v2077_v35 = vpop.xlane.xlu1 %2076  ;;  %v2073_v37 = vpop.xlane.xlu0 %2072  ;;  %v1066_v16 = vunpack.c.h.bf16 %v409_v63  ;;  %v1076_v61 = vunpack.c.h.bf16 %v414_v46  ;;  %v1075_v12 = vunpack.c.l.bf16 %v414_v46 }
 0x123   : > { %v4731_v42 = vrot.slane %v2077_v35, %v7949_v62  ;;  %v4726_v43 = vrot.slane %v2073_v37, %v7944_v57  ;;  %v1065_v35 = vunpack.c.l.bf16 %v409_v63  ;;  %v416_v63 = vld [vmem:[%s7781_s27 + $0x4b8] sm:$0xff] }
 0x124   : > { %v2382_v39 = vsel %vm1805_vm0, %v1066_v16, 0.0  ;;  %v1080_v16 = vunpack.c.h.bf16 %v416_v63 }
 0x125   : > { %v4727_v49 = vsel %vm4384_vm2, %v4726_v43, %v4722_v26  ;;  %2356 = vadd.xlane.f32.xlu1 %v2355_v20  ;;  %2352 = vadd.xlane.f32.xlu0 %v2351_v30  ;;  %v412_v20 = vld [vmem:[%s7781_s27 + $0x498] sm:$0xff]  ;;  %v2379_v30 = vadd.f32 %v2378_v3, %v1063_v2  ;;  %v2383_v53 = vadd.f32 %v2382_v39, %v1065_v35  ;;  %v415_v3 = vld [vmem:[%s7781_s27 + $0x4b0] sm:$0xff] }
 0x126   : > { %v2085_v58 = vpop.xlane.xlu1 %2084  ;;  %v4732_v59 = vsel %vm4391_vm3, %v4731_v42, %v4727_v49  ;;  %v2081_v60 = vpop.xlane.xlu0 %2080  ;;  %v1072_v40 = vunpack.c.h.bf16 %v412_v20  ;;  %v413_v49 = vld [vmem:[%s7781_s27 + $0x4a0] sm:$0xff]  ;;  %v1071_v54 = vunpack.c.l.bf16 %v412_v20  ;;  %v1078_v20 = vunpack.c.h.bf16 %v415_v3 }
 0x127   : > { %v4741_v0 = vrot.slane %v2085_v58, %v7962_v13  ;;  %v4736_v1 = vrot.slane %v2081_v60, %v7965_v15  ;;  %v2390_v60 = vsel %vm1805_vm0, %v1070_v41, 0.0  ;;  %v1077_v41 = vunpack.c.l.bf16 %v415_v3 }
 0x128   : > { %v2406_v46 = vsel %vm1805_vm0, %v1078_v20, 0.0 }
 0x129   : > { %v4737_v7 = vsel %vm4398_vm4, %v4736_v1, %v4732_v59  ;;  %2364 = vadd.xlane.f32.xlu1 %v2363_v45  ;;  %2360 = vadd.xlane.f32.xlu0 %v2359_v52  ;;  %v2387_v52 = vadd.f32 %v2386_v33, %v1067_v32  ;;  %v2394_v59 = vsel %vm1805_vm0, %v1072_v40, 0.0  ;;  %v417_v32 = vld [vmem:[%s7781_s27 + $0x4c0] sm:$0xff]  ;;  %v2410_v40 = vsel %vm1805_vm0, %v1080_v16, 0.0 }
 0x12a   : > { %v2093_v17 = vpop.xlane.xlu1 %2092  ;;  %v4742_v18 = vsel %vm4405_vm5, %v4741_v0, %v4737_v7  ;;  %v2089_v19 = vpop.xlane.xlu0 %2088  ;;  %v2395_v7 = vadd.f32 %v2394_v59, %v1071_v54  ;;  %v419_v54 = vld [vmem:[%s7781_s27 + $0x4d0] sm:$0xff] }
 0x12b   : > { %v4751_v25 = vrot.slane %v2093_v17, %v7969_v22  ;;  %v4746_v26 = vrot.slane %v2089_v19, %v7972_v23  ;;  %v1073_v19 = vunpack.c.l.bf16 %v413_v49  ;;  %v1086_v3 = vunpack.c.h.bf16 %v419_v54 }
 0x12d   : > { %v4747_v37 = vsel %vm4412_vm6, %v4746_v26, %v4742_v18  ;;  %2372 = vadd.xlane.f32.xlu1 %v2371_v28  ;;  %2368 = vadd.xlane.f32.xlu0 %v2367_v11  ;;  %v1074_v28 = vunpack.c.h.bf16 %v413_v49  ;;  %v2391_v11 = vadd.f32 %v2390_v60, %v1069_v55  ;;  %v2402_v18 = vsel %vm1805_vm0, %v1076_v61, 0.0 }
 0x12e   : > { %v2101_v42 = vpop.xlane.xlu1 %2100  ;;  %v4752_v43 = vsel %vm4419_vm7, %v4751_v25, %v4747_v37  ;;  %v2097_v45 = vpop.xlane.xlu0 %2096  ;;  %v1079_v37 = vunpack.c.l.bf16 %v416_v63  ;;  %v2403_v39 = vadd.f32 %v2402_v18, %v1075_v12  ;;  %v2407_v60 = vadd.f32 %v2406_v46, %v1077_v41  ;;  %v421_v18 = vld [vmem:[%s7781_s27 + $0x4e0] sm:$0xff] }
 0x12f   : > { %v4761_v47 = vrot.slane %v2101_v42, %v7991_v50  ;;  %v4756_v48 = vrot.slane %v2097_v45, %v7996_v56  ;;  %v1084_v42 = vunpack.c.h.bf16 %v418_v21  ;;  %v1083_v61 = vunpack.c.l.bf16 %v418_v21 }
 0x130   : > { %v2411_v59 = vadd.f32 %v2410_v40, %v1079_v37  ;;  %v1090_v37 = vunpack.c.h.bf16 %v421_v18 }
 0x131   : > { %v4757_v58 = vsel %vm4426_vm8, %v4756_v48, %v4752_v43  ;;  %2380 = vadd.xlane.f32.xlu1 %v2379_v30  ;;  %2376 = vadd.xlane.f32.xlu0 %v2375_v31  ;;  %v2398_v31 = vsel %vm1805_vm0, %v1074_v28, 0.0  ;;  %v2418_v63 = vsel %vm1805_vm0, %v1084_v42, 0.0 }
 0x132   : > { %v2109_v0 = vpop.xlane.xlu1 %2108  ;;  %v4762_v1 = vsel %vm11349_vm9, %v4761_v47, %v4757_v58  ;;  %v2105_v2 = vpop.xlane.xlu0 %2104  ;;  %v2399_v45 = vadd.f32 %v2398_v31, %v1073_v19  ;;  %v1082_v47 = vunpack.c.h.bf16 %v417_v32  ;;  %v2419_v19 = vadd.f32 %v2418_v63, %v1083_v61 }
 0x133   : > { %v4771_v4 = vrot.slane %v2109_v0, %v8013_v24  ;;  %v4766_v6 = vrot.slane %v2105_v2, %v8018_v29  ;;  %v1081_v0 = vunpack.c.l.bf16 %v417_v32  ;;  %v2422_v31 = vsel %vm1805_vm0, %v1086_v3, 0.0  ;;  %v424_v32 = vld [vmem:[%s7781_s27 + $0x4f8] sm:$0xff] }
 0x134   : > { %v2414_v2 = vsel %vm1805_vm0, %v1082_v47, 0.0  ;;  %v1096_v46 = vunpack.c.h.bf16 %v424_v32 }
 0x135   : > { %v4767_v17 = vsel %vm4440_vm10, %v4766_v6, %v4762_v1  ;;  %2388 = vadd.xlane.f32.xlu1 %v2387_v52  ;;  %2384 = vadd.xlane.f32.xlu0 %v2383_v53  ;;  %v420_v53 = vld [vmem:[%s7781_s27 + $0x4d8] sm:$0xff]  ;;  %v2415_v20 = vadd.f32 %v2414_v2, %v1081_v0  ;;  %v1095_v0 = vunpack.c.l.bf16 %v424_v32 }
 0x136   : > { %v2117_v25 = vpop.xlane.xlu1 %2116  ;;  %v4772_v26 = vsel %vm11348_vm11, %v4771_v4, %v4767_v17  ;;  %v2113_v30 = vpop.xlane.xlu0 %2112  ;;  %vm6926_vm11 = vcmask 1041409   ;;  %v1088_v28 = vunpack.c.h.bf16 %v420_v53  ;;  %v1087_v21 = vunpack.c.l.bf16 %v420_v53  ;;  %v426_v53 = vld [vmem:[%s7781_s27 + $0x508] sm:$0xff] }
 0x137   : > { %v4781_v33 = vrot.slane %v2117_v25, %v8023_v34  ;;  %v4776_v35 = vrot.slane %v2113_v30, %v8027_v38  ;;  %v1085_v25 = vunpack.c.l.bf16 %v419_v54  ;;  %v2442_v2 = vsel %vm1805_vm0, %v1096_v46, 0.0 }
 0x138   : > { %v2426_v30 = vsel %vm1805_vm0, %v1088_v28, 0.0  ;;  %v1100_v3 = vunpack.c.h.bf16 %v426_v53 }
 0x139   : > { %v4777_v43 = vsel %vm4454_vm12, %v4776_v35, %v4772_v26  ;;  %2396 = vadd.xlane.f32.xlu1 %v2395_v7  ;;  %2392 = vadd.xlane.f32.xlu0 %v2391_v11  ;;  %v422_v11 = vld [vmem:[%s7781_s27 + $0x4e8] sm:$0xff]  ;;  %v2427_v42 = vadd.f32 %v2426_v30, %v1087_v21 }
 0x13a   : > { %v2125_v48 = vpop.xlane.xlu1 %2124  ;;  %v4782_v49 = vsel %vm4461_vm13, %v4781_v33, %v4777_v43  ;;  %v2121_v52 = vpop.xlane.xlu0 %2120  ;;  %v2423_v43 = vadd.f32 %v2422_v31, %v1085_v25  ;;  %v1099_v31 = vunpack.c.l.bf16 %v426_v53 }
 0x13b   : > { %v4791_v55 = vrot.slane %v2125_v48, %v8046_v8  ;;  %v4786_v58 = vrot.slane %v2121_v52, %v8049_v10 }
 0x13d   : > { %v4787_v1 = vsel %vm4468_vm14, %v4786_v58, %v4782_v49  ;;  %2404 = vadd.xlane.f32.xlu1 %v2403_v39  ;;  %2400 = vadd.xlane.f32.xlu0 %v2399_v45  ;;  %v423_v39 = vld [vmem:[%s7781_s27 + $0x4f0] sm:$0xff]  ;;  %v1091_v45 = vunpack.c.l.bf16 %v422_v11  ;;  %v1089_v49 = vunpack.c.l.bf16 %v421_v18 }
 0x13e   : > { %v4792_v4 = vsel %vm4475_vm15, %v4791_v55, %v4787_v1  ;;  %v2133_v6 = vpop.xlane.xlu1 %2132  ;;  %v2129_v7 = vpop.xlane.xlu0 %2128  ;;  %v1094_v52 = vunpack.c.h.bf16 %v423_v39  ;;  %v1093_v28 = vunpack.c.l.bf16 %v423_v39 }
 0x13f   : > { %v8327_v12 = vsel %vm6926_vm11, %v4792_v4, %v8063_v44  ;;  %v4800_v16 = vrot.slane %v2133_v6, %v7958_v9  ;;  %v4796_v17 = vrot.slane %v2129_v7, %v7940_v51  ;;  %v1092_v44 = vunpack.c.h.bf16 %v422_v11 }
 0x140   : > { %v2438_v7 = vsel %vm1805_vm0, %v1094_v52, 0.0 }
 0x141   : > { %v4801_v26 = vsel %vm4377_vm1, %v4800_v16, %v4796_v17  ;;  %2412 = vadd.xlane.f32.xlu1 %v2411_v59  ;;  %2408 = vadd.xlane.f32.xlu0 %v2407_v60  ;;  %v2434_v48 = vsel %vm1805_vm0, %v1092_v44, 0.0  ;;  %v2430_v59 = vsel %vm1805_vm0, %v1090_v37, 0.0  ;;  %v425_v60 = vld [vmem:[%s7781_s27 + $0x500] sm:$0xff]  ;;  %v2439_v30 = vadd.f32 %v2438_v7, %v1093_v28 }
 0x142   : > { %v2141_v33 = vpop.xlane.xlu1 %2140  ;;  %v2137_v35 = vpop.xlane.xlu0 %2136  ;;  %v2435_v1 = vadd.f32 %v2434_v48, %v1091_v45  ;;  %v2431_v6 = vadd.f32 %v2430_v59, %v1089_v49  ;;  %v1098_v11 = vunpack.c.h.bf16 %v425_v60  ;;  %v2450_v44 = vsel %vm1805_vm0, %v1100_v3, 0.0 }
 0x143   : > { %v4810_v40 = vrot.slane %v2141_v33, %v7949_v62  ;;  %v4805_v41 = vrot.slane %v2137_v35, %v7944_v57  ;;  %v1097_v32 = vunpack.c.l.bf16 %v425_v60  ;;  %v2451_v48 = vadd.f32 %v2450_v44, %v1099_v31  ;;  %v432_v60 = vld [vmem:[%s7781_s27 + $0x538] sm:$0xff]  ;;  %v433_v31 = vld [vmem:[%s7781_s27 + $0x540] sm:$0xff] }
 0x144   : > { %v2446_v35 = vsel %vm1805_vm0, %v1098_v11, 0.0  ;;  %v1112_v11 = vunpack.c.h.bf16 %v432_v60 }
 0x145   : > { %v4806_v47 = vsel %vm4384_vm2, %v4805_v41, %v4801_v26  ;;  %2420 = vadd.xlane.f32.xlu1 %v2419_v19  ;;  %2416 = vadd.xlane.f32.xlu0 %v2415_v20  ;;  %v428_v19 = vld [vmem:[%s7781_s27 + $0x518] sm:$0xff]  ;;  %v427_v20 = vld [vmem:[%s7781_s27 + $0x510] sm:$0xff]  ;;  %v2443_v26 = vadd.f32 %v2442_v2, %v1095_v0  ;;  %v2447_v49 = vadd.f32 %v2446_v35, %v1097_v32 }
 0x146   : > { %v2149_v54 = vpop.xlane.xlu1 %2148  ;;  %v4811_v55 = vsel %vm4391_vm3, %v4810_v40, %v4806_v47  ;;  %v2145_v58 = vpop.xlane.xlu0 %2144  ;;  %v1104_v37 = vunpack.c.h.bf16 %v428_v19  ;;  %v1102_v39 = vunpack.c.h.bf16 %v427_v20  ;;  %v429_v47 = vld [vmem:[%s7781_s27 + $0x520] sm:$0xff]  ;;  %v1103_v52 = vunpack.c.l.bf16 %v428_v19  ;;  %v431_v2 = vld [vmem:[%s7781_s27 + $0x530] sm:$0xff] }
 0x147   : > { %v4820_v61 = vrot.slane %v2149_v54, %v7962_v13  ;;  %v4815_v63 = vrot.slane %v2145_v58, %v7965_v15  ;;  %v1101_v53 = vunpack.c.l.bf16 %v427_v20  ;;  %v1110_v19 = vunpack.c.h.bf16 %v431_v2  ;;  %v434_v20 = vld [vmem:[%s7781_s27 + $0x548] sm:$0xff] }
 0x148   : > { %v2454_v58 = vsel %vm1805_vm0, %v1102_v39, 0.0  ;;  %v1109_v39 = vunpack.c.l.bf16 %v431_v2 }
 0x149   : > { %v4816_v4 = vsel %vm4398_vm4, %v4815_v63, %v4811_v55  ;;  %2428 = vadd.xlane.f32.xlu1 %v2427_v42  ;;  %2424 = vadd.xlane.f32.xlu0 %v2423_v43  ;;  %v430_v43 = vld [vmem:[%s7781_s27 + $0x528] sm:$0xff]  ;;  %v2458_v55 = vsel %vm1805_vm0, %v1104_v37, 0.0  ;;  %v2474_v37 = vsel %vm1805_vm0, %v1112_v11, 0.0 }
 0x14a   : > { %v2157_v16 = vpop.xlane.xlu1 %2156  ;;  %v4821_v17 = vsel %vm4405_vm5, %v4820_v61, %v4816_v4  ;;  %v2153_v18 = vpop.xlane.xlu0 %2152  ;;  %v1108_v59 = vunpack.c.h.bf16 %v430_v43  ;;  %v2459_v4 = vadd.f32 %v2458_v55, %v1103_v52  ;;  %v1107_v7 = vunpack.c.l.bf16 %v430_v43  ;;  %v435_v52 = vld [vmem:[%s7781_s27 + $0x550] sm:$0xff] }
 0x14b   : > { %v4830_v21 = vrot.slane %v2157_v16, %v7969_v22  ;;  %v4825_v25 = vrot.slane %v2153_v18, %v7972_v23  ;;  %v1105_v18 = vunpack.c.l.bf16 %v429_v47  ;;  %v2470_v43 = vsel %vm1805_vm0, %v1110_v19, 0.0 }
 0x14c   : > { %v1118_v2 = vunpack.c.h.bf16 %v435_v52 }
 0x14d   : > { %v4826_v33 = vsel %vm4412_vm6, %v4825_v25, %v4821_v17  ;;  %2436 = vadd.xlane.f32.xlu1 %v2435_v1  ;;  %2432 = vadd.xlane.f32.xlu0 %v2431_v6  ;;  %v1106_v1 = vunpack.c.h.bf16 %v429_v47  ;;  %v2455_v6 = vadd.f32 %v2454_v58, %v1101_v53  ;;  %v2466_v17 = vsel %vm1805_vm0, %v1108_v59, 0.0 }
 0x14e   : > { %v2165_v40 = vpop.xlane.xlu1 %2164  ;;  %v4831_v41 = vsel %vm4419_vm7, %v4830_v21, %v4826_v33  ;;  %v2161_v42 = vpop.xlane.xlu0 %2160  ;;  %v1111_v33 = vunpack.c.l.bf16 %v432_v60  ;;  %v2467_v35 = vadd.f32 %v2466_v17, %v1107_v7  ;;  %v2471_v58 = vadd.f32 %v2470_v43, %v1109_v39  ;;  %v437_v17 = vld [vmem:[%s7781_s27 + $0x560] sm:$0xff] }
 0x14f   : > { %v4840_v45 = vrot.slane %v2165_v40, %v7991_v50  ;;  %v4835_v46 = vrot.slane %v2161_v42, %v7996_v56  ;;  %v1116_v40 = vunpack.c.h.bf16 %v434_v20  ;;  %v1115_v59 = vunpack.c.l.bf16 %v434_v20 }
 0x150   : > { %v2475_v55 = vadd.f32 %v2474_v37, %v1111_v33  ;;  %v1122_v33 = vunpack.c.h.bf16 %v437_v17 }
 0x151   : > { %v4836_v54 = vsel %vm4426_vm8, %v4835_v46, %v4831_v41  ;;  %2444 = vadd.xlane.f32.xlu1 %v2443_v26  ;;  %2440 = vadd.xlane.f32.xlu0 %v2439_v30  ;;  %v2462_v30 = vsel %vm1805_vm0, %v1106_v1, 0.0  ;;  %v2482_v60 = vsel %vm1805_vm0, %v1116_v40, 0.0 }
 0x152   : > { %v2173_v61 = vpop.xlane.xlu1 %2172  ;;  %v4841_v63 = vsel %vm11349_vm9, %v4840_v45, %v4836_v54  ;;  %v2169_v0 = vpop.xlane.xlu0 %2168  ;;  %vm11350_vm9 = vcmask 786112   ;;  %v2463_v42 = vadd.f32 %v2462_v30, %v1105_v18  ;;  %v1114_v45 = vunpack.c.h.bf16 %v433_v31 }
 0x153   : > { %v4850_v28 = vrot.slane %v2173_v61, %v8013_v24  ;;  %v4845_v3 = vrot.slane %v2169_v0, %v8018_v29  ;;  %v1113_v61 = vunpack.c.l.bf16 %v433_v31  ;;  %v2483_v18 = vadd.f32 %v2482_v60, %v1115_v59  ;;  %v440_v31 = vld [vmem:[%s7781_s27 + $0x578] sm:$0xff] }
 0x154   : > { %v2478_v0 = vsel %vm1805_vm0, %v1114_v45, 0.0  ;;  %v2486_v30 = vsel %vm1805_vm0, %v1118_v2, 0.0  ;;  %v1128_v43 = vunpack.c.h.bf16 %v440_v31 }
 0x155   : > { %v4846_v16 = vsel %vm4440_vm10, %v4845_v3, %v4841_v63  ;;  %2452 = vadd.xlane.f32.xlu1 %v2451_v48  ;;  %2448 = vadd.xlane.f32.xlu0 %v2447_v49  ;;  %v436_v49 = vld [vmem:[%s7781_s27 + $0x558] sm:$0xff]  ;;  %v2479_v19 = vadd.f32 %v2478_v0, %v1113_v61  ;;  %v1127_v61 = vunpack.c.l.bf16 %v440_v31 }
 0x156   : > { %v2181_v21 = vpop.xlane.xlu1 %2180  ;;  %v4851_v25 = vsel %vm11350_vm9, %v4850_v28, %v4846_v16  ;;  %v2177_v26 = vpop.xlane.xlu0 %2176  ;;  %v1120_v1 = vunpack.c.h.bf16 %v436_v49  ;;  %v1119_v20 = vunpack.c.l.bf16 %v436_v49  ;;  %v442_v49 = vld [vmem:[%s7781_s27 + $0x588] sm:$0xff]  ;;  %v2506_v0 = vsel %vm1805_vm0, %v1128_v43, 0.0 }
 0x157   : > { %v4860_v44 = vrot.slane %v2181_v21, %v8023_v34  ;;  %v4855_v32 = vrot.slane %v2177_v26, %v8027_v38  ;;  %v1117_v21 = vunpack.c.l.bf16 %v435_v52  ;;  %v1132_v2 = vunpack.c.h.bf16 %v442_v49 }
 0x158   : > { %v2490_v26 = vsel %vm1805_vm0, %v1120_v1, 0.0  ;;  %vm11351_vm9 = vcmask 654912  }
 0x159   : > { %v4856_v41 = vsel %vm4454_vm12, %v4855_v32, %v4851_v25  ;;  %2460 = vadd.xlane.f32.xlu1 %v2459_v4  ;;  %2456 = vadd.xlane.f32.xlu0 %v2455_v6  ;;  %v438_v6 = vld [vmem:[%s7781_s27 + $0x568] sm:$0xff]  ;;  %v2491_v40 = vadd.f32 %v2490_v26, %v1119_v20 }
 0x15a   : > { %v2189_v46 = vpop.xlane.xlu1 %2188  ;;  %v4861_v47 = vsel %vm4461_vm13, %v4860_v44, %v4856_v41  ;;  %v2185_v48 = vpop.xlane.xlu0 %2184  ;;  %v2487_v41 = vadd.f32 %v2486_v30, %v1117_v21  ;;  %v1131_v30 = vunpack.c.l.bf16 %v442_v49 }
 0x15b   : > { %v4870_v53 = vrot.slane %v2189_v46, %v8046_v8  ;;  %v4865_v54 = vrot.slane %v2185_v48, %v8049_v10 }
 0x15d   : > { %v4866_v63 = vsel %vm4468_vm14, %v4865_v54, %v4861_v47  ;;  %2468 = vadd.xlane.f32.xlu1 %v2467_v35  ;;  %2464 = vadd.xlane.f32.xlu0 %v2463_v42  ;;  %v439_v35 = vld [vmem:[%s7781_s27 + $0x570] sm:$0xff]  ;;  %v1123_v42 = vunpack.c.l.bf16 %v438_v6  ;;  %v1121_v47 = vunpack.c.l.bf16 %v437_v17 }
 0x15e   : > { %v4871_v28 = vsel %vm4475_vm15, %v4870_v53, %v4866_v63  ;;  %v2197_v3 = vpop.xlane.xlu1 %2196  ;;  %v2193_v4 = vpop.xlane.xlu0 %2192  ;;  %v1126_v48 = vunpack.c.h.bf16 %v439_v35  ;;  %v1125_v1 = vunpack.c.l.bf16 %v439_v35 }
 0x15f   : > { %v8394_v7 = vsel %vm6926_vm11, %v4871_v28, %v8127_v27  ;;  %v4879_v11 = vrot.slane %v2197_v3, %v7958_v9  ;;  %v4875_v16 = vrot.slane %v2193_v4, %v7940_v51  ;;  %v1124_v27 = vunpack.c.h.bf16 %v438_v6 }
 0x160   : > { %v2502_v4 = vsel %vm1805_vm0, %v1126_v48, 0.0 }
 0x161   : > { %v4880_v25 = vsel %vm4377_vm1, %v4879_v11, %v4875_v16  ;;  %2476 = vadd.xlane.f32.xlu1 %v2475_v55  ;;  %2472 = vadd.xlane.f32.xlu0 %v2471_v58  ;;  %v2498_v46 = vsel %vm1805_vm0, %v1124_v27, 0.0  ;;  %v2494_v55 = vsel %vm1805_vm0, %v1122_v33, 0.0  ;;  %v441_v58 = vld [vmem:[%s7781_s27 + $0x580] sm:$0xff]  ;;  %v2503_v26 = vadd.f32 %v2502_v4, %v1125_v1 }
 0x162   : > { %v2205_v44 = vpop.xlane.xlu1 %2204  ;;  %v2201_v32 = vpop.xlane.xlu0 %2200  ;;  %v2499_v63 = vadd.f32 %v2498_v46, %v1123_v42  ;;  %v2495_v3 = vadd.f32 %v2494_v55, %v1121_v47  ;;  %v1130_v6 = vunpack.c.h.bf16 %v441_v58  ;;  %v2514_v27 = vsel %vm1805_vm0, %v1132_v2, 0.0 }
 0x163   : > { %v4889_v37 = vrot.slane %v2205_v44, %v7949_v62  ;;  %v4884_v39 = vrot.slane %v2201_v32, %v7944_v57  ;;  %v1129_v31 = vunpack.c.l.bf16 %v441_v58  ;;  %v2515_v46 = vadd.f32 %v2514_v27, %v1131_v30  ;;  %v448_v58 = vld [vmem:[%s7781_s27 + $0x5b8] sm:$0xff]  ;;  %v449_v30 = vld [vmem:[%s7781_s27 + $0x5c0] sm:$0xff] }
 0x164   : > { %v2510_v32 = vsel %vm1805_vm0, %v1130_v6, 0.0  ;;  %v1144_v6 = vunpack.c.h.bf16 %v448_v58 }
 0x165   : > { %v4885_v45 = vsel %vm4384_vm2, %v4884_v39, %v4880_v25  ;;  %2484 = vadd.xlane.f32.xlu1 %v2483_v18  ;;  %2480 = vadd.xlane.f32.xlu0 %v2479_v19  ;;  %v444_v18 = vld [vmem:[%s7781_s27 + $0x598] sm:$0xff]  ;;  %v443_v19 = vld [vmem:[%s7781_s27 + $0x590] sm:$0xff]  ;;  %v2507_v25 = vadd.f32 %v2506_v0, %v1127_v61  ;;  %v2511_v47 = vadd.f32 %v2510_v32, %v1129_v31 }
 0x166   : > { %v2213_v52 = vpop.xlane.xlu1 %2212  ;;  %v4890_v53 = vsel %vm4391_vm3, %v4889_v37, %v4885_v45  ;;  %v2209_v54 = vpop.xlane.xlu0 %2208  ;;  %v1136_v33 = vunpack.c.h.bf16 %v444_v18  ;;  %v1134_v35 = vunpack.c.h.bf16 %v443_v19  ;;  %v445_v45 = vld [vmem:[%s7781_s27 + $0x5a0] sm:$0xff]  ;;  %v1135_v48 = vunpack.c.l.bf16 %v444_v18  ;;  %v447_v0 = vld [vmem:[%s7781_s27 + $0x5b0] sm:$0xff] }
 0x167   : > { %v4899_v59 = vrot.slane %v2213_v52, %v7962_v13  ;;  %v4894_v60 = vrot.slane %v2209_v54, %v7965_v15  ;;  %v1133_v49 = vunpack.c.l.bf16 %v443_v19  ;;  %v1142_v18 = vunpack.c.h.bf16 %v447_v0  ;;  %v450_v19 = vld [vmem:[%s7781_s27 + $0x5c8] sm:$0xff] }
 0x168   : > { %v2518_v54 = vsel %vm1805_vm0, %v1134_v35, 0.0  ;;  %v1141_v35 = vunpack.c.l.bf16 %v447_v0 }
 0x169   : > { %v4895_v28 = vsel %vm4398_vm4, %v4894_v60, %v4890_v53  ;;  %2492 = vadd.xlane.f32.xlu1 %v2491_v40  ;;  %2488 = vadd.xlane.f32.xlu0 %v2487_v41  ;;  %v446_v41 = vld [vmem:[%s7781_s27 + $0x5a8] sm:$0xff]  ;;  %v2522_v53 = vsel %vm1805_vm0, %v1136_v33, 0.0  ;;  %v2538_v33 = vsel %vm1805_vm0, %v1144_v6, 0.0 }
 0x16a   : > { %v2221_v11 = vpop.xlane.xlu1 %2220  ;;  %v4900_v16 = vsel %vm4405_vm5, %v4899_v59, %v4895_v28  ;;  %v2217_v17 = vpop.xlane.xlu0 %2216  ;;  %v1140_v55 = vunpack.c.h.bf16 %v446_v41  ;;  %v2523_v28 = vadd.f32 %v2522_v53, %v1135_v48  ;;  %v1139_v4 = vunpack.c.l.bf16 %v446_v41  ;;  %v451_v48 = vld [vmem:[%s7781_s27 + $0x5d0] sm:$0xff] }
 0x16b   : > { %v4909_v20 = vrot.slane %v2221_v11, %v7969_v22  ;;  %v4904_v21 = vrot.slane %v2217_v17, %v7972_v23  ;;  %v1137_v17 = vunpack.c.l.bf16 %v445_v45  ;;  %v2534_v41 = vsel %vm1805_vm0, %v1142_v18, 0.0 }
 0x16c   : > { %v1150_v0 = vunpack.c.h.bf16 %v451_v48 }
 0x16d   : > { %v4905_v44 = vsel %vm4412_vm6, %v4904_v21, %v4900_v16  ;;  %2500 = vadd.xlane.f32.xlu1 %v2499_v63  ;;  %2496 = vadd.xlane.f32.xlu0 %v2495_v3  ;;  %v1138_v63 = vunpack.c.h.bf16 %v445_v45  ;;  %v2519_v3 = vadd.f32 %v2518_v54, %v1133_v49  ;;  %v2530_v16 = vsel %vm1805_vm0, %v1140_v55, 0.0 }
 0x16e   : > { %v2229_v37 = vpop.xlane.xlu1 %2228  ;;  %v4910_v39 = vsel %vm4419_vm7, %v4909_v20, %v4905_v44  ;;  %v2225_v40 = vpop.xlane.xlu0 %2224  ;;  %v1143_v44 = vunpack.c.l.bf16 %v448_v58  ;;  %v2531_v32 = vadd.f32 %v2530_v16, %v1139_v4  ;;  %v2535_v54 = vadd.f32 %v2534_v41, %v1141_v35  ;;  %v453_v16 = vld [vmem:[%s7781_s27 + $0x5e0] sm:$0xff] }
 0x16f   : > { %v4919_v42 = vrot.slane %v2229_v37, %v7991_v50  ;;  %v4914_v43 = vrot.slane %v2225_v40, %v7996_v56  ;;  %v1148_v37 = vunpack.c.h.bf16 %v450_v19  ;;  %v1147_v55 = vunpack.c.l.bf16 %v450_v19 }
 0x170   : > { %v2539_v53 = vadd.f32 %v2538_v33, %v1143_v44  ;;  %v1154_v44 = vunpack.c.h.bf16 %v453_v16 }
 0x171   : > { %v4915_v52 = vsel %vm4426_vm8, %v4914_v43, %v4910_v39  ;;  %2508 = vadd.xlane.f32.xlu1 %v2507_v25  ;;  %2504 = vadd.xlane.f32.xlu0 %v2503_v26  ;;  %v2526_v26 = vsel %vm1805_vm0, %v1138_v63, 0.0  ;;  %v2546_v58 = vsel %vm1805_vm0, %v1148_v37, 0.0 }
 0x172   : > { %v2237_v59 = vpop.xlane.xlu1 %2236  ;;  %v4920_v60 = vsel %vm11351_vm9, %v4919_v42, %v4915_v52  ;;  %v2233_v61 = vpop.xlane.xlu0 %2232  ;;  %vm11352_vm9 = vcmask 786112   ;;  %v2527_v40 = vadd.f32 %v2526_v26, %v1137_v17  ;;  %v1146_v42 = vunpack.c.h.bf16 %v449_v30 }
 0x173   : > { %v4929_v1 = vrot.slane %v2237_v59, %v8013_v24  ;;  %v4924_v2 = vrot.slane %v2233_v61, %v8018_v29  ;;  %v1145_v59 = vunpack.c.l.bf16 %v449_v30  ;;  %v2547_v17 = vadd.f32 %v2546_v58, %v1147_v55  ;;  %v456_v30 = vld [vmem:[%s7781_s27 + $0x5f8] sm:$0xff] }
 0x174   : > { %v2542_v61 = vsel %vm1805_vm0, %v1146_v42, 0.0  ;;  %v2550_v26 = vsel %vm1805_vm0, %v1150_v0, 0.0  ;;  %v1160_v41 = vunpack.c.h.bf16 %v456_v30 }
 0x175   : > { %v4925_v11 = vsel %vm4440_vm10, %v4924_v2, %v4920_v60  ;;  %2516 = vadd.xlane.f32.xlu1 %v2515_v46  ;;  %2512 = vadd.xlane.f32.xlu0 %v2511_v47  ;;  %v452_v47 = vld [vmem:[%s7781_s27 + $0x5d8] sm:$0xff]  ;;  %v2543_v18 = vadd.f32 %v2542_v61, %v1145_v59  ;;  %v1159_v59 = vunpack.c.l.bf16 %v456_v30 }
 0x176   : > { %v2245_v20 = vpop.xlane.xlu1 %2244  ;;  %v4930_v21 = vsel %vm11352_vm9, %v4929_v1, %v4925_v11  ;;  %v2241_v25 = vpop.xlane.xlu0 %2240  ;;  %v1152_v63 = vunpack.c.h.bf16 %v452_v47  ;;  %v1151_v19 = vunpack.c.l.bf16 %v452_v47  ;;  %v458_v47 = vld [vmem:[%s7781_s27 + $0x608] sm:$0xff]  ;;  %v2570_v61 = vsel %vm1805_vm0, %v1160_v41, 0.0 }
 0x177   : > { %v4939_v27 = vrot.slane %v2245_v20, %v8023_v34  ;;  %v4934_v31 = vrot.slane %v2241_v25, %v8027_v38  ;;  %v1149_v20 = vunpack.c.l.bf16 %v451_v48  ;;  %v1164_v0 = vunpack.c.h.bf16 %v458_v47 }
 0x178   : > { %v2554_v25 = vsel %vm1805_vm0, %v1152_v63, 0.0  ;;  %vm11353_vm9 = vcmask 654912  }
 0x179   : > { %v4935_v39 = vsel %vm4454_vm12, %v4934_v31, %v4930_v21  ;;  %2524 = vadd.xlane.f32.xlu1 %v2523_v28  ;;  %2520 = vadd.xlane.f32.xlu0 %v2519_v3  ;;  %v454_v3 = vld [vmem:[%s7781_s27 + $0x5e8] sm:$0xff]  ;;  %v2555_v37 = vadd.f32 %v2554_v25, %v1151_v19 }
 0x17a   : > { %v2253_v43 = vpop.xlane.xlu1 %2252  ;;  %v4940_v45 = vsel %vm4461_vm13, %v4939_v27, %v4935_v39  ;;  %v2249_v46 = vpop.xlane.xlu0 %2248  ;;  %v2551_v39 = vadd.f32 %v2550_v26, %v1149_v20  ;;  %v1163_v26 = vunpack.c.l.bf16 %v458_v47 }
 0x17b   : > { %v4949_v49 = vrot.slane %v2253_v43, %v8046_v8  ;;  %v4944_v52 = vrot.slane %v2249_v46, %v8049_v10 }
 0x17d   : > { %v4945_v60 = vsel %vm4468_vm14, %v4944_v52, %v4940_v45  ;;  %2532 = vadd.xlane.f32.xlu1 %v2531_v32  ;;  %2528 = vadd.xlane.f32.xlu0 %v2527_v40  ;;  %v455_v32 = vld [vmem:[%s7781_s27 + $0x5f0] sm:$0xff]  ;;  %v1155_v40 = vunpack.c.l.bf16 %v454_v3  ;;  %v1153_v45 = vunpack.c.l.bf16 %v453_v16 }
 0x17e   : > { %v4950_v1 = vsel %vm4475_vm15, %v4949_v49, %v4945_v60  ;;  %v2261_v2 = vpop.xlane.xlu1 %2260  ;;  %v2257_v28 = vpop.xlane.xlu0 %2256  ;;  %v1158_v46 = vunpack.c.h.bf16 %v455_v32  ;;  %v1157_v63 = vunpack.c.l.bf16 %v455_v32 }
 0x17f   : > { %v8461_v4 = vsel %vm6926_vm11, %v4950_v1, %v8192_v14  ;;  %v4958_v6 = vrot.slane %v2261_v2, %v7958_v9  ;;  %v4954_v11 = vrot.slane %v2257_v28, %v7940_v51  ;;  %v1156_v14 = vunpack.c.h.bf16 %v454_v3 }
 0x180   : > { %v2566_v28 = vsel %vm1805_vm0, %v1158_v46, 0.0 }
 0x181   : > { %v4959_v21 = vsel %vm4377_vm1, %v4958_v6, %v4954_v11  ;;  %2540 = vadd.xlane.f32.xlu1 %v2539_v53  ;;  %2536 = vadd.xlane.f32.xlu0 %v2535_v54  ;;  %v2562_v43 = vsel %vm1805_vm0, %v1156_v14, 0.0  ;;  %v2558_v53 = vsel %vm1805_vm0, %v1154_v44, 0.0  ;;  %v457_v54 = vld [vmem:[%s7781_s27 + $0x600] sm:$0xff]  ;;  %v2567_v25 = vadd.f32 %v2566_v28, %v1157_v63 }
 0x182   : > { %v2269_v27 = vpop.xlane.xlu1 %2268  ;;  %v2265_v31 = vpop.xlane.xlu0 %2264  ;;  %v2563_v60 = vadd.f32 %v2562_v43, %v1155_v40  ;;  %v2559_v2 = vadd.f32 %v2558_v53, %v1153_v45  ;;  %v1162_v3 = vunpack.c.h.bf16 %v457_v54  ;;  %v2578_v14 = vsel %vm1805_vm0, %v1164_v0, 0.0 }
 0x183   : > { %v4968_v33 = vrot.slane %v2269_v27, %v7949_v62  ;;  %v4963_v35 = vrot.slane %v2265_v31, %v7944_v57  ;;  %v1161_v30 = vunpack.c.l.bf16 %v457_v54  ;;  %v2579_v43 = vadd.f32 %v2578_v14, %v1163_v26  ;;  %v464_v54 = vld [vmem:[%s7781_s27 + $0x638] sm:$0xff]  ;;  %v465_v26 = vld [vmem:[%s7781_s27 + $0x640] sm:$0xff] }
 0x184   : > { %v2574_v31 = vsel %vm1805_vm0, %v1162_v3, 0.0  ;;  %v1176_v3 = vunpack.c.h.bf16 %v464_v54 }
 0x185   : > { %v4964_v42 = vsel %vm4384_vm2, %v4963_v35, %v4959_v21  ;;  %2548 = vadd.xlane.f32.xlu1 %v2547_v17  ;;  %2544 = vadd.xlane.f32.xlu0 %v2543_v18  ;;  %v460_v17 = vld [vmem:[%s7781_s27 + $0x618] sm:$0xff]  ;;  %v459_v18 = vld [vmem:[%s7781_s27 + $0x610] sm:$0xff]  ;;  %v2571_v21 = vadd.f32 %v2570_v61, %v1159_v59  ;;  %v2575_v45 = vadd.f32 %v2574_v31, %v1161_v30 }
 0x186   : > { %v2277_v48 = vpop.xlane.xlu1 %2276  ;;  %v4969_v49 = vsel %vm4391_vm3, %v4968_v33, %v4964_v42  ;;  %v2273_v52 = vpop.xlane.xlu0 %2272  ;;  %v1168_v44 = vunpack.c.h.bf16 %v460_v17  ;;  %v1166_v32 = vunpack.c.h.bf16 %v459_v18  ;;  %v461_v42 = vld [vmem:[%s7781_s27 + $0x620] sm:$0xff]  ;;  %v1167_v46 = vunpack.c.l.bf16 %v460_v17  ;;  %v463_v61 = vld [vmem:[%s7781_s27 + $0x630] sm:$0xff] }
 0x187   : > { %v4978_v55 = vrot.slane %v2277_v48, %v7962_v13  ;;  %v4973_v58 = vrot.slane %v2273_v52, %v7965_v15  ;;  %v1165_v47 = vunpack.c.l.bf16 %v459_v18  ;;  %v1174_v17 = vunpack.c.h.bf16 %v463_v61  ;;  %v466_v18 = vld [vmem:[%s7781_s27 + $0x648] sm:$0xff] }
 0x188   : > { %v2582_v52 = vsel %vm1805_vm0, %v1166_v32, 0.0  ;;  %v1173_v32 = vunpack.c.l.bf16 %v463_v61 }
 0x189   : > { %v4974_v1 = vsel %vm4398_vm4, %v4973_v58, %v4969_v49  ;;  %2556 = vadd.xlane.f32.xlu1 %v2555_v37  ;;  %2552 = vadd.xlane.f32.xlu0 %v2551_v39  ;;  %v462_v39 = vld [vmem:[%s7781_s27 + $0x628] sm:$0xff]  ;;  %v2586_v49 = vsel %vm1805_vm0, %v1168_v44, 0.0  ;;  %v2602_v44 = vsel %vm1805_vm0, %v1176_v3, 0.0 }
 0x18a   : > { %v2285_v6 = vpop.xlane.xlu1 %2284  ;;  %v4979_v11 = vsel %vm4405_vm5, %v4978_v55, %v4974_v1  ;;  %v2281_v16 = vpop.xlane.xlu0 %2280  ;;  %v1172_v53 = vunpack.c.h.bf16 %v462_v39  ;;  %v2587_v1 = vadd.f32 %v2586_v49, %v1167_v46  ;;  %v1171_v28 = vunpack.c.l.bf16 %v462_v39  ;;  %v467_v46 = vld [vmem:[%s7781_s27 + $0x650] sm:$0xff] }
 0x18b   : > { %v4988_v19 = vrot.slane %v2285_v6, %v7969_v22  ;;  %v4983_v20 = vrot.slane %v2281_v16, %v7972_v23  ;;  %v1169_v16 = vunpack.c.l.bf16 %v461_v42  ;;  %v2598_v39 = vsel %vm1805_vm0, %v1174_v17, 0.0 }
 0x18c   : > { %v1182_v61 = vunpack.c.h.bf16 %v467_v46 }
 0x18d   : > { %v4984_v27 = vsel %vm4412_vm6, %v4983_v20, %v4979_v11  ;;  %2564 = vadd.xlane.f32.xlu1 %v2563_v60  ;;  %2560 = vadd.xlane.f32.xlu0 %v2559_v2  ;;  %v1170_v60 = vunpack.c.h.bf16 %v461_v42  ;;  %v2583_v2 = vadd.f32 %v2582_v52, %v1165_v47  ;;  %v2594_v11 = vsel %vm1805_vm0, %v1172_v53, 0.0 }
 0x18e   : > { %v2293_v33 = vpop.xlane.xlu1 %2292  ;;  %v4989_v35 = vsel %vm4419_vm7, %v4988_v19, %v4984_v27  ;;  %v2289_v37 = vpop.xlane.xlu0 %2288  ;;  %v1175_v27 = vunpack.c.l.bf16 %v464_v54  ;;  %v2595_v31 = vadd.f32 %v2594_v11, %v1171_v28  ;;  %v2599_v52 = vadd.f32 %v2598_v39, %v1173_v32  ;;  %v469_v11 = vld [vmem:[%s7781_s27 + $0x660] sm:$0xff] }
 0x18f   : > { %v4998_v40 = vrot.slane %v2293_v33, %v7991_v50  ;;  %v4993_v41 = vrot.slane %v2289_v37, %v7996_v56  ;;  %v1180_v33 = vunpack.c.h.bf16 %v466_v18  ;;  %v1179_v53 = vunpack.c.l.bf16 %v466_v18 }
 0x190   : > { %v2603_v49 = vadd.f32 %v2602_v44, %v1175_v27  ;;  %v1186_v27 = vunpack.c.h.bf16 %v469_v11 }
 0x191   : > { %v4994_v48 = vsel %vm4426_vm8, %v4993_v41, %v4989_v35  ;;  %2572 = vadd.xlane.f32.xlu1 %v2571_v21  ;;  %2568 = vadd.xlane.f32.xlu0 %v2567_v25  ;;  %v2590_v25 = vsel %vm1805_vm0, %v1170_v60, 0.0  ;;  %v2610_v54 = vsel %vm1805_vm0, %v1180_v33, 0.0 }
 0x192   : > { %v2301_v55 = vpop.xlane.xlu1 %2300  ;;  %v4999_v58 = vsel %vm11353_vm9, %v4998_v40, %v4994_v48  ;;  %v2297_v59 = vpop.xlane.xlu0 %2296  ;;  %vm11354_vm9 = vcmask 786112   ;;  %v2591_v37 = vadd.f32 %v2590_v25, %v1169_v16  ;;  %v1178_v40 = vunpack.c.h.bf16 %v465_v26 }
 0x193   : > { %v5008_v63 = vrot.slane %v2301_v55, %v8013_v24  ;;  %v5003_v0 = vrot.slane %v2297_v59, %v8018_v29  ;;  %v1177_v55 = vunpack.c.l.bf16 %v465_v26  ;;  %v2611_v16 = vadd.f32 %v2610_v54, %v1179_v53  ;;  %v472_v26 = vld [vmem:[%s7781_s27 + $0x678] sm:$0xff] }
 0x194   : > { %v2606_v59 = vsel %vm1805_vm0, %v1178_v40, 0.0  ;;  %v2614_v25 = vsel %vm1805_vm0, %v1182_v61, 0.0  ;;  %v1192_v39 = vunpack.c.h.bf16 %v472_v26 }
 0x195   : > { %v5004_v6 = vsel %vm4440_vm10, %v5003_v0, %v4999_v58  ;;  %2580 = vadd.xlane.f32.xlu1 %v2579_v43  ;;  %2576 = vadd.xlane.f32.xlu0 %v2575_v45  ;;  %v468_v45 = vld [vmem:[%s7781_s27 + $0x658] sm:$0xff]  ;;  %v2607_v17 = vadd.f32 %v2606_v59, %v1177_v55  ;;  %v1191_v55 = vunpack.c.l.bf16 %v472_v26 }
 0x196   : > { %v2309_v19 = vpop.xlane.xlu1 %2308  ;;  %v5009_v20 = vsel %vm11354_vm9, %v5008_v63, %v5004_v6  ;;  %v2305_v21 = vpop.xlane.xlu0 %2304  ;;  %v1184_v60 = vunpack.c.h.bf16 %v468_v45  ;;  %v1183_v18 = vunpack.c.l.bf16 %v468_v45  ;;  %v474_v45 = vld [vmem:[%s7781_s27 + $0x688] sm:$0xff]  ;;  %v2634_v59 = vsel %vm1805_vm0, %v1192_v39, 0.0 }
 0x197   : > { %v5018_v14 = vrot.slane %v2309_v19, %v8023_v34  ;;  %v5013_v30 = vrot.slane %v2305_v21, %v8027_v38  ;;  %v1181_v19 = vunpack.c.l.bf16 %v467_v46  ;;  %v1196_v61 = vunpack.c.h.bf16 %v474_v45 }
 0x198   : > { %v2618_v21 = vsel %vm1805_vm0, %v1184_v60, 0.0 }
 0x199   : > { %v5014_v35 = vsel %vm4454_vm12, %v5013_v30, %v5009_v20  ;;  %2588 = vadd.xlane.f32.xlu1 %v2587_v1  ;;  %2584 = vadd.xlane.f32.xlu0 %v2583_v2  ;;  %v470_v2 = vld [vmem:[%s7781_s27 + $0x668] sm:$0xff]  ;;  %v2619_v33 = vadd.f32 %v2618_v21, %v1183_v18 }
 0x19a   : > { %v2317_v41 = vpop.xlane.xlu1 %2316  ;;  %v5019_v42 = vsel %vm4461_vm13, %v5018_v14, %v5014_v35  ;;  %v2313_v43 = vpop.xlane.xlu0 %2312  ;;  %v2615_v35 = vadd.f32 %v2614_v25, %v1181_v19  ;;  %v1195_v25 = vunpack.c.l.bf16 %v474_v45 }
 0x19b   : > { %v5028_v47 = vrot.slane %v2317_v41, %v8046_v8  ;;  %v5023_v48 = vrot.slane %v2313_v43, %v8049_v10 }
 0x19d   : > { %v5024_v58 = vsel %vm4468_vm14, %v5023_v48, %v5019_v42  ;;  %2596 = vadd.xlane.f32.xlu1 %v2595_v31  ;;  %2592 = vadd.xlane.f32.xlu0 %v2591_v37  ;;  %v471_v31 = vld [vmem:[%s7781_s27 + $0x670] sm:$0xff]  ;;  %v1187_v37 = vunpack.c.l.bf16 %v470_v2  ;;  %v1185_v42 = vunpack.c.l.bf16 %v469_v11 }
 0x19e   : > { %v5029_v63 = vsel %vm4475_vm15, %v5028_v47, %v5024_v58  ;;  %v2325_v0 = vpop.xlane.xlu1 %2324  ;;  %v2321_v1 = vpop.xlane.xlu0 %2320  ;;  %v1190_v43 = vunpack.c.h.bf16 %v471_v31  ;;  %v1189_v60 = vunpack.c.l.bf16 %v471_v31 }
 0x19f   : > { %v8528_v28 = vsel %vm6926_vm11, %v5029_v63, %v8258_v5  ;;  %v5037_v3 = vrot.slane %v2325_v0, %v7958_v9  ;;  %v5033_v6 = vrot.slane %v2321_v1, %v7940_v51  ;;  %v1188_v5 = vunpack.c.h.bf16 %v470_v2 }
 0x1a0   : > { %v2630_v1 = vsel %vm1805_vm0, %v1190_v43, 0.0  ;;  %vm11355_vm11 = vcmask 654912  }
 0x1a1   : > { %v5038_v20 = vsel %vm4377_vm1, %v5037_v3, %v5033_v6  ;;  %2604 = vadd.xlane.f32.xlu1 %v2603_v49  ;;  %2600 = vadd.xlane.f32.xlu0 %v2599_v52  ;;  %v2626_v41 = vsel %vm1805_vm0, %v1188_v5, 0.0  ;;  %v2622_v49 = vsel %vm1805_vm0, %v1186_v27, 0.0  ;;  %v473_v52 = vld [vmem:[%s7781_s27 + $0x680] sm:$0xff]  ;;  %v2631_v21 = vadd.f32 %v2630_v1, %v1189_v60 }
 0x1a2   : > { %v2333_v14 = vpop.xlane.xlu1 %2332  ;;  %v2329_v30 = vpop.xlane.xlu0 %2328  ;;  %v2627_v58 = vadd.f32 %v2626_v41, %v1187_v37  ;;  %v2623_v0 = vadd.f32 %v2622_v49, %v1185_v42  ;;  %v1194_v2 = vunpack.c.h.bf16 %v473_v52  ;;  %v2642_v5 = vsel %vm1805_vm0, %v1196_v61, 0.0 }
 0x1a3   : > { %v5047_v44 = vrot.slane %v2333_v14, %v7949_v62  ;;  %v5042_v32 = vrot.slane %v2329_v30, %v7944_v57  ;;  %v1193_v26 = vunpack.c.l.bf16 %v473_v52  ;;  %v2643_v41 = vadd.f32 %v2642_v5, %v1195_v25  ;;  %v480_v52 = vld [vmem:[%s7781_s27 + $0x6b8] sm:$0xff]  ;;  %v481_v25 = vld [vmem:[%s7781_s27 + $0x6c0] sm:$0xff] }
 0x1a4   : > { %v2638_v30 = vsel %vm1805_vm0, %v1194_v2, 0.0  ;;  %v1208_v2 = vunpack.c.h.bf16 %v480_v52 }
 0x1a5   : > { %v5043_v40 = vsel %vm4384_vm2, %v5042_v32, %v5038_v20  ;;  %2612 = vadd.xlane.f32.xlu1 %v2611_v16  ;;  %2608 = vadd.xlane.f32.xlu0 %v2607_v17  ;;  %v476_v16 = vld [vmem:[%s7781_s27 + $0x698] sm:$0xff]  ;;  %v475_v17 = vld [vmem:[%s7781_s27 + $0x690] sm:$0xff]  ;;  %v2635_v20 = vadd.f32 %v2634_v59, %v1191_v55  ;;  %v2639_v42 = vadd.f32 %v2638_v30, %v1193_v26 }
 0x1a6   : > { %v2341_v46 = vpop.xlane.xlu1 %2340  ;;  %v5048_v47 = vsel %vm4391_vm3, %v5047_v44, %v5043_v40  ;;  %v2337_v48 = vpop.xlane.xlu0 %2336  ;;  %v1200_v27 = vunpack.c.h.bf16 %v476_v16  ;;  %v1198_v31 = vunpack.c.h.bf16 %v475_v17  ;;  %v477_v40 = vld [vmem:[%s7781_s27 + $0x6a0] sm:$0xff]  ;;  %v1199_v43 = vunpack.c.l.bf16 %v476_v16  ;;  %v479_v59 = vld [vmem:[%s7781_s27 + $0x6b0] sm:$0xff] }
 0x1a7   : > { %v5057_v53 = vrot.slane %v2341_v46, %v7962_v13  ;;  %v5052_v54 = vrot.slane %v2337_v48, %v7965_v15  ;;  %v1197_v45 = vunpack.c.l.bf16 %v475_v17  ;;  %v1206_v16 = vunpack.c.h.bf16 %v479_v59  ;;  %v482_v17 = vld [vmem:[%s7781_s27 + $0x6c8] sm:$0xff] }
 0x1a8   : > { %v2646_v48 = vsel %vm1805_vm0, %v1198_v31, 0.0  ;;  %v1205_v31 = vunpack.c.l.bf16 %v479_v59 }
 0x1a9   : > { %v5053_v63 = vsel %vm4398_vm4, %v5052_v54, %v5048_v47  ;;  %2620 = vadd.xlane.f32.xlu1 %v2619_v33  ;;  %2616 = vadd.xlane.f32.xlu0 %v2615_v35  ;;  %v478_v35 = vld [vmem:[%s7781_s27 + $0x6a8] sm:$0xff]  ;;  %v2650_v47 = vsel %vm1805_vm0, %v1200_v27, 0.0  ;;  %v2666_v27 = vsel %vm1805_vm0, %v1208_v2, 0.0 }
 0x1aa   : > { %v2349_v3 = vpop.xlane.xlu1 %2348  ;;  %v5058_v6 = vsel %vm4405_vm5, %v5057_v53, %v5053_v63  ;;  %v2345_v11 = vpop.xlane.xlu0 %2344  ;;  %v1204_v49 = vunpack.c.h.bf16 %v478_v35  ;;  %v2651_v63 = vadd.f32 %v2650_v47, %v1199_v43  ;;  %v1203_v1 = vunpack.c.l.bf16 %v478_v35  ;;  %v483_v43 = vld [vmem:[%s7781_s27 + $0x6d0] sm:$0xff] }
 0x1ab   : > { %v5067_v18 = vrot.slane %v2349_v3, %v7969_v22  ;;  %v5062_v19 = vrot.slane %v2345_v11, %v7972_v23  ;;  %v1201_v11 = vunpack.c.l.bf16 %v477_v40  ;;  %v2662_v35 = vsel %vm1805_vm0, %v1206_v16, 0.0 }
 0x1ac   : > { %v1214_v59 = vunpack.c.h.bf16 %v483_v43 }
 0x1ad   : > { %v5063_v14 = vsel %vm4412_vm6, %v5062_v19, %v5058_v6  ;;  %2628 = vadd.xlane.f32.xlu1 %v2627_v58  ;;  %2624 = vadd.xlane.f32.xlu0 %v2623_v0  ;;  %v1202_v58 = vunpack.c.h.bf16 %v477_v40  ;;  %v2647_v0 = vadd.f32 %v2646_v48, %v1197_v45  ;;  %v2658_v6 = vsel %vm1805_vm0, %v1204_v49, 0.0 }
 0x1ae   : > { %v2357_v44 = vpop.xlane.xlu1 %2356  ;;  %v5068_v32 = vsel %vm4419_vm7, %v5067_v18, %v5063_v14  ;;  %v2353_v33 = vpop.xlane.xlu0 %2352  ;;  %v1207_v14 = vunpack.c.l.bf16 %v480_v52  ;;  %v2659_v30 = vadd.f32 %v2658_v6, %v1203_v1  ;;  %v2663_v48 = vadd.f32 %v2662_v35, %v1205_v31  ;;  %v485_v6 = vld [vmem:[%s7781_s27 + $0x6e0] sm:$0xff] }
 0x1af   : > { %v5077_v37 = vrot.slane %v2357_v44, %v7991_v50  ;;  %v5072_v39 = vrot.slane %v2353_v33, %v7996_v56  ;;  %v1212_v44 = vunpack.c.h.bf16 %v482_v17  ;;  %v1211_v49 = vunpack.c.l.bf16 %v482_v17 }
 0x1b0   : > { %v2667_v47 = vadd.f32 %v2666_v27, %v1207_v14  ;;  %v1218_v14 = vunpack.c.h.bf16 %v485_v6 }
 0x1b1   : > { %v5073_v46 = vsel %vm4426_vm8, %v5072_v39, %v5068_v32  ;;  %2636 = vadd.xlane.f32.xlu1 %v2635_v20  ;;  %2632 = vadd.xlane.f32.xlu0 %v2631_v21  ;;  %v2654_v21 = vsel %vm1805_vm0, %v1202_v58, 0.0  ;;  %v2674_v52 = vsel %vm1805_vm0, %v1212_v44, 0.0 }
 0x1b2   : > { %v2365_v53 = vpop.xlane.xlu1 %2364  ;;  %v5078_v54 = vsel %vm11355_vm11, %v5077_v37, %v5073_v46  ;;  %v2361_v55 = vpop.xlane.xlu0 %2360  ;;  %v2655_v33 = vadd.f32 %v2654_v21, %v1201_v11  ;;  %v1210_v37 = vunpack.c.h.bf16 %v481_v25  ;;  %vm6928_vm11 = vcmask 1042434  }
 0x1b3   : > { %v5087_v60 = vrot.slane %v2365_v53, %v8013_v24  ;;  %v5082_v61 = vrot.slane %v2361_v55, %v8018_v29  ;;  %v1209_v53 = vunpack.c.l.bf16 %v481_v25  ;;  %v2675_v11 = vadd.f32 %v2674_v52, %v1211_v49  ;;  %v488_v25 = vld [vmem:[%s7781_s27 + $0x6f8] sm:$0xff] }
 0x1b4   : > { %v2670_v55 = vsel %vm1805_vm0, %v1210_v37, 0.0  ;;  %v2678_v21 = vsel %vm1805_vm0, %v1214_v59, 0.0  ;;  %v1224_v35 = vunpack.c.h.bf16 %v488_v25 }
 0x1b5   : > { %v5083_v3 = vsel %vm4440_vm10, %v5082_v61, %v5078_v54  ;;  %2644 = vadd.xlane.f32.xlu1 %v2643_v41  ;;  %2640 = vadd.xlane.f32.xlu0 %v2639_v42  ;;  %v484_v42 = vld [vmem:[%s7781_s27 + $0x6d8] sm:$0xff]  ;;  %v2671_v16 = vadd.f32 %v2670_v55, %v1209_v53  ;;  %v1223_v53 = vunpack.c.l.bf16 %v488_v25 }
 0x1b6   : > { %v2373_v18 = vpop.xlane.xlu1 %2372  ;;  %v5088_v19 = vsel %vm11354_vm9, %v5087_v60, %v5083_v3  ;;  %v2369_v20 = vpop.xlane.xlu0 %2368  ;;  %v1216_v58 = vunpack.c.h.bf16 %v484_v42  ;;  %v1215_v17 = vunpack.c.l.bf16 %v484_v42  ;;  %v490_v42 = vld [vmem:[%s7781_s27 + $0x708] sm:$0xff]  ;;  %v2698_v55 = vsel %vm1805_vm0, %v1224_v35, 0.0 }
 0x1b7   : > { %v5097_v5 = vrot.slane %v2373_v18, %v8023_v34  ;;  %v5092_v26 = vrot.slane %v2369_v20, %v8027_v38  ;;  %v1213_v18 = vunpack.c.l.bf16 %v483_v43  ;;  %v1228_v59 = vunpack.c.h.bf16 %v490_v42 }
 0x1b8   : > { %v2682_v20 = vsel %vm1805_vm0, %v1216_v58, 0.0  ;;  %vm11356_vm9 = vcmask 654912  }
 0x1b9   : > { %v5093_v32 = vsel %vm4454_vm12, %v5092_v26, %v5088_v19  ;;  %2652 = vadd.xlane.f32.xlu1 %v2651_v63  ;;  %2648 = vadd.xlane.f32.xlu0 %v2647_v0  ;;  %v486_v0 = vld [vmem:[%s7781_s27 + $0x6e8] sm:$0xff]  ;;  %v2683_v44 = vadd.f32 %v2682_v20, %v1215_v17 }
 0x1ba   : > { %v2381_v39 = vpop.xlane.xlu1 %2380  ;;  %v5098_v40 = vsel %vm4461_vm13, %v5097_v5, %v5093_v32  ;;  %v2377_v41 = vpop.xlane.xlu0 %2376  ;;  %v2679_v32 = vadd.f32 %v2678_v21, %v1213_v18  ;;  %v1227_v21 = vunpack.c.l.bf16 %v490_v42 }
 0x1bb   : > { %v5107_v45 = vrot.slane %v2381_v39, %v8046_v8  ;;  %v5102_v46 = vrot.slane %v2377_v41, %v8049_v10 }
 0x1bd   : > { %v5103_v54 = vsel %vm4468_vm14, %v5102_v46, %v5098_v40  ;;  %2660 = vadd.xlane.f32.xlu1 %v2659_v30  ;;  %2656 = vadd.xlane.f32.xlu0 %v2655_v33  ;;  %v487_v30 = vld [vmem:[%s7781_s27 + $0x6f0] sm:$0xff]  ;;  %v1219_v33 = vunpack.c.l.bf16 %v486_v0  ;;  %v1217_v40 = vunpack.c.l.bf16 %v485_v6 }
 0x1be   : > { %v5108_v60 = vsel %vm4475_vm15, %v5107_v45, %v5103_v54  ;;  %v2389_v61 = vpop.xlane.xlu1 %2388  ;;  %v2385_v63 = vpop.xlane.xlu0 %2384  ;;  %v1222_v41 = vunpack.c.h.bf16 %v487_v30  ;;  %v1221_v58 = vunpack.c.l.bf16 %v487_v30 }
 0x1bf   : > { %v8595_v1 = vsel %vm6928_vm11, %v5108_v60, %v8327_v12  ;;  %v5116_v2 = vrot.slane %v2389_v61, %v7958_v9  ;;  %v5112_v3 = vrot.slane %v2385_v63, %v7940_v51  ;;  %v1220_v12 = vunpack.c.h.bf16 %v486_v0 }
 0x1c0   : > { %v2694_v63 = vsel %vm1805_vm0, %v1222_v41, 0.0 }
 0x1c1   : > { %v5117_v19 = vsel %vm4377_vm1, %v5116_v2, %v5112_v3  ;;  %2668 = vadd.xlane.f32.xlu1 %v2667_v47  ;;  %2664 = vadd.xlane.f32.xlu0 %v2663_v48  ;;  %v2690_v39 = vsel %vm1805_vm0, %v1220_v12, 0.0  ;;  %v2686_v47 = vsel %vm1805_vm0, %v1218_v14, 0.0  ;;  %v489_v48 = vld [vmem:[%s7781_s27 + $0x700] sm:$0xff]  ;;  %v2695_v20 = vadd.f32 %v2694_v63, %v1221_v58 }
 0x1c2   : > { %v2397_v5 = vpop.xlane.xlu1 %2396  ;;  %v2393_v26 = vpop.xlane.xlu0 %2392  ;;  %v2691_v54 = vadd.f32 %v2690_v39, %v1219_v33  ;;  %v2687_v61 = vadd.f32 %v2686_v47, %v1217_v40  ;;  %v1226_v0 = vunpack.c.h.bf16 %v489_v48  ;;  %v2706_v12 = vsel %vm1805_vm0, %v1228_v59, 0.0 }
 0x1c3   : > { %v5126_v27 = vrot.slane %v2397_v5, %v7949_v62  ;;  %v5121_v31 = vrot.slane %v2393_v26, %v7944_v57  ;;  %v1225_v25 = vunpack.c.l.bf16 %v489_v48  ;;  %v2707_v39 = vadd.f32 %v2706_v12, %v1227_v21  ;;  %v496_v48 = vld [vmem:[%s7781_s27 + $0x738] sm:$0xff]  ;;  %v497_v21 = vld [vmem:[%s7781_s27 + $0x740] sm:$0xff] }
 0x1c4   : > { %v2702_v26 = vsel %vm1805_vm0, %v1226_v0, 0.0  ;;  %v1240_v0 = vunpack.c.h.bf16 %v496_v48 }
 0x1c5   : > { %v5122_v37 = vsel %vm4384_vm2, %v5121_v31, %v5117_v19  ;;  %2676 = vadd.xlane.f32.xlu1 %v2675_v11  ;;  %2672 = vadd.xlane.f32.xlu0 %v2671_v16  ;;  %v492_v11 = vld [vmem:[%s7781_s27 + $0x718] sm:$0xff]  ;;  %v491_v16 = vld [vmem:[%s7781_s27 + $0x710] sm:$0xff]  ;;  %v2699_v19 = vadd.f32 %v2698_v55, %v1223_v53  ;;  %v2703_v40 = vadd.f32 %v2702_v26, %v1225_v25 }
 0x1c6   : > { %v2405_v43 = vpop.xlane.xlu1 %2404  ;;  %v5127_v45 = vsel %vm4391_vm3, %v5126_v27, %v5122_v37  ;;  %v2401_v46 = vpop.xlane.xlu0 %2400  ;;  %v1232_v14 = vunpack.c.h.bf16 %v492_v11  ;;  %v1230_v30 = vunpack.c.h.bf16 %v491_v16  ;;  %v493_v37 = vld [vmem:[%s7781_s27 + $0x720] sm:$0xff]  ;;  %v1231_v41 = vunpack.c.l.bf16 %v492_v11  ;;  %v495_v55 = vld [vmem:[%s7781_s27 + $0x730] sm:$0xff] }
 0x1c7   : > { %v5136_v49 = vrot.slane %v2405_v43, %v7962_v13  ;;  %v5131_v52 = vrot.slane %v2401_v46, %v7965_v15  ;;  %v1229_v42 = vunpack.c.l.bf16 %v491_v16  ;;  %v1238_v11 = vunpack.c.h.bf16 %v495_v55  ;;  %v498_v16 = vld [vmem:[%s7781_s27 + $0x748] sm:$0xff] }
 0x1c8   : > { %v2710_v46 = vsel %vm1805_vm0, %v1230_v30, 0.0  ;;  %v1237_v30 = vunpack.c.l.bf16 %v495_v55 }
 0x1c9   : > { %v5132_v60 = vsel %vm4398_vm4, %v5131_v52, %v5127_v45  ;;  %2684 = vadd.xlane.f32.xlu1 %v2683_v44  ;;  %2680 = vadd.xlane.f32.xlu0 %v2679_v32  ;;  %v494_v32 = vld [vmem:[%s7781_s27 + $0x728] sm:$0xff]  ;;  %v2714_v45 = vsel %vm1805_vm0, %v1232_v14, 0.0  ;;  %v2730_v14 = vsel %vm1805_vm0, %v1240_v0, 0.0 }
 0x1ca   : > { %v2413_v2 = vpop.xlane.xlu1 %2412  ;;  %v5137_v3 = vsel %vm4405_vm5, %v5136_v49, %v5132_v60  ;;  %v2409_v6 = vpop.xlane.xlu0 %2408  ;;  %v1236_v47 = vunpack.c.h.bf16 %v494_v32  ;;  %v2715_v60 = vadd.f32 %v2714_v45, %v1231_v41  ;;  %v1235_v63 = vunpack.c.l.bf16 %v494_v32  ;;  %v499_v41 = vld [vmem:[%s7781_s27 + $0x750] sm:$0xff] }
 0x1cb   : > { %v5146_v17 = vrot.slane %v2413_v2, %v7969_v22  ;;  %v5141_v18 = vrot.slane %v2409_v6, %v7972_v23  ;;  %v1233_v6 = vunpack.c.l.bf16 %v493_v37  ;;  %v2726_v32 = vsel %vm1805_vm0, %v1238_v11, 0.0 }
 0x1cc   : > { %v1246_v55 = vunpack.c.h.bf16 %v499_v41 }
 0x1cd   : > { %v5142_v5 = vsel %vm4412_vm6, %v5141_v18, %v5137_v3  ;;  %2692 = vadd.xlane.f32.xlu1 %v2691_v54  ;;  %2688 = vadd.xlane.f32.xlu0 %v2687_v61  ;;  %v1234_v54 = vunpack.c.h.bf16 %v493_v37  ;;  %v2711_v61 = vadd.f32 %v2710_v46, %v1229_v42  ;;  %v2722_v3 = vsel %vm1805_vm0, %v1236_v47, 0.0 }
 0x1ce   : > { %v2421_v27 = vpop.xlane.xlu1 %2420  ;;  %v5147_v31 = vsel %vm4419_vm7, %v5146_v17, %v5142_v5  ;;  %v2417_v44 = vpop.xlane.xlu0 %2416  ;;  %v1239_v5 = vunpack.c.l.bf16 %v496_v48  ;;  %v2723_v26 = vadd.f32 %v2722_v3, %v1235_v63  ;;  %v2727_v46 = vadd.f32 %v2726_v32, %v1237_v30  ;;  %v501_v3 = vld [vmem:[%s7781_s27 + $0x760] sm:$0xff] }
 0x1cf   : > { %v5156_v33 = vrot.slane %v2421_v27, %v7991_v50  ;;  %v5151_v35 = vrot.slane %v2417_v44, %v7996_v56  ;;  %v1244_v27 = vunpack.c.h.bf16 %v498_v16  ;;  %v1243_v47 = vunpack.c.l.bf16 %v498_v16 }
 0x1d0   : > { %v2731_v45 = vadd.f32 %v2730_v14, %v1239_v5  ;;  %v1250_v5 = vunpack.c.h.bf16 %v501_v3 }
 0x1d1   : > { %v5152_v43 = vsel %vm4426_vm8, %v5151_v35, %v5147_v31  ;;  %2700 = vadd.xlane.f32.xlu1 %v2699_v19  ;;  %2696 = vadd.xlane.f32.xlu0 %v2695_v20  ;;  %v2718_v20 = vsel %vm1805_vm0, %v1234_v54, 0.0  ;;  %v2738_v48 = vsel %vm1805_vm0, %v1244_v27, 0.0 }
 0x1d2   : > { %v2429_v49 = vpop.xlane.xlu1 %2428  ;;  %v5157_v52 = vsel %vm11356_vm9, %v5156_v33, %v5152_v43  ;;  %v2425_v53 = vpop.xlane.xlu0 %2424  ;;  %vm11357_vm9 = vcmask 786112   ;;  %v2719_v44 = vadd.f32 %v2718_v20, %v1233_v6  ;;  %v1242_v33 = vunpack.c.h.bf16 %v497_v21 }
 0x1d3   : > { %v5166_v58 = vrot.slane %v2429_v49, %v8013_v24  ;;  %v5161_v59 = vrot.slane %v2425_v53, %v8018_v29  ;;  %v1241_v49 = vunpack.c.l.bf16 %v497_v21  ;;  %v2739_v6 = vadd.f32 %v2738_v48, %v1243_v47  ;;  %v504_v21 = vld [vmem:[%s7781_s27 + $0x778] sm:$0xff] }
 0x1d4   : > { %v2734_v53 = vsel %vm1805_vm0, %v1242_v33, 0.0  ;;  %v2742_v20 = vsel %vm1805_vm0, %v1246_v55, 0.0  ;;  %v1256_v32 = vunpack.c.h.bf16 %v504_v21 }
 0x1d5   : > { %v5162_v2 = vsel %vm4440_vm10, %v5161_v59, %v5157_v52  ;;  %2708 = vadd.xlane.f32.xlu1 %v2707_v39  ;;  %2704 = vadd.xlane.f32.xlu0 %v2703_v40  ;;  %v500_v40 = vld [vmem:[%s7781_s27 + $0x758] sm:$0xff]  ;;  %v2735_v11 = vadd.f32 %v2734_v53, %v1241_v49  ;;  %v1255_v49 = vunpack.c.l.bf16 %v504_v21 }
 0x1d6   : > { %v2437_v17 = vpop.xlane.xlu1 %2436  ;;  %v5167_v18 = vsel %vm11357_vm9, %v5166_v58, %v5162_v2  ;;  %v2433_v19 = vpop.xlane.xlu0 %2432  ;;  %v1248_v54 = vunpack.c.h.bf16 %v500_v40  ;;  %v1247_v16 = vunpack.c.l.bf16 %v500_v40  ;;  %v506_v40 = vld [vmem:[%s7781_s27 + $0x788] sm:$0xff]  ;;  %v2762_v53 = vsel %vm1805_vm0, %v1256_v32, 0.0 }
 0x1d7   : > { %v5176_v12 = vrot.slane %v2437_v17, %v8023_v34  ;;  %v5171_v25 = vrot.slane %v2433_v19, %v8027_v38  ;;  %v1245_v17 = vunpack.c.l.bf16 %v499_v41  ;;  %v1260_v55 = vunpack.c.h.bf16 %v506_v40 }
 0x1d8   : > { %v2746_v19 = vsel %vm1805_vm0, %v1248_v54, 0.0  ;;  %vm11358_vm9 = vcmask 654912  }
 0x1d9   : > { %v5172_v31 = vsel %vm4454_vm12, %v5171_v25, %v5167_v18  ;;  %2716 = vadd.xlane.f32.xlu1 %v2715_v60  ;;  %2712 = vadd.xlane.f32.xlu0 %v2711_v61  ;;  %v502_v61 = vld [vmem:[%s7781_s27 + $0x768] sm:$0xff]  ;;  %v2747_v27 = vadd.f32 %v2746_v19, %v1247_v16 }
 0x1da   : > { %v2445_v35 = vpop.xlane.xlu1 %2444  ;;  %v5177_v37 = vsel %vm4461_vm13, %v5176_v12, %v5172_v31  ;;  %v2441_v39 = vpop.xlane.xlu0 %2440  ;;  %v2743_v31 = vadd.f32 %v2742_v20, %v1245_v17  ;;  %v1259_v20 = vunpack.c.l.bf16 %v506_v40 }
 0x1db   : > { %v5186_v42 = vrot.slane %v2445_v35, %v8046_v8  ;;  %v5181_v43 = vrot.slane %v2441_v39, %v8049_v10 }
 0x1dd   : > { %v5182_v52 = vsel %vm4468_vm14, %v5181_v43, %v5177_v37  ;;  %2724 = vadd.xlane.f32.xlu1 %v2723_v26  ;;  %2720 = vadd.xlane.f32.xlu0 %v2719_v44  ;;  %v503_v26 = vld [vmem:[%s7781_s27 + $0x770] sm:$0xff]  ;;  %v1251_v44 = vunpack.c.l.bf16 %v502_v61  ;;  %v1249_v37 = vunpack.c.l.bf16 %v501_v3 }
 0x1de   : > { %v5187_v58 = vsel %vm4475_vm15, %v5186_v42, %v5182_v52  ;;  %v2453_v59 = vpop.xlane.xlu1 %2452  ;;  %v2449_v60 = vpop.xlane.xlu0 %2448  ;;  %v1254_v39 = vunpack.c.h.bf16 %v503_v26  ;;  %v1253_v54 = vunpack.c.l.bf16 %v503_v26 }
 0x1df   : > { %v8662_v63 = vsel %vm6928_vm11, %v5187_v58, %v8394_v7  ;;  %v5195_v0 = vrot.slane %v2453_v59, %v7958_v9  ;;  %v5191_v2 = vrot.slane %v2449_v60, %v7940_v51  ;;  %v1252_v7 = vunpack.c.h.bf16 %v502_v61 }
 0x1e0   : > { %v2758_v60 = vsel %vm1805_vm0, %v1254_v39, 0.0 }
 0x1e1   : > { %v5196_v18 = vsel %vm4377_vm1, %v5195_v0, %v5191_v2  ;;  %2732 = vadd.xlane.f32.xlu1 %v2731_v45  ;;  %2728 = vadd.xlane.f32.xlu0 %v2727_v46  ;;  %v2754_v35 = vsel %vm1805_vm0, %v1252_v7, 0.0  ;;  %v2750_v45 = vsel %vm1805_vm0, %v1250_v5, 0.0  ;;  %v505_v46 = vld [vmem:[%s7781_s27 + $0x780] sm:$0xff]  ;;  %v2759_v19 = vadd.f32 %v2758_v60, %v1253_v54 }
 0x1e2   : > { %v2461_v12 = vpop.xlane.xlu1 %2460  ;;  %v2457_v25 = vpop.xlane.xlu0 %2456  ;;  %v2755_v52 = vadd.f32 %v2754_v35, %v1251_v44  ;;  %v2751_v59 = vadd.f32 %v2750_v45, %v1249_v37  ;;  %v1258_v61 = vunpack.c.h.bf16 %v505_v46  ;;  %v2770_v7 = vsel %vm1805_vm0, %v1260_v55, 0.0 }
 0x1e3   : > { %v5205_v14 = vrot.slane %v2461_v12, %v7949_v62  ;;  %v5200_v30 = vrot.slane %v2457_v25, %v7944_v57  ;;  %v1257_v21 = vunpack.c.l.bf16 %v505_v46  ;;  %v2771_v35 = vadd.f32 %v2770_v7, %v1259_v20  ;;  %v512_v46 = vld [vmem:[%s7781_s27 + $0x7b8] sm:$0xff]  ;;  %v513_v20 = vld [vmem:[%s7781_s27 + $0x7c0] sm:$0xff] }
 0x1e4   : > { %v2766_v25 = vsel %vm1805_vm0, %v1258_v61, 0.0  ;;  %v1272_v61 = vunpack.c.h.bf16 %v512_v46 }
 0x1e5   : > { %v5201_v33 = vsel %vm4384_vm2, %v5200_v30, %v5196_v18  ;;  %2740 = vadd.xlane.f32.xlu1 %v2739_v6  ;;  %2736 = vadd.xlane.f32.xlu0 %v2735_v11  ;;  %v508_v6 = vld [vmem:[%s7781_s27 + $0x798] sm:$0xff]  ;;  %v507_v11 = vld [vmem:[%s7781_s27 + $0x790] sm:$0xff]  ;;  %v2763_v18 = vadd.f32 %v2762_v53, %v1255_v49  ;;  %v2767_v37 = vadd.f32 %v2766_v25, %v1257_v21 }
 0x1e6   : > { %v2469_v41 = vpop.xlane.xlu1 %2468  ;;  %v5206_v42 = vsel %vm4391_vm3, %v5205_v14, %v5201_v33  ;;  %v2465_v43 = vpop.xlane.xlu0 %2464  ;;  %v1264_v5 = vunpack.c.h.bf16 %v508_v6  ;;  %v1262_v26 = vunpack.c.h.bf16 %v507_v11  ;;  %v509_v33 = vld [vmem:[%s7781_s27 + $0x7a0] sm:$0xff]  ;;  %v1263_v39 = vunpack.c.l.bf16 %v508_v6  ;;  %v511_v53 = vld [vmem:[%s7781_s27 + $0x7b0] sm:$0xff] }
 0x1e7   : > { %v5215_v47 = vrot.slane %v2469_v41, %v7962_v13  ;;  %v5210_v48 = vrot.slane %v2465_v43, %v7965_v15  ;;  %v1261_v40 = vunpack.c.l.bf16 %v507_v11  ;;  %v1270_v6 = vunpack.c.h.bf16 %v511_v53  ;;  %v514_v11 = vld [vmem:[%s7781_s27 + $0x7c8] sm:$0xff] }
 0x1e8   : > { %v2774_v43 = vsel %vm1805_vm0, %v1262_v26, 0.0  ;;  %v1269_v26 = vunpack.c.l.bf16 %v511_v53 }
 0x1e9   : > { %v5211_v58 = vsel %vm4398_vm4, %v5210_v48, %v5206_v42  ;;  %2748 = vadd.xlane.f32.xlu1 %v2747_v27  ;;  %2744 = vadd.xlane.f32.xlu0 %v2743_v31  ;;  %v510_v31 = vld [vmem:[%s7781_s27 + $0x7a8] sm:$0xff]  ;;  %v2778_v42 = vsel %vm1805_vm0, %v1264_v5, 0.0  ;;  %v2794_v5 = vsel %vm1805_vm0, %v1272_v61, 0.0 }
 0x1ea   : > { %v2477_v0 = vpop.xlane.xlu1 %2476  ;;  %v5216_v2 = vsel %vm4405_vm5, %v5215_v47, %v5211_v58  ;;  %v2473_v3 = vpop.xlane.xlu0 %2472  ;;  %v1268_v45 = vunpack.c.h.bf16 %v510_v31  ;;  %v2779_v58 = vadd.f32 %v2778_v42, %v1263_v39  ;;  %v1267_v60 = vunpack.c.l.bf16 %v510_v31  ;;  %v515_v39 = vld [vmem:[%s7781_s27 + $0x7d0] sm:$0xff] }
 0x1eb   : > { %v5225_v16 = vrot.slane %v2477_v0, %v7969_v22  ;;  %v5220_v17 = vrot.slane %v2473_v3, %v7972_v23  ;;  %v1265_v3 = vunpack.c.l.bf16 %v509_v33  ;;  %v2790_v31 = vsel %vm1805_vm0, %v1270_v6, 0.0 }
 0x1ec   : > { %v1278_v53 = vunpack.c.h.bf16 %v515_v39 }
 0x1ed   : > { %v5221_v12 = vsel %vm4412_vm6, %v5220_v17, %v5216_v2  ;;  %2756 = vadd.xlane.f32.xlu1 %v2755_v52  ;;  %2752 = vadd.xlane.f32.xlu0 %v2751_v59  ;;  %v1266_v52 = vunpack.c.h.bf16 %v509_v33  ;;  %v2775_v59 = vadd.f32 %v2774_v43, %v1261_v40  ;;  %v2786_v2 = vsel %vm1805_vm0, %v1268_v45, 0.0 }
 0x1ee   : > { %v2485_v14 = vpop.xlane.xlu1 %2484  ;;  %v5226_v30 = vsel %vm4419_vm7, %v5225_v16, %v5221_v12  ;;  %v2481_v27 = vpop.xlane.xlu0 %2480  ;;  %v1271_v12 = vunpack.c.l.bf16 %v512_v46  ;;  %v2787_v25 = vadd.f32 %v2786_v2, %v1267_v60  ;;  %v2791_v43 = vadd.f32 %v2790_v31, %v1269_v26  ;;  %v517_v2 = vld [vmem:[%s7781_s27 + $0x7e0] sm:$0xff] }
 0x1ef   : > { %v5235_v44 = vrot.slane %v2485_v14, %v7991_v50  ;;  %v5230_v32 = vrot.slane %v2481_v27, %v7996_v56  ;;  %v1276_v14 = vunpack.c.h.bf16 %v514_v11  ;;  %v1275_v45 = vunpack.c.l.bf16 %v514_v11 }
 0x1f0   : > { %v2795_v42 = vadd.f32 %v2794_v5, %v1271_v12  ;;  %v1282_v12 = vunpack.c.h.bf16 %v517_v2 }
 0x1f1   : > { %v5231_v41 = vsel %vm4426_vm8, %v5230_v32, %v5226_v30  ;;  %2764 = vadd.xlane.f32.xlu1 %v2763_v18  ;;  %2760 = vadd.xlane.f32.xlu0 %v2759_v19  ;;  %v2782_v19 = vsel %vm1805_vm0, %v1266_v52, 0.0  ;;  %v2802_v46 = vsel %vm1805_vm0, %v1276_v14, 0.0 }
 0x1f2   : > { %v2493_v47 = vpop.xlane.xlu1 %2492  ;;  %v5236_v48 = vsel %vm11358_vm9, %v5235_v44, %v5231_v41  ;;  %v2489_v49 = vpop.xlane.xlu0 %2488  ;;  %vm11359_vm9 = vcmask 786112   ;;  %v2783_v27 = vadd.f32 %v2782_v19, %v1265_v3  ;;  %v1274_v44 = vunpack.c.h.bf16 %v513_v20 }
 0x1f3   : > { %v5245_v54 = vrot.slane %v2493_v47, %v8013_v24  ;;  %v5240_v55 = vrot.slane %v2489_v49, %v8018_v29  ;;  %v1273_v47 = vunpack.c.l.bf16 %v513_v20  ;;  %v2803_v3 = vadd.f32 %v2802_v46, %v1275_v45  ;;  %v520_v20 = vld [vmem:[%s7781_s27 + $0x7f8] sm:$0xff] }
 0x1f4   : > { %v2798_v49 = vsel %vm1805_vm0, %v1274_v44, 0.0  ;;  %v2806_v19 = vsel %vm1805_vm0, %v1278_v53, 0.0  ;;  %v1288_v31 = vunpack.c.h.bf16 %v520_v20 }
 0x1f5   : > { %v5241_v0 = vsel %vm4440_vm10, %v5240_v55, %v5236_v48  ;;  %2772 = vadd.xlane.f32.xlu1 %v2771_v35  ;;  %2768 = vadd.xlane.f32.xlu0 %v2767_v37  ;;  %v516_v37 = vld [vmem:[%s7781_s27 + $0x7d8] sm:$0xff]  ;;  %v2799_v6 = vadd.f32 %v2798_v49, %v1273_v47  ;;  %v1287_v47 = vunpack.c.l.bf16 %v520_v20 }
 0x1f6   : > { %v2501_v16 = vpop.xlane.xlu1 %2500  ;;  %v5246_v17 = vsel %vm11359_vm9, %v5245_v54, %v5241_v0  ;;  %v2497_v18 = vpop.xlane.xlu0 %2496  ;;  %v1280_v52 = vunpack.c.h.bf16 %v516_v37  ;;  %v1279_v11 = vunpack.c.l.bf16 %v516_v37  ;;  %v522_v37 = vld [vmem:[%s7781_s27 + $0x808] sm:$0xff]  ;;  %v2826_v49 = vsel %vm1805_vm0, %v1288_v31, 0.0 }
 0x1f7   : > { %v5255_v7 = vrot.slane %v2501_v16, %v8023_v34  ;;  %v5250_v21 = vrot.slane %v2497_v18, %v8027_v38  ;;  %v1277_v16 = vunpack.c.l.bf16 %v515_v39  ;;  %v1292_v53 = vunpack.c.h.bf16 %v522_v37 }
 0x1f8   : > { %v2810_v18 = vsel %vm1805_vm0, %v1280_v52, 0.0  ;;  %vm11360_vm9 = vcmask 654912  }
 0x1f9   : > { %v5251_v30 = vsel %vm4454_vm12, %v5250_v21, %v5246_v17  ;;  %2780 = vadd.xlane.f32.xlu1 %v2779_v58  ;;  %2776 = vadd.xlane.f32.xlu0 %v2775_v59  ;;  %v518_v59 = vld [vmem:[%s7781_s27 + $0x7e8] sm:$0xff]  ;;  %v2811_v14 = vadd.f32 %v2810_v18, %v1279_v11 }
 0x1fa   : > { %v2509_v32 = vpop.xlane.xlu1 %2508  ;;  %v5256_v33 = vsel %vm4461_vm13, %v5255_v7, %v5251_v30  ;;  %v2505_v35 = vpop.xlane.xlu0 %2504  ;;  %v2807_v30 = vadd.f32 %v2806_v19, %v1277_v16  ;;  %v1291_v19 = vunpack.c.l.bf16 %v522_v37 }
 0x1fb   : > { %v5265_v40 = vrot.slane %v2509_v32, %v8046_v8  ;;  %v5260_v41 = vrot.slane %v2505_v35, %v8049_v10 }
 0x1fd   : > { %v5261_v48 = vsel %vm4468_vm14, %v5260_v41, %v5256_v33  ;;  %2788 = vadd.xlane.f32.xlu1 %v2787_v25  ;;  %2784 = vadd.xlane.f32.xlu0 %v2783_v27  ;;  %v519_v25 = vld [vmem:[%s7781_s27 + $0x7f0] sm:$0xff]  ;;  %v1283_v27 = vunpack.c.l.bf16 %v518_v59  ;;  %v1281_v33 = vunpack.c.l.bf16 %v517_v2 }
 0x1fe   : > { %v5266_v54 = vsel %vm4475_vm15, %v5265_v40, %v5261_v48  ;;  %v2517_v55 = vpop.xlane.xlu1 %2516  ;;  %v2513_v58 = vpop.xlane.xlu0 %2512  ;;  %v1286_v35 = vunpack.c.h.bf16 %v519_v25  ;;  %v1285_v52 = vunpack.c.l.bf16 %v519_v25 }
 0x1ff   : > { %v8729_v60 = vsel %vm6928_vm11, %v5266_v54, %v8461_v4  ;;  %v5274_v61 = vrot.slane %v2517_v55, %v7958_v9  ;;  %v5270_v0 = vrot.slane %v2513_v58, %v7940_v51  ;;  %v1284_v4 = vunpack.c.h.bf16 %v518_v59 }
 0x200   : > { %v2822_v58 = vsel %vm1805_vm0, %v1286_v35, 0.0 }
 0x201   : > { %v5275_v17 = vsel %vm4377_vm1, %v5274_v61, %v5270_v0  ;;  %2796 = vadd.xlane.f32.xlu1 %v2795_v42  ;;  %2792 = vadd.xlane.f32.xlu0 %v2791_v43  ;;  %v2818_v32 = vsel %vm1805_vm0, %v1284_v4, 0.0  ;;  %v2814_v42 = vsel %vm1805_vm0, %v1282_v12, 0.0  ;;  %v521_v43 = vld [vmem:[%s7781_s27 + $0x800] sm:$0xff]  ;;  %v2823_v18 = vadd.f32 %v2822_v58, %v1285_v52 }
 0x202   : > { %v2525_v7 = vpop.xlane.xlu1 %2524  ;;  %v2521_v21 = vpop.xlane.xlu0 %2520  ;;  %v2819_v48 = vadd.f32 %v2818_v32, %v1283_v27  ;;  %v2815_v55 = vadd.f32 %v2814_v42, %v1281_v33  ;;  %v1290_v59 = vunpack.c.h.bf16 %v521_v43  ;;  %v2834_v4 = vsel %vm1805_vm0, %v1292_v53, 0.0 }
 0x203   : > { %v5284_v5 = vrot.slane %v2525_v7, %v7949_v62  ;;  %v5279_v26 = vrot.slane %v2521_v21, %v7944_v57  ;;  %v1289_v20 = vunpack.c.l.bf16 %v521_v43  ;;  %v2835_v32 = vadd.f32 %v2834_v4, %v1291_v19  ;;  %v528_v43 = vld [vmem:[%s7781_s27 + $0x838] sm:$0xff]  ;;  %v529_v19 = vld [vmem:[%s7781_s27 + $0x840] sm:$0xff] }
 0x204   : > { %v2830_v21 = vsel %vm1805_vm0, %v1290_v59, 0.0  ;;  %v1304_v59 = vunpack.c.h.bf16 %v528_v43 }
 0x205   : > { %v5280_v44 = vsel %vm4384_vm2, %v5279_v26, %v5275_v17  ;;  %2804 = vadd.xlane.f32.xlu1 %v2803_v3  ;;  %2800 = vadd.xlane.f32.xlu0 %v2799_v6  ;;  %v524_v3 = vld [vmem:[%s7781_s27 + $0x818] sm:$0xff]  ;;  %v523_v6 = vld [vmem:[%s7781_s27 + $0x810] sm:$0xff]  ;;  %v2827_v17 = vadd.f32 %v2826_v49, %v1287_v47  ;;  %v2831_v33 = vadd.f32 %v2830_v21, %v1289_v20 }
 0x206   : > { %v2533_v39 = vpop.xlane.xlu1 %2532  ;;  %v5285_v40 = vsel %vm4391_vm3, %v5284_v5, %v5280_v44  ;;  %v2529_v41 = vpop.xlane.xlu0 %2528  ;;  %v1296_v12 = vunpack.c.h.bf16 %v524_v3  ;;  %v1294_v25 = vunpack.c.h.bf16 %v523_v6  ;;  %v525_v44 = vld [vmem:[%s7781_s27 + $0x820] sm:$0xff]  ;;  %v1295_v35 = vunpack.c.l.bf16 %v524_v3  ;;  %v527_v49 = vld [vmem:[%s7781_s27 + $0x830] sm:$0xff] }
 0x207   : > { %v5294_v45 = vrot.slane %v2533_v39, %v7962_v13  ;;  %v5289_v46 = vrot.slane %v2529_v41, %v7965_v15  ;;  %v1293_v37 = vunpack.c.l.bf16 %v523_v6  ;;  %v1302_v3 = vunpack.c.h.bf16 %v527_v49  ;;  %v530_v6 = vld [vmem:[%s7781_s27 + $0x848] sm:$0xff] }
 0x208   : > { %v2838_v41 = vsel %vm1805_vm0, %v1294_v25, 0.0  ;;  %v1301_v25 = vunpack.c.l.bf16 %v527_v49 }
 0x209   : > { %v5290_v54 = vsel %vm4398_vm4, %v5289_v46, %v5285_v40  ;;  %2812 = vadd.xlane.f32.xlu1 %v2811_v14  ;;  %2808 = vadd.xlane.f32.xlu0 %v2807_v30  ;;  %v526_v30 = vld [vmem:[%s7781_s27 + $0x828] sm:$0xff]  ;;  %v2842_v40 = vsel %vm1805_vm0, %v1296_v12, 0.0  ;;  %v2858_v12 = vsel %vm1805_vm0, %v1304_v59, 0.0 }
 0x20a   : > { %v2541_v61 = vpop.xlane.xlu1 %2540  ;;  %v5295_v0 = vsel %vm4405_vm5, %v5294_v45, %v5290_v54  ;;  %v2537_v2 = vpop.xlane.xlu0 %2536  ;;  %v1300_v42 = vunpack.c.h.bf16 %v526_v30  ;;  %v2843_v54 = vadd.f32 %v2842_v40, %v1295_v35  ;;  %v1299_v58 = vunpack.c.l.bf16 %v526_v30  ;;  %v531_v35 = vld [vmem:[%s7781_s27 + $0x850] sm:$0xff] }
 0x20b   : > { %v5304_v11 = vrot.slane %v2541_v61, %v7969_v22  ;;  %v5299_v16 = vrot.slane %v2537_v2, %v7972_v23  ;;  %v1297_v2 = vunpack.c.l.bf16 %v525_v44  ;;  %v2854_v30 = vsel %vm1805_vm0, %v1302_v3, 0.0 }
 0x20c   : > { %v1310_v49 = vunpack.c.h.bf16 %v531_v35 }
 0x20d   : > { %v5300_v7 = vsel %vm4412_vm6, %v5299_v16, %v5295_v0  ;;  %2820 = vadd.xlane.f32.xlu1 %v2819_v48  ;;  %2816 = vadd.xlane.f32.xlu0 %v2815_v55  ;;  %v1298_v48 = vunpack.c.h.bf16 %v525_v44  ;;  %v2839_v55 = vadd.f32 %v2838_v41, %v1293_v37  ;;  %v2850_v0 = vsel %vm1805_vm0, %v1300_v42, 0.0 }
 0x20e   : > { %v2549_v5 = vpop.xlane.xlu1 %2548  ;;  %v5305_v26 = vsel %vm4419_vm7, %v5304_v11, %v5300_v7  ;;  %v2545_v14 = vpop.xlane.xlu0 %2544  ;;  %v1303_v7 = vunpack.c.l.bf16 %v528_v43  ;;  %v2851_v21 = vadd.f32 %v2850_v0, %v1299_v58  ;;  %v2855_v41 = vadd.f32 %v2854_v30, %v1301_v25  ;;  %v533_v0 = vld [vmem:[%s7781_s27 + $0x860] sm:$0xff] }
 0x20f   : > { %v5314_v27 = vrot.slane %v2549_v5, %v7991_v50  ;;  %v5309_v31 = vrot.slane %v2545_v14, %v7996_v56  ;;  %v1308_v5 = vunpack.c.h.bf16 %v530_v6  ;;  %v1307_v42 = vunpack.c.l.bf16 %v530_v6 }
 0x210   : > { %v2859_v40 = vadd.f32 %v2858_v12, %v1303_v7  ;;  %v1314_v7 = vunpack.c.h.bf16 %v533_v0 }
 0x211   : > { %v5310_v39 = vsel %vm4426_vm8, %v5309_v31, %v5305_v26  ;;  %2828 = vadd.xlane.f32.xlu1 %v2827_v17  ;;  %2824 = vadd.xlane.f32.xlu0 %v2823_v18  ;;  %v2846_v18 = vsel %vm1805_vm0, %v1298_v48, 0.0  ;;  %v2866_v43 = vsel %vm1805_vm0, %v1308_v5, 0.0 }
 0x212   : > { %v2557_v45 = vpop.xlane.xlu1 %2556  ;;  %v5315_v46 = vsel %vm11360_vm9, %v5314_v27, %v5310_v39  ;;  %v2553_v47 = vpop.xlane.xlu0 %2552  ;;  %vm11361_vm9 = vcmask 786112   ;;  %v2847_v14 = vadd.f32 %v2846_v18, %v1297_v2  ;;  %v1306_v27 = vunpack.c.h.bf16 %v529_v19 }
 0x213   : > { %v5324_v52 = vrot.slane %v2557_v45, %v8013_v24  ;;  %v5319_v53 = vrot.slane %v2553_v47, %v8018_v29  ;;  %v1305_v45 = vunpack.c.l.bf16 %v529_v19  ;;  %v2867_v2 = vadd.f32 %v2866_v43, %v1307_v42  ;;  %v536_v19 = vld [vmem:[%s7781_s27 + $0x878] sm:$0xff] }
 0x214   : > { %v2862_v47 = vsel %vm1805_vm0, %v1306_v27, 0.0  ;;  %v2870_v18 = vsel %vm1805_vm0, %v1310_v49, 0.0  ;;  %v1320_v30 = vunpack.c.h.bf16 %v536_v19 }
 0x215   : > { %v5320_v61 = vsel %vm4440_vm10, %v5319_v53, %v5315_v46  ;;  %2836 = vadd.xlane.f32.xlu1 %v2835_v32  ;;  %2832 = vadd.xlane.f32.xlu0 %v2831_v33  ;;  %v532_v33 = vld [vmem:[%s7781_s27 + $0x858] sm:$0xff]  ;;  %v2863_v3 = vadd.f32 %v2862_v47, %v1305_v45  ;;  %v1319_v45 = vunpack.c.l.bf16 %v536_v19 }
 0x216   : > { %v2565_v11 = vpop.xlane.xlu1 %2564  ;;  %v5325_v16 = vsel %vm11361_vm9, %v5324_v52, %v5320_v61  ;;  %v2561_v17 = vpop.xlane.xlu0 %2560  ;;  %v1312_v48 = vunpack.c.h.bf16 %v532_v33  ;;  %v1311_v6 = vunpack.c.l.bf16 %v532_v33  ;;  %v538_v33 = vld [vmem:[%s7781_s27 + $0x888] sm:$0xff]  ;;  %v2890_v47 = vsel %vm1805_vm0, %v1320_v30, 0.0 }
 0x217   : > { %v5334_v4 = vrot.slane %v2565_v11, %v8023_v34  ;;  %v5329_v20 = vrot.slane %v2561_v17, %v8027_v38  ;;  %v1309_v11 = vunpack.c.l.bf16 %v531_v35  ;;  %v1324_v49 = vunpack.c.h.bf16 %v538_v33 }
 0x218   : > { %v2874_v17 = vsel %vm1805_vm0, %v1312_v48, 0.0 }
 0x219   : > { %v5330_v26 = vsel %vm4454_vm12, %v5329_v20, %v5325_v16  ;;  %2844 = vadd.xlane.f32.xlu1 %v2843_v54  ;;  %2840 = vadd.xlane.f32.xlu0 %v2839_v55  ;;  %v534_v55 = vld [vmem:[%s7781_s27 + $0x868] sm:$0xff]  ;;  %v2875_v5 = vadd.f32 %v2874_v17, %v1311_v6 }
 0x21a   : > { %v2573_v31 = vpop.xlane.xlu1 %2572  ;;  %v5335_v44 = vsel %vm4461_vm13, %v5334_v4, %v5330_v26  ;;  %v2569_v32 = vpop.xlane.xlu0 %2568  ;;  %v2871_v26 = vadd.f32 %v2870_v18, %v1309_v11  ;;  %v1323_v18 = vunpack.c.l.bf16 %v538_v33 }
 0x21b   : > { %v5344_v37 = vrot.slane %v2573_v31, %v8046_v8  ;;  %v5339_v39 = vrot.slane %v2569_v32, %v8049_v10 }
 0x21d   : > { %v5340_v46 = vsel %vm4468_vm14, %v5339_v39, %v5335_v44  ;;  %2852 = vadd.xlane.f32.xlu1 %v2851_v21  ;;  %2848 = vadd.xlane.f32.xlu0 %v2847_v14  ;;  %v535_v21 = vld [vmem:[%s7781_s27 + $0x870] sm:$0xff]  ;;  %v1315_v14 = vunpack.c.l.bf16 %v534_v55  ;;  %v1313_v44 = vunpack.c.l.bf16 %v533_v0 }
 0x21e   : > { %v5345_v52 = vsel %vm4475_vm15, %v5344_v37, %v5340_v46  ;;  %v2581_v53 = vpop.xlane.xlu1 %2580  ;;  %v2577_v54 = vpop.xlane.xlu0 %2576  ;;  %v1318_v32 = vunpack.c.h.bf16 %v535_v21  ;;  %v1317_v48 = vunpack.c.l.bf16 %v535_v21 }
 0x21f   : > { %v8796_v58 = vsel %vm6928_vm11, %v5345_v52, %v8528_v28  ;;  %v5353_v59 = vrot.slane %v2581_v53, %v7958_v9  ;;  %v5349_v61 = vrot.slane %v2577_v54, %v7940_v51  ;;  %v1316_v28 = vunpack.c.h.bf16 %v534_v55 }
 0x220   : > { %v2886_v54 = vsel %vm1805_vm0, %v1318_v32, 0.0  ;;  %vm11362_vm11 = vcmask 654912  }
 0x221   : > { %v5354_v16 = vsel %vm4377_vm1, %v5353_v59, %v5349_v61  ;;  %2860 = vadd.xlane.f32.xlu1 %v2859_v40  ;;  %2856 = vadd.xlane.f32.xlu0 %v2855_v41  ;;  %v2882_v31 = vsel %vm1805_vm0, %v1316_v28, 0.0  ;;  %v2878_v40 = vsel %vm1805_vm0, %v1314_v7, 0.0  ;;  %v537_v41 = vld [vmem:[%s7781_s27 + $0x880] sm:$0xff]  ;;  %v2887_v17 = vadd.f32 %v2886_v54, %v1317_v48 }
 0x222   : > { %v2589_v4 = vpop.xlane.xlu1 %2588  ;;  %v2585_v20 = vpop.xlane.xlu0 %2584  ;;  %v2883_v46 = vadd.f32 %v2882_v31, %v1315_v14  ;;  %v2879_v53 = vadd.f32 %v2878_v40, %v1313_v44  ;;  %v1322_v55 = vunpack.c.h.bf16 %v537_v41  ;;  %v2898_v28 = vsel %vm1805_vm0, %v1324_v49, 0.0 }
 0x223   : > { %v5363_v12 = vrot.slane %v2589_v4, %v7949_v62  ;;  %v5358_v25 = vrot.slane %v2585_v20, %v7944_v57  ;;  %v1321_v19 = vunpack.c.l.bf16 %v537_v41  ;;  %v2899_v31 = vadd.f32 %v2898_v28, %v1323_v18  ;;  %v544_v41 = vld [vmem:[%s7781_s27 + $0x8b8] sm:$0xff]  ;;  %v545_v18 = vld [vmem:[%s7781_s27 + $0x8c0] sm:$0xff] }
 0x224   : > { %v2894_v20 = vsel %vm1805_vm0, %v1322_v55, 0.0  ;;  %v1336_v55 = vunpack.c.h.bf16 %v544_v41 }
 0x225   : > { %v5359_v27 = vsel %vm4384_vm2, %v5358_v25, %v5354_v16  ;;  %2868 = vadd.xlane.f32.xlu1 %v2867_v2  ;;  %2864 = vadd.xlane.f32.xlu0 %v2863_v3  ;;  %v540_v2 = vld [vmem:[%s7781_s27 + $0x898] sm:$0xff]  ;;  %v539_v3 = vld [vmem:[%s7781_s27 + $0x890] sm:$0xff]  ;;  %v2891_v16 = vadd.f32 %v2890_v47, %v1319_v45  ;;  %v2895_v44 = vadd.f32 %v2894_v20, %v1321_v19 }
 0x226   : > { %v2597_v35 = vpop.xlane.xlu1 %2596  ;;  %v5364_v37 = vsel %vm4391_vm3, %v5363_v12, %v5359_v27  ;;  %v2593_v39 = vpop.xlane.xlu0 %2592  ;;  %v1328_v7 = vunpack.c.h.bf16 %v540_v2  ;;  %v1326_v21 = vunpack.c.h.bf16 %v539_v3  ;;  %v541_v27 = vld [vmem:[%s7781_s27 + $0x8a0] sm:$0xff]  ;;  %v1327_v32 = vunpack.c.l.bf16 %v540_v2  ;;  %v543_v47 = vld [vmem:[%s7781_s27 + $0x8b0] sm:$0xff] }
 0x227   : > { %v5373_v42 = vrot.slane %v2597_v35, %v7962_v13  ;;  %v5368_v43 = vrot.slane %v2593_v39, %v7965_v15  ;;  %v1325_v33 = vunpack.c.l.bf16 %v539_v3  ;;  %v1334_v2 = vunpack.c.h.bf16 %v543_v47  ;;  %v601_v3 = vld [vmem:[%s7781_s27 + $0xa80] sm:$0xff] }
 0x228   : > { %v2902_v39 = vsel %vm1805_vm0, %v1326_v21, 0.0  ;;  %v1333_v21 = vunpack.c.l.bf16 %v543_v47 }
 0x229   : > { %v5369_v52 = vsel %vm4398_vm4, %v5368_v43, %v5364_v37  ;;  %2876 = vadd.xlane.f32.xlu1 %v2875_v5  ;;  %2872 = vadd.xlane.f32.xlu0 %v2871_v26  ;;  %v542_v26 = vld [vmem:[%s7781_s27 + $0x8a8] sm:$0xff]  ;;  %v2906_v37 = vsel %vm1805_vm0, %v1328_v7, 0.0  ;;  %v2922_v7 = vsel %vm1805_vm0, %v1336_v55, 0.0 }
 0x22a   : > { %v2605_v59 = vpop.xlane.xlu1 %2604  ;;  %v5374_v61 = vsel %vm4405_vm5, %v5373_v42, %v5369_v52  ;;  %v2601_v0 = vpop.xlane.xlu0 %2600  ;;  %v1332_v40 = vunpack.c.h.bf16 %v542_v26  ;;  %v2907_v52 = vadd.f32 %v2906_v37, %v1327_v32  ;;  %v1331_v54 = vunpack.c.l.bf16 %v542_v26  ;;  %v602_v32 = vld [vmem:[%s7781_s27 + $0xa88] sm:$0xff] }
 0x22b   : > { %v5383_v6 = vrot.slane %v2605_v59, %v7969_v22  ;;  %v5378_v11 = vrot.slane %v2601_v0, %v7972_v23  ;;  %v1329_v0 = vunpack.c.l.bf16 %v541_v27  ;;  %v2918_v26 = vsel %vm1805_vm0, %v1334_v2, 0.0 }
 0x22c   : > { %v1452_v47 = vunpack.c.h.bf16 %v602_v32 }
 0x22d   : > { %v5379_v4 = vsel %vm4412_vm6, %v5378_v11, %v5374_v61  ;;  %2884 = vadd.xlane.f32.xlu1 %v2883_v46  ;;  %2880 = vadd.xlane.f32.xlu0 %v2879_v53  ;;  %v1330_v46 = vunpack.c.h.bf16 %v541_v27  ;;  %v2903_v53 = vadd.f32 %v2902_v39, %v1325_v33  ;;  %v2914_v61 = vsel %vm1805_vm0, %v1332_v40, 0.0 }
 0x22e   : > { %v2613_v12 = vpop.xlane.xlu1 %2612  ;;  %v5384_v25 = vsel %vm4419_vm7, %v5383_v6, %v5379_v4  ;;  %v2609_v5 = vpop.xlane.xlu0 %2608  ;;  %v1335_v4 = vunpack.c.l.bf16 %v544_v41  ;;  %v2915_v20 = vadd.f32 %v2914_v61, %v1331_v54  ;;  %v2919_v39 = vadd.f32 %v2918_v26, %v1333_v21  ;;  %v570_v61 = vld [vmem:[%s7781_s27 + $0x988] sm:$0xff] }
 0x22f   : > { %v5393_v14 = vrot.slane %v2613_v12, %v7991_v50  ;;  %v5388_v30 = vrot.slane %v2609_v5, %v7996_v56  ;;  %v1450_v12 = vunpack.c.h.bf16 %v601_v3  ;;  %v1449_v40 = vunpack.c.l.bf16 %v601_v3 }
 0x230   : > { %v2923_v37 = vadd.f32 %v2922_v7, %v1335_v4  ;;  %v1388_v4 = vunpack.c.h.bf16 %v570_v61 }
 0x231   : > { %v5389_v35 = vsel %vm4426_vm8, %v5388_v30, %v5384_v25  ;;  %2892 = vadd.xlane.f32.xlu1 %v2891_v16  ;;  %2888 = vadd.xlane.f32.xlu0 %v2887_v17  ;;  %v2910_v17 = vsel %vm1805_vm0, %v1330_v46, 0.0  ;;  %v3150_v41 = vsel %vm1805_vm0, %v1450_v12, 0.0 }
 0x232   : > { %v2621_v42 = vpop.xlane.xlu1 %2620  ;;  %v5394_v43 = vsel %vm11362_vm11, %v5393_v14, %v5389_v35  ;;  %v2617_v45 = vpop.xlane.xlu0 %2616  ;;  %v2911_v5 = vadd.f32 %v2910_v17, %v1329_v0  ;;  %v1338_v14 = vunpack.c.h.bf16 %v545_v18  ;;  %vm6930_vm11 = vcmask 1043459  }
 0x233   : > { %v5403_v48 = vrot.slane %v2621_v42, %v8013_v24  ;;  %v5398_v49 = vrot.slane %v2617_v45, %v8018_v29  ;;  %v1337_v42 = vunpack.c.l.bf16 %v545_v18  ;;  %v3151_v0 = vadd.f32 %v3150_v41, %v1449_v40  ;;  %v603_v18 = vld [vmem:[%s7781_s27 + $0xa90] sm:$0xff] }
 0x234   : > { %v2926_v45 = vsel %vm1805_vm0, %v1338_v14, 0.0  ;;  %v3154_v17 = vsel %vm1805_vm0, %v1452_v47, 0.0  ;;  %v1454_v26 = vunpack.c.h.bf16 %v603_v18 }
 0x235   : > { %v5399_v59 = vsel %vm4440_vm10, %v5398_v49, %v5394_v43  ;;  %2900 = vadd.xlane.f32.xlu1 %v2899_v31  ;;  %2896 = vadd.xlane.f32.xlu0 %v2895_v44  ;;  %v569_v44 = vld [vmem:[%s7781_s27 + $0x980] sm:$0xff]  ;;  %v2927_v2 = vadd.f32 %v2926_v45, %v1337_v42  ;;  %v1453_v42 = vunpack.c.l.bf16 %v603_v18 }
 0x236   : > { %v2629_v6 = vpop.xlane.xlu1 %2628  ;;  %v5404_v11 = vsel %vm11361_vm9, %v5403_v48, %v5399_v59  ;;  %v2625_v16 = vpop.xlane.xlu0 %2624  ;;  %v1386_v46 = vunpack.c.h.bf16 %v569_v44  ;;  %v1385_v3 = vunpack.c.l.bf16 %v569_v44  ;;  %v666_v44 = vld [vmem:[%s7781_s27 + $0xc88] sm:$0xff]  ;;  %v3158_v45 = vsel %vm1805_vm0, %v1454_v26, 0.0 }
 0x237   : > { %v5413_v28 = vrot.slane %v2629_v6, %v8023_v34  ;;  %v5408_v19 = vrot.slane %v2625_v16, %v8027_v38  ;;  %v1451_v6 = vunpack.c.l.bf16 %v602_v32  ;;  %v1580_v47 = vunpack.c.h.bf16 %v666_v44 }
 0x238   : > { %v3022_v16 = vsel %vm1805_vm0, %v1386_v46, 0.0  ;;  %vm11363_vm9 = vcmask 654912  }
 0x239   : > { %v5409_v25 = vsel %vm4454_vm12, %v5408_v19, %v5404_v11  ;;  %2908 = vadd.xlane.f32.xlu1 %v2907_v52  ;;  %2904 = vadd.xlane.f32.xlu0 %v2903_v53  ;;  %v585_v53 = vld [vmem:[%s7781_s27 + $0xa00] sm:$0xff]  ;;  %v3023_v12 = vadd.f32 %v3022_v16, %v1385_v3 }
 0x23a   : > { %v2637_v30 = vpop.xlane.xlu1 %2636  ;;  %v5414_v27 = vsel %vm4461_vm13, %v5413_v28, %v5409_v25  ;;  %v2633_v31 = vpop.xlane.xlu0 %2632  ;;  %v3155_v25 = vadd.f32 %v3154_v17, %v1451_v6  ;;  %v1579_v17 = vunpack.c.l.bf16 %v666_v44 }
 0x23b   : > { %v5423_v33 = vrot.slane %v2637_v30, %v8046_v8  ;;  %v5418_v35 = vrot.slane %v2633_v31, %v8049_v10 }
 0x23d   : > { %v5419_v43 = vsel %vm4468_vm14, %v5418_v35, %v5414_v27  ;;  %2916 = vadd.xlane.f32.xlu1 %v2915_v20  ;;  %2912 = vadd.xlane.f32.xlu0 %v2911_v5  ;;  %v586_v20 = vld [vmem:[%s7781_s27 + $0xa08] sm:$0xff]  ;;  %v1417_v5 = vunpack.c.l.bf16 %v585_v53  ;;  %v1387_v27 = vunpack.c.l.bf16 %v570_v61 }
 0x23e   : > { %v5424_v48 = vsel %vm4475_vm15, %v5423_v33, %v5419_v43  ;;  %v2645_v49 = vpop.xlane.xlu1 %2644  ;;  %v2641_v52 = vpop.xlane.xlu0 %2640  ;;  %v1420_v31 = vunpack.c.h.bf16 %v586_v20  ;;  %v1419_v46 = vunpack.c.l.bf16 %v586_v20 }
 0x23f   : > { %v8863_v54 = vsel %vm6930_vm11, %v5424_v48, %v8595_v1  ;;  %v5432_v55 = vrot.slane %v2645_v49, %v7958_v9  ;;  %v5428_v59 = vrot.slane %v2641_v52, %v7940_v51  ;;  %v1418_v1 = vunpack.c.h.bf16 %v585_v53 }
 0x240   : > { %v3090_v52 = vsel %vm1805_vm0, %v1420_v31, 0.0 }
 0x241   : > { %v5433_v11 = vsel %vm4377_vm1, %v5432_v55, %v5428_v59  ;;  %2924 = vadd.xlane.f32.xlu1 %v2923_v37  ;;  %2920 = vadd.xlane.f32.xlu0 %v2919_v39  ;;  %v3086_v30 = vsel %vm1805_vm0, %v1418_v1, 0.0  ;;  %v3026_v37 = vsel %vm1805_vm0, %v1388_v4, 0.0  ;;  %v665_v39 = vld [vmem:[%s7781_s27 + $0xc80] sm:$0xff]  ;;  %v3091_v16 = vadd.f32 %v3090_v52, %v1419_v46 }
 0x242   : > { %v2653_v28 = vpop.xlane.xlu1 %2652  ;;  %v2649_v19 = vpop.xlane.xlu0 %2648  ;;  %v3087_v43 = vadd.f32 %v3086_v30, %v1417_v5  ;;  %v3027_v49 = vadd.f32 %v3026_v37, %v1387_v27  ;;  %v1578_v53 = vunpack.c.h.bf16 %v665_v39  ;;  %v3410_v1 = vsel %vm1805_vm0, %v1580_v47, 0.0  ;;  %v604_v47 = vld [vmem:[%s7781_s27 + $0xa98] sm:$0xff] }
 0x243   : > { %v5442_v7 = vrot.slane %v2653_v28, %v7949_v62  ;;  %v5437_v21 = vrot.slane %v2649_v19, %v7944_v57  ;;  %v1577_v18 = vunpack.c.l.bf16 %v665_v39  ;;  %v3411_v30 = vadd.f32 %v3410_v1, %v1579_v17 }
 0x244   : > { %v3406_v19 = vsel %vm1805_vm0, %v1578_v53, 0.0  ;;  %v1456_v17 = vunpack.c.h.bf16 %v604_v47 }
 0x245   : > { %v5438_v14 = vsel %vm4384_vm2, %v5437_v21, %v5433_v11  ;;  %3152 = vadd.xlane.f32.xlu1 %v3151_v0  ;;  %2928 = vadd.xlane.f32.xlu0 %v2927_v2  ;;  %v554_v0 = vld [vmem:[%s7781_s27 + $0x908] sm:$0xff]  ;;  %v553_v2 = vld [vmem:[%s7781_s27 + $0x900] sm:$0xff]  ;;  %v3159_v11 = vadd.f32 %v3158_v45, %v1453_v42  ;;  %v3407_v27 = vadd.f32 %v3406_v19, %v1577_v18 }
 0x246   : > { %v2661_v32 = vpop.xlane.xlu1 %2660  ;;  %v5443_v33 = vsel %vm4391_vm3, %v5442_v7, %v5438_v14  ;;  %v2657_v35 = vpop.xlane.xlu0 %2656  ;;  %v1356_v4 = vunpack.c.h.bf16 %v554_v0  ;;  %v1354_v20 = vunpack.c.h.bf16 %v553_v2  ;;  %v571_v14 = vld [vmem:[%s7781_s27 + $0x990] sm:$0xff]  ;;  %v1355_v31 = vunpack.c.l.bf16 %v554_v0  ;;  %v649_v0 = vld [vmem:[%s7781_s27 + $0xc00] sm:$0xff] }
 0x247   : > { %v5452_v40 = vrot.slane %v2661_v32, %v7962_v13  ;;  %v5447_v41 = vrot.slane %v2657_v35, %v7965_v15  ;;  %v1353_v44 = vunpack.c.l.bf16 %v553_v2  ;;  %v1390_v42 = vunpack.c.h.bf16 %v571_v14  ;;  %v634_v2 = vld [vmem:[%s7781_s27 + $0xb88] sm:$0xff] }
 0x248   : > { %v2958_v35 = vsel %vm1805_vm0, %v1354_v20, 0.0  ;;  %v1516_v20 = vunpack.c.h.bf16 %v634_v2 }
 0x249   : > { %v5448_v48 = vsel %vm4398_vm4, %v5447_v41, %v5443_v33  ;;  %3024 = vadd.xlane.f32.xlu1 %v3023_v12  ;;  %3156 = vadd.xlane.f32.xlu0 %v3155_v25  ;;  %v587_v25 = vld [vmem:[%s7781_s27 + $0xa10] sm:$0xff]  ;;  %v2962_v33 = vsel %vm1805_vm0, %v1356_v4, 0.0  ;;  %v1546_v4 = vunpack.c.h.bf16 %v649_v0 }
 0x24a   : > { %v2669_v55 = vpop.xlane.xlu1 %2668  ;;  %v5453_v59 = vsel %vm4405_vm5, %v5452_v40, %v5448_v48  ;;  %v2665_v61 = vpop.xlane.xlu0 %2664  ;;  %v1422_v37 = vunpack.c.h.bf16 %v587_v25  ;;  %v2963_v48 = vadd.f32 %v2962_v33, %v1355_v31  ;;  %v1421_v52 = vunpack.c.l.bf16 %v587_v25  ;;  %v650_v31 = vld [vmem:[%s7781_s27 + $0xc08] sm:$0xff] }
 0x24b   : > { %v5462_v3 = vrot.slane %v2669_v55, %v7969_v22  ;;  %v5457_v6 = vrot.slane %v2665_v61, %v7972_v23  ;;  %v1455_v25 = vunpack.c.l.bf16 %v604_v47  ;;  %v1545_v33 = vunpack.c.l.bf16 %v649_v0 }
 0x24c   : > { %v3094_v55 = vsel %vm1805_vm0, %v1422_v37, 0.0 }
 0x24d   : > { %v5458_v28 = vsel %vm4412_vm6, %v5457_v6, %v5453_v59  ;;  %3088 = vadd.xlane.f32.xlu1 %v3087_v43  ;;  %3028 = vadd.xlane.f32.xlu0 %v3027_v49  ;;  %v633_v43 = vld [vmem:[%s7781_s27 + $0xb80] sm:$0xff]  ;;  %v2959_v49 = vadd.f32 %v2958_v35, %v1353_v44  ;;  %v1389_v59 = vunpack.c.l.bf16 %v571_v14  ;;  %v1515_v35 = vunpack.c.l.bf16 %v634_v2 }
 0x24e   : > { %v2677_v7 = vpop.xlane.xlu1 %2676  ;;  %v5463_v21 = vsel %vm4419_vm7, %v5462_v3, %v5458_v28  ;;  %v2673_v12 = vpop.xlane.xlu0 %2672  ;;  %v1514_v61 = vunpack.c.h.bf16 %v633_v43  ;;  %v3095_v28 = vadd.f32 %v3094_v55, %v1421_v52  ;;  %v1513_v19 = vunpack.c.l.bf16 %v633_v43  ;;  %v729_v52 = vld [vmem:[%s7781_s27 + $0xe80] sm:$0xff] }
 0x24f   : > { %v5472_v5 = vrot.slane %v2677_v7, %v7991_v50  ;;  %v5467_v26 = vrot.slane %v2673_v12, %v7996_v56  ;;  %v1547_v2 = vunpack.c.l.bf16 %v650_v31 }
 0x250   : > { %v3278_v12 = vsel %vm1805_vm0, %v1514_v61, 0.0 }
 0x251   : > { %v5468_v32 = vsel %vm4426_vm8, %v5467_v26, %v5463_v21  ;;  %3160 = vadd.xlane.f32.xlu1 %v3159_v11  ;;  %3092 = vadd.xlane.f32.xlu0 %v3091_v16  ;;  %v3030_v16 = vsel %vm1805_vm0, %v1390_v42, 0.0  ;;  %v3279_v37 = vadd.f32 %v3278_v12, %v1513_v19  ;;  %v572_v19 = vld [vmem:[%s7781_s27 + $0x998] sm:$0xff] }
 0x252   : > { %v2685_v39 = vpop.xlane.xlu1 %2684  ;;  %v5473_v40 = vsel %vm11363_vm9, %v5472_v5, %v5468_v32  ;;  %v2681_v41 = vpop.xlane.xlu0 %2680  ;;  %vm11364_vm9 = vcmask 786112   ;;  %v3031_v21 = vadd.f32 %v3030_v16, %v1389_v59 }
 0x253   : > { %v5482_v45 = vrot.slane %v2685_v39, %v8013_v24  ;;  %v5477_v46 = vrot.slane %v2681_v41, %v8018_v29  ;;  %v3342_v39 = vsel %vm1805_vm0, %v1546_v4, 0.0  ;;  %v555_v4 = vld [vmem:[%s7781_s27 + $0x910] sm:$0xff] }
 0x254   : > { %v3343_v59 = vadd.f32 %v3342_v39, %v1545_v33 }
 0x255   : > { %v5478_v53 = vsel %vm4440_vm10, %v5477_v46, %v5473_v40  ;;  %3412 = vadd.xlane.f32.xlu1 %v3411_v30  ;;  %3408 = vadd.xlane.f32.xlu0 %v3407_v27  ;;  %v3162_v30 = vsel %vm1805_vm0, %v1456_v17, 0.0  ;;  %v667_v27 = vld [vmem:[%s7781_s27 + $0xc90] sm:$0xff]  ;;  %v3282_v40 = vsel %vm1805_vm0, %v1516_v20, 0.0  ;;  %v730_v46 = vld [vmem:[%s7781_s27 + $0xe88] sm:$0xff] }
 0x256   : > { %v2693_v3 = vpop.xlane.xlu1 %2692  ;;  %v5483_v6 = vsel %vm11364_vm9, %v5482_v45, %v5478_v53  ;;  %v2689_v11 = vpop.xlane.xlu0 %2688  ;;  %v3163_v42 = vadd.f32 %v3162_v30, %v1455_v25  ;;  %v1582_v43 = vunpack.c.h.bf16 %v667_v27  ;;  %v1548_v45 = vunpack.c.h.bf16 %v650_v31  ;;  %v605_v31 = vld [vmem:[%s7781_s27 + $0xaa0] sm:$0xff] }
 0x257   : > { %v5492_v1 = vrot.slane %v2693_v3, %v8023_v34  ;;  %v5487_v18 = vrot.slane %v2689_v11, %v8027_v38  ;;  %v3283_v61 = vadd.f32 %v3282_v40, %v1515_v35  ;;  %v1581_v0 = vunpack.c.l.bf16 %v667_v27  ;;  %v588_v35 = vld [vmem:[%s7781_s27 + $0xa18] sm:$0xff] }
 0x258   : > { %v1708_v3 = vunpack.c.h.bf16 %v730_v46  ;;  %v3414_v16 = vsel %vm1805_vm0, %v1582_v43, 0.0  ;;  %v3346_v17 = vsel %vm1805_vm0, %v1548_v45, 0.0  ;;  %v1392_v30 = vunpack.c.h.bf16 %v572_v19 }
 0x259   : > { %v5488_v7 = vsel %vm4454_vm12, %v5487_v18, %v5483_v6  ;;  %2964 = vadd.xlane.f32.xlu1 %v2963_v48  ;;  %2960 = vadd.xlane.f32.xlu0 %v2959_v49  ;;  %v3347_v12 = vadd.f32 %v3346_v17, %v1547_v2  ;;  %v1358_v27 = vunpack.c.h.bf16 %v555_v4  ;;  %v1357_v43 = vunpack.c.l.bf16 %v555_v4 }
 0x25a   : > { %v2701_v5 = vpop.xlane.xlu1 %2700  ;;  %v5493_v26 = vsel %vm4461_vm13, %v5492_v1, %v5488_v7  ;;  %v2697_v14 = vpop.xlane.xlu0 %2696  ;;  %v1706_v1 = vunpack.c.h.bf16 %v729_v52  ;;  %v3666_v25 = vsel %vm1805_vm0, %v1708_v3, 0.0  ;;  %v1458_v45 = vunpack.c.h.bf16 %v605_v31 }
 0x25b   : > { %v5502_v44 = vrot.slane %v2701_v5, %v8046_v8  ;;  %v5497_v32 = vrot.slane %v2697_v14, %v8049_v10  ;;  %v1705_v5 = vunpack.c.l.bf16 %v729_v52  ;;  %v1457_v3 = vunpack.c.l.bf16 %v605_v31 }
 0x25c   : > { %v3662_v14 = vsel %vm1805_vm0, %v1706_v1, 0.0  ;;  %v3166_v17 = vsel %vm1805_vm0, %v1458_v45, 0.0  ;;  %v1423_v1 = vunpack.c.l.bf16 %v588_v35  ;;  %vm11365_vm9 = vcmask 654912  }
 0x25d   : > { %v5498_v41 = vsel %vm4468_vm14, %v5497_v32, %v5493_v26  ;;  %3096 = vadd.xlane.f32.xlu1 %v3095_v28  ;;  %3032 = vadd.xlane.f32.xlu0 %v3031_v21  ;;  %v3415_v21 = vadd.f32 %v3414_v16, %v1581_v0 }
 0x25e   : > { %v5503_v47 = vsel %vm4475_vm15, %v5502_v44, %v5498_v41  ;;  %v2709_v48 = vpop.xlane.xlu1 %2708  ;;  %v2705_v49 = vpop.xlane.xlu0 %2704  ;;  %v3663_v41 = vadd.f32 %v3662_v14, %v1705_v5 }
 0x25f   : > { %v5511_v53 = vrot.slane %v2709_v48, %v7958_v9  ;;  %v5507_v55 = vrot.slane %v2705_v49, %v7940_v51  ;;  %v8933_v6 = vsel %vm6930_vm11, %v5503_v47, %v8662_v63  ;;  %v1707_v63 = vunpack.c.l.bf16 %v730_v46 }
 0x260   : > { %v3034_v47 = vsel %vm1805_vm0, %v1392_v30, 0.0  ;;  %v2966_v48 = vsel %vm1805_vm0, %v1358_v27, 0.0  ;;  %v1424_v49 = vunpack.c.h.bf16 %v588_v35 }
 0x261   : > { %v5512_v11 = vsel %vm4377_vm1, %v5511_v53, %v5507_v55  ;;  %3280 = vadd.xlane.f32.xlu1 %v3279_v37  ;;  %3164 = vadd.xlane.f32.xlu0 %v3163_v42  ;;  %v3667_v40 = vadd.f32 %v3666_v25, %v1707_v63  ;;  %v1391_v42 = vunpack.c.l.bf16 %v572_v19  ;;  %v2967_v16 = vadd.f32 %v2966_v48, %v1357_v43 }
 0x262   : > { %v2717_v18 = vpop.xlane.xlu1 %2716  ;;  %v2713_v28 = vpop.xlane.xlu0 %2712 }
 0x263   : > { %v5521_v20 = vrot.slane %v2717_v18, %v7949_v62  ;;  %v5516_v7 = vrot.slane %v2713_v28, %v7944_v57  ;;  %v3098_v28 = vsel %vm1805_vm0, %v1424_v49, 0.0 }
 0x264   : > { %v3099_v14 = vadd.f32 %v3098_v28, %v1423_v1 }
 0x265   : > { %v5517_v26 = vsel %vm4384_vm2, %v5516_v7, %v5512_v11  ;;  %3344 = vadd.xlane.f32.xlu1 %v3343_v59  ;;  %3284 = vadd.xlane.f32.xlu0 %v3283_v61  ;;  %v618_v59 = vld [vmem:[%s7781_s27 + $0xb08] sm:$0xff]  ;;  %v617_v61 = vld [vmem:[%s7781_s27 + $0xb00] sm:$0xff]  ;;  %v3035_v11 = vadd.f32 %v3034_v47, %v1391_v42  ;;  %v668_v42 = vld [vmem:[%s7781_s27 + $0xc98] sm:$0xff] }
 0x266   : > { %v2725_v44 = vpop.xlane.xlu1 %2724  ;;  %v5522_v32 = vsel %vm4391_vm3, %v5521_v20, %v5517_v26  ;;  %v2721_v33 = vpop.xlane.xlu0 %2720  ;;  %v1484_v19 = vunpack.c.h.bf16 %v618_v59  ;;  %v1482_v4 = vunpack.c.h.bf16 %v617_v61  ;;  %v651_v20 = vld [vmem:[%s7781_s27 + $0xc10] sm:$0xff]  ;;  %v3167_v26 = vadd.f32 %v3166_v17, %v1457_v3 }
 0x267   : > { %v5531_v37 = vrot.slane %v2725_v44, %v7962_v13  ;;  %v5526_v39 = vrot.slane %v2721_v33, %v7965_v15  ;;  %v1483_v30 = vunpack.c.l.bf16 %v618_v59  ;;  %v1481_v27 = vunpack.c.l.bf16 %v617_v61 }
 0x268   : > { %v1550_v31 = vunpack.c.h.bf16 %v651_v20  ;;  %v3214_v33 = vsel %vm1805_vm0, %v1482_v4, 0.0  ;;  %v1584_v61 = vunpack.c.h.bf16 %v668_v42  ;;  %v1583_v4 = vunpack.c.l.bf16 %v668_v42 }
 0x269   : > { %v5527_v46 = vsel %vm4398_vm4, %v5526_v39, %v5522_v32  ;;  %3416 = vadd.xlane.f32.xlu1 %v3415_v21  ;;  %3348 = vadd.xlane.f32.xlu0 %v3347_v12  ;;  %v635_v12 = vld [vmem:[%s7781_s27 + $0xb90] sm:$0xff]  ;;  %v3218_v32 = vsel %vm1805_vm0, %v1484_v19, 0.0  ;;  %v3215_v48 = vadd.f32 %v3214_v33, %v1481_v27 }
 0x26a   : > { %v2733_v52 = vpop.xlane.xlu1 %2732  ;;  %v5532_v53 = vsel %vm4405_vm5, %v5531_v37, %v5527_v46  ;;  %v2729_v55 = vpop.xlane.xlu0 %2728  ;;  %v1518_v35 = vunpack.c.h.bf16 %v635_v12  ;;  %v1549_v46 = vunpack.c.l.bf16 %v651_v20  ;;  %v3219_v47 = vadd.f32 %v3218_v32, %v1483_v30  ;;  %v714_v30 = vld [vmem:[%s7781_s27 + $0xe08] sm:$0xff] }
 0x26b   : > { %v5541_v0 = vrot.slane %v2733_v52, %v7969_v22  ;;  %v5536_v2 = vrot.slane %v2729_v55, %v7972_v23  ;;  %v3350_v49 = vsel %vm1805_vm0, %v1550_v31, 0.0  ;;  %v1517_v52 = vunpack.c.l.bf16 %v635_v12 }
 0x26c   : > { %v3286_v55 = vsel %vm1805_vm0, %v1518_v35, 0.0  ;;  %v1676_v42 = vunpack.c.h.bf16 %v714_v30 }
 0x26d   : > { %v5537_v18 = vsel %vm4412_vm6, %v5536_v2, %v5532_v53  ;;  %3668 = vadd.xlane.f32.xlu1 %v3667_v40  ;;  %3664 = vadd.xlane.f32.xlu0 %v3663_v41  ;;  %v697_v41 = vld [vmem:[%s7781_s27 + $0xd80] sm:$0xff]  ;;  %v3287_v28 = vadd.f32 %v3286_v55, %v1517_v52 }
 0x26e   : > { %v2741_v7 = vpop.xlane.xlu1 %2740  ;;  %v5542_v63 = vsel %vm4419_vm7, %v5541_v0, %v5537_v18  ;;  %v2737_v21 = vpop.xlane.xlu0 %2736  ;;  %v1642_v59 = vunpack.c.h.bf16 %v697_v41  ;;  %v713_v0 = vld [vmem:[%s7781_s27 + $0xe00] sm:$0xff]  ;;  %v3351_v18 = vadd.f32 %v3350_v49, %v1549_v46  ;;  %v1641_v19 = vunpack.c.l.bf16 %v697_v41 }
 0x26f   : > { %v5551_v25 = vrot.slane %v2741_v7, %v7991_v50  ;;  %v5546_v5 = vrot.slane %v2737_v21, %v7996_v56  ;;  %v1674_v20 = vunpack.c.h.bf16 %v713_v0  ;;  %v3418_v21 = vsel %vm1805_vm0, %v1584_v61, 0.0 }
 0x270   : > { %v3419_v33 = vadd.f32 %v3418_v21, %v1583_v4  ;;  %v1675_v61 = vunpack.c.l.bf16 %v714_v30 }
 0x271   : > { %v5547_v44 = vsel %vm4426_vm8, %v5546_v5, %v5542_v63  ;;  %3036 = vadd.xlane.f32.xlu1 %v3035_v11  ;;  %2968 = vadd.xlane.f32.xlu0 %v2967_v16  ;;  %v698_v16 = vld [vmem:[%s7781_s27 + $0xd88] sm:$0xff]  ;;  %v3534_v63 = vsel %vm1805_vm0, %v1642_v59, 0.0  ;;  %v3598_v35 = vsel %vm1805_vm0, %v1674_v20, 0.0 }
 0x272   : > { %v2749_v37 = vpop.xlane.xlu1 %2748  ;;  %v5552_v39 = vsel %vm11365_vm9, %v5551_v25, %v5547_v44  ;;  %v2745_v40 = vpop.xlane.xlu0 %2744  ;;  %vm11366_vm9 = vcmask 786112   ;;  %v1644_v12 = vunpack.c.h.bf16 %v698_v16  ;;  %v1673_v44 = vunpack.c.l.bf16 %v713_v0 }
 0x273   : > { %v5561_v43 = vrot.slane %v2749_v37, %v8013_v24  ;;  %v5556_v45 = vrot.slane %v2745_v40, %v8018_v29  ;;  %v3535_v32 = vadd.f32 %v3534_v63, %v1641_v19  ;;  %v1643_v37 = vunpack.c.l.bf16 %v698_v16  ;;  %v589_v19 = vld [vmem:[%s7781_s27 + $0xa20] sm:$0xff] }
 0x274   : > { %v3538_v40 = vsel %vm1805_vm0, %v1644_v12, 0.0  ;;  %v3599_v52 = vadd.f32 %v3598_v35, %v1673_v44 }
 0x275   : > { %v5557_v53 = vsel %vm4440_vm10, %v5556_v45, %v5552_v39  ;;  %3168 = vadd.xlane.f32.xlu1 %v3167_v26  ;;  %3100 = vadd.xlane.f32.xlu0 %v3099_v14  ;;  %v731_v14 = vld [vmem:[%s7781_s27 + $0xe90] sm:$0xff]  ;;  %v3539_v55 = vadd.f32 %v3538_v40, %v1643_v37 }
 0x276   : > { %v2757_v2 = vpop.xlane.xlu1 %2756  ;;  %v5562_v3 = vsel %vm11366_vm9, %v5561_v43, %v5557_v53  ;;  %v2753_v11 = vpop.xlane.xlu0 %2752  ;;  %v1710_v41 = vunpack.c.h.bf16 %v731_v14  ;;  %v556_v53 = vld [vmem:[%s7781_s27 + $0x918] sm:$0xff]  ;;  %v1709_v59 = vunpack.c.l.bf16 %v731_v14  ;;  %vm11367_vm9 = vcmask 654912  }
 0x277   : > { %v5571_v17 = vrot.slane %v2757_v2, %v8023_v34  ;;  %v5566_v1 = vrot.slane %v2753_v11, %v8027_v38  ;;  %v3602_v11 = vsel %vm1805_vm0, %v1676_v42, 0.0  ;;  %v636_v14 = vld [vmem:[%s7781_s27 + $0xb98] sm:$0xff] }
 0x278   : > { %v1520_v42 = vunpack.c.h.bf16 %v636_v14 }
 0x279   : > { %v5567_v7 = vsel %vm4454_vm12, %v5566_v1, %v5562_v3  ;;  %3220 = vadd.xlane.f32.xlu1 %v3219_v47  ;;  %3216 = vadd.xlane.f32.xlu0 %v3215_v48  ;;  %v573_v47 = vld [vmem:[%s7781_s27 + $0x9a0] sm:$0xff]  ;;  %v3670_v3 = vsel %vm1805_vm0, %v1710_v41, 0.0  ;;  %v1425_v41 = vunpack.c.l.bf16 %v589_v19 }
 0x27a   : > { %v2765_v25 = vpop.xlane.xlu1 %2764  ;;  %v5572_v5 = vsel %vm4461_vm13, %v5571_v17, %v5567_v7  ;;  %v2761_v26 = vpop.xlane.xlu0 %2760  ;;  %v1394_v16 = vunpack.c.h.bf16 %v573_v47  ;;  %v606_v17 = vld [vmem:[%s7781_s27 + $0xaa8] sm:$0xff]  ;;  %v3671_v20 = vadd.f32 %v3670_v3, %v1709_v59  ;;  %v3603_v7 = vadd.f32 %v3602_v11, %v1675_v61 }
 0x27b   : > { %v5581_v27 = vrot.slane %v2765_v25, %v8046_v8  ;;  %v5576_v31 = vrot.slane %v2761_v26, %v8049_v10  ;;  %v1393_v63 = vunpack.c.l.bf16 %v573_v47  ;;  %v1460_v21 = vunpack.c.h.bf16 %v606_v17 }
 0x27c   : > { %v3038_v25 = vsel %vm1805_vm0, %v1394_v16, 0.0  ;;  %v1426_v26 = vunpack.c.h.bf16 %v589_v19  ;;  %v1459_v37 = vunpack.c.l.bf16 %v606_v17  ;;  %v1519_v11 = vunpack.c.l.bf16 %v636_v14 }
 0x27d   : > { %v5577_v39 = vsel %vm4468_vm14, %v5576_v31, %v5572_v5  ;;  %3352 = vadd.xlane.f32.xlu1 %v3351_v18  ;;  %3288 = vadd.xlane.f32.xlu0 %v3287_v28  ;;  %v1360_v28 = vunpack.c.h.bf16 %v556_v53  ;;  %v1359_v5 = vunpack.c.l.bf16 %v556_v53  ;;  %v3170_v40 = vsel %vm1805_vm0, %v1460_v21, 0.0  ;;  %v669_v53 = vld [vmem:[%s7781_s27 + $0xca0] sm:$0xff] }
 0x27e   : > { %v5582_v43 = vsel %vm4475_vm15, %v5581_v27, %v5577_v39  ;;  %v2773_v45 = vpop.xlane.xlu1 %2772  ;;  %v2769_v46 = vpop.xlane.xlu0 %2768  ;;  %v3039_v39 = vadd.f32 %v3038_v25, %v1393_v63  ;;  %v3290_v16 = vsel %vm1805_vm0, %v1520_v42, 0.0  ;;  %v699_v42 = vld [vmem:[%s7781_s27 + $0xd90] sm:$0xff] }
 0x27f   : > { %v5590_v48 = vrot.slane %v2773_v45, %v7958_v9  ;;  %v5586_v49 = vrot.slane %v2769_v46, %v7940_v51  ;;  %v9000_v0 = vsel %vm6930_vm11, %v5582_v43, %v8729_v60  ;;  %v2970_v44 = vsel %vm1805_vm0, %v1360_v28, 0.0 }
 0x280   : > { %v2971_v45 = vadd.f32 %v2970_v44, %v1359_v5  ;;  %v3102_v46 = vsel %vm1805_vm0, %v1426_v26, 0.0  ;;  %v1586_v28 = vunpack.c.h.bf16 %v669_v53  ;;  %v3291_v25 = vadd.f32 %v3290_v16, %v1519_v11 }
 0x281   : > { %v5591_v2 = vsel %vm4377_vm1, %v5590_v48, %v5586_v49  ;;  %3536 = vadd.xlane.f32.xlu1 %v3535_v32  ;;  %3420 = vadd.xlane.f32.xlu0 %v3419_v33  ;;  %v619_v32 = vld [vmem:[%s7781_s27 + $0xb10] sm:$0xff]  ;;  %v3103_v3 = vadd.f32 %v3102_v46, %v1425_v41  ;;  %v1585_v26 = vunpack.c.l.bf16 %v669_v53  ;;  %v761_v53 = vld [vmem:[%s7781_s27 + $0xf80] sm:$0xff]  ;;  %v1646_v11 = vunpack.c.h.bf16 %v699_v42 }
 0x282   : > { %v2781_v1 = vpop.xlane.xlu1 %2780  ;;  %v2777_v18 = vpop.xlane.xlu0 %2776  ;;  %v1486_v47 = vunpack.c.h.bf16 %v619_v32  ;;  %v1485_v17 = vunpack.c.l.bf16 %v619_v32 }
 0x283   : > { %v5600_v4 = vrot.slane %v2781_v1, %v7949_v62  ;;  %v5595_v60 = vrot.slane %v2777_v18, %v7944_v57 }
 0x284   : > { %v3222_v18 = vsel %vm1805_vm0, %v1486_v47, 0.0 }
 0x285   : > { %v5596_v12 = vsel %vm4384_vm2, %v5595_v60, %v5591_v2  ;;  %3600 = vadd.xlane.f32.xlu1 %v3599_v52  ;;  %3540 = vadd.xlane.f32.xlu0 %v3539_v55  ;;  %v652_v55 = vld [vmem:[%s7781_s27 + $0xc18] sm:$0xff]  ;;  %v3171_v2 = vadd.f32 %v3170_v40, %v1459_v37  ;;  %v3223_v5 = vadd.f32 %v3222_v18, %v1485_v17 }
 0x286   : > { %v2789_v30 = vpop.xlane.xlu1 %2788  ;;  %v5601_v27 = vsel %vm4391_vm3, %v5600_v4, %v5596_v12  ;;  %v2785_v31 = vpop.xlane.xlu0 %2784  ;;  %v1552_v19 = vunpack.c.h.bf16 %v652_v55  ;;  %v681_v12 = vld [vmem:[%s7781_s27 + $0xd00] sm:$0xff]  ;;  %v1551_v14 = vunpack.c.l.bf16 %v652_v55  ;;  %v732_v55 = vld [vmem:[%s7781_s27 + $0xe98] sm:$0xff] }
 0x287   : > { %v5610_v33 = vrot.slane %v2789_v30, %v7962_v13  ;;  %v5605_v35 = vrot.slane %v2785_v31, %v7965_v15  ;;  %v1610_v37 = vunpack.c.h.bf16 %v681_v12 }
 0x288   : > { %v3354_v31 = vsel %vm1805_vm0, %v1552_v19, 0.0  ;;  %v1712_v19 = vunpack.c.h.bf16 %v732_v55 }
 0x289   : > { %v5606_v43 = vsel %vm4398_vm4, %v5605_v35, %v5601_v27  ;;  %3672 = vadd.xlane.f32.xlu1 %v3671_v20  ;;  %3604 = vadd.xlane.f32.xlu0 %v3603_v7  ;;  %v682_v7 = vld [vmem:[%s7781_s27 + $0xd08] sm:$0xff]  ;;  %v3422_v27 = vsel %vm1805_vm0, %v1586_v28, 0.0  ;;  %v1770_v28 = vunpack.c.h.bf16 %v761_v53 }
 0x28a   : > { %v2797_v48 = vpop.xlane.xlu1 %2796  ;;  %v5611_v49 = vsel %vm4405_vm5, %v5610_v33, %v5606_v43  ;;  %v2793_v52 = vpop.xlane.xlu0 %2792  ;;  %v1612_v44 = vunpack.c.h.bf16 %v682_v7  ;;  %v3423_v43 = vadd.f32 %v3422_v27, %v1585_v26  ;;  %v1611_v46 = vunpack.c.l.bf16 %v682_v7  ;;  %v762_v26 = vld [vmem:[%s7781_s27 + $0xf88] sm:$0xff] }
 0x28b   : > { %v5620_v59 = vrot.slane %v2797_v48, %v7969_v22  ;;  %v5615_v61 = vrot.slane %v2793_v52, %v7972_v23  ;;  %v1645_v7 = vunpack.c.l.bf16 %v699_v42  ;;  %v1769_v27 = vunpack.c.l.bf16 %v761_v53 }
 0x28c   : > { %v3474_v48 = vsel %vm1805_vm0, %v1612_v44, 0.0 }
 0x28d   : > { %v5616_v1 = vsel %vm4412_vm6, %v5615_v61, %v5611_v49  ;;  %3040 = vadd.xlane.f32.xlu1 %v3039_v39  ;;  %2972 = vadd.xlane.f32.xlu0 %v2971_v45  ;;  %v715_v39 = vld [vmem:[%s7781_s27 + $0xe10] sm:$0xff]  ;;  %v3355_v45 = vadd.f32 %v3354_v31, %v1551_v14  ;;  %v1609_v49 = vunpack.c.l.bf16 %v681_v12  ;;  %v1711_v31 = vunpack.c.l.bf16 %v732_v55 }
 0x28e   : > { %v2805_v4 = vpop.xlane.xlu1 %2804  ;;  %v5621_v60 = vsel %vm4419_vm7, %v5620_v59, %v5616_v1  ;;  %v2801_v20 = vpop.xlane.xlu0 %2800  ;;  %v1678_v52 = vunpack.c.h.bf16 %v715_v39  ;;  %v3475_v1 = vadd.f32 %v3474_v48, %v1611_v46  ;;  %v1677_v18 = vunpack.c.l.bf16 %v715_v39  ;;  %v574_v46 = vld [vmem:[%s7781_s27 + $0x9a8] sm:$0xff] }
 0x28f   : > { %v5630_v63 = vrot.slane %v2805_v4, %v7991_v50  ;;  %v5625_v21 = vrot.slane %v2801_v20, %v7996_v56  ;;  %v1771_v55 = vunpack.c.l.bf16 %v762_v26 }
 0x290   : > { %v3606_v20 = vsel %vm1805_vm0, %v1678_v52, 0.0 }
 0x291   : > { %v5626_v30 = vsel %vm4426_vm8, %v5625_v21, %v5621_v60  ;;  %3172 = vadd.xlane.f32.xlu1 %v3171_v2  ;;  %3104 = vadd.xlane.f32.xlu0 %v3103_v3  ;;  %v3470_v3 = vsel %vm1805_vm0, %v1610_v37, 0.0  ;;  %v3607_v44 = vadd.f32 %v3606_v20, %v1677_v18  ;;  %v620_v18 = vld [vmem:[%s7781_s27 + $0xb18] sm:$0xff] }
 0x292   : > { %v2813_v32 = vpop.xlane.xlu1 %2812  ;;  %v5631_v33 = vsel %vm11367_vm9, %v5630_v63, %v5626_v30  ;;  %v2809_v35 = vpop.xlane.xlu0 %2808  ;;  %vm11368_vm9 = vcmask 786112   ;;  %v3471_v60 = vadd.f32 %v3470_v3, %v1609_v49 }
 0x293   : > { %v5640_v40 = vrot.slane %v2813_v32, %v8013_v24  ;;  %v5635_v41 = vrot.slane %v2809_v35, %v8018_v29  ;;  %v3790_v32 = vsel %vm1805_vm0, %v1770_v28, 0.0  ;;  %v607_v28 = vld [vmem:[%s7781_s27 + $0xab0] sm:$0xff] }
 0x294   : > { %v3791_v49 = vadd.f32 %v3790_v32, %v1769_v27 }
 0x295   : > { %v5636_v47 = vsel %vm4440_vm10, %v5635_v41, %v5631_v33  ;;  %3292 = vadd.xlane.f32.xlu1 %v3291_v25  ;;  %3224 = vadd.xlane.f32.xlu0 %v3223_v5  ;;  %v3542_v25 = vsel %vm1805_vm0, %v1646_v11, 0.0  ;;  %v557_v5 = vld [vmem:[%s7781_s27 + $0x920] sm:$0xff]  ;;  %v3674_v33 = vsel %vm1805_vm0, %v1712_v19, 0.0  ;;  %v590_v41 = vld [vmem:[%s7781_s27 + $0xa28] sm:$0xff] }
 0x296   : > { %v2821_v59 = vpop.xlane.xlu1 %2820  ;;  %v5641_v61 = vsel %vm11368_vm9, %v5640_v40, %v5636_v47  ;;  %v2817_v2 = vpop.xlane.xlu0 %2816  ;;  %v3543_v37 = vadd.f32 %v3542_v25, %v1645_v7  ;;  %v1362_v39 = vunpack.c.h.bf16 %v557_v5  ;;  %v1772_v40 = vunpack.c.h.bf16 %v762_v26  ;;  %v653_v26 = vld [vmem:[%s7781_s27 + $0xc20] sm:$0xff] }
 0x297   : > { %v5650_v16 = vrot.slane %v2821_v59, %v8023_v34  ;;  %v5645_v17 = vrot.slane %v2817_v2, %v8027_v38  ;;  %v3675_v52 = vadd.f32 %v3674_v33, %v1711_v31  ;;  %v1361_v53 = vunpack.c.l.bf16 %v557_v5  ;;  %v637_v31 = vld [vmem:[%s7781_s27 + $0xba0] sm:$0xff] }
 0x298   : > { %v1428_v59 = vunpack.c.h.bf16 %v590_v41  ;;  %v2974_v3 = vsel %vm1805_vm0, %v1362_v39, 0.0  ;;  %v3794_v11 = vsel %vm1805_vm0, %v1772_v40, 0.0  ;;  %v1488_v25 = vunpack.c.h.bf16 %v620_v18 }
 0x299   : > { %v5646_v4 = vsel %vm4454_vm12, %v5645_v17, %v5641_v61  ;;  %3424 = vadd.xlane.f32.xlu1 %v3423_v43  ;;  %3356 = vadd.xlane.f32.xlu0 %v3355_v45  ;;  %v3795_v20 = vadd.f32 %v3794_v11, %v1771_v55  ;;  %v1462_v5 = vunpack.c.h.bf16 %v607_v28  ;;  %v1461_v39 = vunpack.c.l.bf16 %v607_v28 }
 0x29a   : > { %v2829_v63 = vpop.xlane.xlu1 %2828  ;;  %v5651_v21 = vsel %vm4461_vm13, %v5650_v16, %v5646_v4  ;;  %v2825_v12 = vpop.xlane.xlu0 %2824  ;;  %v1396_v16 = vunpack.c.h.bf16 %v574_v46  ;;  %v3106_v7 = vsel %vm1805_vm0, %v1428_v59, 0.0  ;;  %v1554_v40 = vunpack.c.h.bf16 %v653_v26 }
 0x29b   : > { %v5660_v14 = vrot.slane %v2829_v63, %v8046_v8  ;;  %v5655_v30 = vrot.slane %v2825_v12, %v8049_v10  ;;  %v1395_v63 = vunpack.c.l.bf16 %v574_v46  ;;  %v1553_v59 = vunpack.c.l.bf16 %v653_v26 }
 0x29c   : > { %v3042_v12 = vsel %vm1805_vm0, %v1396_v16, 0.0  ;;  %v3358_v11 = vsel %vm1805_vm0, %v1554_v40, 0.0  ;;  %v1521_v16 = vunpack.c.l.bf16 %v637_v31 }
 0x29d   : > { %v5656_v35 = vsel %vm4468_vm14, %v5655_v30, %v5651_v21  ;;  %3476 = vadd.xlane.f32.xlu1 %v3475_v1  ;;  %3472 = vadd.xlane.f32.xlu0 %v3471_v60  ;;  %v2975_v60 = vadd.f32 %v2974_v3, %v1361_v53 }
 0x29e   : > { %v5661_v42 = vsel %vm4475_vm15, %v5660_v14, %v5656_v35  ;;  %v2837_v43 = vpop.xlane.xlu1 %2836  ;;  %v2833_v45 = vpop.xlane.xlu0 %2832  ;;  %v3043_v35 = vadd.f32 %v3042_v12, %v1395_v63 }
 0x29f   : > { %v5669_v47 = vrot.slane %v2837_v43, %v7958_v9  ;;  %v5665_v48 = vrot.slane %v2833_v45, %v7940_v51  ;;  %v9067_v61 = vsel %vm6930_vm11, %v5661_v42, %v8796_v58  ;;  %v1427_v58 = vunpack.c.l.bf16 %v590_v41 }
 0x2a0   : > { %v3226_v42 = vsel %vm1805_vm0, %v1488_v25, 0.0  ;;  %v3174_v43 = vsel %vm1805_vm0, %v1462_v5, 0.0  ;;  %v1522_v45 = vunpack.c.h.bf16 %v637_v31  ;;  %vm11369_vm11 = vcmask 654912  }
 0x2a1   : > { %v5670_v2 = vsel %vm4377_vm1, %v5669_v47, %v5665_v48  ;;  %3608 = vadd.xlane.f32.xlu1 %v3607_v44  ;;  %3544 = vadd.xlane.f32.xlu0 %v3543_v37  ;;  %v3107_v33 = vadd.f32 %v3106_v7, %v1427_v58  ;;  %v1487_v37 = vunpack.c.l.bf16 %v620_v18  ;;  %v3175_v3 = vadd.f32 %v3174_v43, %v1461_v39 }
 0x2a2   : > { %v2845_v17 = vpop.xlane.xlu1 %2844  ;;  %v2841_v1 = vpop.xlane.xlu0 %2840 }
 0x2a3   : > { %v5679_v19 = vrot.slane %v2845_v17, %v7949_v62  ;;  %v5674_v4 = vrot.slane %v2841_v1, %v7944_v57  ;;  %v3294_v1 = vsel %vm1805_vm0, %v1522_v45, 0.0 }
 0x2a4   : > { %v3295_v12 = vadd.f32 %v3294_v1, %v1521_v16 }
 0x2a5   : > { %v5675_v21 = vsel %vm4384_vm2, %v5674_v4, %v5670_v2  ;;  %3792 = vadd.xlane.f32.xlu1 %v3791_v49  ;;  %3676 = vadd.xlane.f32.xlu0 %v3675_v52  ;;  %v683_v49 = vld [vmem:[%s7781_s27 + $0xd10] sm:$0xff]  ;;  %v670_v52 = vld [vmem:[%s7781_s27 + $0xca8] sm:$0xff]  ;;  %v3227_v2 = vadd.f32 %v3226_v42, %v1487_v37  ;;  %v733_v37 = vld [vmem:[%s7781_s27 + $0xea0] sm:$0xff] }
 0x2a6   : > { %v2853_v14 = vpop.xlane.xlu1 %2852  ;;  %v5680_v30 = vsel %vm4391_vm3, %v5679_v19, %v5675_v21  ;;  %v2849_v27 = vpop.xlane.xlu0 %2848  ;;  %v1614_v18 = vunpack.c.h.bf16 %v683_v49  ;;  %v1588_v28 = vunpack.c.h.bf16 %v670_v52  ;;  %v716_v19 = vld [vmem:[%s7781_s27 + $0xe18] sm:$0xff]  ;;  %v3359_v21 = vadd.f32 %v3358_v11, %v1553_v59 }
 0x2a7   : > { %v5689_v44 = vrot.slane %v2853_v14, %v7962_v13  ;;  %v5684_v32 = vrot.slane %v2849_v27, %v7965_v15  ;;  %v1613_v25 = vunpack.c.l.bf16 %v683_v49  ;;  %v1587_v5 = vunpack.c.l.bf16 %v670_v52 }
 0x2a8   : > { %v1680_v26 = vunpack.c.h.bf16 %v716_v19  ;;  %v3426_v27 = vsel %vm1805_vm0, %v1588_v28, 0.0  ;;  %v1714_v52 = vunpack.c.h.bf16 %v733_v37  ;;  %v1713_v28 = vunpack.c.l.bf16 %v733_v37 }
 0x2a9   : > { %v5685_v41 = vsel %vm4398_vm4, %v5684_v32, %v5680_v30  ;;  %2976 = vadd.xlane.f32.xlu1 %v2975_v60  ;;  %3796 = vadd.xlane.f32.xlu0 %v3795_v20  ;;  %v700_v20 = vld [vmem:[%s7781_s27 + $0xd98] sm:$0xff]  ;;  %v3478_v30 = vsel %vm1805_vm0, %v1614_v18, 0.0  ;;  %v3427_v43 = vadd.f32 %v3426_v27, %v1587_v5 }
 0x2aa   : > { %v2861_v46 = vpop.xlane.xlu1 %2860  ;;  %v5690_v47 = vsel %vm4405_vm5, %v5689_v44, %v5685_v41  ;;  %v2857_v48 = vpop.xlane.xlu0 %2856  ;;  %v1648_v31 = vunpack.c.h.bf16 %v700_v20  ;;  %v1679_v41 = vunpack.c.l.bf16 %v716_v19  ;;  %v3479_v42 = vadd.f32 %v3478_v30, %v1613_v25  ;;  %v558_v25 = vld [vmem:[%s7781_s27 + $0x928] sm:$0xff] }
 0x2ab   : > { %v5699_v53 = vrot.slane %v2861_v46, %v7969_v22  ;;  %v5694_v55 = vrot.slane %v2857_v48, %v7972_v23  ;;  %v3610_v45 = vsel %vm1805_vm0, %v1680_v26, 0.0  ;;  %v1647_v46 = vunpack.c.l.bf16 %v700_v20 }
 0x2ac   : > { %v3546_v48 = vsel %vm1805_vm0, %v1648_v31, 0.0  ;;  %v1364_v37 = vunpack.c.h.bf16 %v558_v25 }
 0x2ad   : > { %v5695_v17 = vsel %vm4412_vm6, %v5694_v55, %v5690_v47  ;;  %3108 = vadd.xlane.f32.xlu1 %v3107_v33  ;;  %3044 = vadd.xlane.f32.xlu0 %v3043_v35  ;;  %v745_v35 = vld [vmem:[%s7781_s27 + $0xf00] sm:$0xff]  ;;  %v3547_v1 = vadd.f32 %v3546_v48, %v1647_v46 }
 0x2ae   : > { %v2869_v4 = vpop.xlane.xlu1 %2868  ;;  %v5700_v58 = vsel %vm4419_vm7, %v5699_v53, %v5695_v17  ;;  %v2865_v60 = vpop.xlane.xlu0 %2864  ;;  %v1738_v49 = vunpack.c.h.bf16 %v745_v35  ;;  %v763_v53 = vld [vmem:[%s7781_s27 + $0xf90] sm:$0xff]  ;;  %v3611_v17 = vadd.f32 %v3610_v45, %v1679_v41  ;;  %v1737_v18 = vunpack.c.l.bf16 %v745_v35 }
 0x2af   : > { %v5709_v7 = vrot.slane %v2869_v4, %v7991_v50  ;;  %v5704_v63 = vrot.slane %v2865_v60, %v7996_v56  ;;  %v1774_v19 = vunpack.c.h.bf16 %v763_v53  ;;  %v3678_v60 = vsel %vm1805_vm0, %v1714_v52, 0.0 }
 0x2b0   : > { %v3679_v27 = vadd.f32 %v3678_v60, %v1713_v28  ;;  %v1363_v52 = vunpack.c.l.bf16 %v558_v25 }
 0x2b1   : > { %v5705_v14 = vsel %vm4426_vm8, %v5704_v63, %v5700_v58  ;;  %3228 = vadd.xlane.f32.xlu1 %v3227_v2  ;;  %3176 = vadd.xlane.f32.xlu0 %v3175_v3  ;;  %v746_v3 = vld [vmem:[%s7781_s27 + $0xf08] sm:$0xff]  ;;  %v3726_v58 = vsel %vm1805_vm0, %v1738_v49, 0.0  ;;  %v3798_v31 = vsel %vm1805_vm0, %v1774_v19, 0.0 }
 0x2b2   : > { %v2877_v44 = vpop.xlane.xlu1 %2876  ;;  %v5710_v32 = vsel %vm11369_vm11, %v5709_v7, %v5705_v14  ;;  %v2873_v33 = vpop.xlane.xlu0 %2872  ;;  %v1740_v20 = vunpack.c.h.bf16 %v746_v3  ;;  %v1773_v14 = vunpack.c.l.bf16 %v763_v53  ;;  %vm6932_vm11 = vcmask 1044484  }
 0x2b3   : > { %v5719_v39 = vrot.slane %v2877_v44, %v8013_v24  ;;  %v5714_v40 = vrot.slane %v2873_v33, %v8018_v29  ;;  %v3727_v30 = vadd.f32 %v3726_v58, %v1737_v18  ;;  %v1739_v44 = vunpack.c.l.bf16 %v746_v3  ;;  %v621_v18 = vld [vmem:[%s7781_s27 + $0xb20] sm:$0xff] }
 0x2b4   : > { %v3730_v33 = vsel %vm1805_vm0, %v1740_v20, 0.0  ;;  %v3799_v46 = vadd.f32 %v3798_v31, %v1773_v14 }
 0x2b5   : > { %v5715_v47 = vsel %vm4440_vm10, %v5714_v40, %v5710_v32  ;;  %3360 = vadd.xlane.f32.xlu1 %v3359_v21  ;;  %3296 = vadd.xlane.f32.xlu0 %v3295_v12  ;;  %v575_v12 = vld [vmem:[%s7781_s27 + $0x9b0] sm:$0xff]  ;;  %v3731_v48 = vadd.f32 %v3730_v33, %v1739_v44 }
 0x2b6   : > { %v2885_v55 = vpop.xlane.xlu1 %2884  ;;  %v5720_v59 = vsel %vm11368_vm9, %v5719_v39, %v5715_v47  ;;  %v2881_v2 = vpop.xlane.xlu0 %2880  ;;  %v1398_v35 = vunpack.c.h.bf16 %v575_v12  ;;  %v591_v47 = vld [vmem:[%s7781_s27 + $0xa30] sm:$0xff]  ;;  %v1397_v49 = vunpack.c.l.bf16 %v575_v12 }
 0x2b7   : > { %v5729_v11 = vrot.slane %v2885_v55, %v8023_v34  ;;  %v5724_v16 = vrot.slane %v2881_v2, %v8027_v38  ;;  %v2978_v2 = vsel %vm1805_vm0, %v1364_v37, 0.0  ;;  %v671_v12 = vld [vmem:[%s7781_s27 + $0xcb0] sm:$0xff] }
 0x2b8   : > { %v1590_v37 = vunpack.c.h.bf16 %v671_v12 }
 0x2b9   : > { %v5725_v4 = vsel %vm4454_vm12, %v5724_v16, %v5720_v59  ;;  %3480 = vadd.xlane.f32.xlu1 %v3479_v42  ;;  %3428 = vadd.xlane.f32.xlu0 %v3427_v43  ;;  %v608_v42 = vld [vmem:[%s7781_s27 + $0xab8] sm:$0xff]  ;;  %v3046_v59 = vsel %vm1805_vm0, %v1398_v35, 0.0  ;;  %v1489_v35 = vunpack.c.l.bf16 %v621_v18 }
 0x2ba   : > { %v2893_v7 = vpop.xlane.xlu1 %2892  ;;  %v5730_v63 = vsel %vm4461_vm13, %v5729_v11, %v5725_v4  ;;  %v2889_v21 = vpop.xlane.xlu0 %2888  ;;  %v1464_v3 = vunpack.c.h.bf16 %v608_v42  ;;  %v638_v11 = vld [vmem:[%s7781_s27 + $0xba8] sm:$0xff]  ;;  %v3047_v19 = vadd.f32 %v3046_v59, %v1397_v49  ;;  %v2979_v4 = vadd.f32 %v2978_v2, %v1363_v52 }
 0x2bb   : > { %v5739_v5 = vrot.slane %v2893_v7, %v8046_v8  ;;  %v5734_v26 = vrot.slane %v2889_v21, %v8049_v10  ;;  %v1463_v58 = vunpack.c.l.bf16 %v608_v42  ;;  %v1524_v60 = vunpack.c.h.bf16 %v638_v11 }
 0x2bc   : > { %v3178_v7 = vsel %vm1805_vm0, %v1464_v3, 0.0  ;;  %v1490_v21 = vunpack.c.h.bf16 %v621_v18  ;;  %v1523_v44 = vunpack.c.l.bf16 %v638_v11  ;;  %v1589_v2 = vunpack.c.l.bf16 %v671_v12 }
 0x2bd   : > { %v5735_v32 = vsel %vm4468_vm14, %v5734_v26, %v5730_v63  ;;  %3612 = vadd.xlane.f32.xlu1 %v3611_v17  ;;  %3548 = vadd.xlane.f32.xlu0 %v3547_v1  ;;  %v1430_v1 = vunpack.c.h.bf16 %v591_v47  ;;  %v1429_v63 = vunpack.c.l.bf16 %v591_v47  ;;  %v3298_v33 = vsel %vm1805_vm0, %v1524_v60, 0.0  ;;  %v701_v47 = vld [vmem:[%s7781_s27 + $0xda0] sm:$0xff] }
 0x2be   : > { %v5740_v39 = vsel %vm4475_vm15, %v5739_v5, %v5735_v32  ;;  %v2901_v40 = vpop.xlane.xlu1 %2900  ;;  %v2897_v41 = vpop.xlane.xlu0 %2896  ;;  %v3179_v32 = vadd.f32 %v3178_v7, %v1463_v58  ;;  %v3430_v3 = vsel %vm1805_vm0, %v1590_v37, 0.0  ;;  %v717_v60 = vld [vmem:[%s7781_s27 + $0xe20] sm:$0xff] }
 0x2bf   : > { %v5748_v43 = vrot.slane %v2901_v40, %v7958_v9  ;;  %v5744_v45 = vrot.slane %v2897_v41, %v7940_v51  ;;  %v9134_v53 = vsel %vm6932_vm11, %v5740_v39, %v8863_v54  ;;  %v3110_v14 = vsel %vm1805_vm0, %v1430_v1, 0.0 }
 0x2c0   : > { %v3111_v40 = vadd.f32 %v3110_v14, %v1429_v63  ;;  %v3230_v41 = vsel %vm1805_vm0, %v1490_v21, 0.0  ;;  %v1650_v1 = vunpack.c.h.bf16 %v701_v47  ;;  %v1649_v63 = vunpack.c.l.bf16 %v701_v47  ;;  %v764_v14 = vld [vmem:[%s7781_s27 + $0xf98] sm:$0xff] }
 0x2c1   : > { %v5749_v55 = vsel %vm4377_vm1, %v5748_v43, %v5744_v45  ;;  %3728 = vadd.xlane.f32.xlu1 %v3727_v30  ;;  %3680 = vadd.xlane.f32.xlu0 %v3679_v27  ;;  %v654_v30 = vld [vmem:[%s7781_s27 + $0xc28] sm:$0xff]  ;;  %v3231_v59 = vadd.f32 %v3230_v41, %v1489_v35 }
 0x2c2   : > { %v2909_v16 = vpop.xlane.xlu1 %2908  ;;  %v2905_v17 = vpop.xlane.xlu0 %2904  ;;  %v1556_v42 = vunpack.c.h.bf16 %v654_v30  ;;  %v1555_v11 = vunpack.c.l.bf16 %v654_v30 }
 0x2c3   : > { %v5758_v28 = vrot.slane %v2909_v16, %v7949_v62  ;;  %v5753_v54 = vrot.slane %v2905_v17, %v7944_v57 }
 0x2c4   : > { %v3362_v17 = vsel %vm1805_vm0, %v1556_v42, 0.0 }
 0x2c5   : > { %v5754_v20 = vsel %vm4384_vm2, %v5753_v54, %v5749_v55  ;;  %3800 = vadd.xlane.f32.xlu1 %v3799_v46  ;;  %3732 = vadd.xlane.f32.xlu0 %v3731_v48  ;;  %v684_v48 = vld [vmem:[%s7781_s27 + $0xd18] sm:$0xff]  ;;  %v3299_v55 = vadd.f32 %v3298_v33, %v1523_v44  ;;  %v3363_v7 = vadd.f32 %v3362_v17, %v1555_v11  ;;  %v747_v44 = vld [vmem:[%s7781_s27 + $0xf10] sm:$0xff] }
 0x2c6   : > { %v2917_v25 = vpop.xlane.xlu1 %2916  ;;  %v5759_v5 = vsel %vm4391_vm3, %v5758_v28, %v5754_v20  ;;  %v2913_v26 = vpop.xlane.xlu0 %2912  ;;  %v1616_v18 = vunpack.c.h.bf16 %v684_v48  ;;  %v3431_v20 = vadd.f32 %v3430_v3, %v1589_v2  ;;  %v1615_v21 = vunpack.c.l.bf16 %v684_v48  ;;  %v546_v2 = vld [vmem:[%s7781_s27 + $0x8c8] sm:$0xff] }
 0x2c7   : > { %v5768_v27 = vrot.slane %v2917_v25, %v7962_v13  ;;  %v5763_v31 = vrot.slane %v2913_v26, %v7965_v15  ;;  %v3550_v25 = vsel %vm1805_vm0, %v1650_v1, 0.0 }
 0x2c8   : > { %v3551_v35 = vadd.f32 %v3550_v25, %v1649_v63 }
 0x2c9   : > { %v5764_v39 = vsel %vm4398_vm4, %v5763_v31, %v5759_v5  ;;  %3048 = vadd.xlane.f32.xlu1 %v3047_v19  ;;  %2980 = vadd.xlane.f32.xlu0 %v2979_v4  ;;  %v734_v4 = vld [vmem:[%s7781_s27 + $0xea8] sm:$0xff]  ;;  %v3482_v5 = vsel %vm1805_vm0, %v1616_v18, 0.0  ;;  %v1682_v31 = vunpack.c.h.bf16 %v717_v60 }
 0x2ca   : > { %v2925_v43 = vpop.xlane.xlu1 %2924  ;;  %v5769_v45 = vsel %vm4405_vm5, %v5768_v27, %v5764_v39  ;;  %v2921_v46 = vpop.xlane.xlu0 %2920  ;;  %v1716_v26 = vunpack.c.h.bf16 %v734_v4  ;;  %v3483_v37 = vadd.f32 %v3482_v5, %v1615_v21  ;;  %v1715_v39 = vunpack.c.l.bf16 %v734_v4 }
 0x2cb   : > { %v5778_v49 = vrot.slane %v2925_v43, %v7969_v22  ;;  %v5773_v52 = vrot.slane %v2921_v46, %v7972_v23  ;;  %v1681_v43 = vunpack.c.l.bf16 %v717_v60  ;;  %v3614_v48 = vsel %vm1805_vm0, %v1682_v31, 0.0  ;;  %v576_v60 = vld [vmem:[%s7781_s27 + $0x9b8] sm:$0xff] }
 0x2cc   : > { %v3682_v42 = vsel %vm1805_vm0, %v1716_v26, 0.0  ;;  %v1339_v26 = vunpack.c.l.bf16 %v546_v2 }
 0x2cd   : > { %v5774_v16 = vsel %vm4412_vm6, %v5773_v52, %v5769_v45  ;;  %3180 = vadd.xlane.f32.xlu1 %v3179_v32  ;;  %3112 = vadd.xlane.f32.xlu0 %v3111_v40  ;;  %v1776_v40 = vunpack.c.h.bf16 %v764_v14  ;;  %v1742_v45 = vunpack.c.h.bf16 %v747_v44  ;;  %v3683_v3 = vadd.f32 %v3682_v42, %v1715_v39  ;;  %v609_v39 = vld [vmem:[%s7781_s27 + $0xac0] sm:$0xff] }
 0x2ce   : > { %v3153_v28 = vpop.xlane.xlu1 %3152  ;;  %v5779_v54 = vsel %vm4419_vm7, %v5778_v49, %v5774_v16  ;;  %v2929_v19 = vpop.xlane.xlu0 %2928  ;;  %v559_v49 = vld [vmem:[%s7781_s27 + $0x930] sm:$0xff]  ;;  %v1741_v16 = vunpack.c.l.bf16 %v747_v44  ;;  %v3615_v1 = vadd.f32 %v3614_v48, %v1681_v43  ;;  %v1400_v44 = vunpack.c.h.bf16 %v576_v60 }
 0x2cf   : > { %v5783_v58 = vrot.slane %v2929_v19, %v7996_v56  ;;  %v6060_v32 = vrot.slane %v3153_v28, %v7940_v51  ;;  %v3802_v11 = vsel %vm1805_vm0, %v1776_v40, 0.0  ;;  %v3734_v18 = vsel %vm1805_vm0, %v1742_v45, 0.0 }
 0x2d0   : > { %v1366_v28 = vunpack.c.h.bf16 %v559_v49  ;;  %v3735_v25 = vadd.f32 %v3734_v18, %v1741_v16  ;;  %v1365_v5 = vunpack.c.l.bf16 %v559_v49 }
 0x2d1   : > { %v9167_v12 = vsel %vm4426_vm8, %v5783_v58, %v5779_v54  ;;  %3300 = vadd.xlane.f32.xlu1 %v3299_v55  ;;  %3232 = vadd.xlane.f32.xlu0 %v3231_v59  ;;  %v1775_v59 = vunpack.c.l.bf16 %v764_v14  ;;  %v592_v54 = vld [vmem:[%s7781_s27 + $0xa38] sm:$0xff]  ;;  %v1340_v58 = vunpack.c.h.bf16 %v546_v2 }
 0x2d2   : > { %v3025_v30 = vpop.xlane.xlu1 %3024  ;;  %v3157_v27 = vpop.xlane.xlu0 %3156  ;;  %v1432_v14 = vunpack.c.h.bf16 %v592_v54  ;;  %v2982_v31 = vsel %vm1805_vm0, %v1366_v28, 0.0  ;;  %v1431_v42 = vunpack.c.l.bf16 %v592_v54 }
 0x2d3   : > { %v6064_v33 = vrot.slane %v3157_v27, %v7958_v9  ;;  %v5902_v52 = vrot.slane %v3025_v30, %v7940_v51  ;;  %v3803_v21 = vadd.f32 %v3802_v11, %v1775_v59  ;;  %v2983_v43 = vadd.f32 %v2982_v31, %v1365_v5  ;;  %v639_v11 = vld [vmem:[%s7781_s27 + $0xbb0] sm:$0xff] }
 0x2d4   : > { %v3114_v45 = vsel %vm1805_vm0, %v1432_v14, 0.0  ;;  %v672_v14 = vld [vmem:[%s7781_s27 + $0xcb8] sm:$0xff] }
 0x2d5   : > { %v6065_v41 = vsel %vm4377_vm1, %v6064_v33, %v6060_v32  ;;  %3432 = vadd.xlane.f32.xlu1 %v3431_v20  ;;  %3364 = vadd.xlane.f32.xlu0 %v3363_v7  ;;  %v622_v32 = vld [vmem:[%s7781_s27 + $0xb28] sm:$0xff]  ;;  %v3115_v18 = vadd.f32 %v3114_v45, %v1431_v42 }
 0x2d6   : > { %v3089_v46 = vpop.xlane.xlu1 %3088  ;;  %v3029_v47 = vpop.xlane.xlu0 %3028  ;;  %v1491_v54 = vunpack.c.l.bf16 %v622_v32 }
 0x2d7   : > { %v5906_v55 = vrot.slane %v3029_v47, %v7958_v9  ;;  %v5981_v20 = vrot.slane %v3089_v46, %v7940_v51  ;;  %v1399_v46 = vunpack.c.l.bf16 %v576_v60  ;;  %v1492_v47 = vunpack.c.h.bf16 %v622_v32 }
 0x2d9   : > { %v9184_v17 = vsel %vm4377_vm1, %v5906_v55, %v5902_v52  ;;  %3552 = vadd.xlane.f32.xlu1 %v3551_v35  ;;  %3484 = vadd.xlane.f32.xlu0 %v3483_v37  ;;  %v2930_v37 = vsel %vm1805_vm0, %v1340_v58, 0.0  ;;  %v3050_v52 = vsel %vm1805_vm0, %v1400_v44, 0.0  ;;  %v1466_v55 = vunpack.c.h.bf16 %v609_v39 }
 0x2da   : > { %v3161_v19 = vpop.xlane.xlu1 %3160  ;;  %v3093_v4 = vpop.xlane.xlu0 %3092  ;;  %v2931_v49 = vadd.f32 %v2930_v37, %v1339_v26  ;;  %v3051_v28 = vadd.f32 %v3050_v52, %v1399_v46  ;;  %v685_v26 = vld [vmem:[%s7781_s27 + $0xd20] sm:$0xff]  ;;  %v1592_v46 = vunpack.c.h.bf16 %v672_v14 }
 0x2db   : > { %v6069_v7 = vrot.slane %v3161_v19, %v7944_v57  ;;  %v5985_v63 = vrot.slane %v3093_v4, %v7958_v9  ;;  %v3234_v19 = vsel %vm1805_vm0, %v1492_v47, 0.0  ;;  %v1465_v4 = vunpack.c.l.bf16 %v609_v39  ;;  %v702_v47 = vld [vmem:[%s7781_s27 + $0xda8] sm:$0xff] }
 0x2dc   : > { %v3182_v60 = vsel %vm1805_vm0, %v1466_v55, 0.0  ;;  %v3235_v31 = vadd.f32 %v3234_v19, %v1491_v54  ;;  %v1618_v45 = vunpack.c.h.bf16 %v685_v26  ;;  %v3434_v54 = vsel %vm1805_vm0, %v1592_v46, 0.0 }
 0x2dd   : > { %v9193_v30 = vsel %vm4384_vm2, %v6069_v7, %v6065_v41  ;;  %v5986_v27 = vsel %vm4377_vm1, %v5985_v63, %v5981_v20  ;;  %3684 = vadd.xlane.f32.xlu1 %v3683_v3  ;;  %3616 = vadd.xlane.f32.xlu0 %v3615_v1  ;;  %v655_v3 = vld [vmem:[%s7781_s27 + $0xc30] sm:$0xff]  ;;  %v1526_v7 = vunpack.c.h.bf16 %v639_v11  ;;  %v3183_v44 = vadd.f32 %v3182_v60, %v1465_v4 }
 0x2de   : > { %v3413_v33 = vpop.xlane.xlu1 %3412  ;;  %v3409_v35 = vpop.xlane.xlu0 %3408  ;;  %v1558_v20 = vunpack.c.h.bf16 %v655_v3  ;;  %v1557_v32 = vunpack.c.l.bf16 %v655_v3  ;;  %v1652_v3 = vunpack.c.h.bf16 %v702_v47 }
 0x2df   : > { %v6380_v40 = vrot.slane %v3413_v33, %v7958_v9  ;;  %v6376_v41 = vrot.slane %v3409_v35, %v7940_v51  ;;  %v1525_v33 = vunpack.c.l.bf16 %v639_v11  ;;  %v718_v35 = vld [vmem:[%s7781_s27 + $0xe28] sm:$0xff]  ;;  %v748_v11 = vld [vmem:[%s7781_s27 + $0xf18] sm:$0xff] }
 0x2e0   : > { %v1683_v19 = vunpack.c.l.bf16 %v718_v35 }
 0x2e1   : > { %v9204_v48 = vsel %vm4377_vm1, %v6380_v40, %v6376_v41  ;;  %3804 = vadd.xlane.f32.xlu1 %v3803_v21  ;;  %3736 = vadd.xlane.f32.xlu0 %v3735_v25  ;;  %v3366_v40 = vsel %vm1805_vm0, %v1558_v20, 0.0  ;;  %v3302_v41 = vsel %vm1805_vm0, %v1526_v7, 0.0  ;;  %v1651_v20 = vunpack.c.l.bf16 %v702_v47 }
 0x2e2   : > { %v2965_v59 = vpop.xlane.xlu1 %2964  ;;  %v2961_v2 = vpop.xlane.xlu0 %2960  ;;  %v3367_v52 = vadd.f32 %v3366_v40, %v1557_v32  ;;  %v3303_v55 = vadd.f32 %v3302_v41, %v1525_v33  ;;  %v1744_v7 = vunpack.c.h.bf16 %v748_v11  ;;  %v547_v32 = vld [vmem:[%s7781_s27 + $0x8d0] sm:$0xff]  ;;  %v765_v33 = vld [vmem:[%s7781_s27 + $0xfa0] sm:$0xff] }
 0x2e3   : > { %v5827_v16 = vrot.slane %v2965_v59, %v7958_v9  ;;  %v5823_v1 = vrot.slane %v2961_v2, %v7940_v51  ;;  %v1617_v59 = vunpack.c.l.bf16 %v685_v26  ;;  %v1591_v2 = vunpack.c.l.bf16 %v672_v14 }
 0x2e4   : > { %v3554_v26 = vsel %vm1805_vm0, %v1652_v3, 0.0 }
 0x2e5   : > { %v9213_v58 = vsel %vm4377_vm1, %v5827_v16, %v5823_v1  ;;  %2984 = vadd.xlane.f32.xlu1 %v2983_v43  ;;  %2932 = vadd.xlane.f32.xlu0 %v2931_v49  ;;  %v1684_v49 = vunpack.c.h.bf16 %v718_v35  ;;  %v735_v16 = vld [vmem:[%s7781_s27 + $0xeb0] sm:$0xff] }
 0x2e6   : > { %v3097_v63 = vpop.xlane.xlu1 %3096  ;;  %v3033_v21 = vpop.xlane.xlu0 %3032  ;;  %v1717_v46 = vunpack.c.l.bf16 %v735_v16 }
 0x2e7   : > { %v5990_v25 = vrot.slane %v3097_v63, %v7944_v57  ;;  %v5911_v5 = vrot.slane %v3033_v21, %v7944_v57  ;;  %v3618_v60 = vsel %vm1805_vm0, %v1684_v49, 0.0  ;;  %v1718_v63 = vunpack.c.h.bf16 %v735_v16 }
 0x2e9   : > { %v9222_v37 = vsel %vm4384_vm2, %v5990_v25, %v5986_v27  ;;  %v9226_v39 = vsel %vm4384_vm2, %v5911_v5, %v9184_v17  ;;  %3116 = vadd.xlane.f32.xlu1 %v3115_v18  ;;  %3052 = vadd.xlane.f32.xlu0 %v3051_v28  ;;  %v3486_v28 = vsel %vm1805_vm0, %v1618_v45, 0.0  ;;  %v3435_v5 = vadd.f32 %v3434_v54, %v1591_v2 }
 0x2ea   : > { %v3281_v42 = vpop.xlane.xlu1 %3280  ;;  %v3165_v43 = vpop.xlane.xlu0 %3164  ;;  %v3487_v25 = vadd.f32 %v3486_v28, %v1617_v59  ;;  %v3738_v45 = vsel %vm1805_vm0, %v1744_v7, 0.0  ;;  %v3686_v47 = vsel %vm1805_vm0, %v1718_v63, 0.0  ;;  %v577_v59 = vld [vmem:[%s7781_s27 + $0x9c0] sm:$0xff]  ;;  %v1777_v54 = vunpack.c.l.bf16 %v765_v33 }
 0x2eb   : > { %v6074_v27 = vrot.slane %v3165_v43, %v7949_v62  ;;  %v6218_v4 = vrot.slane %v3281_v42, %v7940_v51  ;;  %v1743_v42 = vunpack.c.l.bf16 %v748_v11  ;;  %v3555_v43 = vadd.f32 %v3554_v26, %v1651_v20  ;;  %v560_v11 = vld [vmem:[%s7781_s27 + $0x938] sm:$0xff] }
 0x2ec   : > { %v3687_v28 = vadd.f32 %v3686_v47, %v1717_v46  ;;  %v1368_v20 = vunpack.c.h.bf16 %v560_v11 }
 0x2ed   : > { %v9234_v17 = vsel %vm4391_vm3, %v6074_v27, %v9193_v30  ;;  %3236 = vadd.xlane.f32.xlu1 %v3235_v31  ;;  %3184 = vadd.xlane.f32.xlu0 %v3183_v44  ;;  %v3619_v44 = vadd.f32 %v3618_v60, %v1683_v19  ;;  %v1402_v19 = vunpack.c.h.bf16 %v577_v59 }
 0x2ee   : > { %v3345_v1 = vpop.xlane.xlu1 %3344  ;;  %v3285_v18 = vpop.xlane.xlu0 %3284 }
 0x2ef   : > { %v6222_v30 = vrot.slane %v3285_v18, %v7958_v9  ;;  %v6297_v35 = vrot.slane %v3345_v1, %v7940_v51  ;;  %v3739_v18 = vadd.f32 %v3738_v45, %v1743_v42  ;;  %v2986_v42 = vsel %vm1805_vm0, %v1368_v20, 0.0  ;;  %v640_v45 = vld [vmem:[%s7781_s27 + $0xbb8] sm:$0xff] }
 0x2f0   : > { %v656_v20 = vld [vmem:[%s7781_s27 + $0xc38] sm:$0xff] }
 0x2f1   : > { %v9244_v21 = vsel %vm4377_vm1, %v6222_v30, %v6218_v4  ;;  %3368 = vadd.xlane.f32.xlu1 %v3367_v52  ;;  %3304 = vadd.xlane.f32.xlu0 %v3303_v55  ;;  %v1342_v52 = vunpack.c.h.bf16 %v547_v32  ;;  %v1778_v55 = vunpack.c.h.bf16 %v765_v33 }
 0x2f2   : > { %v3417_v14 = vpop.xlane.xlu1 %3416  ;;  %v3349_v31 = vpop.xlane.xlu0 %3348 }
 0x2f3   : > { %v6385_v40 = vrot.slane %v3417_v14, %v7944_v57  ;;  %v6301_v41 = vrot.slane %v3349_v31, %v7958_v9  ;;  %v2934_v30 = vsel %vm1805_vm0, %v1342_v52, 0.0  ;;  %v3806_v60 = vsel %vm1805_vm0, %v1778_v55, 0.0  ;;  %v593_v31 = vld [vmem:[%s7781_s27 + $0xa40] sm:$0xff]  ;;  %v623_v55 = vld [vmem:[%s7781_s27 + $0xb30] sm:$0xff] }
 0x2f4   : > { %v1401_v14 = vunpack.c.l.bf16 %v577_v59  ;;  %v3807_v33 = vadd.f32 %v3806_v60, %v1777_v54  ;;  %v1434_v52 = vunpack.c.h.bf16 %v593_v31  ;;  %v673_v54 = vld [vmem:[%s7781_s27 + $0xcc0] sm:$0xff] }
 0x2f5   : > { %v9256_v27 = vsel %vm4384_vm2, %v6385_v40, %v9204_v48  ;;  %v9259_v49 = vsel %vm4377_vm1, %v6301_v41, %v6297_v35  ;;  %3488 = vadd.xlane.f32.xlu1 %v3487_v25  ;;  %3436 = vadd.xlane.f32.xlu0 %v3435_v5  ;;  %v1341_v48 = vunpack.c.l.bf16 %v547_v32  ;;  %v610_v25 = vld [vmem:[%s7781_s27 + $0xac8] sm:$0xff]  ;;  %v1367_v35 = vunpack.c.l.bf16 %v560_v11 }
 0x2f6   : > { %v3669_v2 = vpop.xlane.xlu1 %3668  ;;  %v3665_v3 = vpop.xlane.xlu0 %3664  ;;  %v1433_v11 = vunpack.c.l.bf16 %v593_v31  ;;  %v3118_v60 = vsel %vm1805_vm0, %v1434_v52, 0.0 }
 0x2f7   : > { %v6696_v16 = vrot.slane %v3669_v2, %v7958_v9  ;;  %v6692_v1 = vrot.slane %v3665_v3, %v7940_v51  ;;  %v2935_v32 = vadd.f32 %v2934_v30, %v1341_v48  ;;  %v2987_v3 = vadd.f32 %v2986_v42, %v1367_v35  ;;  %v703_v42 = vld [vmem:[%s7781_s27 + $0xdb0] sm:$0xff] }
 0x2f8   : > { %v1494_v48 = vunpack.c.h.bf16 %v623_v55  ;;  %v3119_v31 = vadd.f32 %v3118_v60, %v1433_v11  ;;  %v1654_v11 = vunpack.c.h.bf16 %v703_v42 }
 0x2f9   : > { %v9266_v4 = vsel %vm4377_vm1, %v6696_v16, %v6692_v1  ;;  %3620 = vadd.xlane.f32.xlu1 %v3619_v44  ;;  %3556 = vadd.xlane.f32.xlu0 %v3555_v43  ;;  %v3054_v44 = vsel %vm1805_vm0, %v1402_v19, 0.0  ;;  %v1468_v43 = vunpack.c.h.bf16 %v610_v25  ;;  %v1528_v16 = vunpack.c.h.bf16 %v640_v45 }
 0x2fa   : > { %v3037_v7 = vpop.xlane.xlu1 %3036  ;;  %v2969_v63 = vpop.xlane.xlu0 %2968  ;;  %v3055_v2 = vadd.f32 %v3054_v44, %v1401_v14 }
 0x2fb   : > { %v5916_v5 = vrot.slane %v3037_v7, %v7949_v62  ;;  %v5832_v26 = vrot.slane %v2969_v63, %v7944_v57  ;;  %v1527_v63 = vunpack.c.l.bf16 %v640_v45 }
 0x2fd   : > { %v9277_v40 = vsel %vm4391_vm3, %v5916_v5, %v9226_v39  ;;  %v9281_v41 = vsel %vm4384_vm2, %v5832_v26, %v9213_v58  ;;  %3740 = vadd.xlane.f32.xlu1 %v3739_v18  ;;  %3688 = vadd.xlane.f32.xlu0 %v3687_v28  ;;  %v1467_v58 = vunpack.c.l.bf16 %v610_v25  ;;  %v3186_v28 = vsel %vm1805_vm0, %v1468_v43, 0.0 }
 0x2fe   : > { %v3169_v46 = vpop.xlane.xlu1 %3168  ;;  %v3101_v47 = vpop.xlane.xlu0 %3100  ;;  %v1493_v5 = vunpack.c.l.bf16 %v623_v55  ;;  %v1594_v26 = vunpack.c.h.bf16 %v673_v54  ;;  %v1593_v55 = vunpack.c.l.bf16 %v673_v54  ;;  %v736_v54 = vld [vmem:[%s7781_s27 + $0xeb8] sm:$0xff] }
 0x2ff   : > { %v6079_v59 = vrot.slane %v3169_v46, %v7965_v15  ;;  %v5995_v39 = vrot.slane %v3101_v47, %v7949_v62  ;;  %v3187_v25 = vadd.f32 %v3186_v28, %v1467_v58  ;;  %v686_v47 = vld [vmem:[%s7781_s27 + $0xd28] sm:$0xff] }
 0x301   : > { %v9290_v1 = vsel %vm4398_vm4, %v6079_v59, %v9234_v17  ;;  %v9294_v18 = vsel %vm4391_vm3, %v5995_v39, %v9222_v37  ;;  %2936 = vadd.xlane.f32.xlu1 %v2935_v32  ;;  %3808 = vadd.xlane.f32.xlu0 %v3807_v33  ;;  %v3306_v37 = vsel %vm1805_vm0, %v1528_v16, 0.0  ;;  %v3238_v32 = vsel %vm1805_vm0, %v1494_v48, 0.0 }
 0x302   : > { %v3221_v19 = vpop.xlane.xlu1 %3220  ;;  %v3217_v30 = vpop.xlane.xlu0 %3216  ;;  %v1560_v33 = vunpack.c.h.bf16 %v656_v20  ;;  %v3307_v46 = vadd.f32 %v3306_v37, %v1527_v63  ;;  %v3239_v52 = vadd.f32 %v3238_v32, %v1493_v5  ;;  %v3438_v59 = vsel %vm1805_vm0, %v1594_v26, 0.0 }
 0x303   : > { %v6143_v7 = vrot.slane %v3221_v19, %v7958_v9  ;;  %v6139_v17 = vrot.slane %v3217_v30, %v7940_v51  ;;  %v1559_v39 = vunpack.c.l.bf16 %v656_v20  ;;  %v1620_v48 = vunpack.c.h.bf16 %v686_v47  ;;  %v719_v30 = vld [vmem:[%s7781_s27 + $0xe30] sm:$0xff] }
 0x304   : > { %v3370_v58 = vsel %vm1805_vm0, %v1560_v33, 0.0  ;;  %v3439_v60 = vadd.f32 %v3438_v59, %v1593_v55  ;;  %v1619_v63 = vunpack.c.l.bf16 %v686_v47  ;;  %v1685_v47 = vunpack.c.l.bf16 %v719_v30  ;;  %v548_v55 = vld [vmem:[%s7781_s27 + $0x8d8] sm:$0xff] }
 0x305   : > { %v9304_v14 = vsel %vm4377_vm1, %v6143_v7, %v6139_v17  ;;  %3056 = vadd.xlane.f32.xlu1 %v3055_v2  ;;  %2988 = vadd.xlane.f32.xlu0 %v2987_v3  ;;  %v3371_v20 = vadd.f32 %v3370_v58, %v1559_v39  ;;  %v766_v7 = vld [vmem:[%s7781_s27 + $0xfa8] sm:$0xff]  ;;  %v3558_v17 = vsel %vm1805_vm0, %v1654_v11, 0.0  ;;  %v3490_v26 = vsel %vm1805_vm0, %v1620_v48, 0.0 }
 0x306   : > { %v3353_v44 = vpop.xlane.xlu1 %3352  ;;  %v3289_v35 = vpop.xlane.xlu0 %3288  ;;  %v1779_v11 = vunpack.c.l.bf16 %v766_v7 }
 0x307   : > { %v6306_v43 = vrot.slane %v3353_v44, %v7944_v57  ;;  %v6227_v45 = vrot.slane %v3289_v35, %v7944_v57  ;;  %v1780_v44 = vunpack.c.h.bf16 %v766_v7 }
 0x309   : > { %v9314_v2 = vsel %vm4384_vm2, %v6306_v43, %v9259_v49  ;;  %v9318_v3 = vsel %vm4384_vm2, %v6227_v45, %v9244_v21  ;;  %3188 = vadd.xlane.f32.xlu1 %v3187_v25  ;;  %3120 = vadd.xlane.f32.xlu0 %v3119_v31  ;;  %v1653_v49 = vunpack.c.l.bf16 %v703_v42  ;;  %v1720_v25 = vunpack.c.h.bf16 %v736_v54 }
 0x30a   : > { %v3537_v16 = vpop.xlane.xlu1 %3536  ;;  %v3421_v28 = vpop.xlane.xlu0 %3420  ;;  %v1686_v31 = vunpack.c.h.bf16 %v719_v30  ;;  %v1719_v42 = vunpack.c.l.bf16 %v736_v54  ;;  %v3491_v45 = vadd.f32 %v3490_v26, %v1619_v63 }
 0x30b   : > { %v6390_v19 = vrot.slane %v3421_v28, %v7949_v62  ;;  %v6534_v32 = vrot.slane %v3537_v16, %v7940_v51  ;;  %v3559_v35 = vadd.f32 %v3558_v17, %v1653_v49 }
 0x30c   : > { %v3622_v58 = vsel %vm1805_vm0, %v1686_v31, 0.0 }
 0x30d   : > { %v9327_v21 = vsel %vm4391_vm3, %v6390_v19, %v9256_v27  ;;  %3308 = vadd.xlane.f32.xlu1 %v3307_v46  ;;  %3240 = vadd.xlane.f32.xlu0 %v3239_v52  ;;  %v749_v27 = vld [vmem:[%s7781_s27 + $0xf20] sm:$0xff]  ;;  %v3690_v46 = vsel %vm1805_vm0, %v1720_v25, 0.0  ;;  %v3810_v19 = vsel %vm1805_vm0, %v1780_v44, 0.0  ;;  %v3623_v7 = vadd.f32 %v3622_v58, %v1685_v47  ;;  %v594_v25 = vld [vmem:[%s7781_s27 + $0xa48] sm:$0xff] }
 0x30e   : > { %v3601_v37 = vpop.xlane.xlu1 %3600  ;;  %v3541_v5 = vpop.xlane.xlu0 %3540  ;;  %v561_v52 = vld [vmem:[%s7781_s27 + $0x940] sm:$0xff]  ;;  %v1746_v16 = vunpack.c.h.bf16 %v749_v27  ;;  %v1745_v63 = vunpack.c.l.bf16 %v749_v27  ;;  %v3811_v31 = vadd.f32 %v3810_v19, %v1779_v11  ;;  %v1436_v27 = vunpack.c.h.bf16 %v594_v25  ;;  %v611_v11 = vld [vmem:[%s7781_s27 + $0xad0] sm:$0xff] }
 0x30f   : > { %v6538_v33 = vrot.slane %v3541_v5, %v7958_v9  ;;  %v6613_v28 = vrot.slane %v3601_v37, %v7940_v51  ;;  %v1370_v30 = vunpack.c.h.bf16 %v561_v52  ;;  %v578_v37 = vld [vmem:[%s7781_s27 + $0x9c8] sm:$0xff]  ;;  %v1369_v44 = vunpack.c.l.bf16 %v561_v52 }
 0x310   : > { %v3122_v19 = vsel %vm1805_vm0, %v1436_v27, 0.0  ;;  %v687_v27 = vld [vmem:[%s7781_s27 + $0xd30] sm:$0xff] }
 0x311   : > { %v9335_v43 = vsel %vm4377_vm1, %v6538_v33, %v6534_v32  ;;  %3440 = vadd.xlane.f32.xlu1 %v3439_v60  ;;  %3372 = vadd.xlane.f32.xlu0 %v3371_v20  ;;  %v3691_v60 = vadd.f32 %v3690_v46, %v1719_v42  ;;  %v1344_v20 = vunpack.c.h.bf16 %v548_v55  ;;  %v3742_v32 = vsel %vm1805_vm0, %v1746_v16, 0.0 }
 0x312   : > { %v3673_v59 = vpop.xlane.xlu1 %3672  ;;  %v3605_v39 = vpop.xlane.xlu0 %3604  ;;  %v1343_v42 = vunpack.c.l.bf16 %v548_v55  ;;  %v1404_v46 = vunpack.c.h.bf16 %v578_v37  ;;  %v624_v55 = vld [vmem:[%s7781_s27 + $0xb38] sm:$0xff] }
 0x313   : > { %v6701_v48 = vrot.slane %v3673_v59, %v7944_v57  ;;  %v6617_v54 = vrot.slane %v3605_v39, %v7958_v9  ;;  %v3743_v39 = vadd.f32 %v3742_v32, %v1745_v63  ;;  %v1470_v63 = vunpack.c.h.bf16 %v611_v11  ;;  %v657_v32 = vld [vmem:[%s7781_s27 + $0xc40] sm:$0xff] }
 0x315   : > { %v9347_v49 = vsel %vm4384_vm2, %v6701_v48, %v9266_v4  ;;  %v9350_v17 = vsel %vm4377_vm1, %v6617_v54, %v6613_v28  ;;  %3560 = vadd.xlane.f32.xlu1 %v3559_v35  ;;  %3492 = vadd.xlane.f32.xlu0 %v3491_v45  ;;  %v2990_v35 = vsel %vm1805_vm0, %v1370_v30, 0.0  ;;  %v2938_v45 = vsel %vm1805_vm0, %v1344_v20, 0.0 }
 0x316   : > { %v3041_v5 = vpop.xlane.xlu1 %3040  ;;  %v2973_v26 = vpop.xlane.xlu0 %2972  ;;  %v2991_v48 = vadd.f32 %v2990_v35, %v1369_v44  ;;  %v2939_v54 = vadd.f32 %v2938_v45, %v1343_v42  ;;  %v1495_v44 = vunpack.c.l.bf16 %v624_v55  ;;  %v1469_v42 = vunpack.c.l.bf16 %v611_v11 }
 0x317   : > { %v5921_v33 = vrot.slane %v3041_v5, %v7965_v15  ;;  %v5837_v4 = vrot.slane %v2973_v26, %v7949_v62  ;;  %v3190_v45 = vsel %vm1805_vm0, %v1470_v63, 0.0 }
 0x319   : > { %v9361_v47 = vsel %vm4398_vm4, %v5921_v33, %v9277_v40  ;;  %v9365_v59 = vsel %vm4391_vm3, %v5837_v4, %v9281_v41  ;;  %3692 = vadd.xlane.f32.xlu1 %v3691_v60  ;;  %3624 = vadd.xlane.f32.xlu0 %v3623_v7  ;;  %v1435_v40 = vunpack.c.l.bf16 %v594_v25  ;;  %v1403_v41 = vunpack.c.l.bf16 %v578_v37  ;;  %v641_v33 = vld [vmem:[%s7781_s27 + $0xbc0] sm:$0xff] }
 0x31a   : > { %v3173_v58 = vpop.xlane.xlu1 %3172  ;;  %v3105_v52 = vpop.xlane.xlu0 %3104  ;;  %v3058_v60 = vsel %vm1805_vm0, %v1404_v46, 0.0  ;;  %v1496_v7 = vunpack.c.h.bf16 %v624_v55  ;;  %v674_v46 = vld [vmem:[%s7781_s27 + $0xcc8] sm:$0xff]  ;;  %v1530_v55 = vunpack.c.h.bf16 %v641_v33 }
 0x31b   : > { %v6084_v16 = vrot.slane %v3173_v58, %v7962_v13  ;;  %v6000_v28 = vrot.slane %v3105_v52, %v7965_v15  ;;  %v3059_v4 = vadd.f32 %v3058_v60, %v1403_v41  ;;  %v1562_v52 = vunpack.c.h.bf16 %v657_v32  ;;  %v720_v60 = vld [vmem:[%s7781_s27 + $0xe38] sm:$0xff] }
 0x31c   : > { %v3242_v35 = vsel %vm1805_vm0, %v1496_v7, 0.0  ;;  %v1529_v41 = vunpack.c.l.bf16 %v641_v33  ;;  %v704_v7 = vld [vmem:[%s7781_s27 + $0xdb8] sm:$0xff]  ;;  %v1688_v33 = vunpack.c.h.bf16 %v720_v60 }
 0x31d   : > { %v9375_v30 = vsel %vm4405_vm5, %v6084_v16, %v9290_v1  ;;  %v9379_v20 = vsel %vm4398_vm4, %v6000_v28, %v9294_v18  ;;  %3812 = vadd.xlane.f32.xlu1 %v3811_v31  ;;  %3744 = vadd.xlane.f32.xlu0 %v3743_v39  ;;  %v3123_v1 = vadd.f32 %v3122_v19, %v1435_v40  ;;  %v1622_v28 = vunpack.c.h.bf16 %v687_v27 }
 0x31e   : > { %v3293_v5 = vpop.xlane.xlu1 %3292  ;;  %v3225_v25 = vpop.xlane.xlu0 %3224  ;;  %v3191_v16 = vadd.f32 %v3190_v45, %v1469_v42  ;;  %v1561_v19 = vunpack.c.l.bf16 %v657_v32 }
 0x31f   : > { %v6232_v37 = vrot.slane %v3293_v5, %v7949_v62  ;;  %v6148_v26 = vrot.slane %v3225_v25, %v7944_v57  ;;  %v3374_v25 = vsel %vm1805_vm0, %v1562_v52, 0.0  ;;  %v750_v52 = vld [vmem:[%s7781_s27 + $0xf28] sm:$0xff] }
 0x321   : > { %v9387_v18 = vsel %vm4391_vm3, %v6232_v37, %v9318_v3  ;;  %v9391_v31 = vsel %vm4384_vm2, %v6148_v26, %v9304_v14  ;;  %2992 = vadd.xlane.f32.xlu1 %v2991_v48  ;;  %2940 = vadd.xlane.f32.xlu0 %v2939_v54  ;;  %v3243_v14 = vadd.f32 %v3242_v35, %v1495_v44  ;;  %v1596_v48 = vunpack.c.h.bf16 %v674_v46 }
 0x322   : > { %v3425_v39 = vpop.xlane.xlu1 %3424  ;;  %v3357_v58 = vpop.xlane.xlu0 %3356  ;;  %v3310_v37 = vsel %vm1805_vm0, %v1530_v55, 0.0  ;;  %v1595_v44 = vunpack.c.l.bf16 %v674_v46  ;;  %v3375_v35 = vadd.f32 %v3374_v25, %v1561_v19  ;;  %v737_v55 = vld [vmem:[%s7781_s27 + $0xec0] sm:$0xff] }
 0x323   : > { %v6395_v3 = vrot.slane %v3425_v39, %v7965_v15  ;;  %v6311_v11 = vrot.slane %v3357_v58, %v7949_v62  ;;  %v3442_v32 = vsel %vm1805_vm0, %v1596_v48, 0.0  ;;  %v3311_v45 = vadd.f32 %v3310_v37, %v1529_v41  ;;  %v549_v37 = vld [vmem:[%s7781_s27 + $0x8e0] sm:$0xff] }
 0x324   : > { %v3626_v48 = vsel %vm1805_vm0, %v1688_v33, 0.0  ;;  %v1748_v41 = vunpack.c.h.bf16 %v750_v52 }
 0x325   : > { %v9401_v54 = vsel %vm4398_vm4, %v6395_v3, %v9327_v21  ;;  %v9405_v40 = vsel %vm4391_vm3, %v6311_v11, %v9314_v2  ;;  %3124 = vadd.xlane.f32.xlu1 %v3123_v1  ;;  %3060 = vadd.xlane.f32.xlu0 %v3059_v4  ;;  %v1621_v2 = vunpack.c.l.bf16 %v687_v27  ;;  %v3494_v1 = vsel %vm1805_vm0, %v1622_v28, 0.0 }
 0x326   : > { %v3477_v63 = vpop.xlane.xlu1 %3476  ;;  %v3473_v5 = vpop.xlane.xlu0 %3472  ;;  %v1656_v4 = vunpack.c.h.bf16 %v704_v7  ;;  %v3443_v11 = vadd.f32 %v3442_v32, %v1595_v44  ;;  %v1687_v28 = vunpack.c.l.bf16 %v720_v60  ;;  %v1747_v44 = vunpack.c.l.bf16 %v750_v52 }
 0x327   : > { %v6459_v21 = vrot.slane %v3477_v63, %v7958_v9  ;;  %v6455_v26 = vrot.slane %v3473_v5, %v7940_v51  ;;  %v3495_v3 = vadd.f32 %v3494_v1, %v1621_v2  ;;  %v1655_v63 = vunpack.c.l.bf16 %v704_v7  ;;  %v579_v1 = vld [vmem:[%s7781_s27 + $0x9d0] sm:$0xff] }
 0x328   : > { %v1722_v5 = vunpack.c.h.bf16 %v737_v55  ;;  %v3746_v32 = vsel %vm1805_vm0, %v1748_v41, 0.0  ;;  %v612_v41 = vld [vmem:[%s7781_s27 + $0xad8] sm:$0xff] }
 0x329   : > { %v9416_v42 = vsel %vm4377_vm1, %v6459_v21, %v6455_v26  ;;  %3244 = vadd.xlane.f32.xlu1 %v3243_v14  ;;  %3192 = vadd.xlane.f32.xlu0 %v3191_v16  ;;  %v3562_v14 = vsel %vm1805_vm0, %v1656_v4, 0.0  ;;  %v767_v21 = vld [vmem:[%s7781_s27 + $0xfb0] sm:$0xff]  ;;  %v3627_v26 = vadd.f32 %v3626_v48, %v1687_v28  ;;  %v1346_v4 = vunpack.c.h.bf16 %v549_v37 }
 0x32a   : > { %v3609_v39 = vpop.xlane.xlu1 %3608  ;;  %v3545_v58 = vpop.xlane.xlu0 %3544  ;;  %v3563_v2 = vadd.f32 %v3562_v14, %v1655_v63  ;;  %v3694_v33 = vsel %vm1805_vm0, %v1722_v5, 0.0  ;;  %v1781_v14 = vunpack.c.l.bf16 %v767_v21  ;;  %v595_v5 = vld [vmem:[%s7781_s27 + $0xa50] sm:$0xff] }
 0x32b   : > { %v6622_v27 = vrot.slane %v3609_v39, %v7944_v57  ;;  %v6543_v46 = vrot.slane %v3545_v58, %v7944_v57  ;;  %v1782_v39 = vunpack.c.h.bf16 %v767_v21  ;;  %v2942_v63 = vsel %vm1805_vm0, %v1346_v4, 0.0 }
 0x32d   : > { %v9426_v16 = vsel %vm4384_vm2, %v6622_v27, %v9350_v17  ;;  %v9430_v19 = vsel %vm4384_vm2, %v6543_v46, %v9335_v43  ;;  %3376 = vadd.xlane.f32.xlu1 %v3375_v35  ;;  %3312 = vadd.xlane.f32.xlu0 %v3311_v45  ;;  %v1721_v17 = vunpack.c.l.bf16 %v737_v55  ;;  %v562_v27 = vld [vmem:[%s7781_s27 + $0x948] sm:$0xff]  ;;  %v3747_v46 = vadd.f32 %v3746_v32, %v1747_v44 }
 0x32e   : > { %v3793_v25 = vpop.xlane.xlu1 %3792  ;;  %v3677_v60 = vpop.xlane.xlu0 %3676  ;;  %v1372_v44 = vunpack.c.h.bf16 %v562_v27  ;;  %v1472_v32 = vunpack.c.h.bf16 %v612_v41 }
 0x32f   : > { %v6706_v7 = vrot.slane %v3677_v60, %v7949_v62  ;;  %v6850_v58 = vrot.slane %v3793_v25, %v7940_v51 }
 0x331   : > { %v9438_v43 = vsel %vm4391_vm3, %v6706_v7, %v9347_v49  ;;  %3496 = vadd.xlane.f32.xlu1 %v3495_v3  ;;  %3444 = vadd.xlane.f32.xlu0 %v3443_v11  ;;  %v1406_v49 = vunpack.c.h.bf16 %v579_v1  ;;  %v3695_v3 = vadd.f32 %v3694_v33, %v1721_v17  ;;  %v1345_v11 = vunpack.c.l.bf16 %v549_v37 }
 0x332   : > { %v2977_v35 = vpop.xlane.xlu1 %2976  ;;  %v3797_v45 = vpop.xlane.xlu0 %3796  ;;  %v3814_v7 = vsel %vm1805_vm0, %v1782_v39, 0.0  ;;  %v1405_v37 = vunpack.c.l.bf16 %v579_v1  ;;  %v1438_v33 = vunpack.c.h.bf16 %v595_v5  ;;  %v625_v39 = vld [vmem:[%s7781_s27 + $0xb40] sm:$0xff] }
 0x333   : > { %v5842_v52 = vrot.slane %v2977_v35, %v7965_v15  ;;  %v6854_v55 = vrot.slane %v3797_v45, %v7958_v9  ;;  %v3815_v1 = vadd.f32 %v3814_v7, %v1781_v14  ;;  %v1371_v35 = vunpack.c.l.bf16 %v562_v27  ;;  %v642_v45 = vld [vmem:[%s7781_s27 + $0xbc8] sm:$0xff] }
 0x334   : > { %v1532_v27 = vunpack.c.h.bf16 %v642_v45  ;;  %v1498_v14 = vunpack.c.h.bf16 %v625_v39 }
 0x335   : > { %v9448_v28 = vsel %vm4398_vm4, %v5842_v52, %v9365_v59  ;;  %v9451_v48 = vsel %vm4377_vm1, %v6854_v55, %v6850_v58  ;;  %3628 = vadd.xlane.f32.xlu1 %v3627_v26  ;;  %3564 = vadd.xlane.f32.xlu0 %v3563_v2  ;;  %v3062_v26 = vsel %vm1805_vm0, %v1406_v49, 0.0  ;;  %v2943_v2 = vadd.f32 %v2942_v63, %v1345_v11 }
 0x336   : > { %v3109_v25 = vpop.xlane.xlu1 %3108  ;;  %v3045_v60 = vpop.xlane.xlu0 %3044  ;;  %v3063_v55 = vadd.f32 %v3062_v26, %v1405_v37  ;;  %v2994_v49 = vsel %vm1805_vm0, %v1372_v44, 0.0  ;;  %v1471_v63 = vunpack.c.l.bf16 %v612_v41  ;;  %v658_v44 = vld [vmem:[%s7781_s27 + $0xc48] sm:$0xff] }
 0x337   : > { %v6005_v59 = vrot.slane %v3109_v25, %v7962_v13  ;;  %v5926_v17 = vrot.slane %v3045_v60, %v7962_v13  ;;  %v2995_v7 = vadd.f32 %v2994_v49, %v1371_v35 }
 0x339   : > { %v9462_v21 = vsel %vm4405_vm5, %v6005_v59, %v9379_v20  ;;  %v9466_v4 = vsel %vm4405_vm5, %v5926_v17, %v9361_v47  ;;  %3748 = vadd.xlane.f32.xlu1 %v3747_v46  ;;  %3696 = vadd.xlane.f32.xlu0 %v3695_v3  ;;  %v1437_v47 = vunpack.c.l.bf16 %v595_v5  ;;  %v3194_v46 = vsel %vm1805_vm0, %v1472_v32, 0.0  ;;  %v675_v5 = vld [vmem:[%s7781_s27 + $0xcd0] sm:$0xff] }
 0x33a   : > { %v3229_v58 = vpop.xlane.xlu1 %3228  ;;  %v3177_v52 = vpop.xlane.xlu0 %3176  ;;  %v3126_v3 = vsel %vm1805_vm0, %v1438_v33, 0.0  ;;  %v3195_v26 = vadd.f32 %v3194_v46, %v1471_v63  ;;  %v3314_v33 = vsel %vm1805_vm0, %v1532_v27, 0.0  ;;  %v688_v63 = vld [vmem:[%s7781_s27 + $0xd38] sm:$0xff]  ;;  %v1597_v46 = vunpack.c.l.bf16 %v675_v5  ;;  %v738_v27 = vld [vmem:[%s7781_s27 + $0xec8] sm:$0xff] }
 0x33b   : > { %v6153_v11 = vrot.slane %v3229_v58, %v7949_v62  ;;  %v6089_v20 = vrot.slane %v3177_v52, %v7972_v23  ;;  %v3127_v32 = vadd.f32 %v3126_v3, %v1437_v47  ;;  %v1598_v58 = vunpack.c.h.bf16 %v675_v5 }
 0x33c   : > { %v1564_v52 = vunpack.c.h.bf16 %v658_v44  ;;  %v1563_v3 = vunpack.c.l.bf16 %v658_v44 }
 0x33d   : > { %v9477_v25 = vsel %vm4391_vm3, %v6153_v11, %v9391_v31  ;;  %v9481_v60 = vsel %vm4412_vm6, %v6089_v20, %v9375_v30  ;;  %2944 = vadd.xlane.f32.xlu1 %v2943_v2  ;;  %3816 = vadd.xlane.f32.xlu0 %v3815_v1  ;;  %v1531_v31 = vunpack.c.l.bf16 %v642_v45  ;;  %v1497_v30 = vunpack.c.l.bf16 %v625_v39  ;;  %v705_v20 = vld [vmem:[%s7781_s27 + $0xdc0] sm:$0xff] }
 0x33e   : > { %v3361_v37 = vpop.xlane.xlu1 %3360  ;;  %v3297_v41 = vpop.xlane.xlu0 %3296  ;;  %v3246_v2 = vsel %vm1805_vm0, %v1498_v14, 0.0  ;;  %v3446_v14 = vsel %vm1805_vm0, %v1598_v58, 0.0  ;;  %v1658_v44 = vunpack.c.h.bf16 %v705_v20  ;;  %v1623_v58 = vunpack.c.l.bf16 %v688_v63 }
 0x33f   : > { %v6316_v59 = vrot.slane %v3361_v37, %v7965_v15  ;;  %v6237_v17 = vrot.slane %v3297_v41, %v7965_v15  ;;  %v3247_v47 = vadd.f32 %v3246_v2, %v1497_v30  ;;  %v721_v37 = vld [vmem:[%s7781_s27 + $0xe40] sm:$0xff]  ;;  %v1657_v2 = vunpack.c.l.bf16 %v705_v20 }
 0x341   : > { %v9491_v1 = vsel %vm4398_vm4, %v6316_v59, %v9405_v40  ;;  %v9495_v35 = vsel %vm4398_vm4, %v6237_v17, %v9387_v18  ;;  %3064 = vadd.xlane.f32.xlu1 %v3063_v55  ;;  %2996 = vadd.xlane.f32.xlu0 %v2995_v7  ;;  %v3315_v40 = vadd.f32 %v3314_v33, %v1531_v31  ;;  %v3378_v7 = vsel %vm1805_vm0, %v1564_v52, 0.0  ;;  %v768_v52 = vld [vmem:[%s7781_s27 + $0xfb8] sm:$0xff] }
 0x342   : > { %v3481_v49 = vpop.xlane.xlu1 %3480  ;;  %v3429_v45 = vpop.xlane.xlu0 %3428  ;;  %v1624_v59 = vunpack.c.h.bf16 %v688_v63  ;;  %v1724_v31 = vunpack.c.h.bf16 %v738_v27  ;;  %v3379_v33 = vadd.f32 %v3378_v7, %v1563_v3  ;;  %v751_v3 = vld [vmem:[%s7781_s27 + $0xf30] sm:$0xff]  ;;  %v1784_v20 = vunpack.c.h.bf16 %v768_v52 }
 0x343   : > { %v6464_v39 = vrot.slane %v3481_v49, %v7944_v57  ;;  %v6400_v11 = vrot.slane %v3429_v45, %v7962_v13 }
 0x345   : > { %v9504_v18 = vsel %vm4384_vm2, %v6464_v39, %v9416_v42  ;;  %v9508_v55 = vsel %vm4405_vm5, %v6400_v11, %v9401_v54  ;;  %3196 = vadd.xlane.f32.xlu1 %v3195_v26  ;;  %3128 = vadd.xlane.f32.xlu0 %v3127_v32  ;;  %v3447_v54 = vadd.f32 %v3446_v14, %v1597_v46  ;;  %v1690_v26 = vunpack.c.h.bf16 %v721_v37 }
 0x346   : > { %v3613_v41 = vpop.xlane.xlu1 %3612  ;;  %v3549_v5 = vpop.xlane.xlu0 %3548  ;;  %v3566_v39 = vsel %vm1805_vm0, %v1658_v44, 0.0  ;;  %v3498_v11 = vsel %vm1805_vm0, %v1624_v59, 0.0  ;;  %v1723_v46 = vunpack.c.l.bf16 %v738_v27  ;;  %v1689_v14 = vunpack.c.l.bf16 %v721_v37  ;;  %v563_v27 = vld [vmem:[%s7781_s27 + $0x950] sm:$0xff] }
 0x347   : > { %v6627_v17 = vrot.slane %v3613_v41, %v7949_v62  ;;  %v6548_v42 = vrot.slane %v3549_v5, %v7949_v62  ;;  %v3499_v7 = vadd.f32 %v3498_v11, %v1623_v58  ;;  %v1750_v41 = vunpack.c.h.bf16 %v751_v3 }
 0x349   : > { %v9517_v32 = vsel %vm4391_vm3, %v6627_v17, %v9426_v16  ;;  %v9521_v30 = vsel %vm4391_vm3, %v6548_v42, %v9430_v19  ;;  %3316 = vadd.xlane.f32.xlu1 %v3315_v40  ;;  %3248 = vadd.xlane.f32.xlu0 %v3247_v47  ;;  %v3698_v19 = vsel %vm1805_vm0, %v1724_v31, 0.0  ;;  %v3630_v40 = vsel %vm1805_vm0, %v1690_v26, 0.0  ;;  %v550_v17 = vld [vmem:[%s7781_s27 + $0x8e8] sm:$0xff] }
 0x34a   : > { %v3729_v49 = vpop.xlane.xlu1 %3728  ;;  %v3681_v45 = vpop.xlane.xlu0 %3680  ;;  %v3567_v47 = vadd.f32 %v3566_v39, %v1657_v2  ;;  %v3699_v59 = vadd.f32 %v3698_v19, %v1723_v46  ;;  %v3631_v26 = vadd.f32 %v3630_v40, %v1689_v14  ;;  %v1374_v2 = vunpack.c.h.bf16 %v563_v27 }
 0x34b   : > { %v6711_v16 = vrot.slane %v3681_v45, %v7965_v15  ;;  %v6771_v42 = vrot.slane %v3729_v49, %v7940_v51  ;;  %v3750_v51 = vsel %vm1805_vm0, %v1750_v41, 0.0  ;;  %v1348_v49 = vunpack.c.h.bf16 %v550_v17 }
 0x34c   : > { %v2998_v14 = vsel %vm1805_vm0, %v1374_v2, 0.0  ;;  %v1347_v40 = vunpack.c.l.bf16 %v550_v17 }
 0x34d   : > { %v9532_v63 = vsel %vm4398_vm4, %v6711_v16, %v9438_v43  ;;  %3448 = vadd.xlane.f32.xlu1 %v3447_v54  ;;  %3380 = vadd.xlane.f32.xlu0 %v3379_v33  ;;  %v1783_v43 = vunpack.c.l.bf16 %v768_v52  ;;  %v3818_v54 = vsel %vm1805_vm0, %v1784_v20, 0.0  ;;  %v1749_v33 = vunpack.c.l.bf16 %v751_v3  ;;  %v596_v52 = vld [vmem:[%s7781_s27 + $0xa58] sm:$0xff] }
 0x34e   : > { %v3801_v5 = vpop.xlane.xlu1 %3800  ;;  %v3733_v44 = vpop.xlane.xlu0 %3732  ;;  %v1373_v3 = vunpack.c.l.bf16 %v563_v27  ;;  %v1440_v41 = vunpack.c.h.bf16 %v596_v52  ;;  %v626_v27 = vld [vmem:[%s7781_s27 + $0xb48] sm:$0xff] }
 0x34f   : > { %v6859_v37 = vrot.slane %v3801_v5, %v7944_v57  ;;  %v6775_v31 = vrot.slane %v3733_v44, %v7958_v9  ;;  %v3819_v16 = vadd.f32 %v3818_v54, %v1783_v43  ;;  %v3751_v19 = vadd.f32 %v3750_v51, %v1749_v33  ;;  %v613_v5 = vld [vmem:[%s7781_s27 + $0xae0] sm:$0xff] }
 0x350   : > { %v1500_v54 = vunpack.c.h.bf16 %v626_v27  ;;  %v3130_v2 = vsel %vm1805_vm0, %v1440_v41, 0.0 }
 0x351   : > { %v9542_v58 = vsel %vm4384_vm2, %v6859_v37, %v9451_v48  ;;  %v9545_v45 = vsel %vm4377_vm1, %v6775_v31, %v6771_v42  ;;  %3568 = vadd.xlane.f32.xlu1 %v3567_v47  ;;  %3500 = vadd.xlane.f32.xlu0 %v3499_v7  ;;  %v580_v48 = vld [vmem:[%s7781_s27 + $0x9d8] sm:$0xff]  ;;  %v2946_v7 = vsel %vm1805_vm0, %v1348_v49, 0.0  ;;  %v2999_v31 = vadd.f32 %v2998_v14, %v1373_v3  ;;  %v659_v49 = vld [vmem:[%s7781_s27 + $0xc50] sm:$0xff] }
 0x352   : > { %v3049_v9 = vpop.xlane.xlu1 %3048  ;;  %v2981_v39 = vpop.xlane.xlu0 %2980  ;;  %v1408_v37 = vunpack.c.h.bf16 %v580_v48  ;;  %v2947_v43 = vadd.f32 %v2946_v7, %v1347_v40  ;;  %v1407_v51 = vunpack.c.l.bf16 %v580_v48  ;;  %v1499_v3 = vunpack.c.l.bf16 %v626_v27  ;;  %v689_v27 = vld [vmem:[%s7781_s27 + $0xd40] sm:$0xff] }
 0x353   : > { %v5931_v11 = vrot.slane %v3049_v9, %v7972_v23  ;;  %v5847_v46 = vrot.slane %v2981_v39, %v7962_v13  ;;  %v1566_v48 = vunpack.c.h.bf16 %v659_v49  ;;  %vm11370_vm1 = vcmask 654912  }
 0x355   : > { %v9555_v20 = vsel %vm4412_vm6, %v5931_v11, %v9466_v4  ;;  %v9559_v47 = vsel %vm4405_vm5, %v5847_v46, %v9448_v28  ;;  %3700 = vadd.xlane.f32.xlu1 %v3699_v59  ;;  %3632 = vadd.xlane.f32.xlu0 %v3631_v26  ;;  %v1439_v28 = vunpack.c.l.bf16 %v596_v52  ;;  %v1474_v59 = vunpack.c.h.bf16 %v613_v5  ;;  %v643_v11 = vld [vmem:[%s7781_s27 + $0xbd0] sm:$0xff] }
 0x356   : > { %v3181_v44 = vpop.xlane.xlu1 %3180  ;;  %v3113_v42 = vpop.xlane.xlu0 %3112  ;;  %v3066_v52 = vsel %vm1805_vm0, %v1408_v37, 0.0  ;;  %v676_v37 = vld [vmem:[%s7781_s27 + $0xcd8] sm:$0xff] }
 0x357   : > { %v6094_v17 = vrot.slane %v3181_v44, %v7969_v22  ;;  %v6010_v4 = vrot.slane %v3113_v42, %v7972_v23  ;;  %v3131_v14 = vadd.f32 %v3130_v2, %v1439_v28  ;;  %v3067_v41 = vadd.f32 %v3066_v52, %v1407_v51  ;;  %v722_v52 = vld [vmem:[%s7781_s27 + $0xe48] sm:$0xff] }
 0x358   : > { %v1534_v44 = vunpack.c.h.bf16 %v643_v11 }
 0x359   : > { %v9568_v26 = vsel %vm4419_vm7, %v6094_v17, %v9481_v60  ;;  %v9572_v33 = vsel %vm4412_vm6, %v6010_v4, %v9462_v21  ;;  %3820 = vadd.xlane.f32.xlu1 %v3819_v16  ;;  %3752 = vadd.xlane.f32.xlu0 %v3751_v19  ;;  %v1473_v21 = vunpack.c.l.bf16 %v613_v5  ;;  %v3250_v16 = vsel %vm1805_vm0, %v1500_v54, 0.0 }
 0x35a   : > { %v3301_v9 = vpop.xlane.xlu1 %3300  ;;  %v3233_v39 = vpop.xlane.xlu0 %3232  ;;  %v3198_v19 = vsel %vm1805_vm0, %v1474_v59, 0.0  ;;  %v3251_v28 = vadd.f32 %v3250_v16, %v1499_v3  ;;  %v1565_v54 = vunpack.c.l.bf16 %v659_v49  ;;  %v1533_v59 = vunpack.c.l.bf16 %v643_v11 }
 0x35b   : > { %v6242_v46 = vrot.slane %v3301_v9, %v7962_v13  ;;  %v6158_v60 = vrot.slane %v3233_v39, %v7965_v15  ;;  %v3318_v51 = vsel %vm1805_vm0, %v1534_v44, 0.0  ;;  %v1600_v9 = vunpack.c.h.bf16 %v676_v37  ;;  %v752_v44 = vld [vmem:[%s7781_s27 + $0xf38] sm:$0xff] }
 0x35d   : > { %v9584_v40 = vsel %vm4405_vm5, %v6242_v46, %v9495_v35  ;;  %v9588_v7 = vsel %vm4398_vm4, %v6158_v60, %v9477_v25  ;;  %3000 = vadd.xlane.f32.xlu1 %v2999_v31  ;;  %2948 = vadd.xlane.f32.xlu0 %v2947_v43  ;;  %v3199_v35 = vadd.f32 %v3198_v19, %v1473_v21  ;;  %v3382_v25 = vsel %vm1805_vm0, %v1566_v48, 0.0  ;;  %v706_v60 = vld [vmem:[%s7781_s27 + $0xdc8] sm:$0xff] }
 0x35e   : > { %v3433_v5 = vpop.xlane.xlu1 %3432  ;;  %v3365_v42 = vpop.xlane.xlu0 %3364  ;;  %v1626_v31 = vunpack.c.h.bf16 %v689_v27  ;;  %v3383_v3 = vadd.f32 %v3382_v25, %v1565_v54  ;;  %v3319_v21 = vadd.f32 %v3318_v51, %v1533_v59  ;;  %v3450_v48 = vsel %vm1805_vm0, %v1600_v9, 0.0  ;;  %v551_v9 = vld [vmem:[%s7781_s27 + $0x8f0] sm:$0xff] }
 0x35f   : > { %v6405_v17 = vrot.slane %v3433_v5, %v7972_v23  ;;  %v6321_v4 = vrot.slane %v3365_v42, %v7962_v13  ;;  %v1752_v25 = vunpack.c.h.bf16 %v752_v44  ;;  %v1659_v51 = vunpack.c.l.bf16 %v706_v60 }
 0x361   : > { %v9597_v43 = vsel %vm4412_vm6, %v6405_v17, %v9508_v55  ;;  %v9601_v2 = vsel %vm4405_vm5, %v6321_v4, %v9491_v1  ;;  %3132 = vadd.xlane.f32.xlu1 %v3131_v14  ;;  %3068 = vadd.xlane.f32.xlu0 %v3067_v41  ;;  %v1625_v55 = vunpack.c.l.bf16 %v689_v27  ;;  %v3502_v1 = vsel %vm1805_vm0, %v1626_v31, 0.0  ;;  %v739_v27 = vld [vmem:[%s7781_s27 + $0xed0] sm:$0xff] }
 0x362   : > { %v3553_v39 = vpop.xlane.xlu1 %3552  ;;  %v3485_v49 = vpop.xlane.xlu0 %3484  ;;  %v1599_v14 = vunpack.c.l.bf16 %v676_v37  ;;  %v1692_v41 = vunpack.c.h.bf16 %v722_v52  ;;  %v1660_v17 = vunpack.c.h.bf16 %v706_v60  ;;  %v1350_v60 = vunpack.c.h.bf16 %v551_v9 }
 0x363   : > { %v6553_v11 = vrot.slane %v3553_v39, %v7965_v15  ;;  %v6469_v46 = vrot.slane %v3485_v49, %v7949_v62  ;;  %v3503_v4 = vadd.f32 %v3502_v1, %v1625_v55  ;;  %v1751_v55 = vunpack.c.l.bf16 %v752_v44  ;;  %v581_v44 = vld [vmem:[%s7781_s27 + $0x9e0] sm:$0xff] }
 0x364   : > { %v3451_v54 = vadd.f32 %v3450_v48, %v1599_v14  ;;  %v3634_v31 = vsel %vm1805_vm0, %v1692_v41, 0.0 }
 0x365   : > { %v9611_v16 = vsel %vm4398_vm4, %v6553_v11, %v9521_v30  ;;  %v9615_v19 = vsel %vm4391_vm3, %v6469_v46, %v9504_v18  ;;  %3252 = vadd.xlane.f32.xlu1 %v3251_v28  ;;  %3200 = vadd.xlane.f32.xlu0 %v3199_v35  ;;  %v1691_v18 = vunpack.c.l.bf16 %v722_v52  ;;  %v1726_v28 = vunpack.c.h.bf16 %v739_v27  ;;  %v769_v11 = vld [vmem:[%s7781_s27 + $0xfc0] sm:$0xff] }
 0x366   : > { %v3685_v5 = vpop.xlane.xlu1 %3684  ;;  %v3617_v42 = vpop.xlane.xlu0 %3616  ;;  %v3570_v52 = vsel %vm1805_vm0, %v1660_v17, 0.0  ;;  %v1786_v41 = vunpack.c.h.bf16 %v769_v11 }
 0x367   : > { %v6716_v37 = vrot.slane %v3685_v5, %v7962_v13  ;;  %v6632_v30 = vrot.slane %v3617_v42, %v7965_v15  ;;  %v3635_v1 = vadd.f32 %v3634_v31, %v1691_v18  ;;  %v564_v42 = vld [vmem:[%s7781_s27 + $0x958] sm:$0xff]  ;;  %v1349_v18 = vunpack.c.l.bf16 %v551_v9 }
 0x368   : > { %v3822_v31 = vsel %vm1805_vm0, %v1786_v41, 0.0  ;;  %v627_v41 = vld [vmem:[%s7781_s27 + $0xb50] sm:$0xff] }
 0x369   : > { %v9624_v35 = vsel %vm4405_vm5, %v6716_v37, %v9532_v63  ;;  %v9628_v59 = vsel %vm4398_vm4, %v6632_v30, %v9517_v32  ;;  %3384 = vadd.xlane.f32.xlu1 %v3383_v3  ;;  %3320 = vadd.xlane.f32.xlu0 %v3319_v21  ;;  %v1725_v32 = vunpack.c.l.bf16 %v739_v27  ;;  %v3754_v3 = vsel %vm1805_vm0, %v1752_v25, 0.0 }
 0x36a   : > { %v3805_v39 = vpop.xlane.xlu1 %3804  ;;  %v3737_v49 = vpop.xlane.xlu0 %3736  ;;  %v3702_v21 = vsel %vm1805_vm0, %v1726_v28, 0.0  ;;  %v3755_v30 = vadd.f32 %v3754_v3, %v1751_v55  ;;  %v1785_v25 = vunpack.c.l.bf16 %v769_v11 }
 0x36b   : > { %v6864_v46 = vrot.slane %v3805_v39, %v7949_v62  ;;  %v6780_v63 = vrot.slane %v3737_v49, %v7944_v57  ;;  %v3571_v57 = vadd.f32 %v3570_v52, %v1659_v51  ;;  %v1376_v51 = vunpack.c.h.bf16 %v564_v42  ;;  %v614_v49 = vld [vmem:[%s7781_s27 + $0xae8] sm:$0xff] }
 0x36c   : > { %v3823_v55 = vadd.f32 %v3822_v31, %v1785_v25  ;;  %v677_v31 = vld [vmem:[%s7781_s27 + $0xce0] sm:$0xff] }
 0x36d   : > { %v9640_v14 = vsel %vm4391_vm3, %v6864_v46, %v9542_v58  ;;  %v9644_v48 = vsel %vm4384_vm2, %v6780_v63, %v9545_v45  ;;  %3504 = vadd.xlane.f32.xlu1 %v3503_v4  ;;  %3452 = vadd.xlane.f32.xlu0 %v3451_v54  ;;  %v3703_v58 = vadd.f32 %v3702_v21, %v1725_v32  ;;  %v2950_v45 = vsel %vm1805_vm0, %v1350_v60, 0.0  ;;  %v597_v46 = vld [vmem:[%s7781_s27 + $0xa60] sm:$0xff]  ;;  %vm11371_vm2 = vmmov %vm11370_vm1 }
 0x36e   : > { %v2985_v27 = vpop.xlane.xlu1 %2984  ;;  %v2933_v5 = vpop.xlane.xlu0 %2932  ;;  %v1410_v4 = vunpack.c.h.bf16 %v581_v44  ;;  %v2951_v63 = vadd.f32 %v2950_v45, %v1349_v18  ;;  %v1375_v32 = vunpack.c.l.bf16 %v564_v42  ;;  %v3002_v21 = vsel %vm1805_vm0, %v1376_v51, 0.0 }
 0x36f   : > { %v5852_v17 = vrot.slane %v2985_v27, %v7972_v23  ;;  %v5788_v37 = vrot.slane %v2933_v5, %v7991_v50  ;;  %v1476_v60 = vunpack.c.h.bf16 %v614_v49  ;;  %v1442_v5 = vunpack.c.h.bf16 %v597_v46 }
 0x371   : > { %v9653_v54 = vsel %vm4412_vm6, %v5852_v17, %v9559_v47  ;;  %v9657_v28 = vsel %vm11370_vm1, %v5788_v37, %v9167_v12  ;;  %3636 = vadd.xlane.f32.xlu1 %v3635_v1  ;;  %3572 = vadd.xlane.f32.xlu0 %v3571_v57  ;;  %v1409_v47 = vunpack.c.l.bf16 %v581_v44  ;;  %v3070_v12 = vsel %vm1805_vm0, %v1410_v4, 0.0  ;;  %v644_v57 = vld [vmem:[%s7781_s27 + $0xbd8] sm:$0xff] }
 0x372   : > { %v3117_v39 = vpop.xlane.xlu1 %3116  ;;  %v3053_v9 = vpop.xlane.xlu0 %3052  ;;  %v3003_v37 = vadd.f32 %v3002_v21, %v1375_v32  ;;  %v1536_v18 = vunpack.c.h.bf16 %v644_v57  ;;  %v3202_v25 = vsel %vm1805_vm0, %v1476_v60, 0.0  ;;  %v1441_v4 = vunpack.c.l.bf16 %v597_v46 }
 0x373   : > { %v6015_v52 = vrot.slane %v3117_v39, %v7969_v22  ;;  %v5936_v11 = vrot.slane %v3053_v9, %v7969_v22  ;;  %v3071_v17 = vadd.f32 %v3070_v12, %v1409_v47  ;;  %v3134_v9 = vsel %vm1805_vm0, %v1442_v5, 0.0 }
 0x374   : > { %v1602_v46 = vunpack.c.h.bf16 %v677_v31  ;;  %v3135_v21 = vadd.f32 %v3134_v9, %v1441_v4 }
 0x375   : > { %v9667_v1 = vsel %vm4419_vm7, %v6015_v52, %v9572_v33  ;;  %v9671_v3 = vsel %vm4419_vm7, %v5936_v11, %v9555_v20  ;;  %3756 = vadd.xlane.f32.xlu1 %v3755_v30  ;;  %3704 = vadd.xlane.f32.xlu0 %v3703_v58  ;;  %v1475_v20 = vunpack.c.l.bf16 %v614_v49  ;;  %v1502_v30 = vunpack.c.h.bf16 %v627_v41  ;;  %v660_v49 = vld [vmem:[%s7781_s27 + $0xc58] sm:$0xff] }
 0x376   : > { %v3237_v44 = vpop.xlane.xlu1 %3236  ;;  %v3185_v27 = vpop.xlane.xlu0 %3184  ;;  %v1535_v11 = vunpack.c.l.bf16 %v644_v57  ;;  %v1568_v60 = vunpack.c.h.bf16 %v660_v49  ;;  %v707_v57 = vld [vmem:[%s7781_s27 + $0xdd0] sm:$0xff] }
 0x377   : > { %v6163_v42 = vrot.slane %v3237_v44, %v7962_v13  ;;  %v6099_v33 = vrot.slane %v3185_v27, %v7996_v56  ;;  %v3203_v47 = vadd.f32 %v3202_v25, %v1475_v20  ;;  %v690_v27 = vld [vmem:[%s7781_s27 + $0xd48] sm:$0xff]  ;;  %v1601_v20 = vunpack.c.l.bf16 %v677_v31 }
 0x378   : > { %v3386_v25 = vsel %vm1805_vm0, %v1568_v60, 0.0  ;;  %v1628_v4 = vunpack.c.h.bf16 %v690_v27  ;;  %v753_v60 = vld [vmem:[%s7781_s27 + $0xf40] sm:$0xff] }
 0x379   : > { %v9680_v58 = vsel %vm4405_vm5, %v6163_v42, %v9588_v7  ;;  %v9684_v45 = vsel %vm4426_vm8, %v6099_v33, %v9568_v26  ;;  %2952 = vadd.xlane.f32.xlu1 %v2951_v63  ;;  %3824 = vadd.xlane.f32.xlu0 %v3823_v55  ;;  %v1501_v26 = vunpack.c.l.bf16 %v627_v41  ;;  %v3322_v63 = vsel %vm1805_vm0, %v1536_v18, 0.0 }
 0x37a   : > { %v3369_v51 = vpop.xlane.xlu1 %3368  ;;  %v3305_v39 = vpop.xlane.xlu0 %3304  ;;  %v3254_v55 = vsel %vm1805_vm0, %v1502_v30, 0.0  ;;  %v3323_v33 = vadd.f32 %v3322_v63, %v1535_v11  ;;  %v1567_v18 = vunpack.c.l.bf16 %v660_v49 }
 0x37b   : > { %v6326_v52 = vrot.slane %v3369_v51, %v7972_v23  ;;  %v6247_v7 = vrot.slane %v3305_v39, %v7972_v23  ;;  %v740_v39 = vld [vmem:[%s7781_s27 + $0xed8] sm:$0xff] }
 0x37c   : > { %v3387_v11 = vadd.f32 %v3386_v25, %v1567_v18 }
 0x37d   : > { %v9696_v12 = vsel %vm4412_vm6, %v6326_v52, %v9601_v2  ;;  %v9700_v32 = vsel %vm4412_vm6, %v6247_v7, %v9584_v40  ;;  %3072 = vadd.xlane.f32.xlu1 %v3071_v17  ;;  %3004 = vadd.xlane.f32.xlu0 %v3003_v37  ;;  %v3255_v2 = vadd.f32 %v3254_v55, %v1501_v26  ;;  %v3454_v40 = vsel %vm1805_vm0, %v1602_v46, 0.0  ;;  %v723_v52 = vld [vmem:[%s7781_s27 + $0xe50] sm:$0xff] }
 0x37e   : > { %v3489_v41 = vpop.xlane.xlu1 %3488  ;;  %v3437_v44 = vpop.xlane.xlu0 %3436  ;;  %v1662_v17 = vunpack.c.h.bf16 %v707_v57  ;;  %v3455_v7 = vadd.f32 %v3454_v40, %v1601_v20  ;;  %v1627_v26 = vunpack.c.l.bf16 %v690_v27  ;;  %v3506_v55 = vsel %vm1805_vm0, %v1628_v4, 0.0 }
 0x37f   : > { %v6474_v5 = vrot.slane %v3489_v41, %v7965_v15  ;;  %v6410_v42 = vrot.slane %v3437_v44, %v7969_v22  ;;  %v1728_v46 = vunpack.c.h.bf16 %v740_v39  ;;  %v1694_v44 = vunpack.c.h.bf16 %v723_v52 }
 0x380   : > { %v1693_v18 = vunpack.c.l.bf16 %v723_v52 }
 0x381   : > { %v9709_v37 = vsel %vm4398_vm4, %v6474_v5, %v9615_v19  ;;  %v9713_v30 = vsel %vm4419_vm7, %v6410_v42, %v9597_v43  ;;  %3204 = vadd.xlane.f32.xlu1 %v3203_v47  ;;  %3136 = vadd.xlane.f32.xlu0 %v3135_v21  ;;  %v1661_v19 = vunpack.c.l.bf16 %v707_v57  ;;  %v3574_v43 = vsel %vm1805_vm0, %v1662_v17, 0.0  ;;  %v770_v21 = vld [vmem:[%s7781_s27 + $0xfc8] sm:$0xff]  ;;  %v565_v17 = vld [vmem:[%s7781_s27 + $0x960] sm:$0xff] }
 0x382   : > { %v3621_v51 = vpop.xlane.xlu1 %3620  ;;  %v3557_v31 = vpop.xlane.xlu0 %3556  ;;  %v3507_v42 = vadd.f32 %v3506_v55, %v1627_v26  ;;  %v1788_v20 = vunpack.c.h.bf16 %v770_v21  ;;  %v1378_v52 = vunpack.c.h.bf16 %v565_v17 }
 0x383   : > { %v6637_v9 = vrot.slane %v3621_v51, %v7962_v13  ;;  %v6558_v49 = vrot.slane %v3557_v31, %v7962_v13  ;;  %v3575_v5 = vadd.f32 %v3574_v43, %v1661_v19  ;;  %v3638_v51 = vsel %vm1805_vm0, %v1694_v44, 0.0  ;;  %v552_v31 = vld [vmem:[%s7781_s27 + $0x8f8] sm:$0xff] }
 0x384   : > { %v3826_v19 = vsel %vm1805_vm0, %v1788_v20, 0.0  ;;  %v3639_v26 = vadd.f32 %v3638_v51, %v1693_v18  ;;  %v1352_v55 = vunpack.c.h.bf16 %v552_v31 }
 0x385   : > { %v9723_v47 = vsel %vm4405_vm5, %v6637_v9, %v9628_v59  ;;  %v9727_v63 = vsel %vm4405_vm5, %v6558_v49, %v9611_v16  ;;  %3324 = vadd.xlane.f32.xlu1 %v3323_v33  ;;  %3256 = vadd.xlane.f32.xlu0 %v3255_v2  ;;  %v1727_v16 = vunpack.c.l.bf16 %v740_v39  ;;  %v1754_v33 = vunpack.c.h.bf16 %v753_v60 }
 0x386   : > { %v3741_v57 = vpop.xlane.xlu1 %3740  ;;  %v3689_v41 = vpop.xlane.xlu0 %3688  ;;  %v1787_v9 = vunpack.c.l.bf16 %v770_v21 }
 0x387   : > { %v6785_v27 = vrot.slane %v3741_v57, %v7949_v62  ;;  %v6721_v59 = vrot.slane %v3689_v41, %v7972_v23  ;;  %v3706_v62 = vsel %vm1805_vm0, %v1728_v46, 0.0  ;;  %v598_v46 = vld [vmem:[%s7781_s27 + $0xa68] sm:$0xff] }
 0x388   : > { %v3707_v49 = vadd.f32 %v3706_v62, %v1727_v16  ;;  %v582_v57 = vld [vmem:[%s7781_s27 + $0x9e8] sm:$0xff]  ;;  %v1351_v16 = vunpack.c.l.bf16 %v552_v31  ;;  %v615_v31 = vld [vmem:[%s7781_s27 + $0xaf0] sm:$0xff] }
 0x389   : > { %v9736_v2 = vsel %vm4391_vm3, %v6785_v27, %v9644_v48  ;;  %v9740_v40 = vsel %vm4412_vm6, %v6721_v59, %v9624_v35  ;;  %3456 = vadd.xlane.f32.xlu1 %v3455_v7  ;;  %3388 = vadd.xlane.f32.xlu0 %v3387_v11  ;;  %v1753_v35 = vunpack.c.l.bf16 %v753_v60  ;;  %v3758_v7 = vsel %vm1805_vm0, %v1754_v33, 0.0  ;;  %vm11372_vm3 = vmmov %vm11368_vm9 }
 0x38a   : > { %v2937_v25 = vpop.xlane.xlu1 %2936  ;;  %v3809_v4 = vpop.xlane.xlu0 %3808  ;;  %v3827_v27 = vadd.f32 %v3826_v19, %v1787_v9  ;;  %v1377_v59 = vunpack.c.l.bf16 %v565_v17  ;;  %v2954_v33 = vsel %vm1805_vm0, %v1352_v55, 0.0  ;;  %v1412_v62 = vunpack.c.h.bf16 %v582_v57  ;;  %vm11374_vm9 = vmmov %vm11370_vm1 }
 0x38b   : > { %v5793_v39 = vrot.slane %v2937_v25, %v8018_v29  ;;  %v6869_v48 = vrot.slane %v3809_v4, %v7965_v15  ;;  %v628_v25 = vld [vmem:[%s7781_s27 + $0xb58] sm:$0xff]  ;;  %v1411_v9 = vunpack.c.l.bf16 %v582_v57 }
 0x38c   : > { %v3074_v19 = vsel %vm1805_vm0, %v1412_v62, 0.0 }
 0x38d   : > { %v9752_v11 = vsel %vm4440_vm10, %v5793_v39, %v9657_v28  ;;  %v9756_v43 = vsel %vm4398_vm4, %v6869_v48, %v9640_v14  ;;  %3576 = vadd.xlane.f32.xlu1 %v3575_v5  ;;  %3508 = vadd.xlane.f32.xlu0 %v3507_v42  ;;  %v3759_v28 = vadd.f32 %v3758_v7, %v1753_v35  ;;  %v3006_v14 = vsel %vm1805_vm0, %v1378_v52, 0.0  ;;  %v661_v52 = vld [vmem:[%s7781_s27 + $0xc60] sm:$0xff] }
 0x38e   : > { %v3057_v21 = vpop.xlane.xlu1 %3056  ;;  %v2989_v60 = vpop.xlane.xlu0 %2988  ;;  %v1444_v5 = vunpack.c.h.bf16 %v598_v46  ;;  %v3007_v39 = vadd.f32 %v3006_v14, %v1377_v59  ;;  %v2955_v48 = vadd.f32 %v2954_v33, %v1351_v16  ;;  %v1504_v7 = vunpack.c.h.bf16 %v628_v25 }
 0x38f   : > { %v5941_v41 = vrot.slane %v3057_v21, %v7996_v56  ;;  %v5857_v44 = vrot.slane %v2989_v60, %v7969_v22  ;;  %v1478_v21 = vunpack.c.h.bf16 %v615_v31  ;;  %v1477_v16 = vunpack.c.l.bf16 %v615_v31 }
 0x390   : > { %v3258_v14 = vsel %vm1805_vm0, %v1504_v7, 0.0  ;;  %v724_v7 = vld [vmem:[%s7781_s27 + $0xe58] sm:$0xff] }
 0x391   : > { %v9765_v42 = vsel %vm4426_vm8, %v5941_v41, %v9671_v3  ;;  %v9769_v20 = vsel %vm4419_vm7, %v5857_v44, %v9653_v54  ;;  %3708 = vadd.xlane.f32.xlu1 %v3707_v49  ;;  %3640 = vadd.xlane.f32.xlu0 %v3639_v26  ;;  %v1443_v3 = vunpack.c.l.bf16 %v598_v46  ;;  %v3138_v54 = vsel %vm1805_vm0, %v1444_v5, 0.0  ;;  %v645_v26 = vld [vmem:[%s7781_s27 + $0xbe0] sm:$0xff]  ;;  %v691_v5 = vld [vmem:[%s7781_s27 + $0xd50] sm:$0xff] }
 0x392   : > { %v3189_v18 = vpop.xlane.xlu1 %3188  ;;  %v3121_v17 = vpop.xlane.xlu0 %3120  ;;  %v3075_v41 = vadd.f32 %v3074_v19, %v1411_v9  ;;  %v1570_v44 = vunpack.c.h.bf16 %v661_v52  ;;  %v1630_v31 = vunpack.c.h.bf16 %v691_v5 }
 0x393   : > { %v6104_v4 = vrot.slane %v3189_v18, %v7991_v50  ;;  %v6020_v51 = vrot.slane %v3121_v17, %v7996_v56  ;;  %v3139_v57 = vadd.f32 %v3138_v54, %v1443_v3  ;;  %v3206_v18 = vsel %vm1805_vm0, %v1478_v21, 0.0  ;;  %v678_v17 = vld [vmem:[%s7781_s27 + $0xce8] sm:$0xff] }
 0x394   : > { %v3390_v3 = vsel %vm1805_vm0, %v1570_v44, 0.0  ;;  %v3207_v9 = vadd.f32 %v3206_v18, %v1477_v16  ;;  %v1604_v19 = vunpack.c.h.bf16 %v678_v17 }
 0x395   : > { %v9779_v35 = vsel %vm11371_vm2, %v6104_v4, %v9684_v45  ;;  %v9783_v49 = vsel %vm4426_vm8, %v6020_v51, %v9667_v1  ;;  %3828 = vadd.xlane.f32.xlu1 %v3827_v27  ;;  %3760 = vadd.xlane.f32.xlu0 %v3759_v28  ;;  %v1503_v1 = vunpack.c.l.bf16 %v628_v25  ;;  %v1538_v27 = vunpack.c.h.bf16 %v645_v26  ;;  %vm11376_vm2 = vmmov %vm11372_vm3 }
 0x396   : > { %v3309_v55 = vpop.xlane.xlu1 %3308  ;;  %v3241_v46 = vpop.xlane.xlu0 %3240  ;;  %v1569_v4 = vunpack.c.l.bf16 %v661_v52 }
 0x397   : > { %v6252_v60 = vrot.slane %v3309_v55, %v7969_v22  ;;  %v6168_v45 = vrot.slane %v3241_v46, %v7972_v23  ;;  %v3259_v51 = vadd.f32 %v3258_v14, %v1503_v1  ;;  %v708_v55 = vld [vmem:[%s7781_s27 + $0xdd8] sm:$0xff]  ;;  %v1603_v1 = vunpack.c.l.bf16 %v678_v17  ;;  %v741_v17 = vld [vmem:[%s7781_s27 + $0xee0] sm:$0xff] }
 0x398   : > { %v1664_v14 = vunpack.c.h.bf16 %v708_v55 }
 0x399   : > { %v9792_v28 = vsel %vm4419_vm7, %v6252_v60, %v9700_v32  ;;  %v9796_v59 = vsel %vm4412_vm6, %v6168_v45, %v9680_v58  ;;  %3008 = vadd.xlane.f32.xlu1 %v3007_v39  ;;  %2956 = vadd.xlane.f32.xlu0 %v2955_v48  ;;  %v1537_v58 = vunpack.c.l.bf16 %v645_v26  ;;  %v3326_v39 = vsel %vm1805_vm0, %v1538_v27, 0.0 }
 0x39a   : > { %v3441_v33 = vpop.xlane.xlu1 %3440  ;;  %v3373_v62 = vpop.xlane.xlu0 %3372  ;;  %v3391_v60 = vadd.f32 %v3390_v3, %v1569_v4  ;;  %v1629_v45 = vunpack.c.l.bf16 %v691_v5  ;;  %v3458_v27 = vsel %vm1805_vm0, %v1604_v19, 0.0  ;;  %v1663_v4 = vunpack.c.l.bf16 %v708_v55 }
 0x39b   : > { %v6415_v25 = vrot.slane %v3441_v33, %v7996_v56  ;;  %v6331_v32 = vrot.slane %v3373_v62, %v7969_v22  ;;  %v754_v33 = vld [vmem:[%s7781_s27 + $0xf48] sm:$0xff]  ;;  %v3578_v3 = vsel %vm1805_vm0, %v1664_v14, 0.0 }
 0x39d   : > { %v9808_v48 = vsel %vm4426_vm8, %v6415_v25, %v9713_v30  ;;  %v9812_v54 = vsel %vm4419_vm7, %v6331_v32, %v9696_v12  ;;  %3140 = vadd.xlane.f32.xlu1 %v3139_v57  ;;  %3076 = vadd.xlane.f32.xlu0 %v3075_v41  ;;  %v3327_v30 = vadd.f32 %v3326_v39, %v1537_v58  ;;  %v3510_v12 = vsel %vm1805_vm0, %v1630_v31, 0.0  ;;  %v566_v31 = vld [vmem:[%s7781_s27 + $0x968] sm:$0xff] }
 0x39e   : > { %v3561_v52 = vpop.xlane.xlu1 %3560  ;;  %v3493_v26 = vpop.xlane.xlu0 %3492  ;;  %v1696_v57 = vunpack.c.h.bf16 %v724_v7  ;;  %v3511_v25 = vadd.f32 %v3510_v12, %v1629_v45  ;;  %v3459_v32 = vadd.f32 %v3458_v27, %v1603_v1  ;;  %v1756_v39 = vunpack.c.h.bf16 %v754_v33 }
 0x39f   : > { %v6563_v46 = vrot.slane %v3561_v52, %v7972_v23  ;;  %v6479_v21 = vrot.slane %v3493_v26, %v7962_v13  ;;  %v1730_v52 = vunpack.c.h.bf16 %v741_v17  ;;  %v1729_v1 = vunpack.c.l.bf16 %v741_v17 }
 0x3a0   : > { %v3762_v12 = vsel %vm1805_vm0, %v1756_v39, 0.0 }
 0x3a1   : > { %v9821_v41 = vsel %vm4412_vm6, %v6563_v46, %v9727_v63  ;;  %v9825_v44 = vsel %vm4405_vm5, %v6479_v21, %v9709_v37  ;;  %3260 = vadd.xlane.f32.xlu1 %v3259_v51  ;;  %3208 = vadd.xlane.f32.xlu0 %v3207_v9  ;;  %v1695_v63 = vunpack.c.l.bf16 %v724_v7  ;;  %v3642_v37 = vsel %vm1805_vm0, %v1696_v57, 0.0  ;;  %v771_v9 = vld [vmem:[%s7781_s27 + $0xfd0] sm:$0xff] }
 0x3a2   : > { %v3693_v16 = vpop.xlane.xlu1 %3692  ;;  %v3625_v5 = vpop.xlane.xlu0 %3624  ;;  %v3579_v46 = vadd.f32 %v3578_v3, %v1663_v4  ;;  %v1380_v21 = vunpack.c.h.bf16 %v566_v31  ;;  %v3710_v14 = vsel %vm1805_vm0, %v1730_v52, 0.0  ;;  %v629_v3 = vld [vmem:[%s7781_s27 + $0xb60] sm:$0xff] }
 0x3a3   : > { %v6726_v62 = vrot.slane %v3693_v16, %v7969_v22  ;;  %v6642_v18 = vrot.slane %v3625_v5, %v7972_v23  ;;  %v3643_v55 = vadd.f32 %v3642_v37, %v1695_v63  ;;  %v583_v16 = vld [vmem:[%s7781_s27 + $0x9f0] sm:$0xff]  ;;  %v3711_v37 = vadd.f32 %v3710_v14, %v1729_v1  ;;  %v646_v14 = vld [vmem:[%s7781_s27 + $0xbe8] sm:$0xff] }
 0x3a4   : > { %v1414_v4 = vunpack.c.h.bf16 %v583_v16 }
 0x3a5   : > { %v9835_v58 = vsel %vm4419_vm7, %v6726_v62, %v9740_v40  ;;  %v9839_v51 = vsel %vm4412_vm6, %v6642_v18, %v9723_v47  ;;  %3392 = vadd.xlane.f32.xlu1 %v3391_v60  ;;  %3328 = vadd.xlane.f32.xlu0 %v3327_v30  ;;  %v1755_v47 = vunpack.c.l.bf16 %v754_v33  ;;  %v1790_v60 = vunpack.c.h.bf16 %v771_v9 }
 0x3a6   : > { %v3813_v19 = vpop.xlane.xlu1 %3812  ;;  %v3745_v7 = vpop.xlane.xlu0 %3744  ;;  %v1379_v33 = vunpack.c.l.bf16 %v566_v31  ;;  %v3010_v18 = vsel %vm1805_vm0, %v1380_v21, 0.0  ;;  %v3078_v21 = vsel %vm1805_vm0, %v1414_v4, 0.0 }
 0x3a7   : > { %v6874_v26 = vrot.slane %v3813_v19, %v7962_v13  ;;  %v6790_v40 = vrot.slane %v3745_v7, %v7965_v15  ;;  %v599_v15 = vld [vmem:[%s7781_s27 + $0xa70] sm:$0xff]  ;;  %v3763_v62 = vadd.f32 %v3762_v12, %v1755_v47  ;;  %v3830_v63 = vsel %vm1805_vm0, %v1790_v60, 0.0 }
 0x3a8   : > { %v1446_v17 = vunpack.c.h.bf16 %v599_v15  ;;  %v3011_v52 = vadd.f32 %v3010_v18, %v1379_v33 }
 0x3a9   : > { %v9848_v30 = vsel %vm4405_vm5, %v6874_v26, %v9756_v43  ;;  %v9852_v45 = vsel %vm4398_vm4, %v6790_v40, %v9736_v2  ;;  %3512 = vadd.xlane.f32.xlu1 %v3511_v25  ;;  %3460 = vadd.xlane.f32.xlu0 %v3459_v32  ;;  %v1789_v2 = vunpack.c.l.bf16 %v771_v9  ;;  %v616_v9 = vld [vmem:[%s7781_s27 + $0xaf8] sm:$0xff]  ;;  %v1445_v26 = vunpack.c.l.bf16 %v599_v15  ;;  %vm11373_vm4 = vmmov %vm11370_vm1  ;;  %v662_v15 = vld [vmem:[%s7781_s27 + $0xc68] sm:$0xff] }
 0x3aa   : > { %v2993_v57 = vpop.xlane.xlu1 %2992  ;;  %v2941_v27 = vpop.xlane.xlu0 %2940  ;;  %v1413_v40 = vunpack.c.l.bf16 %v583_v16  ;;  %v1480_v60 = vunpack.c.h.bf16 %v616_v9  ;;  %v1572_v18 = vunpack.c.h.bf16 %v662_v15 }
 0x3ab   : > { %v5862_v5 = vrot.slane %v2993_v57, %v7996_v56  ;;  %v5798_v43 = vrot.slane %v2941_v27, %v8013_v24 }
 0x3ad   : > { %v9864_v25 = vsel %vm4426_vm8, %v5862_v5, %v9769_v20  ;;  %v9868_v32 = vsel %vm11372_vm3, %v5798_v43, %v9752_v11  ;;  %3644 = vadd.xlane.f32.xlu1 %v3643_v55  ;;  %3580 = vadd.xlane.f32.xlu0 %v3579_v46  ;;  %v3831_v20 = vadd.f32 %v3830_v63, %v1789_v2  ;;  %v3142_v11 = vsel %vm1805_vm0, %v1446_v17, 0.0  ;;  %v692_v63 = vld [vmem:[%s7781_s27 + $0xd58] sm:$0xff]  ;;  %v679_v17 = vld [vmem:[%s7781_s27 + $0xcf0] sm:$0xff]  ;;  %vm11377_vm3 = vmmov %vm11370_vm1 }
 0x3ae   : > { %v3125_v39 = vpop.xlane.xlu1 %3124  ;;  %v3061_v31 = vpop.xlane.xlu0 %3060  ;;  %v1506_v55 = vunpack.c.h.bf16 %v629_v3  ;;  %v3143_v16 = vadd.f32 %v3142_v11, %v1445_v26  ;;  %v3079_v5 = vadd.f32 %v3078_v21, %v1413_v40  ;;  %v1479_v43 = vunpack.c.l.bf16 %v616_v9  ;;  %v725_v40 = vld [vmem:[%s7781_s27 + $0xe60] sm:$0xff] }
 0x3af   : > { %v6025_v19 = vrot.slane %v3125_v39, %v7991_v50  ;;  %v5946_v7 = vrot.slane %v3061_v31, %v7991_v50  ;;  %v3394_v26 = vsel %vm1805_vm0, %v1572_v18, 0.0  ;;  %v1539_v11 = vunpack.c.l.bf16 %v646_v14 }
 0x3b1   : > { %v9877_v46 = vsel %vm11373_vm4, %v6025_v19, %v9783_v49  ;;  %v9881_v47 = vsel %vm11374_vm9, %v5946_v7, %v9765_v42  ;;  %3764 = vadd.xlane.f32.xlu1 %v3763_v62  ;;  %3712 = vadd.xlane.f32.xlu0 %v3711_v37  ;;  %v1505_v49 = vunpack.c.l.bf16 %v629_v3  ;;  %v3262_v42 = vsel %vm1805_vm0, %v1506_v55, 0.0  ;;  %vm11378_vm4 = vmmov %vm11370_vm1 }
 0x3b2   : > { %v3245_v12 = vpop.xlane.xlu1 %3244  ;;  %v3193_v1 = vpop.xlane.xlu0 %3192  ;;  %v3210_v62 = vsel %vm1805_vm0, %v1480_v60, 0.0  ;;  %v1540_v3 = vunpack.c.h.bf16 %v646_v14  ;;  %v1632_v19 = vunpack.c.h.bf16 %v692_v63  ;;  %v1606_v7 = vunpack.c.h.bf16 %v679_v17  ;;  %vm11379_vm9 = vmmov %vm11370_vm1 }
 0x3b3   : > { %v6173_v57 = vrot.slane %v3245_v12, %v7969_v22  ;;  %v6109_v27 = vrot.slane %v3193_v1, %v8018_v29  ;;  %v3263_v31 = vadd.f32 %v3262_v42, %v1505_v49  ;;  %v3211_v9 = vadd.f32 %v3210_v62, %v1479_v43  ;;  %v709_v12 = vld [vmem:[%s7781_s27 + $0xde0] sm:$0xff]  ;;  %v755_v62 = vld [vmem:[%s7781_s27 + $0xf50] sm:$0xff] }
 0x3b4   : > { %v3330_v60 = vsel %vm1805_vm0, %v1540_v3, 0.0  ;;  %v3462_v49 = vsel %vm1805_vm0, %v1606_v7, 0.0  ;;  %v1698_v14 = vunpack.c.h.bf16 %v725_v40  ;;  %v1666_v43 = vunpack.c.h.bf16 %v709_v12 }
 0x3b5   : > { %v9891_v33 = vsel %vm4419_vm7, %v6173_v57, %v9796_v59  ;;  %v9895_v2 = vsel %vm4440_vm10, %v6109_v27, %v9779_v35  ;;  %3012 = vadd.xlane.f32.xlu1 %v3011_v52  ;;  %3832 = vadd.xlane.f32.xlu0 %v3831_v20  ;;  %v1571_v35 = vunpack.c.l.bf16 %v662_v15  ;;  %v1631_v15 = vunpack.c.l.bf16 %v692_v63 }
 0x3b6   : > { %v3377_v37 = vpop.xlane.xlu1 %3376  ;;  %v3313_v4 = vpop.xlane.xlu0 %3312  ;;  %v3514_v27 = vsel %vm1805_vm0, %v1632_v19, 0.0  ;;  %v3331_v42 = vadd.f32 %v3330_v60, %v1539_v11  ;;  %v3582_v19 = vsel %vm1805_vm0, %v1666_v43, 0.0  ;;  %v772_v60 = vld [vmem:[%s7781_s27 + $0xfd8] sm:$0xff] }
 0x3b7   : > { %v6336_v39 = vrot.slane %v3377_v37, %v7996_v56  ;;  %v6257_v59 = vrot.slane %v3313_v4, %v7996_v56  ;;  %v3395_v57 = vadd.f32 %v3394_v26, %v1571_v35  ;;  %v3515_v3 = vadd.f32 %v3514_v27, %v1631_v15  ;;  %v600_v27 = vld [vmem:[%s7781_s27 + $0xa78] sm:$0xff] }
 0x3b8   : > { %v1792_v43 = vunpack.c.h.bf16 %v772_v60 }
 0x3b9   : > { %v9904_v52 = vsel %vm4426_vm8, %v6336_v39, %v9812_v54  ;;  %v9908_v20 = vsel %vm4426_vm8, %v6257_v59, %v9792_v28  ;;  %3144 = vadd.xlane.f32.xlu1 %v3143_v16  ;;  %3080 = vadd.xlane.f32.xlu0 %v3079_v5  ;;  %v1605_v28 = vunpack.c.l.bf16 %v679_v17  ;;  %v742_v17 = vld [vmem:[%s7781_s27 + $0xee8] sm:$0xff]  ;;  %v1697_v39 = vunpack.c.l.bf16 %v725_v40  ;;  %v567_v40 = vld [vmem:[%s7781_s27 + $0x970] sm:$0xff] }
 0x3ba   : > { %v3497_v55 = vpop.xlane.xlu1 %3496  ;;  %v3445_v21 = vpop.xlane.xlu0 %3444  ;;  %v1665_v59 = vunpack.c.l.bf16 %v709_v12  ;;  %v1732_v7 = vunpack.c.h.bf16 %v742_v17 }
 0x3bb   : > { %v6484_v1 = vrot.slane %v3497_v55, %v7972_v23  ;;  %v6420_v54 = vrot.slane %v3445_v21, %v7991_v50 }
 0x3bd   : > { %v9920_v16 = vsel %vm4412_vm6, %v6484_v1, %v9825_v44  ;;  %v9924_v5 = vsel %vm11370_vm1, %v6420_v54, %v9808_v48  ;;  %3264 = vadd.xlane.f32.xlu1 %v3263_v31  ;;  %3212 = vadd.xlane.f32.xlu0 %v3211_v9  ;;  %v3463_v44 = vadd.f32 %v3462_v49, %v1605_v28  ;;  %v3646_v48 = vsel %vm1805_vm0, %v1698_v14, 0.0  ;;  %v584_v49 = vld [vmem:[%s7781_s27 + $0x9f8] sm:$0xff] }
 0x3be   : > { %v3629_v18 = vpop.xlane.xlu1 %3628  ;;  %v3565_v63 = vpop.xlane.xlu0 %3564  ;;  %v1758_v31 = vunpack.c.h.bf16 %v755_v62  ;;  %v3647_v12 = vadd.f32 %v3646_v48, %v1697_v39  ;;  %v3583_v1 = vadd.f32 %v3582_v19, %v1665_v59  ;;  %v1731_v54 = vunpack.c.l.bf16 %v742_v17  ;;  %v647_v48 = vld [vmem:[%s7781_s27 + $0xbf0] sm:$0xff] }
 0x3bf   : > { %v6647_v37 = vrot.slane %v3629_v18, %v7969_v22  ;;  %v6568_v4 = vrot.slane %v3565_v63, %v7969_v22  ;;  %v1448_v17 = vunpack.c.h.bf16 %v600_v27  ;;  %v1791_v39 = vunpack.c.l.bf16 %v772_v60 }
 0x3c0   : > { %v3834_v19 = vsel %vm1805_vm0, %v1792_v43, 0.0  ;;  %v1541_v43 = vunpack.c.l.bf16 %v647_v48 }
 0x3c1   : > { %v9933_v9 = vsel %vm4419_vm7, %v6647_v37, %v9839_v51  ;;  %v9937_v35 = vsel %vm4419_vm7, %v6568_v4, %v9821_v41  ;;  %3396 = vadd.xlane.f32.xlu1 %v3395_v57  ;;  %3332 = vadd.xlane.f32.xlu0 %v3331_v42  ;;  %v1757_v51 = vunpack.c.l.bf16 %v755_v62  ;;  %v3766_v41 = vsel %vm1805_vm0, %v1758_v31, 0.0 }
 0x3c2   : > { %v3749_v26 = vpop.xlane.xlu1 %3748  ;;  %v3697_v11 = vpop.xlane.xlu0 %3696  ;;  %v1382_v57 = vunpack.c.h.bf16 %v567_v40  ;;  %v1416_v37 = vunpack.c.h.bf16 %v584_v49 }
 0x3c3   : > { %v6795_v55 = vrot.slane %v3749_v26, %v7962_v13  ;;  %v6731_v21 = vrot.slane %v3697_v11, %v7996_v56  ;;  %v3714_v13 = vsel %vm1805_vm0, %v1732_v7, 0.0  ;;  %v3767_v18 = vadd.f32 %v3766_v41, %v1757_v51  ;;  %v630_v7 = vld [vmem:[%s7781_s27 + $0xb68] sm:$0xff] }
 0x3c4   : > { %v3715_v63 = vadd.f32 %v3714_v13, %v1731_v54  ;;  %v1447_v11 = vunpack.c.l.bf16 %v600_v27  ;;  %v1542_v51 = vunpack.c.h.bf16 %v647_v48  ;;  %v1508_v41 = vunpack.c.h.bf16 %v630_v7  ;;  %v680_v54 = vld [vmem:[%s7781_s27 + $0xcf8] sm:$0xff]  ;;  %v663_v27 = vld [vmem:[%s7781_s27 + $0xc70] sm:$0xff] }
 0x3c5   : > { %v9947_v15 = vsel %vm4405_vm5, %v6795_v55, %v9852_v45  ;;  %v9951_v28 = vsel %vm4426_vm8, %v6731_v21, %v9835_v58  ;;  %3516 = vadd.xlane.f32.xlu1 %v3515_v3  ;;  %3464 = vadd.xlane.f32.xlu0 %v3463_v44  ;;  %v1381_v58 = vunpack.c.l.bf16 %v567_v40  ;;  %v3014_v44 = vsel %vm1805_vm0, %v1382_v57, 0.0  ;;  %vm11375_vm5 = vmmov %vm11370_vm1 }
 0x3c6   : > { %v2945_v14 = vpop.xlane.xlu1 %2944  ;;  %v3817_v42 = vpop.xlane.xlu0 %3816  ;;  %v3146_v55 = vsel %vm1805_vm0, %v1448_v17, 0.0  ;;  %v3082_v21 = vsel %vm1805_vm0, %v1416_v37, 0.0  ;;  %v1574_v17 = vunpack.c.h.bf16 %v663_v27  ;;  %vm11381_vm1 = vmmov %vm11376_vm2 }
 0x3c7   : > { %v5803_v62 = vrot.slane %v2945_v14, %v8027_v38  ;;  %v6879_v45 = vrot.slane %v3817_v42, %v7972_v23  ;;  %v3015_v40 = vadd.f32 %v3014_v44, %v1381_v58  ;;  %v3147_v42 = vadd.f32 %v3146_v55, %v1447_v11 }
 0x3c8   : > { %v3266_v58 = vsel %vm1805_vm0, %v1508_v41, 0.0 }
 0x3c9   : > { %v9960_v4 = vsel %vm4454_vm12, %v5803_v62, %v9868_v32  ;;  %v9964_v3 = vsel %vm4412_vm6, %v6879_v45, %v9848_v30  ;;  %3648 = vadd.xlane.f32.xlu1 %v3647_v12  ;;  %3584 = vadd.xlane.f32.xlu0 %v3583_v1  ;;  %v1415_v30 = vunpack.c.l.bf16 %v584_v49  ;;  %v3835_v1 = vadd.f32 %v3834_v19, %v1791_v39  ;;  %v710_v39 = vld [vmem:[%s7781_s27 + $0xde8] sm:$0xff] }
 0x3ca   : > { %v3065_v59 = vpop.xlane.xlu1 %3064  ;;  %v2997_v31 = vpop.xlane.xlu0 %2996  ;;  %v1507_v62 = vunpack.c.l.bf16 %v630_v7  ;;  %v1608_v45 = vunpack.c.h.bf16 %v680_v54  ;;  %v1668_v55 = vunpack.c.h.bf16 %v710_v39 }
 0x3cb   : > { %v5951_v26 = vrot.slane %v3065_v59, %v8018_v29  ;;  %v5867_v32 = vrot.slane %v2997_v31, %v7991_v50  ;;  %v1607_v31 = vunpack.c.l.bf16 %v680_v54 }
 0x3cc   : > { %v3267_v7 = vadd.f32 %v3266_v58, %v1507_v62  ;;  %v3586_v58 = vsel %vm1805_vm0, %v1668_v55, 0.0 }
 0x3cd   : > { %v9976_v60 = vsel %vm4440_vm10, %v5951_v26, %v9881_v47  ;;  %v9980_v12 = vsel %vm11375_vm5, %v5867_v32, %v9864_v25  ;;  %3768 = vadd.xlane.f32.xlu1 %v3767_v18  ;;  %3716 = vadd.xlane.f32.xlu0 %v3715_v63  ;;  %v3083_v47 = vadd.f32 %v3082_v21, %v1415_v30  ;;  %v3334_v25 = vsel %vm1805_vm0, %v1542_v51, 0.0  ;;  %v7045_v32 = vld [vmem:[%s11343_s1 + $0x1e8] sm:$0xff]  ;;  %v743_v21 = vld [vmem:[%s7781_s27 + $0xef0] sm:$0xff]  ;;  %v7044_v51 = vld [vmem:[%s11343_s1 + $0x1e0] sm:$0xff] }
 0x3ce   : > { %v3197_v13 = vpop.xlane.xlu1 %3196  ;;  %v3129_v57 = vpop.xlane.xlu0 %3128  ;;  %v3335_v19 = vadd.f32 %v3334_v25, %v1541_v43  ;;  %v1573_v26 = vunpack.c.l.bf16 %v663_v27  ;;  %7262 = vmatprep.subr.mxu0 %v7045_v32  ;;  %v1734_v43 = vunpack.c.h.bf16 %v743_v21  ;;  %v7037_v25 = vld [vmem:[%s11343_s1 + $0x1a8] sm:$0xff]  ;;  %v7032_v32 = vld [vmem:[%s11343_s1 + $0x180] sm:$0xff]  ;;  %vm11382_vm5 = vmmov %vm11377_vm3 }
 0x3cf   : > { %v6114_v49 = vrot.slane %v3197_v13, %v8013_v24  ;;  %v6030_v14 = vrot.slane %v3129_v57, %v8018_v29  ;;  %v726_v13 = vld [vmem:[%s7781_s27 + $0xe68] sm:$0xff]  ;;  %7263 = vmatpush1.msra.mxu0 %v7044_v51 }
 0x3d1   : > { %v9989_v18 = vsel %vm11376_vm2, %v6114_v49, %v9895_v2  ;;  %v9993_v63 = vsel %vm4440_vm10, %v6030_v14, %v9877_v46  ;;  %3016 = vadd.xlane.f32.xlu1 %v3015_v40  ;;  %3836 = vadd.xlane.f32.xlu0 %v3835_v1  ;;  %v693_v2 = vld [vmem:[%s7781_s27 + $0xd60] sm:$0xff]  ;;  %v3466_v46 = vsel %vm1805_vm0, %v1608_v45, 0.0  ;;  %v3398_v40 = vsel %vm1805_vm0, %v1574_v17, 0.0  ;;  %v7041_v1 = vld [vmem:[%s11343_s1 + $0x1c8] sm:$0xff] }
 0x3d2   : > { %v3317_v37 = vpop.xlane.xlu1 %3316  ;;  %v3249_v44 = vpop.xlane.xlu0 %3248  ;;  %v1634_v54 = vunpack.c.h.bf16 %v693_v2  ;;  %v3467_v27 = vadd.f32 %v3466_v46, %v1607_v31  ;;  %v7040_v49 = vld [vmem:[%s11343_s1 + $0x1c0] sm:$0xff]  ;;  %v3399_v14 = vadd.f32 %v3398_v40, %v1573_v26  ;;  %7264 = vmatprep.subr.mxu0 %v7041_v1  ;;  %v1700_v17 = vunpack.c.h.bf16 %v726_v13  ;;  %v10060_v1 = vld [vmem:[%s7781_s27 + $0xb70] sm:$0xff] }
 0x3d3   : > { %v6262_v48 = vrot.slane %v3317_v37, %v7991_v50  ;;  %v6178_v59 = vrot.slane %v3249_v44, %v7996_v56  ;;  %v773_v37 = vld [vmem:[%s7781_s27 + $0xfe0] sm:$0xff]  ;;  %7265 = vmatpush1.msra.mxu0 %v7040_v49  ;;  %v1733_v31 = vunpack.c.l.bf16 %v743_v21  ;;  %v1699_v46 = vunpack.c.l.bf16 %v726_v13  ;;  %v10066_v13 = vld [vmem:[%s7781_s27 + $0x978] sm:$0xff] }
 0x3d4   : > { %v7036_v44 = vld [vmem:[%s11343_s1 + $0x1a0] sm:$0xff]  ;;  %7266 = vmatprep.subr.mxu0 %v7037_v25  ;;  %v1794_v26 = vunpack.c.h.bf16 %v773_v37  ;;  %v3650_v21 = vsel %vm1805_vm0, %v1700_v17, 0.0  ;;  %v7025_v25 = vld [vmem:[%s11343_s1 + $0x148] sm:$0xff] }
 0x3d5   : > { %v10006_v11 = vsel %vm11377_vm3, %v6262_v48, %v9908_v20  ;;  %v10010_v30 = vsel %vm4426_vm8, %v6178_v59, %v9891_v33  ;;  %3148 = vadd.xlane.f32.xlu1 %v3147_v42  ;;  %3084 = vadd.xlane.f32.xlu0 %v3083_v47  ;;  %v1667_v42 = vunpack.c.l.bf16 %v710_v39  ;;  %v1633_v47 = vunpack.c.l.bf16 %v693_v2  ;;  %v756_v59 = vld [vmem:[%s7781_s27 + $0xf58] sm:$0xff]  ;;  %v7033_v2 = vld [vmem:[%s11343_s1 + $0x188] sm:$0xff]  ;;  %v7028_v49 = vld [vmem:[%s11343_s1 + $0x160] sm:$0xff] }
 0x3d6   : > { %v3449_v20 = vpop.xlane.xlu1 %3448  ;;  %v3381_v41 = vpop.xlane.xlu0 %3380  ;;  %7267 = vmatpush1.msra.mxu0 %v7036_v44  ;;  %v1760_v51 = vunpack.c.h.bf16 %v756_v59  ;;  %v1384_v44 = vunpack.c.h.bf16 %v10066_v13 }
 0x3d7   : > { %v6425_v33 = vrot.slane %v3449_v20, %v8018_v29  ;;  %v6341_v57 = vrot.slane %v3381_v41, %v7991_v50  ;;  %v7029_v20 = vld [vmem:[%s11343_s1 + $0x168] sm:$0xff]  ;;  %7268 = vmatprep.subr.mxu0 %v7033_v2 }
 0x3d8   : > { %7269 = vmatpush1.msra.mxu0 %v7032_v32  ;;  %v7169_v32 = vld [vmem:[%s11343_s1 + $0x5c8] sm:$0xff] }
 0x3d9   : > { %v10031_v62 = vsel %vm4440_vm10, %v6425_v33, %v9924_v5  ;;  %v10035_v45 = vsel %vm11378_vm4, %v6341_v57, %v9904_v52  ;;  %3336 = vadd.xlane.f32.xlu1 %v3335_v19  ;;  %3268 = vadd.xlane.f32.xlu0 %v3267_v7  ;;  %v3518_v5 = vsel %vm1805_vm0, %v1634_v54, 0.0  ;;  %v3587_v19 = vadd.f32 %v3586_v58, %v1667_v42  ;;  %vm11384_vm4 = vmmov %vm11377_vm3 }
 0x3da   : > { %v3569_v39 = vpop.xlane.xlu1 %3568  ;;  %v10042_v48 = vpop.xlane.xlu0 %3500  ;;  %v3718_v7 = vsel %vm1805_vm0, %v1734_v43, 0.0  ;;  %v3519_v55 = vadd.f32 %v3518_v5, %v1633_v47  ;;  %v3838_v42 = vsel %vm1805_vm0, %v1794_v26, 0.0  ;;  %v1759_v47 = vunpack.c.l.bf16 %v756_v59  ;;  %7270 = vmatprep.subr.mxu0 %v7029_v20  ;;  %v7024_v5 = vld [vmem:[%s11343_s1 + $0x140] sm:$0xff]  ;;  %v7021_v26 = vld [vmem:[%s11343_s1 + $0x128] sm:$0xff] }
 0x3db   : > { %v6573_v52 = vrot.slane %v3569_v39, %v7996_v56  ;;  %v3719_v57 = vadd.f32 %v3718_v7, %v1733_v31  ;;  %v1510_v43 = vunpack.c.h.bf16 %v10060_v1  ;;  %v10089_v39 = vld [vmem:[%s7781_s27 + $0xc78] sm:$0xff]  ;;  %7271 = vmatpush1.msra.mxu0 %v7028_v49  ;;  %v7172_v31 = vld [vmem:[%s11343_s1 + $0x5e0] sm:$0xff] }
 0x3dc   : > { %7272 = vmatprep.subr.mxu0 %v7025_v25  ;;  %v7168_v20 = vld [vmem:[%s11343_s1 + $0x5c0] sm:$0xff]  ;;  %v1575_v25 = vunpack.c.l.bf16 %v10089_v39 }
 0x3dd   : > { %v10056_v40 = vsel %vm4426_vm8, %v6573_v52, %v9937_v35  ;;  %3468 = vadd.xlane.f32.xlu1 %v3467_v27  ;;  %3400 = vadd.xlane.f32.xlu0 %v3399_v14  ;;  %v1793_v27 = vunpack.c.l.bf16 %v773_v37  ;;  %v3651_v14 = vadd.f32 %v3650_v21, %v1699_v46  ;;  %v3770_v37 = vsel %vm1805_vm0, %v1760_v51, 0.0 }
 0x3de   : > { %v3701_v41 = vpop.xlane.xlu1 %3700  ;;  %v3633_v54 = vpop.xlane.xlu0 %3632  ;;  %v1509_v46 = vunpack.c.l.bf16 %v10060_v1  ;;  %v3270_v21 = vsel %vm1805_vm0, %v1510_v43, 0.0  ;;  %v1383_v51 = vunpack.c.l.bf16 %v10066_v13  ;;  %7273 = vmatpush1.msra.mxu0 %v7024_v5  ;;  %v7020_v1 = vld [vmem:[%s11343_s1 + $0x120] sm:$0xff]  ;;  %v3018_v13 = vsel %vm1805_vm0, %v1384_v44, 0.0  ;;  %v7161_v44 = vld [vmem:[%s11343_s1 + $0x588] sm:$0xff] }
 0x3df   : > { %v6736_v35 = vrot.slane %v3701_v41, %v7991_v50  ;;  %v6652_v33 = vrot.slane %v3633_v54, %v7996_v56  ;;  %v3839_v7 = vadd.f32 %v3838_v42, %v1793_v27  ;;  %v7017_v27 = vld [vmem:[%s11343_s1 + $0x108] sm:$0xff]  ;;  %7274 = vmatprep.subr.mxu0 %v7021_v26  ;;  %v7012_v26 = vld [vmem:[%s11343_s1 + $0xe0] sm:$0xff] }
 0x3e0   : > { %v3271_v43 = vadd.f32 %v3270_v21, %v1509_v46  ;;  %7275 = vmatpush1.msra.mxu0 %v7020_v1  ;;  %v3019_v5 = vadd.f32 %v3018_v13, %v1383_v51  ;;  %v10181_v51 = vld [vmem:[%s7781_s27 + $0xef8] sm:$0xff]  ;;  %v7009_v1 = vld [vmem:[%s11343_s1 + $0xc8] sm:$0xff] }
 0x3e1   : > { %v10080_v58 = vsel %vm11379_vm9, %v6736_v35, %v9951_v28  ;;  %v10084_v17 = vsel %vm4426_vm8, %v6652_v33, %v9933_v9  ;;  %3588 = vadd.xlane.f32.xlu1 %v3587_v19  ;;  %3520 = vadd.xlane.f32.xlu0 %v3519_v55  ;;  %v7173_v28 = vld [vmem:[%s11343_s1 + $0x5e8] sm:$0xff]  ;;  %v10098_v9 = vld [vmem:[%s7781_s27 + $0xbf8] sm:$0xff]  ;;  %v3771_v55 = vadd.f32 %v3770_v37, %v1759_v47  ;;  %v10132_v33 = vld [vmem:[%s7781_s27 + $0xdf0] sm:$0xff] }
 0x3e2   : > { %v3821_v59 = vpop.xlane.xlu1 %3820  ;;  %v3753_v52 = vpop.xlane.xlu0 %3752  ;;  %7333 = vmatprep.subr.mxu1 %v7173_v28  ;;  %v1544_v35 = vunpack.c.h.bf16 %v10098_v9  ;;  %v7016_v37 = vld [vmem:[%s11343_s1 + $0x100] sm:$0xff]  ;;  %7276 = vmatprep.subr.mxu0 %v7017_v27 }
 0x3e3   : > { %v6884_v2 = vrot.slane %v3821_v59, %v7969_v22  ;;  %v6800_v19 = vrot.slane %v3753_v52, %v7972_v23  ;;  %7334 = vmatpush1.msra.mxu1 %v7172_v31  ;;  %v1576_v23 = vunpack.c.h.bf16 %v10089_v39  ;;  %v1543_v59 = vunpack.c.l.bf16 %v10098_v9  ;;  %v7013_v39 = vld [vmem:[%s11343_s1 + $0xe8] sm:$0xff]  ;;  %v7160_v31 = vld [vmem:[%s11343_s1 + $0x580] sm:$0xff]  ;;  %7277 = vmatpush1.msra.mxu0 %v7016_v37 }
 0x3e4   : > { %7335 = vmatprep.subr.mxu1 %v7169_v32  ;;  %v1670_v52 = vunpack.c.h.bf16 %v10132_v33  ;;  %7278 = vmatprep.subr.mxu0 %v7013_v39  ;;  %v7005_v37 = vld [vmem:[%s11343_s1 + $0xa8] sm:$0xff] }
 0x3e5   : > { %v10123_v41 = vsel %vm4419_vm7, %v6884_v2, %v9964_v3  ;;  %v10127_v54 = vsel %vm4412_vm6, %v6800_v19, %v9947_v15  ;;  %3720 = vadd.xlane.f32.xlu1 %v3719_v57  ;;  %3652 = vadd.xlane.f32.xlu0 %v3651_v14  ;;  %v7165_v3 = vld [vmem:[%s11343_s1 + $0x5a8] sm:$0xff]  ;;  %v7164_v57 = vld [vmem:[%s11343_s1 + $0x5a0] sm:$0xff]  ;;  %v3402_v28 = vsel %vm1805_vm0, %v1576_v23, 0.0  ;;  %v3338_v19 = vsel %vm1805_vm0, %v1544_v35, 0.0  ;;  %v10186_v23 = vld [vmem:[%s7781_s27 + $0xe70] sm:$0xff] }
 0x3e6   : > { %v3001_v49 = vpop.xlane.xlu1 %3000  ;;  %v2949_v42 = vpop.xlane.xlu0 %2948  ;;  %v10141_v15 = vld [vmem:[%s7781_s27 + $0xd68] sm:$0xff]  ;;  %7336 = vmatpush1.msra.mxu1 %v7168_v20  ;;  %v7156_v20 = vld [vmem:[%s11343_s1 + $0x560] sm:$0xff]  ;;  %v3339_v13 = vadd.f32 %v3338_v19, %v1543_v59  ;;  %v1669_v35 = vunpack.c.l.bf16 %v10132_v33  ;;  %v3590_v27 = vsel %vm1805_vm0, %v1670_v52, 0.0  ;;  %7279 = vmatpush1.msra.mxu0 %v7012_v26  ;;  %vm11380_vm6 = vmmov %vm11376_vm2 }
 0x3e7   : > { %v5872_v14 = vrot.slane %v3001_v49, %v8018_v29  ;;  %v5808_v47 = vrot.slane %v2949_v42, %v8023_v34  ;;  %7337 = vmatprep.subr.mxu1 %v7165_v3  ;;  %v1636_v46 = vunpack.c.h.bf16 %v10141_v15  ;;  %v1635_v3 = vunpack.c.l.bf16 %v10141_v15  ;;  %v10198_v49 = vld [vmem:[%s7781_s27 + $0xfe8] sm:$0xff]  ;;  %v7008_v42 = vld [vmem:[%s11343_s1 + $0xc0] sm:$0xff]  ;;  %7280 = vmatprep.subr.mxu0 %v7009_v1  ;;  %v10254_v1 = vld [vmem:[%s7781_s27 + $0xd70] sm:$0xff] }
 0x3e8   : > { %7338 = vmatpush1.msra.mxu1 %v7164_v57  ;;  %v7153_v57 = vld [vmem:[%s11343_s1 + $0x548] sm:$0xff]  ;;  %v1796_v59 = vunpack.c.h.bf16 %v10198_v49  ;;  %7281 = vmatpush1.msra.mxu0 %v7008_v42  ;;  %v7004_v52 = vld [vmem:[%s11343_s1 + $0xa0] sm:$0xff]  ;;  %vm11383_vm2 = vmmov %vm11381_vm1 }
 0x3e9   : > { %v10166_v2 = vsel %vm4440_vm10, %v5872_v14, %v9980_v12  ;;  %v10170_v9 = vsel %vm4461_vm13, %v5808_v47, %v9960_v4  ;;  %3840 = vadd.xlane.f32.xlu1 %v3839_v7  ;;  %3772 = vadd.xlane.f32.xlu0 %v3771_v55  ;;  %v7157_v12 = vld [vmem:[%s11343_s1 + $0x568] sm:$0xff]  ;;  %v3403_v55 = vadd.f32 %v3402_v28, %v1575_v25  ;;  %v3522_v15 = vsel %vm1805_vm0, %v1636_v46, 0.0  ;;  %v10217_v25 = vld [vmem:[%s7781_s27 + $0xf60] sm:$0xff] }
 0x3ea   : > { %v3133_v32 = vpop.xlane.xlu1 %3132  ;;  %v3069_v21 = vpop.xlane.xlu0 %3068  ;;  %7339 = vmatprep.subr.mxu1 %v7161_v44  ;;  %v1736_v47 = vunpack.c.h.bf16 %v10181_v51  ;;  %v7149_v39 = vld [vmem:[%s11343_s1 + $0x528] sm:$0xff]  ;;  %v3523_v19 = vadd.f32 %v3522_v15, %v1635_v3  ;;  %v1735_v46 = vunpack.c.l.bf16 %v10181_v51  ;;  %v1762_v26 = vunpack.c.h.bf16 %v10217_v25  ;;  %7282 = vmatprep.subr.mxu0 %v7005_v37 }
 0x3eb   : > { %v6035_v4 = vrot.slane %v3133_v32, %v8013_v24  ;;  %v5956_v7 = vrot.slane %v3069_v21, %v8013_v24  ;;  %7340 = vmatpush1.msra.mxu1 %v7160_v31  ;;  %v3591_v31 = vadd.f32 %v3590_v27, %v1669_v35  ;;  %v7148_v32 = vld [vmem:[%s11343_s1 + $0x520] sm:$0xff]  ;;  %7283 = vmatpush1.msra.mxu0 %v7004_v52  ;;  %v3842_v42 = vsel %vm1805_vm0, %v1796_v59, 0.0  ;;  %v6997_v15 = vld [vmem:[%s11343_s1 + $0x68] sm:$0xff]  ;;  %v10297_v59 = vld [vmem:[%s7781_s27 + $0xe78] sm:$0xff] }
 0x3ec   : > { %7341 = vmatprep.subr.mxu1 %v7157_v12  ;;  %v7001_v12 = vld [vmem:[%s11343_s1 + $0x88] sm:$0xff] }
 0x3ed   : > { %v10208_v14 = vsel %vm11380_vm6, %v6035_v4, %v9993_v63  ;;  %v10212_v33 = vsel %vm11381_vm1, %v5956_v7, %v9976_v60  ;;  %3272 = vadd.xlane.f32.xlu1 %v3271_v43  ;;  %3020 = vadd.xlane.f32.xlu0 %v3019_v5  ;;  %v7152_v63 = vld [vmem:[%s11343_s1 + $0x540] sm:$0xff]  ;;  %v1702_v60 = vunpack.c.h.bf16 %v10186_v23  ;;  %v3722_v4 = vsel %vm1805_vm0, %v1736_v47, 0.0  ;;  %v6993_v52 = vld [vmem:[%s11343_s1 + $0x48] sm:$0xff]  ;;  %vm11388_vm6 = vmmov %vm11377_vm3 }
 0x3ee   : > { %v3253_v44 = vpop.xlane.xlu1 %3252  ;;  %v3201_v28 = vpop.xlane.xlu0 %3200  ;;  %7342 = vmatpush1.msra.mxu1 %v7156_v20  ;;  %v1701_v7 = vunpack.c.l.bf16 %v10186_v23  ;;  %v7000_v20 = vld [vmem:[%s11343_s1 + $0x80] sm:$0xff]  ;;  %7284 = vmatprep.subr.mxu0 %v7001_v12  ;;  %v6489_v47 = vrot.slane %v10042_v48, %v7969_v22  ;;  %v3723_v37 = vadd.f32 %v3722_v4, %v1735_v46 }
 0x3ef   : > { %v6183_v43 = vrot.slane %v3253_v44, %v7991_v50  ;;  %v6119_v5 = vrot.slane %v3201_v28, %v8027_v38  ;;  %7343 = vmatprep.subr.mxu1 %v7153_v57  ;;  %v1761_v57 = vunpack.c.l.bf16 %v10217_v25  ;;  %v1638_v44 = vunpack.c.h.bf16 %v10254_v1  ;;  %7285 = vmatpush1.msra.mxu0 %v7000_v20  ;;  %v6996_v25 = vld [vmem:[%s11343_s1 + $0x60] sm:$0xff]  ;;  %v7141_v28 = vld [vmem:[%s11343_s1 + $0x4e8] sm:$0xff] }
 0x3f0   : > { %7344 = vmatpush1.msra.mxu1 %v7152_v63  ;;  %v3774_v63 = vsel %vm1805_vm0, %v1762_v26, 0.0  ;;  %7286 = vmatprep.subr.mxu0 %v6997_v15  ;;  %v6992_v4 = vld [vmem:[%s11343_s1 + $0x40] sm:$0xff]  ;;  %v6490_v20 = vsel %vm4419_vm7, %v6489_v47, %v9920_v16 }
 0x3f1   : > { %v10245_v21 = vsel %vm11382_vm5, %v6183_v43, %v10010_v30  ;;  %v10249_v51 = vsel %vm4454_vm12, %v6119_v5, %v9989_v18  ;;  %3404 = vadd.xlane.f32.xlu1 %v3403_v55  ;;  %3340 = vadd.xlane.f32.xlu0 %v3339_v13  ;;  %v7145_v30 = vld [vmem:[%s11343_s1 + $0x508] sm:$0xff]  ;;  %v3654_v18 = vsel %vm1805_vm0, %v1702_v60, 0.0  ;;  %v1795_v55 = vunpack.c.l.bf16 %v10198_v49  ;;  %v10265_v13 = vld [vmem:[%s7781_s27 + $0xb78] sm:$0xff]  ;;  %v7144_v49 = vld [vmem:[%s11343_s1 + $0x500] sm:$0xff] }
 0x3f2   : > { %v3385_v35 = vpop.xlane.xlu1 %3384  ;;  %v3321_v27 = vpop.xlane.xlu0 %3320  ;;  %7345 = vmatprep.subr.mxu1 %v7149_v39  ;;  %v3655_v43 = vadd.f32 %v3654_v18, %v1701_v7  ;;  %v1512_v5 = vunpack.c.h.bf16 %v10265_v13  ;;  %v3775_v12 = vadd.f32 %v3774_v63, %v1761_v57  ;;  %7287 = vmatpush1.msra.mxu0 %v6996_v25  ;;  %v7137_v7 = vld [vmem:[%s11343_s1 + $0x4c8] sm:$0xff]  ;;  %v7136_v18 = vld [vmem:[%s11343_s1 + $0x4c0] sm:$0xff]  ;;  %vm11390_vm5 = vmmov %vm11377_vm3 }
 0x3f3   : > { %v6346_v23 = vrot.slane %v3385_v35, %v8018_v29  ;;  %v6267_v3 = vrot.slane %v3321_v27, %v8018_v29  ;;  %7346 = vmatpush1.msra.mxu1 %v7148_v32  ;;  %v3843_v26 = vadd.f32 %v3842_v42, %v1795_v55  ;;  %v1637_v32 = vunpack.c.l.bf16 %v10254_v1  ;;  %7288 = vmatprep.subr.mxu0 %v6993_v52  ;;  %v6989_v27 = vld [vmem:[%s11343_s1 + $0x28] sm:$0xff]  ;;  %v6988_v42 = vld [vmem:[%s11343_s1 + $0x20] sm:$0xff] }
 0x3f4   : > { %7347 = vmatprep.subr.mxu1 %v7145_v30  ;;  %v3526_v30 = vsel %vm1805_vm0, %v1638_v44, 0.0  ;;  %v1511_v35 = vunpack.c.l.bf16 %v10265_v13  ;;  %v1704_v1 = vunpack.c.h.bf16 %v10297_v59  ;;  %v3274_v13 = vsel %vm1805_vm0, %v1512_v5, 0.0  ;;  %v7133_v57 = vld [vmem:[%s11343_s1 + $0x4a8] sm:$0xff]  ;;  %7289 = vmatpush1.msra.mxu0 %v6992_v4 }
 0x3f5   : > { %v10289_v60 = vsel %vm4440_vm10, %v6346_v23, %v10035_v45  ;;  %v10293_v48 = vsel %vm4440_vm10, %v6267_v3, %v10006_v11  ;;  %3592 = vadd.xlane.f32.xlu1 %v3591_v31  ;;  %3524 = vadd.xlane.f32.xlu0 %v3523_v19  ;;  %v7140_v45 = vld [vmem:[%s11343_s1 + $0x4e0] sm:$0xff]  ;;  %v10306_v11 = vld [vmem:[%s7781_s27 + $0xdf8] sm:$0xff]  ;;  %v10338_v3 = vld [vmem:[%s7781_s27 + $0xff0] sm:$0xff]  ;;  %v3527_v63 = vadd.f32 %v3526_v30, %v1637_v32  ;;  %v1703_v44 = vunpack.c.l.bf16 %v10297_v59 }
 0x3f6   : > { %v3505_v39 = vpop.xlane.xlu1 %3504  ;;  %v3453_v46 = vpop.xlane.xlu0 %3452  ;;  %7348 = vmatpush1.msra.mxu1 %v7144_v49  ;;  %v1672_v23 = vunpack.c.h.bf16 %v10306_v11  ;;  %7290 = vmatprep.subr.mxu0 %v6989_v27  ;;  %v6985_v25 = vld [vmem:[%s11343_s1 + $0x8] sm:$0xff]  ;;  %v3658_v5 = vsel %vm1805_vm0, %v1704_v1, 0.0  ;;  %v1671_v52 = vunpack.c.l.bf16 %v10306_v11  ;;  %v6984_v59 = vld [vmem:[%s11343_s1] sm:$0xff]  ;;  %v10378_v32 = vld [vmem:[%s7781_s27 + $0xf70] sm:$0xff] }
 0x3f7   : > { %v6494_v31 = vrot.slane %v3505_v39, %v7996_v56  ;;  %v6430_v19 = vrot.slane %v3453_v46, %v8013_v24  ;;  %7349 = vmatprep.subr.mxu1 %v7141_v28  ;;  %v7132_v28 = vld [vmem:[%s11343_s1 + $0x4a0] sm:$0xff]  ;;  %7291 = vmatpush1.msra.mxu0 %v6988_v42  ;;  %v7129_v39 = vld [vmem:[%s11343_s1 + $0x488] sm:$0xff]  ;;  %v3659_v30 = vadd.f32 %v3658_v5, %v1703_v44 }
 0x3f8   : > { %7350 = vmatpush1.msra.mxu1 %v7140_v45  ;;  %v1798_v45 = vunpack.c.h.bf16 %v10338_v3  ;;  %v7109_v4 = vld [vmem:[%s11343_s1 + $0x3e8] sm:$0xff]  ;;  %7292 = vmatprep.subr.mxu0 %v6985_v25  ;;  %v7108_v1 = vld [vmem:[%s11343_s1 + $0x3e0] sm:$0xff]  ;;  %v10424_v25 = vld [vmem:[%s7781_s27 + $0xf78] sm:$0xff] }
 0x3f9   : > { %v10329_v55 = vsel %vm4426_vm8, %v6494_v31, %v6490_v20  ;;  %v10333_v16 = vsel %vm11383_vm2, %v6430_v19, %v10031_v62  ;;  %3724 = vadd.xlane.f32.xlu1 %v3723_v37  ;;  %3656 = vadd.xlane.f32.xlu0 %v3655_v43  ;;  %v10347_v62 = vld [vmem:[%s7781_s27 + $0xf68] sm:$0xff]  ;;  %v3275_v43 = vadd.f32 %v3274_v13, %v1511_v35  ;;  %v3594_v31 = vsel %vm1805_vm0, %v1672_v23, 0.0  ;;  %v7124_v42 = vld [vmem:[%s11343_s1 + $0x460] sm:$0xff] }
 0x3fa   : > { %v3637_v15 = vpop.xlane.xlu1 %3636  ;;  %v3573_v49 = vpop.xlane.xlu0 %3572  ;;  %7351 = vmatprep.subr.mxu1 %v7137_v7  ;;  %v1764_v19 = vunpack.c.h.bf16 %v10347_v62  ;;  %v1797_v35 = vunpack.c.l.bf16 %v10338_v3  ;;  %7293 = vmatpush1.msra.mxu0 %v6984_v59  ;;  %v7125_v27 = vld [vmem:[%s11343_s1 + $0x468] sm:$0xff]  ;;  %v3846_v13 = vsel %vm1805_vm0, %v1798_v45, 0.0  ;;  %v1766_v23 = vunpack.c.h.bf16 %v10378_v32 }
 0x3fb   : > { %v6657_v47 = vrot.slane %v3637_v15, %v7991_v50  ;;  %v6578_v37 = vrot.slane %v3573_v49, %v7991_v50  ;;  %7352 = vmatpush1.msra.mxu1 %v7136_v18  ;;  %v3595_v18 = vadd.f32 %v3594_v31, %v1671_v52  ;;  %7294 = vmatprep.subr.mxu0 %v7109_v4  ;;  %v7105_v3 = vld [vmem:[%s11343_s1 + $0x3c8] sm:$0xff]  ;;  %v7120_v52 = vld [vmem:[%s11343_s1 + $0x440] sm:$0xff]  ;;  %v1765_v59 = vunpack.c.l.bf16 %v10378_v32 }
 0x3fc   : > { %7353 = vmatprep.subr.mxu1 %v7133_v57  ;;  %v3778_v49 = vsel %vm1805_vm0, %v1764_v19, 0.0  ;;  %7295 = vmatpush2.msra.mxu0 %v7108_v1  ;;  %v7101_v5 = vld [vmem:[%s11343_s1 + $0x3a8] sm:$0xff]  ;;  %v7100_v19 = vld [vmem:[%s11343_s1 + $0x3a0] sm:$0xff] }
 0x3fd   : > { %v10369_v46 = vsel %vm11377_vm3, %v6657_v47, %v10084_v17  ;;  %v10373_v11 = vsel %vm11384_vm4, %v6578_v37, %v10056_v40  ;;  %3844 = vadd.xlane.f32.xlu1 %v3843_v26  ;;  %3776 = vadd.xlane.f32.xlu0 %v3775_v12  ;;  %v7128_v17 = vld [vmem:[%s11343_s1 + $0x480] sm:$0xff]  ;;  %v10387_v40 = vld [vmem:[%s7781_s27 + $0xd78] sm:$0xff]  ;;  %v7117_v4 = vld [vmem:[%s11343_s1 + $0x428] sm:$0xff] }
 0x3fe   : > { %v3757_v7 = vpop.xlane.xlu1 %3756  ;;  %v3705_v20 = vpop.xlane.xlu0 %3704  ;;  %7354 = vmatpush1.msra.mxu1 %v7132_v28  ;;  %v7104_v47 = vld [vmem:[%s11343_s1 + $0x3c0] sm:$0xff]  ;;  %v3847_v28 = vadd.f32 %v3846_v13, %v1797_v35  ;;  %7296 = vmatprep.subr.mxu0 %v7105_v3  ;;  %v1639_v31 = vunpack.c.l.bf16 %v10387_v40 }
 0x3ff   : > { %v6805_v26 = vrot.slane %v3757_v7, %v7969_v22  ;;  %v6741_v12 = vrot.slane %v3705_v20, %v8018_v29  ;;  %7355 = vmatprep.subr.mxu1 %v7129_v39  ;;  %v1763_v22 = vunpack.c.l.bf16 %v10347_v62  ;;  %v1640_v62 = vunpack.c.h.bf16 %v10387_v40  ;;  %7297 = vmatpush2.msra.mxu0 %v7104_v47  ;;  %v7097_v40 = vld [vmem:[%s11343_s1 + $0x388] sm:$0xff]  ;;  %v7096_v1 = vld [vmem:[%s11343_s1 + $0x380] sm:$0xff] }
 0x400   : > { %7356 = vmatpush1.msra.mxu1 %v7128_v17  ;;  %v3782_v39 = vsel %vm1805_vm0, %v1766_v23, 0.0  ;;  %v1768_v20 = vunpack.c.h.bf16 %v10424_v25  ;;  %7298 = vmatprep.subr.mxu0 %v7101_v5  ;;  %v7093_v23 = vld [vmem:[%s11343_s1 + $0x368] sm:$0xff]  ;;  %v7112_v3 = vld [vmem:[%s11343_s1 + $0x400] sm:$0xff] }
 0x401   : > { %v10409_v57 = vsel %vm4419_vm7, %v6805_v26, %v10127_v54  ;;  %v10413_v15 = vsel %vm4440_vm10, %v6741_v12, %v10080_v58  ;;  %3528 = vadd.xlane.f32.xlu1 %v3527_v63  ;;  %3276 = vadd.xlane.f32.xlu0 %v3275_v43  ;;  %v7121_v54 = vld [vmem:[%s11343_s1 + $0x448] sm:$0xff]  ;;  %v10429_v43 = vld [vmem:[%s7781_s27 + $0xff8] sm:$0xff]  ;;  %v3779_v45 = vadd.f32 %v3778_v49, %v1763_v22  ;;  %v3530_v7 = vsel %vm1805_vm0, %v1640_v62, 0.0  ;;  %v7116_v26 = vld [vmem:[%s11343_s1 + $0x420] sm:$0xff] }
 0x402   : > { %v2953_v37 = vpop.xlane.xlu1 %2952  ;;  %v3825_v44 = vpop.xlane.xlu0 %3824  ;;  %7357 = vmatprep.subr.mxu1 %v7125_v27  ;;  %v1800_v35 = vunpack.c.h.bf16 %v10429_v43  ;;  %7299 = vmatpush2.msra.mxu0 %v7100_v19  ;;  %v7113_v27 = vld [vmem:[%s11343_s1 + $0x408] sm:$0xff]  ;;  %v3531_v13 = vadd.f32 %v3530_v7, %v1639_v31  ;;  %v1767_v22 = vunpack.c.l.bf16 %v10424_v25  ;;  %vm11385_vm7 = vmmov %vm11381_vm1  ;;  %v3786_v62 = vsel %vm1805_vm0, %v1768_v20, 0.0  ;;  %v7088_v5 = vld [vmem:[%s11343_s1 + $0x340] sm:$0xff] }
 0x403   : > { %v5813_v58 = vrot.slane %v2953_v37, %v8049_v10  ;;  %v6889_v63 = vrot.slane %v3825_v44, %v7996_v56  ;;  %7358 = vmatpush1.msra.mxu1 %v7124_v42  ;;  %7300 = vmatprep.subr.mxu0 %v7097_v40  ;;  %v1799_v47 = vunpack.c.l.bf16 %v10429_v43  ;;  %v7237_v37 = vld [vmem:[%s11343_s1 + $0x7e8] sm:$0xff]  ;;  %v7232_v19 = vld [vmem:[%s11343_s1 + $0x7c0] sm:$0xff] }
 0x404   : > { %7359 = vmatprep.subr.mxu1 %v7121_v54  ;;  %v7092_v54 = vld [vmem:[%s11343_s1 + $0x360] sm:$0xff]  ;;  %v3850_v25 = vsel %vm1805_vm0, %v1800_v35, 0.0  ;;  %7301 = vmatpush2.msra.mxu0 %v7096_v1  ;;  %v3787_v43 = vadd.f32 %v3786_v62, %v1767_v22  ;;  %v7085_v31 = vld [vmem:[%s11343_s1 + $0x328] sm:$0xff]  ;;  %vm11386_vm0 = vmmov %vm11381_vm1 }
 0x405   : > { %v10448_v17 = vsel %vm4468_vm14, %v5813_v58, %v10170_v9  ;;  %v10452_v32 = vsel %vm4426_vm8, %v6889_v63, %v10123_v41  ;;  %3660 = vadd.xlane.f32.xlu1 %v3659_v30  ;;  %3596 = vadd.xlane.f32.xlu0 %v3595_v18  ;;  %v3783_v18 = vadd.f32 %v3782_v39, %v1765_v59  ;;  %v7089_v63 = vld [vmem:[%s11343_s1 + $0x348] sm:$0xff]  ;;  %v7084_v20 = vld [vmem:[%s11343_s1 + $0x320] sm:$0xff]  ;;  %vm11387_vm9 = vmmov %vm11386_vm0 }
 0x406   : > { %v3073_v9 = vpop.xlane.xlu1 %3072  ;;  %v3005_v12 = vpop.xlane.xlu0 %3004  ;;  %7360 = vmatpush1.msra.mxu1 %v7120_v52  ;;  %7302 = vmatprep.subr.mxu0 %v7093_v23  ;;  %v7233_v52 = vld [vmem:[%s11343_s1 + $0x7c8] sm:$0xff]  ;;  %v3851_v39 = vadd.f32 %v3850_v25, %v1799_v47  ;;  %v7076_v22 = vld [vmem:[%s11343_s1 + $0x2e0] sm:$0xff]  ;;  %vm11389_vm1 = vmmov %vm11386_vm0 }
 0x407   : > { %v5961_v41 = vrot.slane %v3073_v9, %v8027_v38  ;;  %v5877_v30 = vrot.slane %v3005_v12, %v8013_v24  ;;  %7361 = vmatprep.subr.mxu1 %v7117_v4  ;;  %7303 = vmatpush2.msra.mxu0 %v7092_v54  ;;  %v7229_v40 = vld [vmem:[%s11343_s1 + $0x7a8] sm:$0xff]  ;;  %v7228_v9 = vld [vmem:[%s11343_s1 + $0x7a0] sm:$0xff]  ;;  %vm11392_vm2 = vmmov %vm11386_vm0 }
 0x408   : > { %7362 = vmatpush1.msra.mxu1 %v7116_v26  ;;  %7304 = vmatprep.subr.mxu0 %v7089_v63  ;;  %v7081_v26 = vld [vmem:[%s11343_s1 + $0x308] sm:$0xff]  ;;  %v7220_v62 = vld [vmem:[%s11343_s1 + $0x760] sm:$0xff]  ;;  %vm11393_vm3 = vmmov %vm11386_vm0 }
 0x409   : > { %v10480_v42 = vsel %vm4454_vm12, %v5961_v41, %v10212_v33  ;;  %v10484_v49 = vsel %vm11385_vm7, %v5877_v30, %v10166_v2  ;;  %3848 = vadd.xlane.f32.xlu1 %v3847_v28  ;;  %3780 = vadd.xlane.f32.xlu0 %v3779_v45  ;;  %v7236_v28 = vld [vmem:[%s11343_s1 + $0x7e0] sm:$0xff]  ;;  %v7225_v30 = vld [vmem:[%s11343_s1 + $0x788] sm:$0xff]  ;;  %vm6934_vm7 = vcmask 1045509  }
 0x40a   : > { %v3205_v33 = vpop.xlane.xlu1 %3204  ;;  %v3137_v44 = vpop.xlane.xlu0 %3136  ;;  %7363 = vmatprep.subr.mxu1 %v7113_v27  ;;  %7305 = vmatpush2.msra.mxu0 %v7088_v5  ;;  %v7080_v41 = vld [vmem:[%s11343_s1 + $0x300] sm:$0xff]  ;;  %v7221_v23 = vld [vmem:[%s11343_s1 + $0x768] sm:$0xff] }
 0x40b   : > { %v6124_v2 = vrot.slane %v3205_v33, %v8023_v34  ;;  %v6040_v58 = vrot.slane %v3137_v44, %v8027_v38  ;;  %7364 = vmatpush1.msra.mxu1 %v7112_v3  ;;  %7306 = vmatprep.subr.mxu0 %v7085_v31  ;;  %v7073_v3 = vld [vmem:[%s11343_s1 + $0x2c8] sm:$0xff]  ;;  %v7068_v63 = vld [vmem:[%s11343_s1 + $0x2a0] sm:$0xff] }
 0x40c   : > { %7365 = vmatprep.subr.mxu1 %v7237_v37  ;;  %7307 = vmatpush2.msra.mxu0 %v7084_v20  ;;  %v7072_v37 = vld [vmem:[%s11343_s1 + $0x2c0] sm:$0xff]  ;;  %v7217_v33 = vld [vmem:[%s11343_s1 + $0x748] sm:$0xff] }
 0x40d   : > { %v10511_v45 = vsel %vm4461_vm13, %v6124_v2, %v10249_v51  ;;  %v10515_v59 = vsel %vm4454_vm12, %v6040_v58, %v10208_v14  ;;  %3784 = vadd.xlane.f32.xlu1 %v3783_v18  ;;  %3532 = vadd.xlane.f32.xlu0 %v3531_v13  ;;  %v7212_v5 = vld [vmem:[%s11343_s1 + $0x720] sm:$0xff] }
 0x40e   : > { %v3325_v4 = vpop.xlane.xlu1 %3324  ;;  %v3257_v7 = vpop.xlane.xlu0 %3256  ;;  %7366 = vmatpush2.msra.mxu1 %v7236_v28  ;;  %7308 = vmatprep.subr.mxu0 %v7081_v26  ;;  %v7213_v28 = vld [vmem:[%s11343_s1 + $0x728] sm:$0xff]  ;;  %v7064_v31 = vld [vmem:[%s11343_s1 + $0x280] sm:$0xff] }
 0x40f   : > { %v6272_v51 = vrot.slane %v3325_v4, %v8013_v24  ;;  %v6188_v14 = vrot.slane %v3257_v7, %v8018_v29  ;;  %7367 = vmatprep.subr.mxu1 %v7233_v52  ;;  %7309 = vmatpush2.msra.mxu0 %v7080_v41  ;;  %v7060_v20 = vld [vmem:[%s11343_s1 + $0x260] sm:$0xff]  ;;  %v7057_v26 = vld [vmem:[%s11343_s1 + $0x248] sm:$0xff] }
 0x410   : > { %7368 = vmatpush2.msra.mxu1 %v7232_v19  ;;  %v7209_v19 = vld [vmem:[%s11343_s1 + $0x708] sm:$0xff] }
 0x411   : > { %v10539_v12 = vsel %vm11386_vm0, %v6272_v51, %v10293_v48  ;;  %v10543_v35 = vsel %vm4440_vm10, %v6188_v14, %v10245_v21  ;;  %3788 = vadd.xlane.f32.xlu1 %v3787_v43  ;;  %3852 = vadd.xlane.f32.xlu0 %v3851_v39  ;;  %v7077_v48 = vld [vmem:[%s11343_s1 + $0x2e8] sm:$0xff]  ;;  %v7224_v21 = vld [vmem:[%s11343_s1 + $0x780] sm:$0xff] }
 0x412   : > { %v3457_v1 = vpop.xlane.xlu1 %3456  ;;  %v3389_v27 = vpop.xlane.xlu0 %3388  ;;  %7369 = vmatprep.subr.mxu1 %v7229_v40  ;;  %7310 = vmatprep.subr.mxu0 %v7077_v48  ;;  %v7065_v43 = vld [vmem:[%s11343_s1 + $0x288] sm:$0xff] }
 0x413   : > { %v6435_v18 = vrot.slane %v3457_v1, %v8027_v38  ;;  %v6351_v13 = vrot.slane %v3389_v27, %v8013_v24  ;;  %7370 = vmatpush2.msra.mxu1 %v7228_v9  ;;  %7311 = vmatpush2.msra.mxu0 %v7076_v22  ;;  %v7205_v40 = vld [vmem:[%s11343_s1 + $0x6e8] sm:$0xff]  ;;  %v7204_v9 = vld [vmem:[%s11343_s1 + $0x6e0] sm:$0xff] }
 0x414   : > { %7371 = vmatprep.subr.mxu1 %v7225_v30  ;;  %7312 = vmatprep.subr.mxu0 %v7073_v3  ;;  %v7056_v1 = vld [vmem:[%s11343_s1 + $0x240] sm:$0xff]  ;;  %v7201_v27 = vld [vmem:[%s11343_s1 + $0x6c8] sm:$0xff] }
 0x415   : > { %v10573_v47 = vsel %vm4454_vm12, %v6435_v18, %v10333_v16  ;;  %v10577_v54 = vsel %vm11387_vm9, %v6351_v13, %v10289_v60  ;;  %7372 = vmatpush2.msra.mxu1 %v7224_v21  ;;  %v7069_v16 = vld [vmem:[%s11343_s1 + $0x2a8] sm:$0xff]  ;;  %v7216_v60 = vld [vmem:[%s11343_s1 + $0x740] sm:$0xff]  ;;  %7313 = vmatpush2.msra.mxu0 %v7072_v37  ;;  %vm11394_vm9 = vmmov %vm11386_vm0 }
 0x416   : > { %v3577_v44 = vpop.xlane.xlu1 %3576  ;;  %v3509_v25 = vpop.xlane.xlu0 %3508  ;;  %7373 = vmatprep.subr.mxu1 %v7221_v23  ;;  %7314 = vmatprep.subr.mxu0 %v7069_v16  ;;  %v7052_v22 = vld [vmem:[%s11343_s1 + $0x220] sm:$0xff]  ;;  %v7197_v23 = vld [vmem:[%s11343_s1 + $0x6a8] sm:$0xff] }
 0x417   : > { %v6583_v2 = vrot.slane %v3577_v44, %v8018_v29  ;;  %v6499_v58 = vrot.slane %v3509_v25, %v7991_v50  ;;  %7374 = vmatpush2.msra.mxu1 %v7220_v62  ;;  %7315 = vmatpush2.msra.mxu0 %v7068_v63  ;;  %v7049_v3 = vld [vmem:[%s11343_s1 + $0x208] sm:$0xff]  ;;  %v7188_v63 = vld [vmem:[%s11343_s1 + $0x660] sm:$0xff] }
 0x418   : > { %7375 = vmatprep.subr.mxu1 %v7217_v33  ;;  %7316 = vmatprep.subr.mxu0 %v7065_v43  ;;  %v7048_v33 = vld [vmem:[%s11343_s1 + $0x200] sm:$0xff]  ;;  %v7193_v44 = vld [vmem:[%s11343_s1 + $0x688] sm:$0xff] }
 0x419   : > { %v10607_v52 = vsel %vm4440_vm10, %v6583_v2, %v10373_v11  ;;  %v10611_v39 = vsel %vm11388_vm6, %v6499_v58, %v10329_v55  ;;  %7376 = vmatpush2.msra.mxu1 %v7216_v60  ;;  %v7061_v11 = vld [vmem:[%s11343_s1 + $0x268] sm:$0xff]  ;;  %v7208_v55 = vld [vmem:[%s11343_s1 + $0x700] sm:$0xff]  ;;  %7317 = vmatpush2.msra.mxu0 %v7064_v31  ;;  %vm11395_vm6 = vmmov %vm11386_vm0 }
 0x41a   : > { %v3709_v4 = vpop.xlane.xlu1 %3708  ;;  %v3641_v7 = vpop.xlane.xlu0 %3640  ;;  %7377 = vmatprep.subr.mxu1 %v7213_v28  ;;  %7318 = vmatprep.subr.mxu0 %v7061_v11  ;;  %v7189_v58 = vld [vmem:[%s11343_s1 + $0x668] sm:$0xff] }
 0x41b   : > { %v6746_v51 = vrot.slane %v3709_v4, %v8013_v24  ;;  %v6662_v14 = vrot.slane %v3641_v7, %v8018_v29  ;;  %7378 = vmatpush2.msra.mxu1 %v7212_v5  ;;  %7319 = vmatpush2.msra.mxu0 %v7060_v20  ;;  %v7185_v5 = vld [vmem:[%s11343_s1 + $0x648] sm:$0xff] }
 0x41c   : > { %7379 = vmatprep.subr.mxu1 %v7209_v19  ;;  %7320 = vmatprep.subr.mxu0 %v7057_v26  ;;  %v7181_v11 = vld [vmem:[%s11343_s1 + $0x628] sm:$0xff]  ;;  %v7176_v26 = vld [vmem:[%s11343_s1 + $0x600] sm:$0xff] }
 0x41d   : > { %v10641_v41 = vsel %vm11389_vm1, %v6746_v51, %v10413_v15  ;;  %v10645_v30 = vsel %vm4440_vm10, %v6662_v14, %v10369_v46  ;;  %7380 = vmatpush2.msra.mxu1 %v7208_v55  ;;  %v7053_v15 = vld [vmem:[%s11343_s1 + $0x228] sm:$0xff]  ;;  %v7200_v46 = vld [vmem:[%s11343_s1 + $0x6c0] sm:$0xff]  ;;  %7321 = vmatpush2.msra.mxu0 %v7056_v1 }
 0x41e   : > { %v3829_v48 = vpop.xlane.xlu1 %3828  ;;  %v3761_v21 = vpop.xlane.xlu0 %3760  ;;  %7381 = vmatprep.subr.mxu1 %v7205_v40  ;;  %7322 = vmatprep.subr.mxu0 %v7053_v15  ;;  %v7177_v14 = vld [vmem:[%s11343_s1 + $0x608] sm:$0xff] }
 0x41f   : > { %v6894_v18 = vrot.slane %v3829_v48, %v7991_v50  ;;  %v6810_v13 = vrot.slane %v3761_v21, %v7996_v56  ;;  %7382 = vmatpush2.msra.mxu1 %v7204_v9  ;;  %v7196_v56 = vld [vmem:[%s11343_s1 + $0x6a0] sm:$0xff]  ;;  %7323 = vmatpush2.msra.mxu0 %v7052_v22 }
 0x420   : > { %7383 = vmatprep.subr.mxu1 %v7201_v27  ;;  %7324 = vmatprep.subr.mxu0 %v7049_v3 }
 0x421   : > { %v10675_v62 = vsel %vm11390_vm5, %v6894_v18, %v10452_v32  ;;  %v10679_v37 = vsel %vm4426_vm8, %v6810_v13, %v10409_v57  ;;  %7384 = vmatpush2.msra.mxu1 %v7200_v46  ;;  %v7047_v32 = vld [vmem:[%s11343_s1 + $0x1f8] sm:$0xff]  ;;  %v7192_v57 = vld [vmem:[%s11343_s1 + $0x680] sm:$0xff]  ;;  %7325 = vmatpush2.msra.mxu0 %v7048_v33  ;;  %vm11391_vm8 = vmmov %vm11386_vm0 }
 0x422   : > { %v3009_v25 = vpop.xlane.xlu1 %3008  ;;  %v2957_v16 = vpop.xlane.xlu0 %2956  ;;  %7385 = vmatprep.subr.mxu1 %v7197_v23  ;;  %7404 = vmatprep.subr.mxu0 %v7047_v32 }
 0x423   : > { %v5882_v60 = vrot.slane %v3009_v25, %v8027_v38  ;;  %v5818_v2 = vrot.slane %v2957_v16, %v8046_v8  ;;  %7386 = vmatpush2.msra.mxu1 %v7196_v56 }
 0x424   : > { %7387 = vmatprep.subr.mxu1 %v7193_v44 }
 0x425   : > { %v5883_v28 = vsel %vm4454_vm12, %v5882_v60, %v10484_v49  ;;  %v5819_v43 = vsel %vm4475_vm15, %v5818_v2, %v10448_v17  ;;  %7388 = vmatpush2.msra.mxu1 %v7192_v57  ;;  %v7184_v49 = vld [vmem:[%s11343_s1 + $0x640] sm:$0xff] }
 0x426   : > { %v10710_v31 = vsel %vm6932_vm11, %v5819_v43, %v8933_v6  ;;  %v3141_v19 = vpop.xlane.xlu1 %3140  ;;  %v3077_v4 = vpop.xlane.xlu0 %3076  ;;  %7389 = vmatprep.subr.mxu1 %v7189_v58  ;;  %v7180_v6 = vld [vmem:[%s11343_s1 + $0x620] sm:$0xff] }
 0x427   : > { %v6045_v7 = vrot.slane %v3141_v19, %v8023_v34  ;;  %v5966_v17 = vrot.slane %v3077_v4, %v8023_v34  ;;  %7390 = vmatpush2.msra.mxu1 %v7188_v63 }
 0x428   : > { %7391 = vmatprep.subr.mxu1 %v7185_v5 }
 0x429   : > { %v6046_v55 = vsel %vm4461_vm13, %v6045_v7, %v10515_v59  ;;  %v5967_v51 = vsel %vm4461_vm13, %v5966_v17, %v10480_v42  ;;  %7392 = vmatpush2.msra.mxu1 %v7184_v49  ;;  %v7175_v42 = vld [vmem:[%s11343_s1 + $0x5f8] sm:$0xff] }
 0x42a   : > { %v3261_v20 = vpop.xlane.xlu1 %3260  ;;  %v3209_v40 = vpop.xlane.xlu0 %3208  ;;  %7393 = vmatprep.subr.mxu1 %v7181_v11 }
 0x42b   : > { %v6193_v9 = vrot.slane %v3261_v20, %v8013_v24  ;;  %v6129_v1 = vrot.slane %v3209_v40, %v8049_v10  ;;  %7394 = vmatpush2.msra.mxu1 %v7180_v6 }
 0x42c   : > { %7395 = vmatprep.subr.mxu1 %v7177_v14 }
 0x42d   : > { %v6194_v59 = vsel %vm11391_vm8, %v6193_v9, %v10543_v35  ;;  %v6130_v27 = vsel %vm4468_vm14, %v6129_v1, %v10511_v45  ;;  %7396 = vmatpush2.msra.mxu1 %v7176_v26 }
 0x42e   : > { %v3393_v48 = vpop.xlane.xlu1 %3392  ;;  %v3329_v21 = vpop.xlane.xlu0 %3328  ;;  %7475 = vmatprep.subr.mxu1 %v7175_v42 }
 0x42f   : > { %v6356_v15 = vrot.slane %v3393_v48, %v8027_v38  ;;  %v6277_v46 = vrot.slane %v3329_v21, %v8027_v38 }
 0x431   : > { %v6357_v18 = vsel %vm4454_vm12, %v6356_v15, %v10577_v54  ;;  %v6278_v13 = vsel %vm4454_vm12, %v6277_v46, %v10539_v12 }
 0x432   : > { %v3513_v22 = vpop.xlane.xlu1 %3512  ;;  %v3461_v23 = vpop.xlane.xlu0 %3460 }
 0x433   : > { %v6504_v35 = vrot.slane %v3513_v22, %v8018_v29  ;;  %v6440_v45 = vrot.slane %v3461_v23, %v8023_v34 }
 0x435   : > { %v6505_v3 = vsel %vm4440_vm10, %v6504_v35, %v10611_v39  ;;  %v10754_v56 = vsel %vm4461_vm13, %v6440_v45, %v10573_v47 }
 0x436   : > { %v3645_v33 = vpop.xlane.xlu1 %3644  ;;  %v3581_v44 = vpop.xlane.xlu0 %3580 }
 0x437   : > { %v6667_v54 = vrot.slane %v3645_v33, %v8013_v24  ;;  %v6588_v25 = vrot.slane %v3581_v44, %v8013_v24 }
 0x439   : > { %v10760_v12 = vsel %vm11392_vm2, %v6667_v54, %v10645_v30  ;;  %v6589_v16 = vsel %vm11393_vm3, %v6588_v25, %v10607_v52 }
 0x43a   : > { %v3765_v32 = vpop.xlane.xlu1 %3764  ;;  %v3713_v57 = vpop.xlane.xlu0 %3712 }
 0x43b   : > { %v6815_v39 = vrot.slane %v3765_v32, %v7991_v50  ;;  %v6751_v47 = vrot.slane %v3713_v57, %v8027_v38 }
 0x43d   : > { %v6816_v60 = vsel %vm11384_vm4, %v6815_v39, %v10679_v37  ;;  %v10770_v2 = vsel %vm4454_vm12, %v6751_v47, %v10641_v41 }
 0x43e   : > { %v3013_v58 = vpop.xlane.xlu1 %3012  ;;  %v3833_v63 = vpop.xlane.xlu0 %3832 }
 0x43f   : > { %v5887_v30 = vrot.slane %v3013_v58, %v8023_v34  ;;  %v6899_v43 = vrot.slane %v3833_v63, %v8018_v29 }
 0x441   : > { %v10775_v52 = vsel %vm4461_vm13, %v5887_v30, %v5883_v28  ;;  %v10779_v50 = vsel %vm4440_vm10, %v6899_v43, %v10675_v62 }
 0x442   : > { %v3145_v5 = vpop.xlane.xlu1 %3144  ;;  %v3081_v19 = vpop.xlane.xlu0 %3080 }
 0x443   : > { %v6050_v37 = vrot.slane %v3145_v5, %v8049_v10  ;;  %v5971_v41 = vrot.slane %v3081_v19, %v8049_v10 }
 0x445   : > { %v6051_v4 = vsel %vm4468_vm14, %v6050_v37, %v6046_v55  ;;  %v5972_v49 = vsel %vm4468_vm14, %v5971_v41, %v5967_v51 }
 0x446   : > { %v3265_v7 = vpop.xlane.xlu1 %3264  ;;  %v3213_v17 = vpop.xlane.xlu0 %3212 }
 0x447   : > { %v6198_v11 = vrot.slane %v3265_v7, %v8027_v38  ;;  %v6134_v28 = vrot.slane %v3213_v17, %v8046_v8 }
 0x449   : > { %v10788_v62 = vsel %vm4454_vm12, %v6198_v11, %v6194_v59  ;;  %v6135_v6 = vsel %vm4475_vm15, %v6134_v28, %v6130_v27 }
 0x44a   : > { %v3397_v14 = vpop.xlane.xlu1 %3396  ;;  %v3333_v20 = vpop.xlane.xlu0 %3332  ;;  %v6944_v40 = vsel %vm6934_vm7, %v6135_v6, %v10710_v31 }
 0x44b   : > { %v6361_v55 = vrot.slane %v3397_v14, %v8023_v34  ;;  %v6282_v51 = vrot.slane %v3333_v20, %v8023_v34 }
 0x44d   : > { %v6362_v26 = vsel %vm4461_vm13, %v6361_v55, %v6357_v18  ;;  %v6283_v9 = vsel %vm4461_vm13, %v6282_v51, %v6278_v13 }
 0x44e   : > { %v3517_v1 = vpop.xlane.xlu1 %3516  ;;  %v3465_v42 = vpop.xlane.xlu0 %3464 }
 0x44f   : > { %v6509_v59 = vrot.slane %v3517_v1, %v8013_v24  ;;  %v6445_v39 = vrot.slane %v3465_v42, %v8049_v10 }
 0x451   : > { %v10799_v48 = vsel %vm11386_vm0, %v6509_v59, %v6505_v3  ;;  %v6446_v63 = vsel %vm4468_vm14, %v6445_v39, %v10754_v56 }
 0x452   : > { %v10801_v27 = vpop.xlane.xlu1 %3648  ;;  %v3585_v21 = vpop.xlane.xlu0 %3584 }
 0x453   : > { %v6593_v31 = vrot.slane %v3585_v21, %v8027_v38 }
 0x455   : > { %v10805_v15 = vsel %vm4454_vm12, %v6593_v31, %v6589_v16 }
 0x456   : > { %v3769_v46 = vpop.xlane.xlu1 %3768  ;;  %v3717_v22 = vpop.xlane.xlu0 %3716 }
 0x457   : > { %v6820_v18 = vrot.slane %v3769_v46, %v8018_v29 }
 0x459   : > { %v10809_v13 = vsel %vm4440_vm10, %v6820_v18, %v6816_v60  ;;  %vm6936_vm10 = vcmask 1046534   ;;  %v6756_v18 = vrot.slane %v3717_v22, %v8023_v34 }
 0x45a   : > { %v3017_v23 = vpop.xlane.xlu1 %3016  ;;  %v10811_v35 = vpop.xlane.xlu0 %3836 }
 0x45e   : > { %v3149_v45 = vpop.xlane.xlu1 %3148  ;;  %v3085_v3 = vpop.xlane.xlu0 %3084 }
 0x45f   : > { %v6055_v33 = vrot.slane %v3149_v45, %v8046_v8  ;;  %v5976_v44 = vrot.slane %v3085_v3, %v8046_v8 }
 0x461   : > { %v6056_v54 = vsel %vm4475_vm15, %v6055_v33, %v6051_v4  ;;  %v5977_v25 = vsel %vm4475_vm15, %v5976_v44, %v5972_v49  ;;  %v5892_v4 = vrot.slane %v3017_v23, %v8049_v10 }
 0x462   : > { %v6935_v16 = vsel %vm6934_vm7, %v6056_v54, %v9134_v53  ;;  %v6957_v29 = vsel %vm6932_vm11, %v5977_v25, %v9067_v61  ;;  %v3337_v32 = vpop.xlane.xlu1 %3336  ;;  %v3269_v57 = vpop.xlane.xlu0 %3268 }
 0x463   : > { %v5893_v56 = vsel %vm4468_vm14, %v5892_v4, %v10775_v52  ;;  %v6287_v11 = vrot.slane %v3337_v32, %v8049_v10 }
 0x465   : > { %v6288_v1 = vsel %vm4468_vm14, %v6287_v11, %v6283_v9 }
 0x466   : > { %v3469_v47 = vpop.xlane.xlu1 %3468  ;;  %v3401_v60 = vpop.xlane.xlu0 %3400 }
 0x467   : > { %v6450_v58 = vrot.slane %v3469_v47, %v8046_v8  ;;  %v6366_v28 = vrot.slane %v3401_v60, %v8049_v10 }
 0x469   : > { %v6451_v30 = vsel %vm4475_vm15, %v6450_v58, %v6446_v63  ;;  %v6367_v42 = vsel %vm4468_vm14, %v6366_v28, %v6362_v26  ;;  %v6757_v26 = vsel %vm4461_vm13, %v6756_v18, %v10770_v2  ;;  %v6672_v2 = vrot.slane %v10801_v27, %v8027_v38 }
 0x46a   : > { %v3589_v43 = vpop.xlane.xlu1 %3588  ;;  %v10826_v5 = vpop.xlane.xlu0 %3520  ;;  %v6945_v53 = vsel %vm6936_vm10, %v6451_v30, %v6944_v40 }
 0x46b   : > { %v6598_v58 = vrot.slane %v3589_v43, %v8023_v34  ;;  %v6673_v27 = vsel %vm4454_vm12, %v6672_v2, %v10760_v12 }
 0x46d   : > { %v6599_v43 = vsel %vm4461_vm13, %v6598_v58, %v10805_v15 }
 0x46e   : > { %v3721_v61 = vpop.xlane.xlu1 %3720  ;;  %v3653_v19 = vpop.xlane.xlu0 %3652 }
 0x46f   : > { %v6761_v23 = vrot.slane %v3721_v61, %v8049_v10  ;;  %v6677_v63 = vrot.slane %v3653_v19, %v8023_v34 }
 0x471   : > { %v6762_v33 = vsel %vm4468_vm14, %v6761_v23, %v6757_v26  ;;  %v6678_v19 = vsel %vm4461_vm13, %v6677_v63, %v6673_v27 }
 0x472   : > { %v10829_v37 = vpop.xlane.xlu1 %3840  ;;  %v10831_v41 = vpop.xlane.xlu0 %3772 }
 0x476   : > { %v3273_v49 = vpop.xlane.xlu1 %3272  ;;  %v3021_v7 = vpop.xlane.xlu0 %3020 }
 0x477   : > { %v5897_v17 = vrot.slane %v3021_v7, %v8046_v8  ;;  %v6208_v32 = vrot.slane %v3273_v49, %v8049_v10 }
 0x479   : > { %v5898_v6 = vsel %vm4475_vm15, %v5897_v17, %v5893_v56 }
 0x47a   : > { %v6950_v14 = vsel %vm6932_vm11, %v5898_v6, %v9000_v0  ;;  %v3405_v20 = vpop.xlane.xlu1 %3404  ;;  %v3341_v40 = vpop.xlane.xlu0 %3340  ;;  %vm6938_vm11 = vcmask 1047559  }
 0x47b   : > { %v6371_v55 = vrot.slane %v3405_v20, %v8046_v8  ;;  %v6292_v51 = vrot.slane %v3341_v40, %v8046_v8 }
 0x47d   : > { %v6372_v52 = vsel %vm4475_vm15, %v6371_v55, %v6367_v42  ;;  %v6293_v59 = vsel %vm4475_vm15, %v6292_v51, %v6288_v1  ;;  %v7046_v42 = vld [vmem:[%s11343_s1 + $0x1f0] sm:$0xff] }
 0x47e   : > { %v3593_v21 = vpop.xlane.xlu1 %3592  ;;  %v10848_v31 = vpop.xlane.xlu0 %3524  ;;  %v6937_v46 = vsel %vm6936_vm10, %v6372_v52, %v6935_v16  ;;  %v6958_v0 = vsel %vm6934_vm7, %v6293_v59, %v6957_v29  ;;  %v6203_v16 = vrot.slane %v3269_v57, %v8023_v34  ;;  %v6904_v59 = vrot.slane %v10811_v35, %v8013_v24 }
 0x47f   : > { %v6519_v51 = vrot.slane %v10848_v31, %v8023_v34  ;;  %v7042_v31 = vld [vmem:[%s11343_s1 + $0x1d0] sm:$0xff] }
 0x480   : > { %v6204_v60 = vsel %vm4461_vm13, %v6203_v16, %v10788_v62 }
 0x481   : > { %v6209_v57 = vsel %vm4468_vm14, %v6208_v32, %v6204_v60  ;;  %v7030_v60 = vld [vmem:[%s11343_s1 + $0x170] sm:$0xff] }
 0x482   : > { %v3725_v45 = vpop.xlane.xlu1 %3724  ;;  %v3657_v3 = vpop.xlane.xlu0 %3656 }
 0x483   : > { %v6766_v9 = vrot.slane %v3725_v45, %v8046_v8  ;;  %v6682_v61 = vrot.slane %v3657_v3, %v8049_v10 }
 0x485   : > { %v6767_v44 = vsel %vm4475_vm15, %v6766_v9, %v6762_v33  ;;  %v6683_v28 = vsel %vm4468_vm14, %v6682_v61, %v6678_v19  ;;  %v7035_v33 = vld [vmem:[%s11343_s1 + $0x198] sm:$0xff]  ;;  %v7174_v19 = vld [vmem:[%s11343_s1 + $0x5f0] sm:$0xff] }
 0x486   : > { %v10859_v54 = vpop.xlane.xlu1 %3844  ;;  %v10861_v25 = vpop.xlane.xlu0 %3776  ;;  %v6946_v22 = vsel %vm6938_vm11, %v6767_v44, %v6945_v53  ;;  %v6603_v53 = vrot.slane %v3593_v21, %v8049_v10  ;;  %v6825_v21 = vrot.slane %v10831_v41, %v8013_v24  ;;  %v7039_v24 = vld [vmem:[%s11343_s1 + $0x1b8] sm:$0xff] }
 0x487   : > { %v6981_v29 = vmul.f32 0.0069444445, %v6946_v22  ;;  %v6830_v18 = vrot.slane %v10861_v25, %v8027_v38  ;;  %v6914_v45 = vrot.slane %v10859_v54, %v8023_v34  ;;  %v7034_v25 = vld [vmem:[%s11343_s1 + $0x190] sm:$0xff]  ;;  %v7023_v61 = vld [vmem:[%s11343_s1 + $0x138] sm:$0xff] }
 0x488   : > { %v6604_v11 = vsel %vm4468_vm14, %v6603_v53, %v6599_v43  ;;  %v6826_v44 = vsel %vm11395_vm6, %v6825_v21, %v10809_v13  ;;  %v7019_v43 = vld [vmem:[%s11343_s1 + $0x118] sm:$0xff]  ;;  %v7002_v21 = vld [vmem:[%s11343_s1 + $0x90] sm:$0xff] }
 0x489   : > { %7326 = vmatprep.mubr.f32.mxu0 %v6981_v29  ;;  %v6831_v22 = vsel %vm4454_vm12, %v6830_v18, %v6826_v44  ;;  %v6998_v18 = vld [vmem:[%s11343_s1 + $0x70] sm:$0xff]  ;;  %v7111_v44 = vld [vmem:[%s11343_s1 + $0x3f8] sm:$0xff] }
 0x48a   : > { %v3529_v39 = vpop.xlane.xlu1 %3528  ;;  %v3277_v47 = vpop.xlane.xlu0 %3276 }
 0x48b   : > { %v6213_v30 = vrot.slane %v3277_v47, %v8046_v8  ;;  %v6524_v52 = vrot.slane %v3529_v39, %v8049_v10 }
 0x48d   : > { %v6214_v4 = vsel %vm4475_vm15, %v6213_v30, %v6209_v57  ;;  %v7027_v30 = vld [vmem:[%s11343_s1 + $0x158] sm:$0xff] }
 0x48e   : > { %v6951_v49 = vsel %vm6934_vm7, %v6214_v4, %v6950_v14  ;;  %v3661_v62 = vpop.xlane.xlu1 %3660  ;;  %v3597_v7 = vpop.xlane.xlu0 %3596  ;;  %v6514_v14 = vrot.slane %v10826_v5, %v8027_v38  ;;  %v7043_v5 = vld [vmem:[%s11343_s1 + $0x1d8] sm:$0xff] }
 0x48f   : > { %v6687_v17 = vrot.slane %v3661_v62, %v8046_v8  ;;  %v6608_v56 = vrot.slane %v3597_v7, %v8046_v8  ;;  %v7022_v62 = vld [vmem:[%s11343_s1 + $0x130] sm:$0xff] }
 0x491   : > { %v6688_v6 = vsel %vm4475_vm15, %v6687_v17, %v6683_v28  ;;  %v6609_v12 = vsel %vm4475_vm15, %v6608_v56, %v6604_v11  ;;  %v7018_v17 = vld [vmem:[%s11343_s1 + $0x110] sm:$0xff]  ;;  %v7171_v56 = vld [vmem:[%s11343_s1 + $0x5d8] sm:$0xff] }
 0x492   : > { %v3849_v20 = vpop.xlane.xlu1 %3848  ;;  %v3781_v40 = vpop.xlane.xlu0 %3780  ;;  %v6939_v15 = vsel %vm6938_vm11, %v6688_v6, %v6937_v46  ;;  %v6959_v55 = vsel %vm6936_vm10, %v6609_v12, %v6958_v0  ;;  %v6515_v46 = vsel %vm4454_vm12, %v6514_v14, %v10799_v48  ;;  %v6909_v0 = vrot.slane %v10829_v37, %v8027_v38  ;;  %v7038_v38 = vld [vmem:[%s11343_s1 + $0x1b0] sm:$0xff]  ;;  %v7015_v11 = vld [vmem:[%s11343_s1 + $0xf8] sm:$0xff] }
 0x493   : > { %v10895_v1 = vmul.f32 0.0069444445, %v6939_v15  ;;  %v6520_v41 = vsel %vm4461_vm13, %v6519_v51, %v6515_v46  ;;  %v6835_v48 = vrot.slane %v3781_v40, %v8023_v34  ;;  %v6919_v26 = vrot.slane %v3849_v20, %v8049_v10  ;;  %v7170_v28 = vld [vmem:[%s11343_s1 + $0x5d0] sm:$0xff]  ;;  %v7167_v12 = vld [vmem:[%s11343_s1 + $0x5b8] sm:$0xff] }
 0x494   : > { %v6525_v3 = vsel %vm4468_vm14, %v6524_v52, %v6520_v41  ;;  %v6905_v34 = vsel %vm11394_vm9, %v6904_v59, %v10779_v50  ;;  %v7031_v50 = vld [vmem:[%s11343_s1 + $0x178] sm:$0xff]  ;;  %v7014_v6 = vld [vmem:[%s11343_s1 + $0xf0] sm:$0xff] }
 0x495   : > { %7327 = vmatmul.mubr.f32.vlgmr.msra.gmra.mxu0 %v10895_v1  ;;  %v6836_v2 = vsel %vm4461_vm13, %v6835_v48, %v6831_v22  ;;  %v7011_v14 = vld [vmem:[%s11343_s1 + $0xd8] sm:$0xff]  ;;  %v7166_v20 = vld [vmem:[%s11343_s1 + $0x5b0] sm:$0xff] }
 0x496   : > { %7405 = vmatpush1.msra.mxu0 %v7046_v42  ;;  %v3785_v35 = vpop.xlane.xlu1 %3784  ;;  %7468 = vmatprep.mubr.f32.mxu0 %v6981_v29  ;;  %v3533_v23 = vpop.xlane.xlu0 %3532  ;;  %v7010_v40 = vld [vmem:[%s11343_s1 + $0xd0] sm:$0xff]  ;;  %v7163_v15 = vld [vmem:[%s11343_s1 + $0x598] sm:$0xff] }
 0x497   : > { %7406 = vmatprep.subr.mxu0 %v7043_v5  ;;  %v6529_v37 = vrot.slane %v3533_v23, %v8046_v8  ;;  %v6840_v9 = vrot.slane %v3785_v35, %v8049_v10  ;;  %v6910_v10 = vsel %vm4454_vm12, %v6909_v0, %v6905_v34  ;;  %v7162_v51 = vld [vmem:[%s11343_s1 + $0x590] sm:$0xff]  ;;  %v7159_v52 = vld [vmem:[%s11343_s1 + $0x578] sm:$0xff]  ;;  %vm7590_vm12 = vcmask 7168  }
 0x498   : > { %7407 = vmatpush1.msra.mxu0 %v7042_v31  ;;  %v6915_v32 = vsel %vm4461_vm13, %v6914_v45, %v6910_v10  ;;  %v7006_v42 = vld [vmem:[%s11343_s1 + $0xb0] sm:$0xff]  ;;  %v7003_v5 = vld [vmem:[%s11343_s1 + $0x98] sm:$0xff] }
 0x499   : > { %v6530_v54 = vsel %vm4475_vm15, %v6529_v37, %v6525_v3  ;;  %7408 = vmatprep.subr.mxu0 %v7039_v24  ;;  %v6920_v58 = vsel %vm4468_vm14, %v6919_v26, %v6915_v32  ;;  %v6841_v63 = vsel %vm4468_vm14, %v6840_v9, %v6836_v2  ;;  %v7158_v59 = vld [vmem:[%s11343_s1 + $0x570] sm:$0xff]  ;;  %v7155_v31 = vld [vmem:[%s11343_s1 + $0x558] sm:$0xff] }
 0x49a   : > { %7409 = vmatpush1.msra.mxu0 %v7038_v38  ;;  %v3789_v16 = vpop.xlane.xlu1 %3788  ;;  %v3853_v29 = vpop.xlane.xlu0 %3852  ;;  %v6952_v13 = vsel %vm6936_vm10, %v6530_v54, %v6951_v49  ;;  %v6999_v46 = vld [vmem:[%s11343_s1 + $0x78] sm:$0xff]  ;;  %v7154_v0 = vld [vmem:[%s11343_s1 + $0x550] sm:$0xff] }
 0x49b   : > { %v6845_v39 = vrot.slane %v3789_v16, %v8046_v8  ;;  %7410 = vmatprep.subr.mxu0 %v7035_v33  ;;  %v6924_v47 = vrot.slane %v3853_v29, %v8046_v8  ;;  %v7026_v8 = vld [vmem:[%s11343_s1 + $0x150] sm:$0xff]  ;;  %v7151_v35 = vld [vmem:[%s11343_s1 + $0x538] sm:$0xff] }
 0x49c   : > { %7411 = vmatpush1.msra.mxu0 %v7034_v25  ;;  %v6995_v23 = vld [vmem:[%s11343_s1 + $0x58] sm:$0xff]  ;;  %v7150_v24 = vld [vmem:[%s11343_s1 + $0x530] sm:$0xff] }
 0x49d   : > { %v6846_v57 = vsel %vm4475_vm15, %v6845_v39, %v6841_v63  ;;  %7412 = vmatprep.subr.mxu0 %v7031_v50  ;;  %v6925_v53 = vsel %vm4475_vm15, %v6924_v47, %v6920_v58  ;;  %v6994_v41 = vld [vmem:[%s11343_s1 + $0x50] sm:$0xff]  ;;  %v7147_v45 = vld [vmem:[%s11343_s1 + $0x518] sm:$0xff] }
 0x49e   : > { %7413 = vmatpush1.msra.mxu0 %v7030_v60  ;;  %v6960_v4 = vsel %vm6938_vm11, %v6925_v53, %v6959_v55  ;;  %v6953_v27 = vsel %vm6938_vm11, %v6846_v57, %v6952_v13  ;;  %v7007_v55 = vld [vmem:[%s11343_s1 + $0xb8] sm:$0xff]  ;;  %v7146_v37 = vld [vmem:[%s11343_s1 + $0x510] sm:$0xff] }
 0x49f   : > { %7414 = vmatprep.subr.mxu0 %v7027_v30  ;;  %v6983_v49 = vmul.f32 0.0069444445, %v6960_v4  ;;  %v10974_v7 = vmul.f32 0.0069444445, %v6953_v27  ;;  %v6991_v48 = vld [vmem:[%s11343_s1 + $0x38] sm:$0xff]  ;;  %v6990_v38 = vld [vmem:[%s11343_s1 + $0x30] sm:$0xff] }
 0x4a0   : > { %7415 = vmatpush1.msra.mxu0 %v7026_v8  ;;  %v7143_v3 = vld [vmem:[%s11343_s1 + $0x4f8] sm:$0xff]  ;;  %v7142_v9 = vld [vmem:[%s11343_s1 + $0x4f0] sm:$0xff] }
 0x4a1   : > { %7416 = vmatprep.subr.mxu0 %v7023_v61  ;;  %7397 = vmatprep.mubr.f32.mxu1 %v6983_v49  ;;  %v6987_v26 = vld [vmem:[%s11343_s1 + $0x18] sm:$0xff]  ;;  %v6986_v33 = vld [vmem:[%s11343_s1 + $0x10] sm:$0xff] }
 0x4a2   : > { %7417 = vmatpush1.msra.mxu0 %v7022_v62  ;;  %7398 = vmatmul.mubr.f32.vlgmr.msra.gmra.mxu1 %v10974_v7  ;;  %v7139_v34 = vld [vmem:[%s11343_s1 + $0x4d8] sm:$0xff]  ;;  %v7138_v54 = vld [vmem:[%s11343_s1 + $0x4d0] sm:$0xff] }
 0x4a3   : > { %7418 = vmatprep.subr.mxu0 %v7019_v43  ;;  %7476 = vmatpush1.msra.mxu1 %v7174_v19  ;;  %v7110_v25 = vld [vmem:[%s11343_s1 + $0x3f0] sm:$0xff]  ;;  %v7135_v10 = vld [vmem:[%s11343_s1 + $0x4b8] sm:$0xff] }
 0x4a4   : > { %7419 = vmatpush1.msra.mxu0 %v7018_v17  ;;  %7477 = vmatprep.subr.mxu1 %v7171_v56  ;;  %v7107_v22 = vld [vmem:[%s11343_s1 + $0x3d8] sm:$0xff]  ;;  %v7134_v16 = vld [vmem:[%s11343_s1 + $0x4b0] sm:$0xff] }
 0x4a5   : > { %7539 = vmatprep.mubr.f32.mxu1 %v6983_v49  ;;  %7420 = vmatprep.subr.mxu0 %v7015_v11  ;;  %v7106_v29 = vld [vmem:[%s11343_s1 + $0x3d0] sm:$0xff]  ;;  %v7131_v50 = vld [vmem:[%s11343_s1 + $0x498] sm:$0xff] }
 0x4a6   : > { %7478 = vmatpush1.msra.mxu1 %v7170_v28  ;;  %7421 = vmatpush1.msra.mxu0 %v7014_v6  ;;  %v7103_v13 = vld [vmem:[%s11343_s1 + $0x3b8] sm:$0xff]  ;;  %v7130_v32 = vld [vmem:[%s11343_s1 + $0x490] sm:$0xff] }
 0x4a7   : > { %7479 = vmatprep.subr.mxu1 %v7167_v12  ;;  %7422 = vmatprep.subr.mxu0 %v7011_v14  ;;  %v7102_v2 = vld [vmem:[%s11343_s1 + $0x3b0] sm:$0xff]  ;;  %v7127_v39 = vld [vmem:[%s11343_s1 + $0x478] sm:$0xff] }
 0x4a8   : > { %7480 = vmatpush1.msra.mxu1 %v7166_v20  ;;  %7423 = vmatpush1.msra.mxu0 %v7010_v40  ;;  %v7099_v47 = vld [vmem:[%s11343_s1 + $0x398] sm:$0xff]  ;;  %v7126_v60 = vld [vmem:[%s11343_s1 + $0x470] sm:$0xff] }
 0x4a9   : > { %7481 = vmatprep.subr.mxu1 %v7163_v15  ;;  %7424 = vmatprep.subr.mxu0 %v7007_v55  ;;  %v7098_v58 = vld [vmem:[%s11343_s1 + $0x390] sm:$0xff]  ;;  %v7123_v63 = vld [vmem:[%s11343_s1 + $0x458] sm:$0xff] }
 0x4aa   : > { %7482 = vmatpush1.msra.mxu1 %v7162_v51  ;;  %7425 = vmatpush1.msra.mxu0 %v7006_v42  ;;  %v7095_v30 = vld [vmem:[%s11343_s1 + $0x378] sm:$0xff]  ;;  %v7122_v57 = vld [vmem:[%s11343_s1 + $0x450] sm:$0xff] }
 0x4ab   : > { %7483 = vmatprep.subr.mxu1 %v7159_v52  ;;  %7426 = vmatprep.subr.mxu0 %v7003_v5  ;;  %v7094_v8 = vld [vmem:[%s11343_s1 + $0x370] sm:$0xff]  ;;  %v7119_v53 = vld [vmem:[%s11343_s1 + $0x438] sm:$0xff] }
 0x4ac   : > { %7484 = vmatpush1.msra.mxu1 %v7158_v59  ;;  %7427 = vmatpush1.msra.mxu0 %v7002_v21  ;;  %v7091_v61 = vld [vmem:[%s11343_s1 + $0x358] sm:$0xff]  ;;  %v7118_v4 = vld [vmem:[%s11343_s1 + $0x430] sm:$0xff] }
 0x4ad   : > { %7485 = vmatprep.subr.mxu1 %v7155_v31  ;;  %7428 = vmatprep.subr.mxu0 %v6999_v46  ;;  %v7090_v27 = vld [vmem:[%s11343_s1 + $0x350] sm:$0xff]  ;;  %v7115_v49 = vld [vmem:[%s11343_s1 + $0x418] sm:$0xff] }
 0x4ae   : > { %7486 = vmatpush1.msra.mxu1 %v7154_v0  ;;  %7429 = vmatpush1.msra.mxu0 %v6998_v18  ;;  %v7087_v62 = vld [vmem:[%s11343_s1 + $0x338] sm:$0xff]  ;;  %v7114_v43 = vld [vmem:[%s11343_s1 + $0x410] sm:$0xff] }
 0x4af   : > { %7487 = vmatprep.subr.mxu1 %v7151_v35  ;;  %7430 = vmatprep.subr.mxu0 %v6995_v23  ;;  %v7086_v19 = vld [vmem:[%s11343_s1 + $0x330] sm:$0xff]  ;;  %v7239_v17 = vld [vmem:[%s11343_s1 + $0x7f8] sm:$0xff] }
 0x4b0   : > { %7488 = vmatpush1.msra.mxu1 %v7150_v24  ;;  %7431 = vmatpush1.msra.mxu0 %v6994_v41  ;;  %v7083_v56 = vld [vmem:[%s11343_s1 + $0x318] sm:$0xff]  ;;  %v7238_v11 = vld [vmem:[%s11343_s1 + $0x7f0] sm:$0xff] }
 0x4b1   : > { %7489 = vmatprep.subr.mxu1 %v7147_v45  ;;  %7432 = vmatprep.subr.mxu0 %v6991_v48  ;;  %v7082_v28 = vld [vmem:[%s11343_s1 + $0x310] sm:$0xff]  ;;  %v7235_v6 = vld [vmem:[%s11343_s1 + $0x7d8] sm:$0xff] }
 0x4b2   : > { %7490 = vmatpush1.msra.mxu1 %v7146_v37  ;;  %7433 = vmatpush1.msra.mxu0 %v6990_v38  ;;  %v7079_v12 = vld [vmem:[%s11343_s1 + $0x2f8] sm:$0xff]  ;;  %v7234_v14 = vld [vmem:[%s11343_s1 + $0x7d0] sm:$0xff] }
 0x4b3   : > { %7491 = vmatprep.subr.mxu1 %v7143_v3  ;;  %7434 = vmatprep.subr.mxu0 %v6987_v26  ;;  %v7078_v20 = vld [vmem:[%s11343_s1 + $0x2f0] sm:$0xff]  ;;  %v7231_v40 = vld [vmem:[%s11343_s1 + $0x7b8] sm:$0xff] }
 0x4b4   : > { %7492 = vmatpush1.msra.mxu1 %v7142_v9  ;;  %7435 = vmatpush1.msra.mxu0 %v6986_v33  ;;  %v7075_v15 = vld [vmem:[%s11343_s1 + $0x2d8] sm:$0xff]  ;;  %v7230_v55 = vld [vmem:[%s11343_s1 + $0x7b0] sm:$0xff] }
 0x4b5   : > { %7493 = vmatprep.subr.mxu1 %v7139_v34  ;;  %7436 = vmatprep.subr.mxu0 %v7111_v44  ;;  %v7074_v51 = vld [vmem:[%s11343_s1 + $0x2d0] sm:$0xff]  ;;  %v7227_v42 = vld [vmem:[%s11343_s1 + $0x798] sm:$0xff] }
 0x4b6   : > { %7494 = vmatpush1.msra.mxu1 %v7138_v54  ;;  %7437 = vmatpush2.msra.mxu0 %v7110_v25  ;;  %v7071_v52 = vld [vmem:[%s11343_s1 + $0x2b8] sm:$0xff]  ;;  %v7226_v5 = vld [vmem:[%s11343_s1 + $0x790] sm:$0xff] }
 0x4b7   : > { %7495 = vmatprep.subr.mxu1 %v7135_v10  ;;  %7438 = vmatprep.subr.mxu0 %v7107_v22  ;;  %v7070_v59 = vld [vmem:[%s11343_s1 + $0x2b0] sm:$0xff]  ;;  %v7223_v21 = vld [vmem:[%s11343_s1 + $0x778] sm:$0xff] }
 0x4b8   : > { %7496 = vmatpush1.msra.mxu1 %v7134_v16  ;;  %7439 = vmatpush2.msra.mxu0 %v7106_v29  ;;  %v7067_v31 = vld [vmem:[%s11343_s1 + $0x298] sm:$0xff]  ;;  %v7222_v46 = vld [vmem:[%s11343_s1 + $0x770] sm:$0xff] }
 0x4b9   : > { %7497 = vmatprep.subr.mxu1 %v7131_v50  ;;  %7440 = vmatprep.subr.mxu0 %v7103_v13  ;;  %v7066_v0 = vld [vmem:[%s11343_s1 + $0x290] sm:$0xff]  ;;  %v7219_v18 = vld [vmem:[%s11343_s1 + $0x758] sm:$0xff] }
 0x4ba   : > { %7498 = vmatpush1.msra.mxu1 %v7130_v32  ;;  %7441 = vmatpush2.msra.mxu0 %v7102_v2  ;;  %v7063_v35 = vld [vmem:[%s11343_s1 + $0x278] sm:$0xff]  ;;  %v7218_v23 = vld [vmem:[%s11343_s1 + $0x750] sm:$0xff] }
 0x4bb   : > { %7499 = vmatprep.subr.mxu1 %v7127_v39  ;;  %7442 = vmatprep.subr.mxu0 %v7099_v47  ;;  %v7062_v24 = vld [vmem:[%s11343_s1 + $0x270] sm:$0xff]  ;;  %v7215_v41 = vld [vmem:[%s11343_s1 + $0x738] sm:$0xff] }
 0x4bc   : > { %7500 = vmatpush1.msra.mxu1 %v7126_v60  ;;  %7443 = vmatpush2.msra.mxu0 %v7098_v58  ;;  %v7059_v45 = vld [vmem:[%s11343_s1 + $0x258] sm:$0xff]  ;;  %v7214_v48 = vld [vmem:[%s11343_s1 + $0x730] sm:$0xff] }
 0x4bd   : > { %7501 = vmatprep.subr.mxu1 %v7123_v63  ;;  %7444 = vmatprep.subr.mxu0 %v7095_v30  ;;  %v7058_v37 = vld [vmem:[%s11343_s1 + $0x250] sm:$0xff]  ;;  %v7211_v38 = vld [vmem:[%s11343_s1 + $0x718] sm:$0xff]  ;;  %v7248_v63 = vsub.s32 1, %v7928_v36 }
 0x4be   : > { %7502 = vmatpush1.msra.mxu1 %v7122_v57  ;;  %7445 = vmatpush2.msra.mxu0 %v7094_v8  ;;  %v7055_v3 = vld [vmem:[%s11343_s1 + $0x238] sm:$0xff]  ;;  %v7210_v26 = vld [vmem:[%s11343_s1 + $0x710] sm:$0xff]  ;;  %v7244_v57 = vsub.s32 0, %v7928_v36  ;;  %v7240_v8 = vld [vmem:[%s11344_s2] sm:$0xf] }
 0x4bf   : > { %7503 = vmatprep.subr.mxu1 %v7119_v53  ;;  %7446 = vmatprep.subr.mxu0 %v7091_v61  ;;  %v7054_v9 = vld [vmem:[%s11343_s1 + $0x230] sm:$0xff]  ;;  %v7207_v33 = vld [vmem:[%s11343_s1 + $0x6f8] sm:$0xff]  ;;  %v7249_v61 = vrot.slane %v7240_v8, %v7248_v63 }
 0x4c0   : > { %7504 = vmatpush1.msra.mxu1 %v7118_v4  ;;  %7447 = vmatpush2.msra.mxu0 %v7090_v27  ;;  %v7051_v34 = vld [vmem:[%s11343_s1 + $0x218] sm:$0xff]  ;;  %v7206_v44 = vld [vmem:[%s11343_s1 + $0x6f0] sm:$0xff]  ;;  %v7245_v27 = vrot.slane %v7240_v8, %v7244_v57 }
 0x4c1   : > { %7505 = vmatprep.subr.mxu1 %v7115_v49  ;;  %7448 = vmatprep.subr.mxu0 %v7087_v62  ;;  %v7050_v54 = vld [vmem:[%s11343_s1 + $0x210] sm:$0xff]  ;;  %v7203_v25 = vld [vmem:[%s11343_s1 + $0x6d8] sm:$0xff] }
 0x4c2   : > { %7506 = vmatpush1.msra.mxu1 %v7114_v43  ;;  %7449 = vmatpush2.msra.mxu0 %v7086_v19  ;;  %v7202_v10 = vld [vmem:[%s11343_s1 + $0x6d0] sm:$0xff]  ;;  %v7199_v22 = vld [vmem:[%s11343_s1 + $0x6b8] sm:$0xff]  ;;  %v7252_v43 = vsub.s32 2, %v7928_v36 }
 0x4c3   : > { %7507 = vmatprep.subr.mxu1 %v7239_v17  ;;  %7450 = vmatprep.subr.mxu0 %v7083_v56  ;;  %v7198_v16 = vld [vmem:[%s11343_s1 + $0x6b0] sm:$0xff]  ;;  %v7195_v29 = vld [vmem:[%s11343_s1 + $0x698] sm:$0xff] }
 0x4c4   : > { %7508 = vmatpush2.msra.mxu1 %v7238_v11  ;;  %7451 = vmatpush2.msra.mxu0 %v7082_v28  ;;  %v7194_v50 = vld [vmem:[%s11343_s1 + $0x690] sm:$0xff]  ;;  %v7191_v13 = vld [vmem:[%s11343_s1 + $0x678] sm:$0xff]  ;;  %v7253_v28 = vrot.slane %v7240_v8, %v7252_v43 }
 0x4c5   : > { %7509 = vmatprep.subr.mxu1 %v7235_v6  ;;  %7452 = vmatprep.subr.mxu0 %v7079_v12  ;;  %v7187_v32 = vld [vmem:[%s11343_s1 + $0x658] sm:$0xff]  ;;  %v7186_v2 = vld [vmem:[%s11343_s1 + $0x650] sm:$0xff]  ;;  %v7550_v6 = vld [vmem:[%s11345_s3] sm:$0xf] }
 0x4c6   : > { %7510 = vmatpush2.msra.mxu1 %v7234_v14  ;;  %7453 = vmatpush2.msra.mxu0 %v7078_v20  ;;  %v7183_v39 = vld [vmem:[%s11343_s1 + $0x638] sm:$0xff]  ;;  %v7182_v47 = vld [vmem:[%s11343_s1 + $0x630] sm:$0xff]  ;;  %v7559_v14 = vrot.slane %v7550_v6, %v7248_v63 }
 0x4c7   : > { %7511 = vmatprep.subr.mxu1 %v7231_v40  ;;  %7454 = vmatprep.subr.mxu0 %v7075_v15  ;;  %v7179_v60 = vld [vmem:[%s11343_s1 + $0x618] sm:$0xff]  ;;  %v7178_v58 = vld [vmem:[%s11343_s1 + $0x610] sm:$0xff] }
 0x4c8   : > { %7512 = vmatpush2.msra.mxu1 %v7230_v55  ;;  %7455 = vmatpush2.msra.mxu0 %v7074_v51  ;;  %v7555_v55 = vrot.slane %v7550_v6, %v7244_v57 }
 0x4c9   : > { %7513 = vmatprep.subr.mxu1 %v7227_v42  ;;  %7456 = vmatprep.subr.mxu0 %v7071_v52 }
 0x4ca   : > { %7514 = vmatpush2.msra.mxu1 %v7226_v5  ;;  %7457 = vmatpush2.msra.mxu0 %v7070_v59 }
 0x4cb   : > { %7515 = vmatprep.subr.mxu1 %v7223_v21  ;;  %7458 = vmatprep.subr.mxu0 %v7067_v31  ;;  %v7563_v21 = vrot.slane %v7550_v6, %v7252_v43 }
 0x4cc   : > { %7516 = vmatpush2.msra.mxu1 %v7222_v46  ;;  %7459 = vmatpush2.msra.mxu0 %v7066_v0 }
 0x4cd   : > { %7517 = vmatprep.subr.mxu1 %v7219_v18  ;;  %7460 = vmatprep.subr.mxu0 %v7063_v35 }
 0x4ce   : > { %7518 = vmatpush2.msra.mxu1 %v7218_v23  ;;  %7461 = vmatpush2.msra.mxu0 %v7062_v24 }
 0x4cf   : > { %7519 = vmatprep.subr.mxu1 %v7215_v41  ;;  %7462 = vmatprep.subr.mxu0 %v7059_v45 }
 0x4d0   : > { %7520 = vmatpush2.msra.mxu1 %v7214_v48  ;;  %7463 = vmatpush2.msra.mxu0 %v7058_v37  ;;  %v7582_v37 = vstv %s7581_s18 }
 0x4d1   : > { %7521 = vmatprep.subr.mxu1 %v7211_v38  ;;  %7464 = vmatprep.subr.mxu0 %v7055_v3 }
 0x4d2   : > { %7522 = vmatpush2.msra.mxu1 %v7210_v26  ;;  %7465 = vmatpush2.msra.mxu0 %v7054_v9 }
 0x4d3   : > { %7523 = vmatprep.subr.mxu1 %v7207_v33  ;;  %7466 = vmatprep.subr.mxu0 %v7051_v34 }
 0x4d4   : > { %7524 = vmatpush2.msra.mxu1 %v7206_v44  ;;  %7467 = vmatpush2.msra.mxu0 %v7050_v54 }
 0x4d5   : > { %7525 = vmatprep.subr.mxu1 %v7203_v25  ;;  %7469 = vmatmul.mubr.f32.vlgmr.msra.gmra.mxu0 %v10895_v1  ;;  %v7190_v1 = vld [vmem:[%s11343_s1 + $0x670] sm:$0xff] }
 0x4d6   : > { %7526 = vmatpush2.msra.mxu1 %v7202_v10 }
 0x4d7   : > { %7527 = vmatprep.subr.mxu1 %v7199_v22 }
 0x4d8   : > { %7528 = vmatpush2.msra.mxu1 %v7198_v16 }
 0x4d9   : > { %7529 = vmatprep.subr.mxu1 %v7195_v29 }
 0x4da   : > { %7530 = vmatpush2.msra.mxu1 %v7194_v50 }
 0x4db   : > { %7531 = vmatprep.subr.mxu1 %v7191_v13 }
 0x4dc   : > { %7532 = vmatpush2.msra.mxu1 %v7190_v1 }
 0x4dd   : > { %7533 = vmatprep.subr.mxu1 %v7187_v32 }
 0x4de   : > { %7534 = vmatpush2.msra.mxu1 %v7186_v2 }
 0x4df   : > { %7535 = vmatprep.subr.mxu1 %v7183_v39 }
 0x4e0   : > { %7536 = vmatpush2.msra.mxu1 %v7182_v47 }
 0x4e1   : > { %7537 = vmatprep.subr.mxu1 %v7179_v60 }
 0x4e2   : > { %7538 = vmatpush2.msra.mxu1 %v7178_v58 }
 0x4e3   : > { %7540 = vmatmul.mubr.f32.vlgmr.msra.gmra.mxu1 %v10974_v7  ;;  %v7256_v7 = vsub.s32 3, %v7928_v36 }
 0x4e5   : > { %v7257_v20 = vrot.slane %v7240_v8, %v7256_v7  ;;  %v7567_v18 = vrot.slane %v7550_v6, %v7256_v7 }
 0x555   : > { %v7328_v30 = vpop.f32.mrf.mxu0 }
 0x556   : > { %v7329_v19 = vadd.f32 %v7328_v30, %v7245_v27 }
 0x557   : > { %v7330_v4 = vpop.f32.mrf.mxu0 }
 0x558   : > { %v7331_v62 = vadd.f32 %v7330_v4, %v7249_v61 }
 0x562   : > { %v7399_v53 = vpop.f32.mrf.mxu1 }
 0x563   : > { %v7400_v11 = vadd.f32 %v7399_v53, %v7329_v19 }
 0x564   : > { %v7401_v49 = vpop.f32.mrf.mxu1 }
 0x565   : > { %v7402_v17 = vadd.f32 %v7401_v49, %v7331_v62  ;;  %v7546_v15 = vmax.f32 %v7400_v11, 0.0 }
 0x567   : > { %v7547_v12 = vmax.f32 %v7402_v17, 0.0  ;;  %v7572_v31 = vmul.f32 %v7555_v55, %v7546_v15 }
 0x569   : > { %v7573_v52 = vmul.f32 %v7559_v14, %v7547_v12 }
 0x56b   : > { %v7576_v35 = vadd.f32 %v7573_v52, %v7572_v31 }
 0x595   : > { %v7470_v56 = vpop.f32.mrf.mxu0 }
 0x596   : > { %v7471_v51 = vadd.f32 %v7470_v56, %v7253_v28 }
 0x597   : > { %v7472_v40 = vpop.f32.mrf.mxu0 }
 0x598   : > { %v7473_v5 = vadd.f32 %v7472_v40, %v7257_v20 }
 0x5a3   : > { %v7541_v42 = vpop.f32.mrf.mxu1 }
 0x5a4   : > { %v7542_v59 = vadd.f32 %v7541_v42, %v7471_v51 }
 0x5a5   : > { %v7543_v36 = vpop.f32.mrf.mxu1 }
 0x5a6   : > { %v7548_v46 = vmax.f32 %v7542_v59, 0.0  ;;  %v7544_v0 = vadd.f32 %v7543_v36, %v7473_v5 }
 0x5a8   : > { %v7574_v23 = vmul.f32 %v7563_v21, %v7548_v46  ;;  %v7549_v24 = vmax.f32 %v7544_v0, 0.0 }
 0x5aa   : > { %v7577_v41 = vadd.f32 %v7576_v35, %v7574_v23  ;;  %v7575_v45 = vmul.f32 %v7567_v18, %v7549_v24 }
 0x5ac   : > { %v7578_v48 = vadd.f32 %v7577_v41, %v7575_v45 }
 0x5ae   : > { %7579 = vadd.xlane.f32.xlu0 %v7578_v48 }
 0x637   : > { %v7580_v38 = vpop.xlane.xlu0 %7579 }
 0x638   : > { %v7583_v3 = vadd.f32 %v7582_v37, %v7580_v38 }
 0x63a   : > { %v7668_v26 = vmul.f32 -1.442695, %v7583_v3 }
 0x63c   : > { %7696 = vpow2.f32 %v7668_v26 }
 0x649   : > { %v7697_v9 = vpop.eup %7696 }
 0x64a   : > { %v7587_v33 = vadd.f32 1.0, %v7697_v9 }
 0x64c   : > { %7698 = vrcp.f32 %v7587_v33 }
 0x659   : > { %v7699_v34 = vpop.eup %7698 }
 0x65a   : > { %7591 = vst.msk [vmem:[%s256_s25] sm:$0xff] %vm7590_vm12, %v7699_v34 }
 0x65b PF: > { %s16_s22 = sadd.s32 1, %s7722_s22   ;;  %s11396_s20 = smov %s7718_s21 }
 0x65c   : > { %p13_p6 = scmp.ge.s32.totalorder %s16_s22, 4   ;;  %s11397_s21 = smov %s11399_s4 }
 0x65e   :  { %15 = sbr.rel (!%p13_p6) target bundleno = 2 (0x2), region = 78 }

</bundles_post_ra>
